<compile_context>
chip_gen: v6e
topology: v6e:2x2x1
jax: 0.10.0
libtpu: 0.0.40
codegen_flags: <defaults>
</compile_context>

<pallas_src>
import functools

import jax
import jax.numpy as jnp
from jax.experimental import pallas as pl
from jax.experimental.pallas import tpu as pltpu

_EPS = 1e-5  # PyTorch nn.LayerNorm default eps


# ----------------------------------------------------------------------------
# In-kernel math helpers
# ----------------------------------------------------------------------------
def _erf(x):
    # Abramowitz & Stegun 7.1.26 rational approximation (|err| <= ~1.5e-7).
    # Exact divide for the 1/(1+p|x|) term (review: parity over approx recip).
    a1, a2, a3, a4, a5 = (0.254829592, -0.284496736, 1.421413741,
                          -1.453152027, 1.061405429)
    p = 0.3275911
    ax = jnp.abs(x)
    t = 1.0 / (1.0 + p * ax)
    poly = t * (a1 + t * (a2 + t * (a3 + t * (a4 + t * a5))))
    y = 1.0 - poly * jnp.exp(-ax * ax)
    return jnp.where(x >= 0, y, -y)


def _gelu_exact(x):
    # PyTorch nn.GELU() default (erf formulation).
    return 0.5 * x * (1.0 + _erf(x * 0.7071067811865476))


def _layernorm(x, gamma, beta):
    mean = jnp.mean(x, axis=-1, keepdims=True)
    var = jnp.mean((x - mean) ** 2, axis=-1, keepdims=True)
    return (x - mean) * jax.lax.rsqrt(var + _EPS) * gamma + beta


# ----------------------------------------------------------------------------
# Kernel 1: one attention branch per grid step (LayerNorm -> MHSA -> +residual),
# batch folded into the block, branches on a "parallel" grid axis.
# ----------------------------------------------------------------------------
def _attn_branch_kernel(x_ref, g_ref, b_ref, wqkv_ref, bqkv_ref, wo_ref, bo_ref,
                        out_ref, attn_ref, *, batch, tokens, dim, heads):
    hd = dim // heads
    inv_scale = 1.0 / float(hd) ** 0.5           # premultiplied (no divide)

    x = x_ref[0]                                 # (B*n, D) batch-folded block
    xn = _layernorm(x, g_ref[0], b_ref[0])
    # ONE fused Q|K|V projection over all batches and heads (review: replaces
    # 12 narrow K=32,N=8 matmuls per branch with a single (B*n, D)@(D, 3D)).
    qkv = (jnp.dot(xn, wqkv_ref[0], preferred_element_type=jnp.float32)
           + bqkv_ref[0])

    for b in range(batch):                       # tiny static unrolls (B*H)
        r0 = b * tokens
        o = jnp.zeros((tokens, dim), jnp.float32)
        for h in range(heads):
            c = h * hd
            q = qkv[r0:r0 + tokens, c:c + hd]
            k = qkv[r0:r0 + tokens, dim + c:dim + c + hd]
            v = qkv[r0:r0 + tokens, 2 * dim + c:2 * dim + c + hd]
            # q @ k^T without materializing a transpose.
            s = jax.lax.dot_general(q, k, (((1,), (1,)), ((), ())),
                                    preferred_element_type=jnp.float32)
            s = s * inv_scale
            s = s - jnp.max(s, axis=-1, keepdims=True)
            e = jnp.exp(s)
            # Exact normalization (review: returned maps must sum to 1).
            p = e / jnp.sum(e, axis=-1, keepdims=True)
            attn_ref[0, b * heads + h] = p
            ctx = jnp.dot(p, v, preferred_element_type=jnp.float32)
            # Per-head output-projection accumulate: 8-aligned ref row slices,
            # no per-head context list / concat -> small live ranges.
            o = o + jnp.dot(ctx, wo_ref[0, h * hd:(h + 1) * hd, :],
                            preferred_element_type=jnp.float32)
        # + projection bias + residual (residual re-read from the ref).
        out_ref[0, b] = o + bo_ref[0] + x_ref[0, pl.ds(r0, tokens), :]


def _branch_spec(arr):
    tail = (0,) * (arr.ndim - 1)

    def imap(r):
        return (r,) + tail

    return pl.BlockSpec((1,) + tuple(arr.shape[1:]), imap)


def dual_attention(xs, branch_params, *, batch, tokens, dim, heads):
    """xs: (2, batch*tokens, dim) -- branch-stacked, batch-folded inputs."""
    kernel = functools.partial(_attn_branch_kernel, batch=batch, tokens=tokens,
                               dim=dim, heads=heads)
    in_specs = [_branch_spec(xs)] + [_branch_spec(w) for w in branch_params]
    out_specs = (
        pl.BlockSpec((1, batch, tokens, dim), lambda r: (r, 0, 0, 0)),
        pl.BlockSpec((1, batch * heads, tokens, tokens),
                     lambda r: (r, 0, 0, 0)),
    )
    out_shape = (
        jax.ShapeDtypeStruct((2, batch, tokens, dim), jnp.float32),
        jax.ShapeDtypeStruct((2, batch * heads, tokens, tokens), jnp.float32),
    )
    return pl.pallas_call(
        kernel, grid=(2,), in_specs=in_specs, out_specs=out_specs,
        out_shape=out_shape,
        compiler_params=pltpu.CompilerParams(dimension_semantics=("parallel",)),
    )(xs, *branch_params)


# ----------------------------------------------------------------------------
# Kernel 2: norm3(concat) -> MLP(GELU) -> Conv2d([1,2]) skip -> final LayerNorm.
# Single fat step, batch folded; out2's transpose done via identity matmul.
# ----------------------------------------------------------------------------
def _fusion_kernel(o1_ref, v2_ref, eye_ref,
                   g3a_ref, b3a_ref, g3b_ref, b3b_ref,
                   w1a_ref, w1b_ref, bm1_ref, w2_ref, bm2_ref,
                   wc0_ref, wc1_ref, bc_ref, gf_ref, bf_ref,
                   y_ref, o2_scr, *, batch, tokens, dim):
    eye = eye_ref[...]                           # (n, n) precomputed input
    # Per-batch transpose of the (E, n1) view of out2 via identity matmul on
    # the idle MXU; assembled into a VMEM scratch with plain masked stores.
    for b in range(batch):
        o2_scr[pl.ds(b * tokens, tokens), :] = jax.lax.dot_general(
            eye, v2_ref[b], (((1,), (1,)), ((), ())),
            preferred_element_type=jnp.float32)

    o1 = o1_ref[...]                             # (B*n, E) out1 (+residual)
    o2 = o2_scr[...]                             # (B*n, E) transposed out2

    # norm3 over the (virtually) concatenated 2E features -- no materialized cat.
    inv_2e = 1.0 / (2.0 * dim)
    mean = (jnp.sum(o1, axis=-1, keepdims=True)
            + jnp.sum(o2, axis=-1, keepdims=True)) * inv_2e
    d1 = o1 - mean
    d2 = o2 - mean
    var = (jnp.sum(d1 * d1, axis=-1, keepdims=True)
           + jnp.sum(d2 * d2, axis=-1, keepdims=True)) * inv_2e
    inv = jax.lax.rsqrt(var + _EPS)
    x1n = d1 * inv * g3a_ref[...] + b3a_ref[...]
    x2n = d2 * inv * g3b_ref[...] + b3b_ref[...]

    # MLP: fc1 (2E -> mlp) split over the two halves, exact GELU, fc2.
    hmid = (jnp.dot(x1n, w1a_ref[...], preferred_element_type=jnp.float32)
            + jnp.dot(x2n, w1b_ref[...], preferred_element_type=jnp.float32)
            + bm1_ref[...])
    hmid = _gelu_exact(hmid)
    y = jnp.dot(hmid, w2_ref[...], preferred_element_type=jnp.float32) + bm2_ref[...]

    # Conv2d([1,2]) skip connection == two token-mixing matmuls per batch plus
    # the per-output-channel bias broadcast across features (Conv2d semantics);
    # then +residual and final LayerNorm, written with leading-index stores.
    for b in range(batch):
        r0 = b * tokens
        res = (jnp.dot(wc0_ref[...], o1_ref[pl.ds(r0, tokens), :],
                       preferred_element_type=jnp.float32)
               + jnp.dot(wc1_ref[...], o2_scr[pl.ds(r0, tokens), :],
                         preferred_element_type=jnp.float32)
               + bc_ref[...])
        yb = y[r0:r0 + tokens, :] + res
        m = jnp.mean(yb, axis=-1, keepdims=True)
        vv = jnp.mean((yb - m) ** 2, axis=-1, keepdims=True)
        y_ref[b] = (yb - m) * jax.lax.rsqrt(vv + _EPS) * gf_ref[...] + bf_ref[...]


def _full_spec(arr):
    zeros = (0,) * arr.ndim

    def imap(i):
        return zeros

    return pl.BlockSpec(tuple(arr.shape), imap)


def fusion(o1s, v2, eye, fusion_params, *, batch, tokens, dim):
    kernel = functools.partial(_fusion_kernel, batch=batch, tokens=tokens,
                               dim=dim)
    args = (o1s, v2, eye) + tuple(fusion_params)
    in_specs = [_full_spec(a) for a in args]
    out_specs = pl.BlockSpec((batch, tokens, dim), lambda i: (0, 0, 0))
    out_shape = jax.ShapeDtypeStruct((batch, tokens, dim), jnp.float32)
    return pl.pallas_call(
        kernel, grid=(1,), in_specs=in_specs, out_specs=out_specs,
        out_shape=out_shape,
        scratch_shapes=[pltpu.VMEM((batch * tokens, dim), jnp.float32)],
    )(*args)


# ----------------------------------------------------------------------------
# Full STSA_Encoder forward
# ----------------------------------------------------------------------------
@functools.partial(jax.jit, static_argnames="num_heads")
def stsa_encoder_forward(x1, x2, params, *, num_heads):
    B, n1, E = x1.shape
    _, n2, Et = x2.shape
    assert E % num_heads == 0
    assert n1 == n2 and E == Et, "branch-stacked kernel needs n1==n2, E==Et"

    # Fold batch into the sublane axis (free row-major HBM reshapes) and stack
    # the two branches along the parallel grid axis.
    xs = jnp.stack([x1.reshape(B * n1, E), x2.reshape(B * n2, Et)])
    out_br, attn_br = dual_attention(xs, params["branch"], batch=B, tokens=n1,
                                     dim=E, heads=num_heads)

    out1s = out_br[0].reshape(B * n1, E)          # spatial branch, batch-folded
    # PyTorch: out2.view(B, -1, n1) -- a free row-major reinterpretation of the
    # temporal branch output; the .transpose(1, 2) happens ON-CHIP inside the
    # fusion kernel (identity matmul against the precomputed eye input).
    out2_v = out_br[1].reshape(B, (n2 * Et) // n1, n1)
    eye = jnp.eye(n1, dtype=jnp.float32)

    out = fusion(out1s, out2_v, eye, params["fusion"], batch=B, tokens=n1, dim=E)
    attn_w1 = attn_br[0].reshape(B, num_heads, n1, n1)
    attn_w2 = attn_br[1].reshape(B, num_heads, n2, n2)
    return out, attn_w1, attn_w2


# ----------------------------------------------------------------------------
# Deterministic synthetic parameter init + driver
# ----------------------------------------------------------------------------
def make_params(key, emb_dim, emb_dim_temporal, mlp_dim, n_tokens, num_heads):
    assert emb_dim == emb_dim_temporal
    D, n1 = emb_dim, n_tokens
    keys = jax.random.split(key, 12)

    def rnd(k, shape, scale=0.1):
        return scale * jax.random.normal(k, shape, dtype=jnp.float32)

    def branch(k):
        kq, kk, kv, ko = jax.random.split(k, 4)
        # Fused QKV weight: columns [Q | K | V]; within each block, head-major
        # head_dim chunks (matches the kernel's static slicing).
        wqkv = jnp.concatenate(
            [rnd(kq, (D, D)), rnd(kk, (D, D)), rnd(kv, (D, D))], axis=1)
        bqkv = jnp.zeros((1, 3 * D), jnp.float32)
        wo = rnd(ko, (D, D))                     # rows = concat over heads of (hd, D)
        bo = jnp.zeros((1, D), jnp.float32)
        gamma = jnp.ones((1, D), jnp.float32)
        beta = jnp.zeros((1, D), jnp.float32)
        return (gamma, beta, wqkv, bqkv, wo, bo)

    spatial = branch(keys[0])
    temporal = branch(keys[1])
    # Stack spatial/temporal along the leading branch axis (kernel-1 grid axis).
    branch_params = tuple(jnp.stack([s, t]) for s, t in zip(spatial, temporal))

    fusion_params = (
        jnp.ones((1, D), jnp.float32), jnp.zeros((1, D), jnp.float32),  # norm3 g/b [:E]
        jnp.ones((1, D), jnp.float32), jnp.zeros((1, D), jnp.float32),  # norm3 g/b [E:]
        rnd(keys[2], (D, mlp_dim)), rnd(keys[3], (D, mlp_dim)),         # fc1 W rows [:E]/[E:]
        rnd(keys[4], (1, mlp_dim), 0.01),                               # fc1 bias
        rnd(keys[5], (mlp_dim, D)), rnd(keys[6], (1, D), 0.01),         # fc2 W, bias
        rnd(keys[7], (n1, n1)), rnd(keys[8], (n1, n1)),                 # skipcat W[...,0], W[...,1]
        rnd(keys[9], (n1, 1), 0.01),                                    # skipcat bias (per out channel)
        jnp.ones((1, D), jnp.float32), jnp.zeros((1, D), jnp.float32),  # final norm g/b
    )
    return {"branch": branch_params, "fusion": fusion_params}


if __name__ == "__main__":
    # Shapes implied by the module: skip_dim = int(emb_dim_temporal*41/emb_dim)
    # must equal the spatial token count n1, and n2*emb_dim_temporal == n1*emb_dim.
    emb_dim = 32
    emb_dim_temporal = 32
    mlp_dim = 64
    num_heads = 4
    batch = 2
    n1 = int(emb_dim_temporal * 41 / emb_dim)        # 41 (== skip_dim)
    n2 = (n1 * emb_dim) // emb_dim_temporal          # 41
    assert n2 * emb_dim_temporal == n1 * emb_dim

    key = jax.random.PRNGKey(0)
    kx1, kx2, kp = jax.random.split(key, 3)
    x1 = jax.random.normal(kx1, (batch, n1, emb_dim), dtype=jnp.float32)
    x2 = jax.random.normal(kx2, (batch, n2, emb_dim_temporal), dtype=jnp.float32)
    params = make_params(kp, emb_dim, emb_dim_temporal, mlp_dim, n1, num_heads)

    out, aw1, aw2 = stsa_encoder_forward(x1, x2, params, num_heads=num_heads)
    jax.block_until_ready((out, aw1, aw2))

    assert out.shape == (batch, n1, emb_dim)
    assert aw1.shape == (batch, num_heads, n1, n1)
    assert aw2.shape == (batch, num_heads, n2, n2)
    print("KERNEL_OK")
</pallas_src>

<mosaic_0001>
module attributes {stable_mosaic.version = 11 : i64} {
  func.func @_attn_branch_kernel(%arg0: i32, %arg1: memref<1x82x32xf32, #tpu.memory_space<vmem>>, %arg2: memref<1x1x32xf32, #tpu.memory_space<vmem>>, %arg3: memref<1x1x32xf32, #tpu.memory_space<vmem>>, %arg4: memref<1x32x96xf32, #tpu.memory_space<vmem>>, %arg5: memref<1x1x96xf32, #tpu.memory_space<vmem>>, %arg6: memref<1x32x32xf32, #tpu.memory_space<vmem>>, %arg7: memref<1x1x32xf32, #tpu.memory_space<vmem>>, %arg8: memref<1x2x41x32xf32, #tpu.memory_space<vmem>>, %arg9: memref<1x8x41x41xf32, #tpu.memory_space<vmem>>) attributes {dimension_semantics = [#tpu.dimension_semantics<parallel>], iteration_bounds = array<i64: 2>, scalar_prefetch = 0 : i64, scratch_operands = 0 : i64, tpu.core_type = #tpu.core_type<tc>, window_params = [{transform_indices = @transform_0, window_bounds = array<i64: 1, 82, 32>}, {transform_indices = @transform_1, window_bounds = array<i64: 1, 1, 32>}, {transform_indices = @transform_2, window_bounds = array<i64: 1, 1, 32>}, {transform_indices = @transform_3, window_bounds = array<i64: 1, 32, 96>}, {transform_indices = @transform_4, window_bounds = array<i64: 1, 1, 96>}, {transform_indices = @transform_5, window_bounds = array<i64: 1, 32, 32>}, {transform_indices = @transform_6, window_bounds = array<i64: 1, 1, 32>}, {transform_indices = @transform_7, window_bounds = array<i64: 1, 2, 41, 32>}, {transform_indices = @transform_8, window_bounds = array<i64: 1, 8, 41, 41>}]} {
    %c0 = arith.constant 0 : index
    %c0_0 = arith.constant 0 : index
    %c0_1 = arith.constant 0 : index
    %0 = vector.load %arg1[%c0, %c0_0, %c0_1] : memref<1x82x32xf32, #tpu.memory_space<vmem>>, vector<1x82x32xf32>
    %1 = vector.shape_cast %0 : vector<1x82x32xf32> to vector<82x32xf32>
    %c0_2 = arith.constant 0 : index
    %c0_3 = arith.constant 0 : index
    %c0_4 = arith.constant 0 : index
    %2 = vector.load %arg2[%c0_2, %c0_3, %c0_4] : memref<1x1x32xf32, #tpu.memory_space<vmem>>, vector<1x1x32xf32>
    %3 = vector.shape_cast %2 : vector<1x1x32xf32> to vector<1x32xf32>
    %c0_5 = arith.constant 0 : index
    %c0_6 = arith.constant 0 : index
    %c0_7 = arith.constant 0 : index
    %4 = vector.load %arg3[%c0_5, %c0_6, %c0_7] : memref<1x1x32xf32, #tpu.memory_space<vmem>>, vector<1x1x32xf32>
    %5 = vector.shape_cast %4 : vector<1x1x32xf32> to vector<1x32xf32>
    %cst = arith.constant dense<0.000000e+00> : vector<82xf32>
    %6 = vector.multi_reduction <add>, %1, %cst [1] : vector<82x32xf32> to vector<82xf32>
    %7 = vector.shape_cast %6 : vector<82xf32> to vector<82x1xf32>
    %cst_8 = arith.constant 3.200000e+01 : f32
    %8 = vector.broadcast %cst_8 : f32 to vector<82x1xf32>
    %9 = arith.divf %7, %8 : vector<82x1xf32>
    %10 = vector.broadcast %9 : vector<82x1xf32> to vector<82x32xf32>
    %11 = arith.subf %1, %10 : vector<82x32xf32>
    %12 = arith.mulf %11, %11 : vector<82x32xf32>
    %cst_9 = arith.constant dense<0.000000e+00> : vector<82xf32>
    %13 = vector.multi_reduction <add>, %12, %cst_9 [1] : vector<82x32xf32> to vector<82xf32>
    %14 = vector.shape_cast %13 : vector<82xf32> to vector<82x1xf32>
    %cst_10 = arith.constant 3.200000e+01 : f32
    %15 = vector.broadcast %cst_10 : f32 to vector<82x1xf32>
    %16 = arith.divf %14, %15 : vector<82x1xf32>
    %17 = vector.broadcast %9 : vector<82x1xf32> to vector<82x32xf32>
    %18 = arith.subf %1, %17 : vector<82x32xf32>
    %cst_11 = arith.constant 9.99999974E-6 : f32
    %19 = vector.broadcast %cst_11 : f32 to vector<82x1xf32>
    %20 = arith.addf %16, %19 : vector<82x1xf32>
    %21 = math.rsqrt %20 : vector<82x1xf32>
    %22 = vector.broadcast %21 : vector<82x1xf32> to vector<82x32xf32>
    %23 = arith.mulf %18, %22 : vector<82x32xf32>
    %24 = vector.broadcast %3 : vector<1x32xf32> to vector<82x32xf32>
    %25 = arith.mulf %23, %24 : vector<82x32xf32>
    %26 = vector.broadcast %5 : vector<1x32xf32> to vector<82x32xf32>
    %27 = arith.addf %25, %26 : vector<82x32xf32>
    %c0_12 = arith.constant 0 : index
    %c0_13 = arith.constant 0 : index
    %c0_14 = arith.constant 0 : index
    %28 = vector.load %arg4[%c0_12, %c0_13, %c0_14] : memref<1x32x96xf32, #tpu.memory_space<vmem>>, vector<1x32x96xf32>
    %29 = vector.shape_cast %28 : vector<1x32x96xf32> to vector<32x96xf32>
    %cst_15 = arith.constant dense<0.000000e+00> : vector<82x96xf32>
    %30 = tpu.matmul %27, %29, %cst_15 {dimension_numbers = #tpu.dot_dimension_numbers<[1], [0], [0], [1], [0, 0, 1, 1], [], []>} : vector<82x32xf32>, vector<32x96xf32>, vector<82x96xf32> -> vector<82x96xf32>
    %c0_16 = arith.constant 0 : index
    %c0_17 = arith.constant 0 : index
    %c0_18 = arith.constant 0 : index
    %31 = vector.load %arg5[%c0_16, %c0_17, %c0_18] : memref<1x1x96xf32, #tpu.memory_space<vmem>>, vector<1x1x96xf32>
    %32 = vector.shape_cast %31 : vector<1x1x96xf32> to vector<1x96xf32>
    %33 = vector.broadcast %32 : vector<1x96xf32> to vector<82x96xf32>
    %34 = arith.addf %30, %33 : vector<82x96xf32>
    %cst_19 = arith.constant 0.000000e+00 : f32
    %35 = vector.broadcast %cst_19 : f32 to vector<41x32xf32>
    %36 = vector.extract_strided_slice %34 {offsets = [0, 0], sizes = [41, 8], strides = [1, 1]} : vector<82x96xf32> to vector<41x8xf32>
    %37 = vector.extract_strided_slice %34 {offsets = [0, 32], sizes = [41, 8], strides = [1, 1]} : vector<82x96xf32> to vector<41x8xf32>
    %38 = vector.extract_strided_slice %34 {offsets = [0, 64], sizes = [41, 8], strides = [1, 1]} : vector<82x96xf32> to vector<41x8xf32>
    %cst_20 = arith.constant dense<0.000000e+00> : vector<41x41xf32>
    %39 = tpu.matmul %36, %37, %cst_20 {dimension_numbers = #tpu.dot_dimension_numbers<[1], [1], [0], [0], [0, 0, 1, 0], [], []>} : vector<41x8xf32>, vector<41x8xf32>, vector<41x41xf32> -> vector<41x41xf32>
    %cst_21 = arith.constant 0.353553385 : f32
    %40 = vector.broadcast %cst_21 : f32 to vector<41x41xf32>
    %41 = arith.mulf %39, %40 : vector<41x41xf32>
    %cst_22 = arith.constant dense<0xFF800000> : vector<41xf32>
    %42 = vector.multi_reduction <maximumf>, %41, %cst_22 [1] : vector<41x41xf32> to vector<41xf32>
    %43 = vector.shape_cast %42 : vector<41xf32> to vector<41x1xf32>
    %44 = vector.broadcast %43 : vector<41x1xf32> to vector<41x41xf32>
    %45 = arith.subf %41, %44 : vector<41x41xf32>
    %46 = math.exp %45 : vector<41x41xf32>
    %cst_23 = arith.constant dense<0.000000e+00> : vector<41xf32>
    %47 = vector.multi_reduction <add>, %46, %cst_23 [1] : vector<41x41xf32> to vector<41xf32>
    %48 = vector.shape_cast %47 : vector<41xf32> to vector<41x1xf32>
    %49 = vector.broadcast %48 : vector<41x1xf32> to vector<41x41xf32>
    %50 = arith.divf %46, %49 : vector<41x41xf32>
    %c0_24 = arith.constant 0 : index
    %c0_25 = arith.constant 0 : index
    %c0_26 = arith.constant 0 : index
    %c0_27 = arith.constant 0 : index
    %51 = vector.load %arg9[%c0_24, %c0_25, %c0_26, %c0_27] : memref<1x8x41x41xf32, #tpu.memory_space<vmem>>, vector<1x1x41x41xf32>
    %52 = vector.shape_cast %51 : vector<1x1x41x41xf32> to vector<41x41xf32>
    %53 = vector.shape_cast %50 : vector<41x41xf32> to vector<1x1x41x41xf32>
    tpu.vector_store %arg9[%c0_24, %c0_25, %c0_26, %c0_27], %53 {strides = array<i32>} : memref<1x8x41x41xf32, #tpu.memory_space<vmem>>, vector<1x1x41x41xf32>,
    %cst_28 = arith.constant dense<0.000000e+00> : vector<41x8xf32>
    %54 = tpu.matmul %50, %38, %cst_28 {dimension_numbers = #tpu.dot_dimension_numbers<[1], [0], [0], [1], [0, 0, 1, 1], [], []>} : vector<41x41xf32>, vector<41x8xf32>, vector<41x8xf32> -> vector<41x8xf32>
    %c0_29 = arith.constant 0 : index
    %c0_30 = arith.constant 0 : index
    %c0_31 = arith.constant 0 : index
    %55 = vector.load %arg6[%c0_29, %c0_30, %c0_31] : memref<1x32x32xf32, #tpu.memory_space<vmem>>, vector<1x8x32xf32>
    %56 = vector.shape_cast %55 : vector<1x8x32xf32> to vector<8x32xf32>
    %cst_32 = arith.constant dense<0.000000e+00> : vector<41x32xf32>
    %57 = tpu.matmul %54, %56, %cst_32 {dimension_numbers = #tpu.dot_dimension_numbers<[1], [0], [0], [1], [0, 0, 1, 1], [], []>} : vector<41x8xf32>, vector<8x32xf32>, vector<41x32xf32> -> vector<41x32xf32>
    %58 = arith.addf %35, %57 : vector<41x32xf32>
    %59 = vector.extract_strided_slice %34 {offsets = [0, 8], sizes = [41, 8], strides = [1, 1]} : vector<82x96xf32> to vector<41x8xf32>
    %60 = vector.extract_strided_slice %34 {offsets = [0, 40], sizes = [41, 8], strides = [1, 1]} : vector<82x96xf32> to vector<41x8xf32>
    %61 = vector.extract_strided_slice %34 {offsets = [0, 72], sizes = [41, 8], strides = [1, 1]} : vector<82x96xf32> to vector<41x8xf32>
    %cst_33 = arith.constant dense<0.000000e+00> : vector<41x41xf32>
    %62 = tpu.matmul %59, %60, %cst_33 {dimension_numbers = #tpu.dot_dimension_numbers<[1], [1], [0], [0], [0, 0, 1, 0], [], []>} : vector<41x8xf32>, vector<41x8xf32>, vector<41x41xf32> -> vector<41x41xf32>
    %cst_34 = arith.constant 0.353553385 : f32
    %63 = vector.broadcast %cst_34 : f32 to vector<41x41xf32>
    %64 = arith.mulf %62, %63 : vector<41x41xf32>
    %cst_35 = arith.constant dense<0xFF800000> : vector<41xf32>
    %65 = vector.multi_reduction <maximumf>, %64, %cst_35 [1] : vector<41x41xf32> to vector<41xf32>
    %66 = vector.shape_cast %65 : vector<41xf32> to vector<41x1xf32>
    %67 = vector.broadcast %66 : vector<41x1xf32> to vector<41x41xf32>
    %68 = arith.subf %64, %67 : vector<41x41xf32>
    %69 = math.exp %68 : vector<41x41xf32>
    %cst_36 = arith.constant dense<0.000000e+00> : vector<41xf32>
    %70 = vector.multi_reduction <add>, %69, %cst_36 [1] : vector<41x41xf32> to vector<41xf32>
    %71 = vector.shape_cast %70 : vector<41xf32> to vector<41x1xf32>
    %72 = vector.broadcast %71 : vector<41x1xf32> to vector<41x41xf32>
    %73 = arith.divf %69, %72 : vector<41x41xf32>
    %c0_37 = arith.constant 0 : index
    %c1 = arith.constant 1 : index
    %c0_38 = arith.constant 0 : index
    %c0_39 = arith.constant 0 : index
    %74 = vector.load %arg9[%c0_37, %c1, %c0_38, %c0_39] : memref<1x8x41x41xf32, #tpu.memory_space<vmem>>, vector<1x1x41x41xf32>
    %75 = vector.shape_cast %74 : vector<1x1x41x41xf32> to vector<41x41xf32>
    %76 = vector.shape_cast %73 : vector<41x41xf32> to vector<1x1x41x41xf32>
    tpu.vector_store %arg9[%c0_37, %c1, %c0_38, %c0_39], %76 {strides = array<i32>} : memref<1x8x41x41xf32, #tpu.memory_space<vmem>>, vector<1x1x41x41xf32>,
    %cst_40 = arith.constant dense<0.000000e+00> : vector<41x8xf32>
    %77 = tpu.matmul %73, %61, %cst_40 {dimension_numbers = #tpu.dot_dimension_numbers<[1], [0], [0], [1], [0, 0, 1, 1], [], []>} : vector<41x41xf32>, vector<41x8xf32>, vector<41x8xf32> -> vector<41x8xf32>
    %c0_41 = arith.constant 0 : index
    %c8 = arith.constant 8 : index
    %c0_42 = arith.constant 0 : index
    %78 = vector.load %arg6[%c0_41, %c8, %c0_42] : memref<1x32x32xf32, #tpu.memory_space<vmem>>, vector<1x8x32xf32>
    %79 = vector.shape_cast %78 : vector<1x8x32xf32> to vector<8x32xf32>
    %cst_43 = arith.constant dense<0.000000e+00> : vector<41x32xf32>
    %80 = tpu.matmul %77, %79, %cst_43 {dimension_numbers = #tpu.dot_dimension_numbers<[1], [0], [0], [1], [0, 0, 1, 1], [], []>} : vector<41x8xf32>, vector<8x32xf32>, vector<41x32xf32> -> vector<41x32xf32>
    %81 = arith.addf %58, %80 : vector<41x32xf32>
    %82 = vector.extract_strided_slice %34 {offsets = [0, 16], sizes = [41, 8], strides = [1, 1]} : vector<82x96xf32> to vector<41x8xf32>
    %83 = vector.extract_strided_slice %34 {offsets = [0, 48], sizes = [41, 8], strides = [1, 1]} : vector<82x96xf32> to vector<41x8xf32>
    %84 = vector.extract_strided_slice %34 {offsets = [0, 80], sizes = [41, 8], strides = [1, 1]} : vector<82x96xf32> to vector<41x8xf32>
    %cst_44 = arith.constant dense<0.000000e+00> : vector<41x41xf32>
    %85 = tpu.matmul %82, %83, %cst_44 {dimension_numbers = #tpu.dot_dimension_numbers<[1], [1], [0], [0], [0, 0, 1, 0], [], []>} : vector<41x8xf32>, vector<41x8xf32>, vector<41x41xf32> -> vector<41x41xf32>
    %cst_45 = arith.constant 0.353553385 : f32
    %86 = vector.broadcast %cst_45 : f32 to vector<41x41xf32>
    %87 = arith.mulf %85, %86 : vector<41x41xf32>
    %cst_46 = arith.constant dense<0xFF800000> : vector<41xf32>
    %88 = vector.multi_reduction <maximumf>, %87, %cst_46 [1] : vector<41x41xf32> to vector<41xf32>
    %89 = vector.shape_cast %88 : vector<41xf32> to vector<41x1xf32>
    %90 = vector.broadcast %89 : vector<41x1xf32> to vector<41x41xf32>
    %91 = arith.subf %87, %90 : vector<41x41xf32>
    %92 = math.exp %91 : vector<41x41xf32>
    %cst_47 = arith.constant dense<0.000000e+00> : vector<41xf32>
    %93 = vector.multi_reduction <add>, %92, %cst_47 [1] : vector<41x41xf32> to vector<41xf32>
    %94 = vector.shape_cast %93 : vector<41xf32> to vector<41x1xf32>
    %95 = vector.broadcast %94 : vector<41x1xf32> to vector<41x41xf32>
    %96 = arith.divf %92, %95 : vector<41x41xf32>
    %c0_48 = arith.constant 0 : index
    %c2 = arith.constant 2 : index
    %c0_49 = arith.constant 0 : index
    %c0_50 = arith.constant 0 : index
    %97 = vector.load %arg9[%c0_48, %c2, %c0_49, %c0_50] : memref<1x8x41x41xf32, #tpu.memory_space<vmem>>, vector<1x1x41x41xf32>
    %98 = vector.shape_cast %97 : vector<1x1x41x41xf32> to vector<41x41xf32>
    %99 = vector.shape_cast %96 : vector<41x41xf32> to vector<1x1x41x41xf32>
    tpu.vector_store %arg9[%c0_48, %c2, %c0_49, %c0_50], %99 {strides = array<i32>} : memref<1x8x41x41xf32, #tpu.memory_space<vmem>>, vector<1x1x41x41xf32>,
    %cst_51 = arith.constant dense<0.000000e+00> : vector<41x8xf32>
    %100 = tpu.matmul %96, %84, %cst_51 {dimension_numbers = #tpu.dot_dimension_numbers<[1], [0], [0], [1], [0, 0, 1, 1], [], []>} : vector<41x41xf32>, vector<41x8xf32>, vector<41x8xf32> -> vector<41x8xf32>
    %c0_52 = arith.constant 0 : index
    %c16 = arith.constant 16 : index
    %c0_53 = arith.constant 0 : index
    %101 = vector.load %arg6[%c0_52, %c16, %c0_53] : memref<1x32x32xf32, #tpu.memory_space<vmem>>, vector<1x8x32xf32>
    %102 = vector.shape_cast %101 : vector<1x8x32xf32> to vector<8x32xf32>
    %cst_54 = arith.constant dense<0.000000e+00> : vector<41x32xf32>
    %103 = tpu.matmul %100, %102, %cst_54 {dimension_numbers = #tpu.dot_dimension_numbers<[1], [0], [0], [1], [0, 0, 1, 1], [], []>} : vector<41x8xf32>, vector<8x32xf32>, vector<41x32xf32> -> vector<41x32xf32>
    %104 = arith.addf %81, %103 : vector<41x32xf32>
    %105 = vector.extract_strided_slice %34 {offsets = [0, 24], sizes = [41, 8], strides = [1, 1]} : vector<82x96xf32> to vector<41x8xf32>
    %106 = vector.extract_strided_slice %34 {offsets = [0, 56], sizes = [41, 8], strides = [1, 1]} : vector<82x96xf32> to vector<41x8xf32>
    %107 = vector.extract_strided_slice %34 {offsets = [0, 88], sizes = [41, 8], strides = [1, 1]} : vector<82x96xf32> to vector<41x8xf32>
    %cst_55 = arith.constant dense<0.000000e+00> : vector<41x41xf32>
    %108 = tpu.matmul %105, %106, %cst_55 {dimension_numbers = #tpu.dot_dimension_numbers<[1], [1], [0], [0], [0, 0, 1, 0], [], []>} : vector<41x8xf32>, vector<41x8xf32>, vector<41x41xf32> -> vector<41x41xf32>
    %cst_56 = arith.constant 0.353553385 : f32
    %109 = vector.broadcast %cst_56 : f32 to vector<41x41xf32>
    %110 = arith.mulf %108, %109 : vector<41x41xf32>
    %cst_57 = arith.constant dense<0xFF800000> : vector<41xf32>
    %111 = vector.multi_reduction <maximumf>, %110, %cst_57 [1] : vector<41x41xf32> to vector<41xf32>
    %112 = vector.shape_cast %111 : vector<41xf32> to vector<41x1xf32>
    %113 = vector.broadcast %112 : vector<41x1xf32> to vector<41x41xf32>
    %114 = arith.subf %110, %113 : vector<41x41xf32>
    %115 = math.exp %114 : vector<41x41xf32>
    %cst_58 = arith.constant dense<0.000000e+00> : vector<41xf32>
    %116 = vector.multi_reduction <add>, %115, %cst_58 [1] : vector<41x41xf32> to vector<41xf32>
    %117 = vector.shape_cast %116 : vector<41xf32> to vector<41x1xf32>
    %118 = vector.broadcast %117 : vector<41x1xf32> to vector<41x41xf32>
    %119 = arith.divf %115, %118 : vector<41x41xf32>
    %c0_59 = arith.constant 0 : index
    %c3 = arith.constant 3 : index
    %c0_60 = arith.constant 0 : index
    %c0_61 = arith.constant 0 : index
    %120 = vector.load %arg9[%c0_59, %c3, %c0_60, %c0_61] : memref<1x8x41x41xf32, #tpu.memory_space<vmem>>, vector<1x1x41x41xf32>
    %121 = vector.shape_cast %120 : vector<1x1x41x41xf32> to vector<41x41xf32>
    %122 = vector.shape_cast %119 : vector<41x41xf32> to vector<1x1x41x41xf32>
    tpu.vector_store %arg9[%c0_59, %c3, %c0_60, %c0_61], %122 {strides = array<i32>} : memref<1x8x41x41xf32, #tpu.memory_space<vmem>>, vector<1x1x41x41xf32>,
    %cst_62 = arith.constant dense<0.000000e+00> : vector<41x8xf32>
    %123 = tpu.matmul %119, %107, %cst_62 {dimension_numbers = #tpu.dot_dimension_numbers<[1], [0], [0], [1], [0, 0, 1, 1], [], []>} : vector<41x41xf32>, vector<41x8xf32>, vector<41x8xf32> -> vector<41x8xf32>
    %c0_63 = arith.constant 0 : index
    %c24 = arith.constant 24 : index
    %c0_64 = arith.constant 0 : index
    %124 = vector.load %arg6[%c0_63, %c24, %c0_64] : memref<1x32x32xf32, #tpu.memory_space<vmem>>, vector<1x8x32xf32>
    %125 = vector.shape_cast %124 : vector<1x8x32xf32> to vector<8x32xf32>
    %cst_65 = arith.constant dense<0.000000e+00> : vector<41x32xf32>
    %126 = tpu.matmul %123, %125, %cst_65 {dimension_numbers = #tpu.dot_dimension_numbers<[1], [0], [0], [1], [0, 0, 1, 1], [], []>} : vector<41x8xf32>, vector<8x32xf32>, vector<41x32xf32> -> vector<41x32xf32>
    %127 = arith.addf %104, %126 : vector<41x32xf32>
    %c0_66 = arith.constant 0 : index
    %c0_67 = arith.constant 0 : index
    %c0_68 = arith.constant 0 : index
    %128 = vector.load %arg7[%c0_66, %c0_67, %c0_68] : memref<1x1x32xf32, #tpu.memory_space<vmem>>, vector<1x1x32xf32>
    %129 = vector.shape_cast %128 : vector<1x1x32xf32> to vector<1x32xf32>
    %130 = vector.broadcast %129 : vector<1x32xf32> to vector<41x32xf32>
    %131 = arith.addf %127, %130 : vector<41x32xf32>
    %c0_69 = arith.constant 0 : index
    %c0_70 = arith.constant 0 : index
    %c0_71 = arith.constant 0 : index
    %132 = vector.load %arg1[%c0_69, %c0_70, %c0_71] : memref<1x82x32xf32, #tpu.memory_space<vmem>>, vector<1x41x32xf32>
    %133 = vector.shape_cast %132 : vector<1x41x32xf32> to vector<41x32xf32>
    %134 = arith.addf %131, %133 : vector<41x32xf32>
    %c0_72 = arith.constant 0 : index
    %c0_73 = arith.constant 0 : index
    %c0_74 = arith.constant 0 : index
    %c0_75 = arith.constant 0 : index
    %135 = vector.load %arg8[%c0_72, %c0_73, %c0_74, %c0_75] : memref<1x2x41x32xf32, #tpu.memory_space<vmem>>, vector<1x1x41x32xf32>
    %136 = vector.shape_cast %135 : vector<1x1x41x32xf32> to vector<41x32xf32>
    %137 = vector.shape_cast %134 : vector<41x32xf32> to vector<1x1x41x32xf32>
    tpu.vector_store %arg8[%c0_72, %c0_73, %c0_74, %c0_75], %137 {strides = array<i32>} : memref<1x2x41x32xf32, #tpu.memory_space<vmem>>, vector<1x1x41x32xf32>,
    %cst_76 = arith.constant 0.000000e+00 : f32
    %138 = vector.broadcast %cst_76 : f32 to vector<41x32xf32>
    %139 = vector.extract_strided_slice %34 {offsets = [41, 0], sizes = [41, 8], strides = [1, 1]} : vector<82x96xf32> to vector<41x8xf32>
    %140 = vector.extract_strided_slice %34 {offsets = [41, 32], sizes = [41, 8], strides = [1, 1]} : vector<82x96xf32> to vector<41x8xf32>
    %141 = vector.extract_strided_slice %34 {offsets = [41, 64], sizes = [41, 8], strides = [1, 1]} : vector<82x96xf32> to vector<41x8xf32>
    %cst_77 = arith.constant dense<0.000000e+00> : vector<41x41xf32>
    %142 = tpu.matmul %139, %140, %cst_77 {dimension_numbers = #tpu.dot_dimension_numbers<[1], [1], [0], [0], [0, 0, 1, 0], [], []>} : vector<41x8xf32>, vector<41x8xf32>, vector<41x41xf32> -> vector<41x41xf32>
    %cst_78 = arith.constant 0.353553385 : f32
    %143 = vector.broadcast %cst_78 : f32 to vector<41x41xf32>
    %144 = arith.mulf %142, %143 : vector<41x41xf32>
    %cst_79 = arith.constant dense<0xFF800000> : vector<41xf32>
    %145 = vector.multi_reduction <maximumf>, %144, %cst_79 [1] : vector<41x41xf32> to vector<41xf32>
    %146 = vector.shape_cast %145 : vector<41xf32> to vector<41x1xf32>
    %147 = vector.broadcast %146 : vector<41x1xf32> to vector<41x41xf32>
    %148 = arith.subf %144, %147 : vector<41x41xf32>
    %149 = math.exp %148 : vector<41x41xf32>
    %cst_80 = arith.constant dense<0.000000e+00> : vector<41xf32>
    %150 = vector.multi_reduction <add>, %149, %cst_80 [1] : vector<41x41xf32> to vector<41xf32>
    %151 = vector.shape_cast %150 : vector<41xf32> to vector<41x1xf32>
    %152 = vector.broadcast %151 : vector<41x1xf32> to vector<41x41xf32>
    %153 = arith.divf %149, %152 : vector<41x41xf32>
    %c0_81 = arith.constant 0 : index
    %c4 = arith.constant 4 : index
    %c0_82 = arith.constant 0 : index
    %c0_83 = arith.constant 0 : index
    %154 = vector.load %arg9[%c0_81, %c4, %c0_82, %c0_83] : memref<1x8x41x41xf32, #tpu.memory_space<vmem>>, vector<1x1x41x41xf32>
    %155 = vector.shape_cast %154 : vector<1x1x41x41xf32> to vector<41x41xf32>
    %156 = vector.shape_cast %153 : vector<41x41xf32> to vector<1x1x41x41xf32>
    tpu.vector_store %arg9[%c0_81, %c4, %c0_82, %c0_83], %156 {strides = array<i32>} : memref<1x8x41x41xf32, #tpu.memory_space<vmem>>, vector<1x1x41x41xf32>,
    %cst_84 = arith.constant dense<0.000000e+00> : vector<41x8xf32>
    %157 = tpu.matmul %153, %141, %cst_84 {dimension_numbers = #tpu.dot_dimension_numbers<[1], [0], [0], [1], [0, 0, 1, 1], [], []>} : vector<41x41xf32>, vector<41x8xf32>, vector<41x8xf32> -> vector<41x8xf32>
    %c0_85 = arith.constant 0 : index
    %c0_86 = arith.constant 0 : index
    %c0_87 = arith.constant 0 : index
    %158 = vector.load %arg6[%c0_85, %c0_86, %c0_87] : memref<1x32x32xf32, #tpu.memory_space<vmem>>, vector<1x8x32xf32>
    %159 = vector.shape_cast %158 : vector<1x8x32xf32> to vector<8x32xf32>
    %cst_88 = arith.constant dense<0.000000e+00> : vector<41x32xf32>
    %160 = tpu.matmul %157, %159, %cst_88 {dimension_numbers = #tpu.dot_dimension_numbers<[1], [0], [0], [1], [0, 0, 1, 1], [], []>} : vector<41x8xf32>, vector<8x32xf32>, vector<41x32xf32> -> vector<41x32xf32>
    %161 = arith.addf %138, %160 : vector<41x32xf32>
    %162 = vector.extract_strided_slice %34 {offsets = [41, 8], sizes = [41, 8], strides = [1, 1]} : vector<82x96xf32> to vector<41x8xf32>
    %163 = vector.extract_strided_slice %34 {offsets = [41, 40], sizes = [41, 8], strides = [1, 1]} : vector<82x96xf32> to vector<41x8xf32>
    %164 = vector.extract_strided_slice %34 {offsets = [41, 72], sizes = [41, 8], strides = [1, 1]} : vector<82x96xf32> to vector<41x8xf32>
    %cst_89 = arith.constant dense<0.000000e+00> : vector<41x41xf32>
    %165 = tpu.matmul %162, %163, %cst_89 {dimension_numbers = #tpu.dot_dimension_numbers<[1], [1], [0], [0], [0, 0, 1, 0], [], []>} : vector<41x8xf32>, vector<41x8xf32>, vector<41x41xf32> -> vector<41x41xf32>
    %cst_90 = arith.constant 0.353553385 : f32
    %166 = vector.broadcast %cst_90 : f32 to vector<41x41xf32>
    %167 = arith.mulf %165, %166 : vector<41x41xf32>
    %cst_91 = arith.constant dense<0xFF800000> : vector<41xf32>
    %168 = vector.multi_reduction <maximumf>, %167, %cst_91 [1] : vector<41x41xf32> to vector<41xf32>
    %169 = vector.shape_cast %168 : vector<41xf32> to vector<41x1xf32>
    %170 = vector.broadcast %169 : vector<41x1xf32> to vector<41x41xf32>
    %171 = arith.subf %167, %170 : vector<41x41xf32>
    %172 = math.exp %171 : vector<41x41xf32>
    %cst_92 = arith.constant dense<0.000000e+00> : vector<41xf32>
    %173 = vector.multi_reduction <add>, %172, %cst_92 [1] : vector<41x41xf32> to vector<41xf32>
    %174 = vector.shape_cast %173 : vector<41xf32> to vector<41x1xf32>
    %175 = vector.broadcast %174 : vector<41x1xf32> to vector<41x41xf32>
    %176 = arith.divf %172, %175 : vector<41x41xf32>
    %c0_93 = arith.constant 0 : index
    %c5 = arith.constant 5 : index
    %c0_94 = arith.constant 0 : index
    %c0_95 = arith.constant 0 : index
    %177 = vector.load %arg9[%c0_93, %c5, %c0_94, %c0_95] : memref<1x8x41x41xf32, #tpu.memory_space<vmem>>, vector<1x1x41x41xf32>
    %178 = vector.shape_cast %177 : vector<1x1x41x41xf32> to vector<41x41xf32>
    %179 = vector.shape_cast %176 : vector<41x41xf32> to vector<1x1x41x41xf32>
    tpu.vector_store %arg9[%c0_93, %c5, %c0_94, %c0_95], %179 {strides = array<i32>} : memref<1x8x41x41xf32, #tpu.memory_space<vmem>>, vector<1x1x41x41xf32>,
    %cst_96 = arith.constant dense<0.000000e+00> : vector<41x8xf32>
    %180 = tpu.matmul %176, %164, %cst_96 {dimension_numbers = #tpu.dot_dimension_numbers<[1], [0], [0], [1], [0, 0, 1, 1], [], []>} : vector<41x41xf32>, vector<41x8xf32>, vector<41x8xf32> -> vector<41x8xf32>
    %c0_97 = arith.constant 0 : index
    %c8_98 = arith.constant 8 : index
    %c0_99 = arith.constant 0 : index
    %181 = vector.load %arg6[%c0_97, %c8_98, %c0_99] : memref<1x32x32xf32, #tpu.memory_space<vmem>>, vector<1x8x32xf32>
    %182 = vector.shape_cast %181 : vector<1x8x32xf32> to vector<8x32xf32>
    %cst_100 = arith.constant dense<0.000000e+00> : vector<41x32xf32>
    %183 = tpu.matmul %180, %182, %cst_100 {dimension_numbers = #tpu.dot_dimension_numbers<[1], [0], [0], [1], [0, 0, 1, 1], [], []>} : vector<41x8xf32>, vector<8x32xf32>, vector<41x32xf32> -> vector<41x32xf32>
    %184 = arith.addf %161, %183 : vector<41x32xf32>
    %185 = vector.extract_strided_slice %34 {offsets = [41, 16], sizes = [41, 8], strides = [1, 1]} : vector<82x96xf32> to vector<41x8xf32>
    %186 = vector.extract_strided_slice %34 {offsets = [41, 48], sizes = [41, 8], strides = [1, 1]} : vector<82x96xf32> to vector<41x8xf32>
    %187 = vector.extract_strided_slice %34 {offsets = [41, 80], sizes = [41, 8], strides = [1, 1]} : vector<82x96xf32> to vector<41x8xf32>
    %cst_101 = arith.constant dense<0.000000e+00> : vector<41x41xf32>
    %188 = tpu.matmul %185, %186, %cst_101 {dimension_numbers = #tpu.dot_dimension_numbers<[1], [1], [0], [0], [0, 0, 1, 0], [], []>} : vector<41x8xf32>, vector<41x8xf32>, vector<41x41xf32> -> vector<41x41xf32>
    %cst_102 = arith.constant 0.353553385 : f32
    %189 = vector.broadcast %cst_102 : f32 to vector<41x41xf32>
    %190 = arith.mulf %188, %189 : vector<41x41xf32>
    %cst_103 = arith.constant dense<0xFF800000> : vector<41xf32>
    %191 = vector.multi_reduction <maximumf>, %190, %cst_103 [1] : vector<41x41xf32> to vector<41xf32>
    %192 = vector.shape_cast %191 : vector<41xf32> to vector<41x1xf32>
    %193 = vector.broadcast %192 : vector<41x1xf32> to vector<41x41xf32>
    %194 = arith.subf %190, %193 : vector<41x41xf32>
    %195 = math.exp %194 : vector<41x41xf32>
    %cst_104 = arith.constant dense<0.000000e+00> : vector<41xf32>
    %196 = vector.multi_reduction <add>, %195, %cst_104 [1] : vector<41x41xf32> to vector<41xf32>
    %197 = vector.shape_cast %196 : vector<41xf32> to vector<41x1xf32>
    %198 = vector.broadcast %197 : vector<41x1xf32> to vector<41x41xf32>
    %199 = arith.divf %195, %198 : vector<41x41xf32>
    %c0_105 = arith.constant 0 : index
    %c6 = arith.constant 6 : index
    %c0_106 = arith.constant 0 : index
    %c0_107 = arith.constant 0 : index
    %200 = vector.load %arg9[%c0_105, %c6, %c0_106, %c0_107] : memref<1x8x41x41xf32, #tpu.memory_space<vmem>>, vector<1x1x41x41xf32>
    %201 = vector.shape_cast %200 : vector<1x1x41x41xf32> to vector<41x41xf32>
    %202 = vector.shape_cast %199 : vector<41x41xf32> to vector<1x1x41x41xf32>
    tpu.vector_store %arg9[%c0_105, %c6, %c0_106, %c0_107], %202 {strides = array<i32>} : memref<1x8x41x41xf32, #tpu.memory_space<vmem>>, vector<1x1x41x41xf32>,
    %cst_108 = arith.constant dense<0.000000e+00> : vector<41x8xf32>
    %203 = tpu.matmul %199, %187, %cst_108 {dimension_numbers = #tpu.dot_dimension_numbers<[1], [0], [0], [1], [0, 0, 1, 1], [], []>} : vector<41x41xf32>, vector<41x8xf32>, vector<41x8xf32> -> vector<41x8xf32>
    %c0_109 = arith.constant 0 : index
    %c16_110 = arith.constant 16 : index
    %c0_111 = arith.constant 0 : index
    %204 = vector.load %arg6[%c0_109, %c16_110, %c0_111] : memref<1x32x32xf32, #tpu.memory_space<vmem>>, vector<1x8x32xf32>
    %205 = vector.shape_cast %204 : vector<1x8x32xf32> to vector<8x32xf32>
    %cst_112 = arith.constant dense<0.000000e+00> : vector<41x32xf32>
    %206 = tpu.matmul %203, %205, %cst_112 {dimension_numbers = #tpu.dot_dimension_numbers<[1], [0], [0], [1], [0, 0, 1, 1], [], []>} : vector<41x8xf32>, vector<8x32xf32>, vector<41x32xf32> -> vector<41x32xf32>
    %207 = arith.addf %184, %206 : vector<41x32xf32>
    %208 = vector.extract_strided_slice %34 {offsets = [41, 24], sizes = [41, 8], strides = [1, 1]} : vector<82x96xf32> to vector<41x8xf32>
    %209 = vector.extract_strided_slice %34 {offsets = [41, 56], sizes = [41, 8], strides = [1, 1]} : vector<82x96xf32> to vector<41x8xf32>
    %210 = vector.extract_strided_slice %34 {offsets = [41, 88], sizes = [41, 8], strides = [1, 1]} : vector<82x96xf32> to vector<41x8xf32>
    %cst_113 = arith.constant dense<0.000000e+00> : vector<41x41xf32>
    %211 = tpu.matmul %208, %209, %cst_113 {dimension_numbers = #tpu.dot_dimension_numbers<[1], [1], [0], [0], [0, 0, 1, 0], [], []>} : vector<41x8xf32>, vector<41x8xf32>, vector<41x41xf32> -> vector<41x41xf32>
    %cst_114 = arith.constant 0.353553385 : f32
    %212 = vector.broadcast %cst_114 : f32 to vector<41x41xf32>
    %213 = arith.mulf %211, %212 : vector<41x41xf32>
    %cst_115 = arith.constant dense<0xFF800000> : vector<41xf32>
    %214 = vector.multi_reduction <maximumf>, %213, %cst_115 [1] : vector<41x41xf32> to vector<41xf32>
    %215 = vector.shape_cast %214 : vector<41xf32> to vector<41x1xf32>
    %216 = vector.broadcast %215 : vector<41x1xf32> to vector<41x41xf32>
    %217 = arith.subf %213, %216 : vector<41x41xf32>
    %218 = math.exp %217 : vector<41x41xf32>
    %cst_116 = arith.constant dense<0.000000e+00> : vector<41xf32>
    %219 = vector.multi_reduction <add>, %218, %cst_116 [1] : vector<41x41xf32> to vector<41xf32>
    %220 = vector.shape_cast %219 : vector<41xf32> to vector<41x1xf32>
    %221 = vector.broadcast %220 : vector<41x1xf32> to vector<41x41xf32>
    %222 = arith.divf %218, %221 : vector<41x41xf32>
    %c0_117 = arith.constant 0 : index
    %c7 = arith.constant 7 : index
    %c0_118 = arith.constant 0 : index
    %c0_119 = arith.constant 0 : index
    %223 = vector.load %arg9[%c0_117, %c7, %c0_118, %c0_119] : memref<1x8x41x41xf32, #tpu.memory_space<vmem>>, vector<1x1x41x41xf32>
    %224 = vector.shape_cast %223 : vector<1x1x41x41xf32> to vector<41x41xf32>
    %225 = vector.shape_cast %222 : vector<41x41xf32> to vector<1x1x41x41xf32>
    tpu.vector_store %arg9[%c0_117, %c7, %c0_118, %c0_119], %225 {strides = array<i32>} : memref<1x8x41x41xf32, #tpu.memory_space<vmem>>, vector<1x1x41x41xf32>,
    %cst_120 = arith.constant dense<0.000000e+00> : vector<41x8xf32>
    %226 = tpu.matmul %222, %210, %cst_120 {dimension_numbers = #tpu.dot_dimension_numbers<[1], [0], [0], [1], [0, 0, 1, 1], [], []>} : vector<41x41xf32>, vector<41x8xf32>, vector<41x8xf32> -> vector<41x8xf32>
    %c0_121 = arith.constant 0 : index
    %c24_122 = arith.constant 24 : index
    %c0_123 = arith.constant 0 : index
    %227 = vector.load %arg6[%c0_121, %c24_122, %c0_123] : memref<1x32x32xf32, #tpu.memory_space<vmem>>, vector<1x8x32xf32>
    %228 = vector.shape_cast %227 : vector<1x8x32xf32> to vector<8x32xf32>
    %cst_124 = arith.constant dense<0.000000e+00> : vector<41x32xf32>
    %229 = tpu.matmul %226, %228, %cst_124 {dimension_numbers = #tpu.dot_dimension_numbers<[1], [0], [0], [1], [0, 0, 1, 1], [], []>} : vector<41x8xf32>, vector<8x32xf32>, vector<41x32xf32> -> vector<41x32xf32>
    %230 = arith.addf %207, %229 : vector<41x32xf32>
    %c0_125 = arith.constant 0 : index
    %c0_126 = arith.constant 0 : index
    %c0_127 = arith.constant 0 : index
    %231 = vector.load %arg7[%c0_125, %c0_126, %c0_127] : memref<1x1x32xf32, #tpu.memory_space<vmem>>, vector<1x1x32xf32>
    %232 = vector.shape_cast %231 : vector<1x1x32xf32> to vector<1x32xf32>
    %233 = vector.broadcast %232 : vector<1x32xf32> to vector<41x32xf32>
    %234 = arith.addf %230, %233 : vector<41x32xf32>
    %c0_128 = arith.constant 0 : index
    %c41 = arith.constant 41 : index
    %c0_129 = arith.constant 0 : index
    %235 = vector.load %arg1[%c0_128, %c41, %c0_129] : memref<1x82x32xf32, #tpu.memory_space<vmem>>, vector<1x41x32xf32>
    %236 = vector.shape_cast %235 : vector<1x41x32xf32> to vector<41x32xf32>
    %237 = arith.addf %234, %236 : vector<41x32xf32>
    %c0_130 = arith.constant 0 : index
    %c1_131 = arith.constant 1 : index
    %c0_132 = arith.constant 0 : index
    %c0_133 = arith.constant 0 : index
    %238 = vector.load %arg8[%c0_130, %c1_131, %c0_132, %c0_133] : memref<1x2x41x32xf32, #tpu.memory_space<vmem>>, vector<1x1x41x32xf32>
    %239 = vector.shape_cast %238 : vector<1x1x41x32xf32> to vector<41x32xf32>
    %240 = vector.shape_cast %237 : vector<41x32xf32> to vector<1x1x41x32xf32>
    tpu.vector_store %arg8[%c0_130, %c1_131, %c0_132, %c0_133], %240 {strides = array<i32>} : memref<1x2x41x32xf32, #tpu.memory_space<vmem>>, vector<1x1x41x32xf32>,
    return
  }
  func.func @transform_0(%arg0: i32) -> (i32, i32, i32) {
    %c0_i32 = arith.constant 0 : i32
    %c0_i32_0 = arith.constant 0 : i32
    %c0_i32_1 = arith.constant 0 : i32
    return %arg0, %c0_i32, %c0_i32_0 : i32, i32, i32
  }
  func.func @transform_1(%arg0: i32) -> (i32, i32, i32) {
    %c0_i32 = arith.constant 0 : i32
    %c0_i32_0 = arith.constant 0 : i32
    %c0_i32_1 = arith.constant 0 : i32
    return %arg0, %c0_i32, %c0_i32_0 : i32, i32, i32
  }
  func.func @transform_2(%arg0: i32) -> (i32, i32, i32) {
    %c0_i32 = arith.constant 0 : i32
    %c0_i32_0 = arith.constant 0 : i32
    %c0_i32_1 = arith.constant 0 : i32
    return %arg0, %c0_i32, %c0_i32_0 : i32, i32, i32
  }
  func.func @transform_3(%arg0: i32) -> (i32, i32, i32) {
    %c0_i32 = arith.constant 0 : i32
    %c0_i32_0 = arith.constant 0 : i32
    %c0_i32_1 = arith.constant 0 : i32
    return %arg0, %c0_i32, %c0_i32_0 : i32, i32, i32
  }
  func.func @transform_4(%arg0: i32) -> (i32, i32, i32) {
    %c0_i32 = arith.constant 0 : i32
    %c0_i32_0 = arith.constant 0 : i32
    %c0_i32_1 = arith.constant 0 : i32
    return %arg0, %c0_i32, %c0_i32_0 : i32, i32, i32
  }
  func.func @transform_5(%arg0: i32) -> (i32, i32, i32) {
    %c0_i32 = arith.constant 0 : i32
    %c0_i32_0 = arith.constant 0 : i32
    %c0_i32_1 = arith.constant 0 : i32
    return %arg0, %c0_i32, %c0_i32_0 : i32, i32, i32
  }
  func.func @transform_6(%arg0: i32) -> (i32, i32, i32) {
    %c0_i32 = arith.constant 0 : i32
    %c0_i32_0 = arith.constant 0 : i32
    %c0_i32_1 = arith.constant 0 : i32
    return %arg0, %c0_i32, %c0_i32_0 : i32, i32, i32
  }
  func.func @transform_7(%arg0: i32) -> (i32, i32, i32, i32) {
    %c0_i32 = arith.constant 0 : i32
    %c0_i32_0 = arith.constant 0 : i32
    %c0_i32_1 = arith.constant 0 : i32
    %c0_i32_2 = arith.constant 0 : i32
    return %arg0, %c0_i32, %c0_i32_0, %c0_i32_1 : i32, i32, i32, i32
  }
  func.func @transform_8(%arg0: i32) -> (i32, i32, i32, i32) {
    %c0_i32 = arith.constant 0 : i32
    %c0_i32_0 = arith.constant 0 : i32
    %c0_i32_1 = arith.constant 0 : i32
    %c0_i32_2 = arith.constant 0 : i32
    return %arg0, %c0_i32, %c0_i32_0, %c0_i32_1 : i32, i32, i32, i32
  }
}

module attributes {stable_mosaic.version = 11 : i64} {
  func.func @_fusion_kernel(%arg0: i32, %arg1: memref<82x32xf32, #tpu.memory_space<vmem>>, %arg2: memref<2x32x41xf32, #tpu.memory_space<vmem>>, %arg3: memref<41x41xf32, #tpu.memory_space<vmem>>, %arg4: memref<1x32xf32, #tpu.memory_space<vmem>>, %arg5: memref<1x32xf32, #tpu.memory_space<vmem>>, %arg6: memref<1x32xf32, #tpu.memory_space<vmem>>, %arg7: memref<1x32xf32, #tpu.memory_space<vmem>>, %arg8: memref<32x64xf32, #tpu.memory_space<vmem>>, %arg9: memref<32x64xf32, #tpu.memory_space<vmem>>, %arg10: memref<1x64xf32, #tpu.memory_space<vmem>>, %arg11: memref<64x32xf32, #tpu.memory_space<vmem>>, %arg12: memref<1x32xf32, #tpu.memory_space<vmem>>, %arg13: memref<41x41xf32, #tpu.memory_space<vmem>>, %arg14: memref<41x41xf32, #tpu.memory_space<vmem>>, %arg15: memref<41x1xf32, #tpu.memory_space<vmem>>, %arg16: memref<1x32xf32, #tpu.memory_space<vmem>>, %arg17: memref<1x32xf32, #tpu.memory_space<vmem>>, %arg18: memref<2x41x32xf32, #tpu.memory_space<vmem>>, %arg19: memref<82x32xf32, #tpu.memory_space<vmem>>) attributes {dimension_semantics = [#tpu.dimension_semantics<arbitrary>], iteration_bounds = array<i64: 1>, scalar_prefetch = 0 : i64, scratch_operands = 1 : i64, tpu.core_type = #tpu.core_type<tc>, window_params = [{pipeline_mode = #tpu.pipeline_mode<synchronous>, transform_indices = @transform_0, window_bounds = array<i64: 82, 32>}, {pipeline_mode = #tpu.pipeline_mode<synchronous>, transform_indices = @transform_1, window_bounds = array<i64: 2, 32, 41>}, {pipeline_mode = #tpu.pipeline_mode<synchronous>, transform_indices = @transform_2, window_bounds = array<i64: 41, 41>}, {pipeline_mode = #tpu.pipeline_mode<synchronous>, transform_indices = @transform_3, window_bounds = array<i64: 1, 32>}, {pipeline_mode = #tpu.pipeline_mode<synchronous>, transform_indices = @transform_4, window_bounds = array<i64: 1, 32>}, {pipeline_mode = #tpu.pipeline_mode<synchronous>, transform_indices = @transform_5, window_bounds = array<i64: 1, 32>}, {pipeline_mode = #tpu.pipeline_mode<synchronous>, transform_indices = @transform_6, window_bounds = array<i64: 1, 32>}, {pipeline_mode = #tpu.pipeline_mode<synchronous>, transform_indices = @transform_7, window_bounds = array<i64: 32, 64>}, {pipeline_mode = #tpu.pipeline_mode<synchronous>, transform_indices = @transform_8, window_bounds = array<i64: 32, 64>}, {pipeline_mode = #tpu.pipeline_mode<synchronous>, transform_indices = @transform_9, window_bounds = array<i64: 1, 64>}, {pipeline_mode = #tpu.pipeline_mode<synchronous>, transform_indices = @transform_10, window_bounds = array<i64: 64, 32>}, {pipeline_mode = #tpu.pipeline_mode<synchronous>, transform_indices = @transform_11, window_bounds = array<i64: 1, 32>}, {pipeline_mode = #tpu.pipeline_mode<synchronous>, transform_indices = @transform_12, window_bounds = array<i64: 41, 41>}, {pipeline_mode = #tpu.pipeline_mode<synchronous>, transform_indices = @transform_13, window_bounds = array<i64: 41, 41>}, {pipeline_mode = #tpu.pipeline_mode<synchronous>, transform_indices = @transform_14, window_bounds = array<i64: 41, 1>}, {pipeline_mode = #tpu.pipeline_mode<synchronous>, transform_indices = @transform_15, window_bounds = array<i64: 1, 32>}, {pipeline_mode = #tpu.pipeline_mode<synchronous>, transform_indices = @transform_16, window_bounds = array<i64: 1, 32>}, {pipeline_mode = #tpu.pipeline_mode<synchronous>, transform_indices = @transform_17, window_bounds = array<i64: 2, 41, 32>}]} {
    %c0 = arith.constant 0 : index
    %c0_0 = arith.constant 0 : index
    %0 = vector.load %arg3[%c0, %c0_0] : memref<41x41xf32, #tpu.memory_space<vmem>>, vector<41x41xf32>
    %c0_1 = arith.constant 0 : index
    %c0_2 = arith.constant 0 : index
    %c0_3 = arith.constant 0 : index
    %1 = vector.load %arg2[%c0_1, %c0_2, %c0_3] : memref<2x32x41xf32, #tpu.memory_space<vmem>>, vector<1x32x41xf32>
    %2 = vector.shape_cast %1 : vector<1x32x41xf32> to vector<32x41xf32>
    %cst = arith.constant dense<0.000000e+00> : vector<41x32xf32>
    %3 = tpu.matmul %0, %2, %cst {dimension_numbers = #tpu.dot_dimension_numbers<[1], [1], [0], [0], [0, 0, 1, 0], [], []>} : vector<41x41xf32>, vector<32x41xf32>, vector<41x32xf32> -> vector<41x32xf32>
    %c0_4 = arith.constant 0 : index
    %c0_5 = arith.constant 0 : index
    %4 = vector.load %arg19[%c0_4, %c0_5] : memref<82x32xf32, #tpu.memory_space<vmem>>, vector<41x32xf32>
    tpu.vector_store %arg19[%c0_4, %c0_5], %3 {strides = array<i32>} : memref<82x32xf32, #tpu.memory_space<vmem>>, vector<41x32xf32>,
    %c1 = arith.constant 1 : index
    %c0_6 = arith.constant 0 : index
    %c0_7 = arith.constant 0 : index
    %5 = vector.load %arg2[%c1, %c0_6, %c0_7] : memref<2x32x41xf32, #tpu.memory_space<vmem>>, vector<1x32x41xf32>
    %6 = vector.shape_cast %5 : vector<1x32x41xf32> to vector<32x41xf32>
    %cst_8 = arith.constant dense<0.000000e+00> : vector<41x32xf32>
    %7 = tpu.matmul %0, %6, %cst_8 {dimension_numbers = #tpu.dot_dimension_numbers<[1], [1], [0], [0], [0, 0, 1, 0], [], []>} : vector<41x41xf32>, vector<32x41xf32>, vector<41x32xf32> -> vector<41x32xf32>
    %c41 = arith.constant 41 : index
    %c0_9 = arith.constant 0 : index
    %8 = vector.load %arg19[%c41, %c0_9] : memref<82x32xf32, #tpu.memory_space<vmem>>, vector<41x32xf32>
    tpu.vector_store %arg19[%c41, %c0_9], %7 {strides = array<i32>} : memref<82x32xf32, #tpu.memory_space<vmem>>, vector<41x32xf32>,
    %c0_10 = arith.constant 0 : index
    %c0_11 = arith.constant 0 : index
    %9 = vector.load %arg1[%c0_10, %c0_11] : memref<82x32xf32, #tpu.memory_space<vmem>>, vector<82x32xf32>
    %c0_12 = arith.constant 0 : index
    %c0_13 = arith.constant 0 : index
    %10 = vector.load %arg19[%c0_12, %c0_13] : memref<82x32xf32, #tpu.memory_space<vmem>>, vector<82x32xf32>
    %cst_14 = arith.constant dense<0.000000e+00> : vector<82xf32>
    %11 = vector.multi_reduction <add>, %9, %cst_14 [1] : vector<82x32xf32> to vector<82xf32>
    %12 = vector.shape_cast %11 : vector<82xf32> to vector<82x1xf32>
    %cst_15 = arith.constant dense<0.000000e+00> : vector<82xf32>
    %13 = vector.multi_reduction <add>, %10, %cst_15 [1] : vector<82x32xf32> to vector<82xf32>
    %14 = vector.shape_cast %13 : vector<82xf32> to vector<82x1xf32>
    %15 = arith.addf %12, %14 : vector<82x1xf32>
    %cst_16 = arith.constant 1.562500e-02 : f32
    %16 = vector.broadcast %cst_16 : f32 to vector<82x1xf32>
    %17 = arith.mulf %15, %16 : vector<82x1xf32>
    %18 = vector.broadcast %17 : vector<82x1xf32> to vector<82x32xf32>
    %19 = arith.subf %9, %18 : vector<82x32xf32>
    %20 = vector.broadcast %17 : vector<82x1xf32> to vector<82x32xf32>
    %21 = arith.subf %10, %20 : vector<82x32xf32>
    %22 = arith.mulf %19, %19 : vector<82x32xf32>
    %cst_17 = arith.constant dense<0.000000e+00> : vector<82xf32>
    %23 = vector.multi_reduction <add>, %22, %cst_17 [1] : vector<82x32xf32> to vector<82xf32>
    %24 = vector.shape_cast %23 : vector<82xf32> to vector<82x1xf32>
    %25 = arith.mulf %21, %21 : vector<82x32xf32>
    %cst_18 = arith.constant dense<0.000000e+00> : vector<82xf32>
    %26 = vector.multi_reduction <add>, %25, %cst_18 [1] : vector<82x32xf32> to vector<82xf32>
    %27 = vector.shape_cast %26 : vector<82xf32> to vector<82x1xf32>
    %28 = arith.addf %24, %27 : vector<82x1xf32>
    %cst_19 = arith.constant 1.562500e-02 : f32
    %29 = vector.broadcast %cst_19 : f32 to vector<82x1xf32>
    %30 = arith.mulf %28, %29 : vector<82x1xf32>
    %cst_20 = arith.constant 9.99999974E-6 : f32
    %31 = vector.broadcast %cst_20 : f32 to vector<82x1xf32>
    %32 = arith.addf %30, %31 : vector<82x1xf32>
    %33 = math.rsqrt %32 : vector<82x1xf32>
    %34 = vector.broadcast %33 : vector<82x1xf32> to vector<82x32xf32>
    %35 = arith.mulf %19, %34 : vector<82x32xf32>
    %c0_21 = arith.constant 0 : index
    %c0_22 = arith.constant 0 : index
    %36 = vector.load %arg4[%c0_21, %c0_22] : memref<1x32xf32, #tpu.memory_space<vmem>>, vector<1x32xf32>
    %37 = vector.broadcast %36 : vector<1x32xf32> to vector<82x32xf32>
    %38 = arith.mulf %35, %37 : vector<82x32xf32>
    %c0_23 = arith.constant 0 : index
    %c0_24 = arith.constant 0 : index
    %39 = vector.load %arg5[%c0_23, %c0_24] : memref<1x32xf32, #tpu.memory_space<vmem>>, vector<1x32xf32>
    %40 = vector.broadcast %39 : vector<1x32xf32> to vector<82x32xf32>
    %41 = arith.addf %38, %40 : vector<82x32xf32>
    %42 = vector.broadcast %33 : vector<82x1xf32> to vector<82x32xf32>
    %43 = arith.mulf %21, %42 : vector<82x32xf32>
    %c0_25 = arith.constant 0 : index
    %c0_26 = arith.constant 0 : index
    %44 = vector.load %arg6[%c0_25, %c0_26] : memref<1x32xf32, #tpu.memory_space<vmem>>, vector<1x32xf32>
    %45 = vector.broadcast %44 : vector<1x32xf32> to vector<82x32xf32>
    %46 = arith.mulf %43, %45 : vector<82x32xf32>
    %c0_27 = arith.constant 0 : index
    %c0_28 = arith.constant 0 : index
    %47 = vector.load %arg7[%c0_27, %c0_28] : memref<1x32xf32, #tpu.memory_space<vmem>>, vector<1x32xf32>
    %48 = vector.broadcast %47 : vector<1x32xf32> to vector<82x32xf32>
    %49 = arith.addf %46, %48 : vector<82x32xf32>
    %c0_29 = arith.constant 0 : index
    %c0_30 = arith.constant 0 : index
    %50 = vector.load %arg8[%c0_29, %c0_30] : memref<32x64xf32, #tpu.memory_space<vmem>>, vector<32x64xf32>
    %cst_31 = arith.constant dense<0.000000e+00> : vector<82x64xf32>
    %51 = tpu.matmul %41, %50, %cst_31 {dimension_numbers = #tpu.dot_dimension_numbers<[1], [0], [0], [1], [0, 0, 1, 1], [], []>} : vector<82x32xf32>, vector<32x64xf32>, vector<82x64xf32> -> vector<82x64xf32>
    %c0_32 = arith.constant 0 : index
    %c0_33 = arith.constant 0 : index
    %52 = vector.load %arg9[%c0_32, %c0_33] : memref<32x64xf32, #tpu.memory_space<vmem>>, vector<32x64xf32>
    %cst_34 = arith.constant dense<0.000000e+00> : vector<82x64xf32>
    %53 = tpu.matmul %49, %52, %cst_34 {dimension_numbers = #tpu.dot_dimension_numbers<[1], [0], [0], [1], [0, 0, 1, 1], [], []>} : vector<82x32xf32>, vector<32x64xf32>, vector<82x64xf32> -> vector<82x64xf32>
    %54 = arith.addf %51, %53 : vector<82x64xf32>
    %c0_35 = arith.constant 0 : index
    %c0_36 = arith.constant 0 : index
    %55 = vector.load %arg10[%c0_35, %c0_36] : memref<1x64xf32, #tpu.memory_space<vmem>>, vector<1x64xf32>
    %56 = vector.broadcast %55 : vector<1x64xf32> to vector<82x64xf32>
    %57 = arith.addf %54, %56 : vector<82x64xf32>
    %cst_37 = arith.constant 5.000000e-01 : f32
    %58 = vector.broadcast %cst_37 : f32 to vector<82x64xf32>
    %59 = arith.mulf %58, %57 : vector<82x64xf32>
    %cst_38 = arith.constant 0.707106769 : f32
    %60 = vector.broadcast %cst_38 : f32 to vector<82x64xf32>
    %61 = arith.mulf %57, %60 : vector<82x64xf32>
    %62 = math.absf %61 : vector<82x64xf32>
    %cst_39 = arith.constant 0.327591091 : f32
    %63 = vector.broadcast %cst_39 : f32 to vector<82x64xf32>
    %64 = arith.mulf %63, %62 : vector<82x64xf32>
    %cst_40 = arith.constant 1.000000e+00 : f32
    %65 = vector.broadcast %cst_40 : f32 to vector<82x64xf32>
    %66 = arith.addf %65, %64 : vector<82x64xf32>
    %cst_41 = arith.constant 1.000000e+00 : f32
    %67 = vector.broadcast %cst_41 : f32 to vector<82x64xf32>
    %68 = arith.divf %67, %66 : vector<82x64xf32>
    %cst_42 = arith.constant 1.06140542 : f32
    %69 = vector.broadcast %cst_42 : f32 to vector<82x64xf32>
    %70 = arith.mulf %68, %69 : vector<82x64xf32>
    %cst_43 = arith.constant -1.45315206 : f32
    %71 = vector.broadcast %cst_43 : f32 to vector<82x64xf32>
    %72 = arith.addf %71, %70 : vector<82x64xf32>
    %73 = arith.mulf %68, %72 : vector<82x64xf32>
    %cst_44 = arith.constant 1.42141378 : f32
    %74 = vector.broadcast %cst_44 : f32 to vector<82x64xf32>
    %75 = arith.addf %74, %73 : vector<82x64xf32>
    %76 = arith.mulf %68, %75 : vector<82x64xf32>
    %cst_45 = arith.constant -0.284496725 : f32
    %77 = vector.broadcast %cst_45 : f32 to vector<82x64xf32>
    %78 = arith.addf %77, %76 : vector<82x64xf32>
    %79 = arith.mulf %68, %78 : vector<82x64xf32>
    %cst_46 = arith.constant 0.254829586 : f32
    %80 = vector.broadcast %cst_46 : f32 to vector<82x64xf32>
    %81 = arith.addf %80, %79 : vector<82x64xf32>
    %82 = arith.mulf %68, %81 : vector<82x64xf32>
    %cst_47 = arith.constant 0.000000e+00 : f32
    %83 = vector.broadcast %cst_47 : f32 to vector<82x64xf32>
    %84 = arith.subf %83, %62 : vector<82x64xf32>
    %85 = arith.mulf %84, %62 : vector<82x64xf32>
    %86 = math.exp %85 : vector<82x64xf32>
    %87 = arith.mulf %82, %86 : vector<82x64xf32>
    %cst_48 = arith.constant 1.000000e+00 : f32
    %88 = vector.broadcast %cst_48 : f32 to vector<82x64xf32>
    %89 = arith.subf %88, %87 : vector<82x64xf32>
    %cst_49 = arith.constant 0.000000e+00 : f32
    %90 = vector.broadcast %cst_49 : f32 to vector<82x64xf32>
    %91 = arith.cmpf oge, %61, %90 : vector<82x64xf32>
    %cst_50 = arith.constant 0.000000e+00 : f32
    %92 = vector.broadcast %cst_50 : f32 to vector<82x64xf32>
    %93 = arith.subf %92, %89 : vector<82x64xf32>
    %94 = arith.select %91, %89, %93 : vector<82x64xi1>, vector<82x64xf32>
    %cst_51 = arith.constant 1.000000e+00 : f32
    %95 = vector.broadcast %cst_51 : f32 to vector<82x64xf32>
    %96 = arith.addf %95, %94 : vector<82x64xf32>
    %97 = arith.mulf %59, %96 : vector<82x64xf32>
    %c0_52 = arith.constant 0 : index
    %c0_53 = arith.constant 0 : index
    %98 = vector.load %arg11[%c0_52, %c0_53] : memref<64x32xf32, #tpu.memory_space<vmem>>, vector<64x32xf32>
    %cst_54 = arith.constant dense<0.000000e+00> : vector<82x32xf32>
    %99 = tpu.matmul %97, %98, %cst_54 {dimension_numbers = #tpu.dot_dimension_numbers<[1], [0], [0], [1], [0, 0, 1, 1], [], []>} : vector<82x64xf32>, vector<64x32xf32>, vector<82x32xf32> -> vector<82x32xf32>
    %c0_55 = arith.constant 0 : index
    %c0_56 = arith.constant 0 : index
    %100 = vector.load %arg12[%c0_55, %c0_56] : memref<1x32xf32, #tpu.memory_space<vmem>>, vector<1x32xf32>
    %101 = vector.broadcast %100 : vector<1x32xf32> to vector<82x32xf32>
    %102 = arith.addf %99, %101 : vector<82x32xf32>
    %c0_57 = arith.constant 0 : index
    %c0_58 = arith.constant 0 : index
    %103 = vector.load %arg13[%c0_57, %c0_58] : memref<41x41xf32, #tpu.memory_space<vmem>>, vector<41x41xf32>
    %c0_59 = arith.constant 0 : index
    %c0_60 = arith.constant 0 : index
    %104 = vector.load %arg1[%c0_59, %c0_60] : memref<82x32xf32, #tpu.memory_space<vmem>>, vector<41x32xf32>
    %cst_61 = arith.constant dense<0.000000e+00> : vector<41x32xf32>
    %105 = tpu.matmul %103, %104, %cst_61 {dimension_numbers = #tpu.dot_dimension_numbers<[1], [0], [0], [1], [0, 0, 1, 1], [], []>} : vector<41x41xf32>, vector<41x32xf32>, vector<41x32xf32> -> vector<41x32xf32>
    %c0_62 = arith.constant 0 : index
    %c0_63 = arith.constant 0 : index
    %106 = vector.load %arg14[%c0_62, %c0_63] : memref<41x41xf32, #tpu.memory_space<vmem>>, vector<41x41xf32>
    %c0_64 = arith.constant 0 : index
    %c0_65 = arith.constant 0 : index
    %107 = vector.load %arg19[%c0_64, %c0_65] : memref<82x32xf32, #tpu.memory_space<vmem>>, vector<41x32xf32>
    %cst_66 = arith.constant dense<0.000000e+00> : vector<41x32xf32>
    %108 = tpu.matmul %106, %107, %cst_66 {dimension_numbers = #tpu.dot_dimension_numbers<[1], [0], [0], [1], [0, 0, 1, 1], [], []>} : vector<41x41xf32>, vector<41x32xf32>, vector<41x32xf32> -> vector<41x32xf32>
    %109 = arith.addf %105, %108 : vector<41x32xf32>
    %c0_67 = arith.constant 0 : index
    %c0_68 = arith.constant 0 : index
    %110 = vector.load %arg15[%c0_67, %c0_68] : memref<41x1xf32, #tpu.memory_space<vmem>>, vector<41x1xf32>
    %111 = vector.broadcast %110 : vector<41x1xf32> to vector<41x32xf32>
    %112 = arith.addf %109, %111 : vector<41x32xf32>
    %113 = vector.extract_strided_slice %102 {offsets = [0, 0], sizes = [41, 32], strides = [1, 1]} : vector<82x32xf32> to vector<41x32xf32>
    %114 = arith.addf %113, %112 : vector<41x32xf32>
    %cst_69 = arith.constant dense<0.000000e+00> : vector<41xf32>
    %115 = vector.multi_reduction <add>, %114, %cst_69 [1] : vector<41x32xf32> to vector<41xf32>
    %116 = vector.shape_cast %115 : vector<41xf32> to vector<41x1xf32>
    %cst_70 = arith.constant 3.200000e+01 : f32
    %117 = vector.broadcast %cst_70 : f32 to vector<41x1xf32>
    %118 = arith.divf %116, %117 : vector<41x1xf32>
    %119 = vector.broadcast %118 : vector<41x1xf32> to vector<41x32xf32>
    %120 = arith.subf %114, %119 : vector<41x32xf32>
    %121 = arith.mulf %120, %120 : vector<41x32xf32>
    %cst_71 = arith.constant dense<0.000000e+00> : vector<41xf32>
    %122 = vector.multi_reduction <add>, %121, %cst_71 [1] : vector<41x32xf32> to vector<41xf32>
    %123 = vector.shape_cast %122 : vector<41xf32> to vector<41x1xf32>
    %cst_72 = arith.constant 3.200000e+01 : f32
    %124 = vector.broadcast %cst_72 : f32 to vector<41x1xf32>
    %125 = arith.divf %123, %124 : vector<41x1xf32>
    %126 = vector.broadcast %118 : vector<41x1xf32> to vector<41x32xf32>
    %127 = arith.subf %114, %126 : vector<41x32xf32>
    %cst_73 = arith.constant 9.99999974E-6 : f32
    %128 = vector.broadcast %cst_73 : f32 to vector<41x1xf32>
    %129 = arith.addf %125, %128 : vector<41x1xf32>
    %130 = math.rsqrt %129 : vector<41x1xf32>
    %131 = vector.broadcast %130 : vector<41x1xf32> to vector<41x32xf32>
    %132 = arith.mulf %127, %131 : vector<41x32xf32>
    %c0_74 = arith.constant 0 : index
    %c0_75 = arith.constant 0 : index
    %133 = vector.load %arg16[%c0_74, %c0_75] : memref<1x32xf32, #tpu.memory_space<vmem>>, vector<1x32xf32>
    %134 = vector.broadcast %133 : vector<1x32xf32> to vector<41x32xf32>
    %135 = arith.mulf %132, %134 : vector<41x32xf32>
    %c0_76 = arith.constant 0 : index
    %c0_77 = arith.constant 0 : index
    %136 = vector.load %arg17[%c0_76, %c0_77] : memref<1x32xf32, #tpu.memory_space<vmem>>, vector<1x32xf32>
    %137 = vector.broadcast %136 : vector<1x32xf32> to vector<41x32xf32>
    %138 = arith.addf %135, %137 : vector<41x32xf32>
    %c0_78 = arith.constant 0 : index
    %c0_79 = arith.constant 0 : index
    %c0_80 = arith.constant 0 : index
    %139 = vector.load %arg18[%c0_78, %c0_79, %c0_80] : memref<2x41x32xf32, #tpu.memory_space<vmem>>, vector<1x41x32xf32>
    %140 = vector.shape_cast %139 : vector<1x41x32xf32> to vector<41x32xf32>
    %141 = vector.shape_cast %138 : vector<41x32xf32> to vector<1x41x32xf32>
    tpu.vector_store %arg18[%c0_78, %c0_79, %c0_80], %141 {strides = array<i32>} : memref<2x41x32xf32, #tpu.memory_space<vmem>>, vector<1x41x32xf32>,
    %c0_81 = arith.constant 0 : index
    %c0_82 = arith.constant 0 : index
    %142 = vector.load %arg13[%c0_81, %c0_82] : memref<41x41xf32, #tpu.memory_space<vmem>>, vector<41x41xf32>
    %c41_83 = arith.constant 41 : index
    %c0_84 = arith.constant 0 : index
    %143 = vector.load %arg1[%c41_83, %c0_84] : memref<82x32xf32, #tpu.memory_space<vmem>>, vector<41x32xf32>
    %cst_85 = arith.constant dense<0.000000e+00> : vector<41x32xf32>
    %144 = tpu.matmul %142, %143, %cst_85 {dimension_numbers = #tpu.dot_dimension_numbers<[1], [0], [0], [1], [0, 0, 1, 1], [], []>} : vector<41x41xf32>, vector<41x32xf32>, vector<41x32xf32> -> vector<41x32xf32>
    %c0_86 = arith.constant 0 : index
    %c0_87 = arith.constant 0 : index
    %145 = vector.load %arg14[%c0_86, %c0_87] : memref<41x41xf32, #tpu.memory_space<vmem>>, vector<41x41xf32>
    %c41_88 = arith.constant 41 : index
    %c0_89 = arith.constant 0 : index
    %146 = vector.load %arg19[%c41_88, %c0_89] : memref<82x32xf32, #tpu.memory_space<vmem>>, vector<41x32xf32>
    %cst_90 = arith.constant dense<0.000000e+00> : vector<41x32xf32>
    %147 = tpu.matmul %145, %146, %cst_90 {dimension_numbers = #tpu.dot_dimension_numbers<[1], [0], [0], [1], [0, 0, 1, 1], [], []>} : vector<41x41xf32>, vector<41x32xf32>, vector<41x32xf32> -> vector<41x32xf32>
    %148 = arith.addf %144, %147 : vector<41x32xf32>
    %c0_91 = arith.constant 0 : index
    %c0_92 = arith.constant 0 : index
    %149 = vector.load %arg15[%c0_91, %c0_92] : memref<41x1xf32, #tpu.memory_space<vmem>>, vector<41x1xf32>
    %150 = vector.broadcast %149 : vector<41x1xf32> to vector<41x32xf32>
    %151 = arith.addf %148, %150 : vector<41x32xf32>
    %152 = vector.extract_strided_slice %102 {offsets = [41, 0], sizes = [41, 32], strides = [1, 1]} : vector<82x32xf32> to vector<41x32xf32>
    %153 = arith.addf %152, %151 : vector<41x32xf32>
    %cst_93 = arith.constant dense<0.000000e+00> : vector<41xf32>
    %154 = vector.multi_reduction <add>, %153, %cst_93 [1] : vector<41x32xf32> to vector<41xf32>
    %155 = vector.shape_cast %154 : vector<41xf32> to vector<41x1xf32>
    %cst_94 = arith.constant 3.200000e+01 : f32
    %156 = vector.broadcast %cst_94 : f32 to vector<41x1xf32>
    %157 = arith.divf %155, %156 : vector<41x1xf32>
    %158 = vector.broadcast %157 : vector<41x1xf32> to vector<41x32xf32>
    %159 = arith.subf %153, %158 : vector<41x32xf32>
    %160 = arith.mulf %159, %159 : vector<41x32xf32>
    %cst_95 = arith.constant dense<0.000000e+00> : vector<41xf32>
    %161 = vector.multi_reduction <add>, %160, %cst_95 [1] : vector<41x32xf32> to vector<41xf32>
    %162 = vector.shape_cast %161 : vector<41xf32> to vector<41x1xf32>
    %cst_96 = arith.constant 3.200000e+01 : f32
    %163 = vector.broadcast %cst_96 : f32 to vector<41x1xf32>
    %164 = arith.divf %162, %163 : vector<41x1xf32>
    %165 = vector.broadcast %157 : vector<41x1xf32> to vector<41x32xf32>
    %166 = arith.subf %153, %165 : vector<41x32xf32>
    %cst_97 = arith.constant 9.99999974E-6 : f32
    %167 = vector.broadcast %cst_97 : f32 to vector<41x1xf32>
    %168 = arith.addf %164, %167 : vector<41x1xf32>
    %169 = math.rsqrt %168 : vector<41x1xf32>
    %170 = vector.broadcast %169 : vector<41x1xf32> to vector<41x32xf32>
    %171 = arith.mulf %166, %170 : vector<41x32xf32>
    %c0_98 = arith.constant 0 : index
    %c0_99 = arith.constant 0 : index
    %172 = vector.load %arg16[%c0_98, %c0_99] : memref<1x32xf32, #tpu.memory_space<vmem>>, vector<1x32xf32>
    %173 = vector.broadcast %172 : vector<1x32xf32> to vector<41x32xf32>
    %174 = arith.mulf %171, %173 : vector<41x32xf32>
    %c0_100 = arith.constant 0 : index
    %c0_101 = arith.constant 0 : index
    %175 = vector.load %arg17[%c0_100, %c0_101] : memref<1x32xf32, #tpu.memory_space<vmem>>, vector<1x32xf32>
    %176 = vector.broadcast %175 : vector<1x32xf32> to vector<41x32xf32>
    %177 = arith.addf %174, %176 : vector<41x32xf32>
    %c1_102 = arith.constant 1 : index
    %c0_103 = arith.constant 0 : index
    %c0_104 = arith.constant 0 : index
    %178 = vector.load %arg18[%c1_102, %c0_103, %c0_104] : memref<2x41x32xf32, #tpu.memory_space<vmem>>, vector<1x41x32xf32>
    %179 = vector.shape_cast %178 : vector<1x41x32xf32> to vector<41x32xf32>
    %180 = vector.shape_cast %177 : vector<41x32xf32> to vector<1x41x32xf32>
    tpu.vector_store %arg18[%c1_102, %c0_103, %c0_104], %180 {strides = array<i32>} : memref<2x41x32xf32, #tpu.memory_space<vmem>>, vector<1x41x32xf32>,
    return
  }
  func.func @transform_0(%arg0: i32) -> (i32, i32) {
    %c0_i32 = arith.constant 0 : i32
    %c0_i32_0 = arith.constant 0 : i32
    %c0_i32_1 = arith.constant 0 : i32
    return %c0_i32, %c0_i32_0 : i32, i32
  }
  func.func @transform_1(%arg0: i32) -> (i32, i32, i32) {
    %c0_i32 = arith.constant 0 : i32
    %c0_i32_0 = arith.constant 0 : i32
    %c0_i32_1 = arith.constant 0 : i32
    %c0_i32_2 = arith.constant 0 : i32
    return %c0_i32, %c0_i32_0, %c0_i32_1 : i32, i32, i32
  }
  func.func @transform_2(%arg0: i32) -> (i32, i32) {
    %c0_i32 = arith.constant 0 : i32
    %c0_i32_0 = arith.constant 0 : i32
    %c0_i32_1 = arith.constant 0 : i32
    return %c0_i32, %c0_i32_0 : i32, i32
  }
  func.func @transform_3(%arg0: i32) -> (i32, i32) {
    %c0_i32 = arith.constant 0 : i32
    %c0_i32_0 = arith.constant 0 : i32
    %c0_i32_1 = arith.constant 0 : i32
    return %c0_i32, %c0_i32_0 : i32, i32
  }
  func.func @transform_4(%arg0: i32) -> (i32, i32) {
    %c0_i32 = arith.constant 0 : i32
    %c0_i32_0 = arith.constant 0 : i32
    %c0_i32_1 = arith.constant 0 : i32
    return %c0_i32, %c0_i32_0 : i32, i32
  }
  func.func @transform_5(%arg0: i32) -> (i32, i32) {
    %c0_i32 = arith.constant 0 : i32
    %c0_i32_0 = arith.constant 0 : i32
    %c0_i32_1 = arith.constant 0 : i32
    return %c0_i32, %c0_i32_0 : i32, i32
  }
  func.func @transform_6(%arg0: i32) -> (i32, i32) {
    %c0_i32 = arith.constant 0 : i32
    %c0_i32_0 = arith.constant 0 : i32
    %c0_i32_1 = arith.constant 0 : i32
    return %c0_i32, %c0_i32_0 : i32, i32
  }
  func.func @transform_7(%arg0: i32) -> (i32, i32) {
    %c0_i32 = arith.constant 0 : i32
    %c0_i32_0 = arith.constant 0 : i32
    %c0_i32_1 = arith.constant 0 : i32
    return %c0_i32, %c0_i32_0 : i32, i32
  }
  func.func @transform_8(%arg0: i32) -> (i32, i32) {
    %c0_i32 = arith.constant 0 : i32
    %c0_i32_0 = arith.constant 0 : i32
    %c0_i32_1 = arith.constant 0 : i32
    return %c0_i32, %c0_i32_0 : i32, i32
  }
  func.func @transform_9(%arg0: i32) -> (i32, i32) {
    %c0_i32 = arith.constant 0 : i32
    %c0_i32_0 = arith.constant 0 : i32
    %c0_i32_1 = arith.constant 0 : i32
    return %c0_i32, %c0_i32_0 : i32, i32
  }
  func.func @transform_10(%arg0: i32) -> (i32, i32) {
    %c0_i32 = arith.constant 0 : i32
    %c0_i32_0 = arith.constant 0 : i32
    %c0_i32_1 = arith.constant 0 : i32
    return %c0_i32, %c0_i32_0 : i32, i32
  }
  func.func @transform_11(%arg0: i32) -> (i32, i32) {
    %c0_i32 = arith.constant 0 : i32
    %c0_i32_0 = arith.constant 0 : i32
    %c0_i32_1 = arith.constant 0 : i32
    return %c0_i32, %c0_i32_0 : i32, i32
  }
  func.func @transform_12(%arg0: i32) -> (i32, i32) {
    %c0_i32 = arith.constant 0 : i32
    %c0_i32_0 = arith.constant 0 : i32
    %c0_i32_1 = arith.constant 0 : i32
    return %c0_i32, %c0_i32_0 : i32, i32
  }
  func.func @transform_13(%arg0: i32) -> (i32, i32) {
    %c0_i32 = arith.constant 0 : i32
    %c0_i32_0 = arith.constant 0 : i32
    %c0_i32_1 = arith.constant 0 : i32
    return %c0_i32, %c0_i32_0 : i32, i32
  }
  func.func @transform_14(%arg0: i32) -> (i32, i32) {
    %c0_i32 = arith.constant 0 : i32
    %c0_i32_0 = arith.constant 0 : i32
    %c0_i32_1 = arith.constant 0 : i32
    return %c0_i32, %c0_i32_0 : i32, i32
  }
  func.func @transform_15(%arg0: i32) -> (i32, i32) {
    %c0_i32 = arith.constant 0 : i32
    %c0_i32_0 = arith.constant 0 : i32
    %c0_i32_1 = arith.constant 0 : i32
    return %c0_i32, %c0_i32_0 : i32, i32
  }
  func.func @transform_16(%arg0: i32) -> (i32, i32) {
    %c0_i32 = arith.constant 0 : i32
    %c0_i32_0 = arith.constant 0 : i32
    %c0_i32_1 = arith.constant 0 : i32
    return %c0_i32, %c0_i32_0 : i32, i32
  }
  func.func @transform_17(%arg0: i32) -> (i32, i32, i32) {
    %c0_i32 = arith.constant 0 : i32
    %c0_i32_0 = arith.constant 0 : i32
    %c0_i32_1 = arith.constant 0 : i32
    %c0_i32_2 = arith.constant 0 : i32
    return %c0_i32, %c0_i32_0, %c0_i32_1 : i32, i32, i32
  }
}

</mosaic_0001>

<bundles_post_ra>
// kernel: squeeze.5
= control target key start
LH: loop header
LB: loop body
LE: loop exit
PB: predicated region body
PF: predicated region fallthrough
CT: control target
= control target key end

     0   :  { %s9_s6 = smov 3  ;;  %s29_s9 = smov 3  ;;  %vm4_vm0 = vcmask 261120   ;;  %vm13_vm1 = vcmask 252928   ;;  %vm33_vm2 = vcmask 236544   ;;  %vm23_vm3 = vcmask 244736   ;;  %s1730_s0 = inlined_call_operand.vmem [shape: f32[1,2,41,32], index: 0, kind: input, shape index: {}]   ;;  %s1731_s1 = inlined_call_operand.vmem [shape: f32[2,32,41], index: 1, kind: output, shape index: {}]  }
   0x1   :  { %v718_v0 = vld [vmem:[%s1730_s0 + $0x20] ss:$48 sm:%s9_s6]   ;;  %s1001_s10 = smov 127   ;;  %v724_v1 = vld [vmem:[%s1730_s0 + $0xe] ss:$48 sm:%s29_s9]   ;;  %s19_s13 = smov 3 }
   0x2   :  { %11 = vrot.lane.b32.xlu0 %v718_v0, %s1001_s10  ;;  %s1002_s14 = smov 125   ;;  %v721_v2 = vld [vmem:[%s1730_s0 + $0x17] ss:$48 sm:%s19_s13]   ;;  %s39_s17 = smov 3  ;;  %vm43_vm4 = vcmask 228352   ;;  %vm53_vm5 = vcmask 220160  }
   0x3   :  { %31 = vrot.lane.b32.xlu1 %v724_v1, %s1002_s14  ;;  %v727_v3 = vld [vmem:[%s1730_s0 + $0x5] ss:$48 sm:%s39_s17]   ;;  %s49_s20 = smov 3  ;;  %s59_s21 = smov 3  ;;  %vm63_vm6 = vcmask 211968   ;;  %vm73_vm7 = vcmask 203776  }
   0x4   :  { %s1003_s22 = smov 126   ;;  %s1004_s23 = smov 124   ;;  %v730_v4 = vld [vmem:[%s1730_s0 + $0x25] ss:$48 sm:%s49_s20]   ;;  %v733_v5 = vld [vmem:[%s1730_s0 + $0x1c] ss:$48 sm:%s59_s21]  }
   0x5   :  { %s69_s28 = smov 3  ;;  %s79_s29 = smov 3  ;;  %vm83_vm8 = vcmask 195584   ;;  %vm93_vm9 = vcmask 187392   ;;  %vm103_vm10 = vcmask 179200   ;;  %vm113_vm11 = vcmask 171008  }
   0x6   :  { %21 = vrot.lane.b32.xlu0 %v721_v2, %s1003_s22  ;;  %s1005_s30 = smov 123   ;;  %s1006_s2 = smov 122   ;;  %v736_v6 = vld [vmem:[%s1730_s0 + $0x13] ss:$48 sm:%s69_s28]   ;;  %vm123_vm12 = vcmask 162816   ;;  %vm133_vm13 = vcmask 154624  }
   0x7   :  { %41 = vrot.lane.b32.xlu1 %v727_v3, %s1004_s23  ;;  %v739_v7 = vld [vmem:[%s1730_s0 + $0xa] ss:$48 sm:%s79_s29]   ;;  %s89_s7 = smov 3  ;;  %s99_s8 = smov 3  ;;  %vm143_vm14 = vcmask 146432   ;;  %vm153_vm15 = vcmask 138240  }
   0x8   :  { %s1007_s9 = smov 121   ;;  %s1008_s10 = smov 120   ;;  %v742_v8 = vld [vmem:[%s1730_s0 + $0x1] ss:$48 sm:%s89_s7]  }
   0x9   :  { %v745_v9 = vld [vmem:[%s1730_s0 + $0x21] ss:$48 sm:%s99_s8]   ;;  %s109_s15 = smov 3  ;;  %s119_s16 = smov 3 }
   0xa   :  { %51 = vrot.lane.b32.xlu0 %v730_v4, %s1005_s30  ;;  %s1009_s17 = smov 119   ;;  %s1010_s18 = smov 118   ;;  %v748_v10 = vld [vmem:[%s1730_s0 + $0x18] ss:$48 sm:%s109_s15]  }
   0xb   :  { %61 = vrot.lane.b32.xlu1 %v733_v5, %s1006_s2  ;;  %v751_v11 = vld [vmem:[%s1730_s0 + $0xf] ss:$48 sm:%s119_s16]   ;;  %s129_s23 = smov 3  ;;  %s139_s24 = smov 3 }
   0xc   :  { %s1011_s25 = smov 117   ;;  %s1012_s26 = smov 116   ;;  %v754_v12 = vld [vmem:[%s1730_s0 + $0x6] ss:$48 sm:%s129_s23]  }
   0xd   :  { %v757_v13 = vld [vmem:[%s1730_s0 + $0x26] ss:$48 sm:%s139_s24]   ;;  %s149_s2 = smov 3  ;;  %s159_s3 = smov 3 }
   0xe   :  { %71 = vrot.lane.b32.xlu0 %v736_v6, %s1007_s9  ;;  %s1013_s4 = smov 115   ;;  %s1014_s5 = smov 114   ;;  %v760_v14 = vld [vmem:[%s1730_s0 + $0x1d] ss:$48 sm:%s149_s2]  }
   0xf   :  { %81 = vrot.lane.b32.xlu1 %v739_v7, %s1008_s10  ;;  %v763_v15 = vld [vmem:[%s1730_s0 + $0x14] ss:$48 sm:%s159_s3]   ;;  %s169_s10 = smov 3  ;;  %s179_s11 = smov 3 }
  0x10   :  { %s1015_s12 = smov 113   ;;  %s1016_s13 = smov 112   ;;  %v766_v16 = vld [vmem:[%s1730_s0 + $0xb] ss:$48 sm:%s169_s10]   ;;  %v769_v17 = vld [vmem:[%s1730_s0 + $0x2] ss:$48 sm:%s179_s11]  }
  0x11   :  { %s199_s19 = smov 3  ;;  %s1017_s20 = smov 111  }
  0x12   :  { %91 = vrot.lane.b32.xlu0 %v742_v8, %s1009_s17  ;;  %s1018_s21 = smov 110   ;;  %v775_v19 = vld [vmem:[%s1730_s0 + $0x19] ss:$48 sm:%s199_s19]   ;;  %s219_s27 = smov 3 }
  0x13   :  { %101 = vrot.lane.b32.xlu1 %v745_v9, %s1010_s18  ;;  %s189_s18 = smov 3  ;;  %s1019_s28 = smov 109   ;;  %v781_v21 = vld [vmem:[%s1730_s0 + $0x7] ss:$48 sm:%s219_s27]  }
  0x14   :  { %v772_v18 = vld [vmem:[%s1730_s0 + $0x22] ss:$48 sm:%s189_s18]   ;;  %s1020_s29 = smov 108   ;;  %s239_s6 = smov 3 }
  0x15   :  { %s1021_s7 = smov 107   ;;  %s1022_s8 = smov 106   ;;  %v787_v23 = vld [vmem:[%s1730_s0 + $0x1e] ss:$48 sm:%s239_s6]  }
  0x16   :  { %111 = vrot.lane.b32.xlu0 %v748_v10, %s1011_s25  ;;  %s259_s14 = smov 3  ;;  %s1023_s15 = smov 105  }
  0x17   :  { %121 = vrot.lane.b32.xlu1 %v751_v11, %s1012_s26  ;;  %s209_s26 = smov 3  ;;  %s1024_s16 = smov 104   ;;  %v793_v25 = vld [vmem:[%s1730_s0 + $0xc] ss:$48 sm:%s259_s14]  }
  0x18   :  { %v778_v20 = vld [vmem:[%s1730_s0 + $0x10] ss:$48 sm:%s209_s26]   ;;  %s279_s22 = smov 3  ;;  %s1025_s23 = smov 103  }
  0x19   :  { %s1026_s24 = smov 102   ;;  %v799_v27 = vld [vmem:[%s1730_s0 + $0x23] ss:$48 sm:%s279_s22]   ;;  %s299_s30 = smov 3 }
  0x1a   :  { %131 = vrot.lane.b32.xlu0 %v754_v12, %s1013_s4  ;;  %s1027_s2 = smov 101   ;;  %s1028_s3 = smov 100   ;;  %v805_v29 = vld [vmem:[%s1730_s0 + $0x11] ss:$48 sm:%s299_s30]  }
  0x1b   :  { %141 = vrot.lane.b32.xlu1 %v757_v13, %s1014_s5  ;;  %s229_s5 = smov 3  ;;  %s319_s9 = smov 3 }
  0x1c   :  { %v784_v22 = vld [vmem:[%s1730_s0 + $0x27] ss:$48 sm:%s229_s5]   ;;  %s1029_s10 = smov 99   ;;  %s1030_s11 = smov 98   ;;  %v811_v31 = vld [vmem:[%s1730_s0 + $0x20] ss:$48 sm:%s319_s9]  }
  0x1d   :  { %s339_s17 = smov 3  ;;  %s1031_s18 = smov 97  }
  0x1e   :  { %151 = vrot.lane.b32.xlu0 %v760_v14, %s1015_s12  ;;  %s1032_s19 = smov 40   ;;  %v817_v33 = vld [vmem:[%s1730_s0 + $0xe] ss:$48 sm:%s339_s17]   ;;  %s359_s25 = smov 3 }
  0x1f   :  { %161 = vrot.lane.b32.xlu1 %v763_v15, %s1016_s13  ;;  %s249_s13 = smov 3  ;;  %s1033_s26 = smov 39   ;;  %v823_v35 = vld [vmem:[%s1730_s0 + $0x25] ss:$48 sm:%s359_s25]  }
  0x20   :  { %v790_v24 = vld [vmem:[%s1730_s0 + $0x15] ss:$48 sm:%s249_s13]   ;;  %s1034_s27 = smov 38   ;;  %s379_s4 = smov 3 }
  0x21   :  { %s1035_s5 = smov 37   ;;  %s1036_s6 = smov 36   ;;  %v829_v37 = vld [vmem:[%s1730_s0 + $0x13] ss:$48 sm:%s379_s4]  }
  0x22   :  { %171 = vrot.lane.b32.xlu0 %v766_v16, %s1017_s20  ;;  %s2_s9 = smov 3  ;;  %s389_s12 = smov 3 }
  0x23   :  { %181 = vrot.lane.b32.xlu1 %v769_v17, %s1018_s21  ;;  %s269_s21 = smov 3  ;;  %v3_v38 = vld [vmem:[%s1730_s0] ss:$48 sm:%s2_s9]   ;;  %s1037_s20 = smov 35  }
  0x24   :  { %v796_v26 = vld [vmem:[%s1730_s0 + $0x3] ss:$48 sm:%s269_s21]   ;;  %5 = vst.msk [vmem:[%s1731_s1] sm:$0x1] %vm4_vm0, %v3_v38   ;;  %717 = vst.msk [vmem:[%s1731_s1 + $0x1f] sm:$0x2] %vm4_vm0, %v3_v38  }
  0x25   :  { %s1038_s21 = smov 34   ;;  %v832_v39 = vld [vmem:[%s1730_s0 + $0xa] ss:$48 sm:%s389_s12]   ;;  %s448_s13 = smov 3  ;;  %vm163_vm0 = vcmask 130048  }
  0x26   :  { %191 = vrot.lane.b32.xlu0 %v772_v18, %s1019_s28  ;;  %s1039_s28 = smov 33   ;;  %s458_s14 = smov 3  ;;  %v849_v45 = vld [vmem:[%s1730_s0 + $0x26] ss:$48 sm:%s448_s13]  }
  0x27   :  { %201 = vrot.lane.b32.xlu1 %v775_v19, %s1020_s29  ;;  %s289_s29 = smov 3  ;;  %v852_v46 = vld [vmem:[%s1730_s0 + $0x1d] ss:$48 sm:%s458_s14]   ;;  %s478_s22 = smov 3 }
  0x28   :  { %v802_v28 = vld [vmem:[%s1730_s0 + $0x1a] ss:$48 sm:%s289_s29]   ;;  %s1040_s29 = smov 32   ;;  %v858_v48 = vld [vmem:[%s1730_s0 + $0xb] ss:$48 sm:%s478_s22]   ;;  %s498_s30 = smov 3 }
  0x29   :  { %v864_v50 = vld [vmem:[%s1730_s0 + $0x22] ss:$48 sm:%s498_s30]   ;;  %s518_s9 = smov 3  ;;  %s538_s17 = smov 3 }
  0x2a   :  { %211 = vrot.lane.b32.xlu0 %v778_v20, %s1021_s7  ;;  %s1041_s7 = smov 31   ;;  %v870_v52 = vld [vmem:[%s1730_s0 + $0x10] ss:$48 sm:%s518_s9]   ;;  %s558_s25 = smov 3 }
  0x2b   :  { %221 = vrot.lane.b32.xlu1 %v781_v21, %s1022_s8  ;;  %s309_s8 = smov 3  ;;  %v876_v54 = vld [vmem:[%s1730_s0 + $0x27] ss:$48 sm:%s538_s17]   ;;  %s578_s4 = smov 3 }
  0x2c   :  { %v808_v30 = vld [vmem:[%s1730_s0 + $0x8] ss:$48 sm:%s309_s8]   ;;  %s1042_s8 = smov 30   ;;  %v882_v56 = vld [vmem:[%s1730_s0 + $0x15] ss:$48 sm:%s558_s25]   ;;  %s598_s12 = smov 3 }
  0x2d   :  { %v888_v58 = vld [vmem:[%s1730_s0 + $0x3] ss:$48 sm:%s578_s4]   ;;  %s1057_s13 = smov 15   ;;  %s1058_s14 = smov 14   ;;  %v894_v61 = vld [vmem:[%s1730_s0 + $0x1a] ss:$48 sm:%s598_s12]  }
  0x2e   :  { %231 = vrot.lane.b32.xlu0 %v784_v22, %s1023_s15  ;;  %s399_s15 = smov 3  ;;  %s1059_s25 = smov 13  }
  0x2f   :  { %241 = vrot.lane.b32.xlu1 %v787_v23, %s1024_s16  ;;  %s329_s16 = smov 3  ;;  %v835_v40 = vld [vmem:[%s1730_s0 + $0x1] ss:$48 sm:%s399_s15]   ;;  %s1043_s15 = smov 29  }
  0x30   :  { %v814_v32 = vld [vmem:[%s1730_s0 + $0x17] ss:$48 sm:%s329_s16]   ;;  %s1044_s16 = smov 28   ;;  %s1060_s30 = smov 12  }
  0x31   :  { %s1061_s12 = smov 11   ;;  %s1062_s17 = smov 10  }
  0x32   :  { %251 = vrot.lane.b32.xlu0 %v790_v24, %s1025_s23  ;;  %s1045_s23 = smov 27   ;;  %s648_s22 = smov 3 }
  0x33   :  { %261 = vrot.lane.b32.xlu1 %v793_v25, %s1026_s24  ;;  %s349_s24 = smov 3  ;;  %s1064_s4 = smov 8   ;;  %v909_v7 = vld [vmem:[%s1730_s0 + $0x16] ss:$48 sm:%s648_s22]  }
  0x34   :  { %v820_v34 = vld [vmem:[%s1730_s0 + $0x5] ss:$48 sm:%s349_s24]   ;;  %s1046_s24 = smov 26   ;;  %s668_s9 = smov 3 }
  0x35   :  { %v915_v11 = vld [vmem:[%s1730_s0 + $0x4] ss:$48 sm:%s668_s9]   ;;  %s1070_s22 = smov 2  }
  0x36   :  { %271 = vrot.lane.b32.xlu0 %v796_v26, %s1027_s2  ;;  %s1047_s2 = smov 25  }
  0x37   :  { %281 = vrot.lane.b32.xlu1 %v799_v27, %s1028_s3  ;;  %s369_s3 = smov 3 }
  0x38   :  { %v826_v36 = vld [vmem:[%s1730_s0 + $0x1c] ss:$48 sm:%s369_s3]   ;;  %s1048_s3 = smov 24  }
  0x3a   :  { %291 = vrot.lane.b32.xlu0 %v802_v28, %s1029_s10  ;;  %s1049_s10 = smov 23  }
  0x3b   :  { %301 = vrot.lane.b32.xlu1 %v805_v29, %s1030_s11  ;;  %s1050_s11 = smov 22  }
  0x3e   :  { %311 = vrot.lane.b32.xlu0 %v808_v30, %s1031_s18  ;;  %s1051_s18 = smov 21  }
  0x3f   :  { %321 = vrot.lane.b32.xlu1 %v811_v31, %s1032_s19  ;;  %s1052_s19 = smov 20  }
  0x42   :  { %331 = vrot.lane.b32.xlu0 %v814_v32, %s1033_s26  ;;  %s408_s26 = smov 3 }
  0x43   :  { %341 = vrot.lane.b32.xlu1 %v817_v33, %s1034_s27  ;;  %s418_s27 = smov 3  ;;  %v837_v41 = vld [vmem:[%s1730_s0 + $0x21] ss:$48 sm:%s408_s26]   ;;  %s1053_s26 = smov 19  }
  0x44   :  { %v840_v42 = vld [vmem:[%s1730_s0 + $0x18] ss:$48 sm:%s418_s27]   ;;  %s1054_s27 = smov 18  }
  0x46   :  { %351 = vrot.lane.b32.xlu0 %v820_v34, %s1035_s5  ;;  %s428_s5 = smov 3 }
  0x47   :  { %361 = vrot.lane.b32.xlu1 %v823_v35, %s1036_s6  ;;  %s438_s6 = smov 3  ;;  %v843_v43 = vld [vmem:[%s1730_s0 + $0xf] ss:$48 sm:%s428_s5]   ;;  %s1055_s5 = smov 17  }
  0x48   :  { %v846_v44 = vld [vmem:[%s1730_s0 + $0x6] ss:$48 sm:%s438_s6]   ;;  %s1056_s6 = smov 16  }
  0x4a   :  { %371 = vrot.lane.b32.xlu0 %v826_v36, %s1037_s20  ;;  %s1066_s20 = smov 6  }
  0x4b   :  { %381 = vrot.lane.b32.xlu1 %v829_v37, %s1038_s21  ;;  %s468_s21 = smov 3 }
  0x4c   :  { %v855_v47 = vld [vmem:[%s1730_s0 + $0x14] ss:$48 sm:%s468_s21]  }
  0x4e   :  { %391 = vrot.lane.b32.xlu0 %v832_v39, %s1039_s28  ;;  %s1063_s28 = smov 9  }
  0x4f   :  { %401 = vrot.lane.b32.xlu1 %v835_v40, %s1040_s29  ;;  %s488_s29 = smov 3 }
  0x50   :  { %v861_v49 = vld [vmem:[%s1730_s0 + $0x2] ss:$48 sm:%s488_s29]  }
  0x52   :  { %410 = vrot.lane.b32.xlu0 %v837_v41, %s1041_s7  ;;  %s1068_s7 = smov 4  }
  0x53   :  { %420 = vrot.lane.b32.xlu1 %v840_v42, %s1042_s8  ;;  %s508_s8 = smov 3 }
  0x54   :  { %v867_v51 = vld [vmem:[%s1730_s0 + $0x19] ss:$48 sm:%s508_s8]  }
  0x56   :  { %430 = vrot.lane.b32.xlu0 %v843_v43, %s1043_s15  ;;  %s1065_s15 = smov 7  }
  0x57   :  { %440 = vrot.lane.b32.xlu1 %v846_v44, %s1044_s16  ;;  %s528_s16 = smov 3 }
  0x58   :  { %v873_v53 = vld [vmem:[%s1730_s0 + $0x7] ss:$48 sm:%s528_s16]  }
  0x5a   :  { %450 = vrot.lane.b32.xlu0 %v849_v45, %s1045_s23 }
  0x5b   :  { %460 = vrot.lane.b32.xlu1 %v852_v46, %s1046_s24  ;;  %s548_s24 = smov 3 }
  0x5c   :  { %v879_v55 = vld [vmem:[%s1730_s0 + $0x1e] ss:$48 sm:%s548_s24]   ;;  %s618_s24 = smov 3 }
  0x5d   :  { %v900_v1 = vld [vmem:[%s1730_s0 + $0x8] ss:$48 sm:%s618_s24]  }
  0x5e   :  { %470 = vrot.lane.b32.xlu0 %v855_v47, %s1047_s2  ;;  %s1067_s2 = smov 5  }
  0x5f   :  { %480 = vrot.lane.b32.xlu1 %v858_v48, %s1048_s3  ;;  %s568_s3 = smov 3 }
  0x60   :  { %v885_v57 = vld [vmem:[%s1730_s0 + $0xc] ss:$48 sm:%s568_s3]  }
  0x62   :  { %490 = vrot.lane.b32.xlu0 %v861_v49, %s1049_s10 }
  0x63   :  { %500 = vrot.lane.b32.xlu1 %v864_v50, %s1050_s11  ;;  %s588_s11 = smov 3 }
  0x64   :  { %v891_v59 = vld [vmem:[%s1730_s0 + $0x23] ss:$48 sm:%s588_s11]   ;;  %s638_s11 = smov 3 }
  0x65   :  { %v906_v5 = vld [vmem:[%s1730_s0 + $0x1f] ss:$48 sm:%s638_s11]  }
  0x66   :  { %510 = vrot.lane.b32.xlu0 %v867_v51, %s1051_s18 }
  0x67   :  { %520 = vrot.lane.b32.xlu1 %v870_v52, %s1052_s19  ;;  %s608_s19 = smov 3 }
  0x68   :  { %v897_v63 = vld [vmem:[%s1730_s0 + $0x11] ss:$48 sm:%s608_s19]  }
  0x6a   :  { %530 = vrot.lane.b32.xlu0 %v873_v53, %s1053_s26 }
  0x6b   :  { %540 = vrot.lane.b32.xlu1 %v876_v54, %s1054_s27  ;;  %s658_s27 = smov 3 }
  0x6c   :  { %v912_v9 = vld [vmem:[%s1730_s0 + $0xd] ss:$48 sm:%s658_s27]  }
  0x6e   :  { %550 = vrot.lane.b32.xlu0 %v879_v55, %s1055_s5 }
  0x6f   :  { %560 = vrot.lane.b32.xlu1 %v882_v56, %s1056_s6  ;;  %s628_s6 = smov 3 }
  0x70   :  { %v903_v3 = vld [vmem:[%s1730_s0 + $0x28] ss:$48 sm:%s628_s6]  }
  0x72   :  { %570 = vrot.lane.b32.xlu0 %v885_v57, %s1057_s13 }
  0x73   :  { %580 = vrot.lane.b32.xlu1 %v888_v58, %s1058_s14  ;;  %s678_s14 = smov 3 }
  0x74   :  { %v12_v60 = vpop.permute.xlu0 %11   ;;  %v918_v13 = vld [vmem:[%s1730_s0 + $0x24] ss:$48 sm:%s678_s14]  }
  0x75   :  { %719 = vst.msk [vmem:[%s1731_s1 + $0x19] sm:$0x1] %vm13_vm1, %v12_v60   ;;  %720 = vst.msk [vmem:[%s1731_s1 + $0x38] sm:$0x2] %vm13_vm1, %v12_v60   ;;  %v32_v62 = vpop.permute.xlu1 %31   ;;  %vm173_vm1 = vcmask 121856  }
  0x76   :  { %590 = vrot.lane.b32.xlu0 %v891_v59, %s1059_s25  ;;  %725 = vst.msk [vmem:[%s1731_s1 + $0xb] sm:$0x1] %vm33_vm2, %v32_v62   ;;  %726 = vst.msk [vmem:[%s1731_s1 + $0x2a] sm:$0x2] %vm33_vm2, %v32_v62   ;;  %s688_s25 = smov 3  ;;  %vm183_vm2 = vcmask 113664  }
  0x77   :  { %600 = vrot.lane.b32.xlu1 %v894_v61, %s1060_s30  ;;  %s698_s30 = smov 3  ;;  %v921_v15 = vld [vmem:[%s1730_s0 + $0x1b] ss:$48 sm:%s688_s25]  }
  0x78   :  { %v22_v0 = vpop.permute.xlu0 %21   ;;  %v924_v17 = vld [vmem:[%s1730_s0 + $0x12] ss:$48 sm:%s698_s30]  }
  0x79   :  { %722 = vst.msk [vmem:[%s1731_s1 + $0x12] sm:$0x1] %vm23_vm3, %v22_v0   ;;  %723 = vst.msk [vmem:[%s1731_s1 + $0x31] sm:$0x2] %vm23_vm3, %v22_v0   ;;  %v42_v2 = vpop.permute.xlu1 %41   ;;  %vm193_vm3 = vcmask 105472  }
  0x7a   :  { %610 = vrot.lane.b32.xlu0 %v897_v63, %s1061_s12  ;;  %728 = vst.msk [vmem:[%s1731_s1 + $0x4] sm:$0x1] %vm43_vm4, %v42_v2   ;;  %729 = vst.msk [vmem:[%s1731_s1 + $0x23] sm:$0x2] %vm43_vm4, %v42_v2   ;;  %s708_s12 = smov 3  ;;  %vm203_vm4 = vcmask 97280  }
  0x7b   :  { %620 = vrot.lane.b32.xlu1 %v900_v1, %s1062_s17  ;;  %s1069_s17 = smov 3   ;;  %v927_v19 = vld [vmem:[%s1730_s0 + $0x9] ss:$48 sm:%s708_s12]  }
  0x7c   :  { %v52_v4 = vpop.permute.xlu0 %51  }
  0x7d   :  { %731 = vst.msk [vmem:[%s1731_s1 + $0x1d] sm:$0x1] %vm53_vm5, %v52_v4   ;;  %732 = vst.msk [vmem:[%s1731_s1 + $0x3c] sm:$0x2] %vm53_vm5, %v52_v4   ;;  %v62_v6 = vpop.permute.xlu1 %61   ;;  %vm213_vm5 = vcmask 89088  }
  0x7e   :  { %630 = vrot.lane.b32.xlu0 %v903_v3, %s1063_s28  ;;  %734 = vst.msk [vmem:[%s1731_s1 + $0x16] sm:$0x1] %vm63_vm6, %v62_v6   ;;  %735 = vst.msk [vmem:[%s1731_s1 + $0x35] sm:$0x2] %vm63_vm6, %v62_v6   ;;  %s1071_s28 = smov 1   ;;  %vm223_vm6 = vcmask 80896  }
  0x7f   :  { %640 = vrot.lane.b32.xlu1 %v906_v5, %s1064_s4 }
  0x80   :  { %v72_v8 = vpop.permute.xlu0 %71  }
  0x81   :  { %737 = vst.msk [vmem:[%s1731_s1 + $0xf] sm:$0x1] %vm73_vm7, %v72_v8   ;;  %738 = vst.msk [vmem:[%s1731_s1 + $0x2e] sm:$0x2] %vm73_vm7, %v72_v8   ;;  %v82_v10 = vpop.permute.xlu1 %81   ;;  %vm233_vm7 = vcmask 72704  }
  0x82   :  { %650 = vrot.lane.b32.xlu0 %v909_v7, %s1065_s15  ;;  %740 = vst.msk [vmem:[%s1731_s1 + $0x8] sm:$0x1] %vm83_vm8, %v82_v10   ;;  %741 = vst.msk [vmem:[%s1731_s1 + $0x27] sm:$0x2] %vm83_vm8, %v82_v10   ;;  %vm243_vm8 = vcmask 64512  }
  0x83   :  { %660 = vrot.lane.b32.xlu1 %v912_v9, %s1066_s20 }
  0x84   :  { %v92_v12 = vpop.permute.xlu0 %91  }
  0x85   :  { %743 = vst.msk [vmem:[%s1731_s1 + $0x1] sm:$0x1] %vm93_vm9, %v92_v12   ;;  %744 = vst.msk [vmem:[%s1731_s1 + $0x20] sm:$0x2] %vm93_vm9, %v92_v12   ;;  %v102_v14 = vpop.permute.xlu1 %101   ;;  %vm253_vm9 = vcmask 56320  }
  0x86   :  { %670 = vrot.lane.b32.xlu0 %v915_v11, %s1067_s2  ;;  %746 = vst.msk [vmem:[%s1731_s1 + $0x1a] sm:$0x1] %vm103_vm10, %v102_v14   ;;  %747 = vst.msk [vmem:[%s1731_s1 + $0x39] sm:$0x2] %vm103_vm10, %v102_v14   ;;  %vm263_vm10 = vcmask 48128  }
  0x87   :  { %680 = vrot.lane.b32.xlu1 %v918_v13, %s1068_s7 }
  0x88   :  { %v112_v16 = vpop.permute.xlu0 %111  }
  0x89   :  { %749 = vst.msk [vmem:[%s1731_s1 + $0x13] sm:$0x1] %vm113_vm11, %v112_v16   ;;  %750 = vst.msk [vmem:[%s1731_s1 + $0x32] sm:$0x2] %vm113_vm11, %v112_v16   ;;  %v122_v18 = vpop.permute.xlu1 %121   ;;  %vm273_vm11 = vcmask 39936  }
  0x8a   :  { %690 = vrot.lane.b32.xlu0 %v921_v15, %s1069_s17  ;;  %752 = vst.msk [vmem:[%s1731_s1 + $0xc] sm:$0x1] %vm123_vm12, %v122_v18   ;;  %753 = vst.msk [vmem:[%s1731_s1 + $0x2b] sm:$0x2] %vm123_vm12, %v122_v18   ;;  %vm283_vm12 = vcmask 31744  }
  0x8b   :  { %700 = vrot.lane.b32.xlu1 %v924_v17, %s1070_s22 }
  0x8c   :  { %v132_v20 = vpop.permute.xlu0 %131  }
  0x8d   :  { %755 = vst.msk [vmem:[%s1731_s1 + $0x5] sm:$0x1] %vm133_vm13, %v132_v20   ;;  %756 = vst.msk [vmem:[%s1731_s1 + $0x24] sm:$0x2] %vm133_vm13, %v132_v20   ;;  %v142_v21 = vpop.permute.xlu1 %141   ;;  %vm293_vm13 = vcmask 23552  }
  0x8e   :  { %710 = vrot.lane.b32.xlu0 %v927_v19, %s1071_s28  ;;  %758 = vst.msk [vmem:[%s1731_s1 + $0x1e] sm:$0x1] %vm143_vm14, %v142_v21   ;;  %759 = vst.msk [vmem:[%s1731_s1 + $0x3d] sm:$0x2] %vm143_vm14, %v142_v21   ;;  %vm303_vm14 = vcmask 15360  }
  0x90   :  { %v152_v22 = vpop.permute.xlu0 %151  }
  0x91   :  { %761 = vst.msk [vmem:[%s1731_s1 + $0x17] sm:$0x1] %vm153_vm15, %v152_v22   ;;  %762 = vst.msk [vmem:[%s1731_s1 + $0x36] sm:$0x2] %vm153_vm15, %v152_v22   ;;  %v162_v23 = vpop.permute.xlu1 %161   ;;  %vm313_vm15 = vcmask 7168  }
  0x92   :  { %764 = vst.msk [vmem:[%s1731_s1 + $0x10] sm:$0x1] %vm163_vm0, %v162_v23   ;;  %765 = vst.msk [vmem:[%s1731_s1 + $0x2f] sm:$0x2] %vm163_vm0, %v162_v23   ;;  %vm323_vm0 = vcmask 335168  }
  0x94   :  { %v172_v24 = vpop.permute.xlu0 %171  }
  0x95   :  { %767 = vst.msk [vmem:[%s1731_s1 + $0x9] sm:$0x1] %vm173_vm1, %v172_v24   ;;  %768 = vst.msk [vmem:[%s1731_s1 + $0x28] sm:$0x2] %vm173_vm1, %v172_v24   ;;  %v182_v25 = vpop.permute.xlu1 %181   ;;  %vm333_vm1 = vcmask 335160  }
  0x96   :  { %770 = vst.msk [vmem:[%s1731_s1 + $0x2] sm:$0x1] %vm183_vm2, %v182_v25   ;;  %771 = vst.msk [vmem:[%s1731_s1 + $0x21] sm:$0x2] %vm183_vm2, %v182_v25   ;;  %vm343_vm2 = vcmask 335152  }
  0x98   :  { %v192_v26 = vpop.permute.xlu0 %191  }
  0x99   :  { %773 = vst.msk [vmem:[%s1731_s1 + $0x1b] sm:$0x1] %vm193_vm3, %v192_v26   ;;  %774 = vst.msk [vmem:[%s1731_s1 + $0x3a] sm:$0x2] %vm193_vm3, %v192_v26   ;;  %v202_v27 = vpop.permute.xlu1 %201   ;;  %vm353_vm3 = vcmask 335144  }
  0x9a   :  { %776 = vst.msk [vmem:[%s1731_s1 + $0x14] sm:$0x1] %vm203_vm4, %v202_v27   ;;  %777 = vst.msk [vmem:[%s1731_s1 + $0x33] sm:$0x2] %vm203_vm4, %v202_v27   ;;  %vm363_vm4 = vcmask 335136  }
  0x9c   :  { %v212_v28 = vpop.permute.xlu0 %211  }
  0x9d   :  { %779 = vst.msk [vmem:[%s1731_s1 + $0xd] sm:$0x1] %vm213_vm5, %v212_v28   ;;  %780 = vst.msk [vmem:[%s1731_s1 + $0x2c] sm:$0x2] %vm213_vm5, %v212_v28   ;;  %v222_v29 = vpop.permute.xlu1 %221   ;;  %vm373_vm5 = vcmask 335128  }
  0x9e   :  { %782 = vst.msk [vmem:[%s1731_s1 + $0x6] sm:$0x1] %vm223_vm6, %v222_v29   ;;  %783 = vst.msk [vmem:[%s1731_s1 + $0x25] sm:$0x2] %vm223_vm6, %v222_v29   ;;  %vm383_vm6 = vcmask 335120  }
  0xa0   :  { %v232_v30 = vpop.permute.xlu0 %231  }
  0xa1   :  { %785 = vst.msk [vmem:[%s1731_s1 + $0x1f] sm:$0x1] %vm233_vm7, %v232_v30   ;;  %786 = vst.msk [vmem:[%s1731_s1 + $0x3e] sm:$0x2] %vm233_vm7, %v232_v30   ;;  %v242_v31 = vpop.permute.xlu1 %241   ;;  %vm393_vm7 = vcmask 335112  }
  0xa2   :  { %788 = vst.msk [vmem:[%s1731_s1 + $0x18] sm:$0x1] %vm243_vm8, %v242_v31   ;;  %789 = vst.msk [vmem:[%s1731_s1 + $0x37] sm:$0x2] %vm243_vm8, %v242_v31   ;;  %vm403_vm8 = vcmask 335104  }
  0xa4   :  { %v252_v32 = vpop.permute.xlu0 %251  }
  0xa5   :  { %791 = vst.msk [vmem:[%s1731_s1 + $0x11] sm:$0x1] %vm253_vm9, %v252_v32   ;;  %792 = vst.msk [vmem:[%s1731_s1 + $0x30] sm:$0x2] %vm253_vm9, %v252_v32   ;;  %v262_v33 = vpop.permute.xlu1 %261   ;;  %vm412_vm9 = vcmask 335096  }
  0xa6   :  { %794 = vst.msk [vmem:[%s1731_s1 + $0xa] sm:$0x1] %vm263_vm10, %v262_v33   ;;  %795 = vst.msk [vmem:[%s1731_s1 + $0x29] sm:$0x2] %vm263_vm10, %v262_v33   ;;  %vm422_vm10 = vcmask 335088  }
  0xa8   :  { %v272_v34 = vpop.permute.xlu0 %271  }
  0xa9   :  { %797 = vst.msk [vmem:[%s1731_s1 + $0x3] sm:$0x1] %vm273_vm11, %v272_v34   ;;  %798 = vst.msk [vmem:[%s1731_s1 + $0x22] sm:$0x2] %vm273_vm11, %v272_v34   ;;  %v282_v35 = vpop.permute.xlu1 %281   ;;  %vm432_vm11 = vcmask 335080  }
  0xaa   :  { %800 = vst.msk [vmem:[%s1731_s1 + $0x1c] sm:$0x1] %vm283_vm12, %v282_v35   ;;  %801 = vst.msk [vmem:[%s1731_s1 + $0x3b] sm:$0x2] %vm283_vm12, %v282_v35   ;;  %vm442_vm12 = vcmask 335072  }
  0xac   :  { %v292_v36 = vpop.permute.xlu0 %291  }
  0xad   :  { %803 = vst.msk [vmem:[%s1731_s1 + $0x15] sm:$0x1] %vm293_vm13, %v292_v36   ;;  %804 = vst.msk [vmem:[%s1731_s1 + $0x34] sm:$0x2] %vm293_vm13, %v292_v36   ;;  %v302_v37 = vpop.permute.xlu1 %301   ;;  %vm452_vm13 = vcmask 335064  }
  0xae   :  { %806 = vst.msk [vmem:[%s1731_s1 + $0xe] sm:$0x1] %vm303_vm14, %v302_v37   ;;  %807 = vst.msk [vmem:[%s1731_s1 + $0x2d] sm:$0x2] %vm303_vm14, %v302_v37   ;;  %vm462_vm14 = vcmask 335056  }
  0xb0   :  { %v312_v38 = vpop.permute.xlu0 %311  }
  0xb1   :  { %809 = vst.msk [vmem:[%s1731_s1 + $0x7] sm:$0x1] %vm313_vm15, %v312_v38   ;;  %810 = vst.msk [vmem:[%s1731_s1 + $0x26] sm:$0x2] %vm313_vm15, %v312_v38   ;;  %v322_v39 = vpop.permute.xlu1 %321   ;;  %vm472_vm15 = vcmask 335048  }
  0xb2   :  { %812 = vst.msk [vmem:[%s1731_s1 + $0x18] sm:$0x1] %vm323_vm0, %v322_v39   ;;  %813 = vst.msk [vmem:[%s1731_s1 + $0x37] sm:$0x2] %vm323_vm0, %v322_v39   ;;  %vm482_vm0 = vcmask 335040  }
  0xb4   :  { %v332_v40 = vpop.permute.xlu0 %331  }
  0xb5   :  { %815 = vst.msk [vmem:[%s1731_s1 + $0x11] sm:$0x1] %vm333_vm1, %v332_v40   ;;  %816 = vst.msk [vmem:[%s1731_s1 + $0x30] sm:$0x2] %vm333_vm1, %v332_v40   ;;  %v342_v41 = vpop.permute.xlu1 %341   ;;  %vm492_vm1 = vcmask 335032  }
  0xb6   :  { %818 = vst.msk [vmem:[%s1731_s1 + $0xa] sm:$0x1] %vm343_vm2, %v342_v41   ;;  %819 = vst.msk [vmem:[%s1731_s1 + $0x29] sm:$0x2] %vm343_vm2, %v342_v41   ;;  %vm502_vm2 = vcmask 335024  }
  0xb8   :  { %v352_v42 = vpop.permute.xlu0 %351  }
  0xb9   :  { %821 = vst.msk [vmem:[%s1731_s1 + $0x3] sm:$0x1] %vm353_vm3, %v352_v42   ;;  %822 = vst.msk [vmem:[%s1731_s1 + $0x22] sm:$0x2] %vm353_vm3, %v352_v42   ;;  %v362_v43 = vpop.permute.xlu1 %361   ;;  %vm512_vm3 = vcmask 335016  }
  0xba   :  { %824 = vst.msk [vmem:[%s1731_s1 + $0x1c] sm:$0x1] %vm363_vm4, %v362_v43   ;;  %825 = vst.msk [vmem:[%s1731_s1 + $0x3b] sm:$0x2] %vm363_vm4, %v362_v43   ;;  %vm522_vm4 = vcmask 335008  }
  0xbc   :  { %v372_v44 = vpop.permute.xlu0 %371  }
  0xbd   :  { %827 = vst.msk [vmem:[%s1731_s1 + $0x15] sm:$0x1] %vm373_vm5, %v372_v44   ;;  %828 = vst.msk [vmem:[%s1731_s1 + $0x34] sm:$0x2] %vm373_vm5, %v372_v44   ;;  %v382_v45 = vpop.permute.xlu1 %381   ;;  %vm532_vm5 = vcmask 335000  }
  0xbe   :  { %830 = vst.msk [vmem:[%s1731_s1 + $0xe] sm:$0x1] %vm383_vm6, %v382_v45   ;;  %831 = vst.msk [vmem:[%s1731_s1 + $0x2d] sm:$0x2] %vm383_vm6, %v382_v45   ;;  %vm542_vm6 = vcmask 334992  }
  0xc0   :  { %v392_v46 = vpop.permute.xlu0 %391  }
  0xc1   :  { %833 = vst.msk [vmem:[%s1731_s1 + $0x7] sm:$0x1] %vm393_vm7, %v392_v46   ;;  %834 = vst.msk [vmem:[%s1731_s1 + $0x26] sm:$0x2] %vm393_vm7, %v392_v46   ;;  %v402_v47 = vpop.permute.xlu1 %401   ;;  %vm552_vm7 = vcmask 334984  }
  0xc2   :  { %404 = vst.msk [vmem:[%s1731_s1] sm:$0x1] %vm403_vm8, %v402_v47   ;;  %836 = vst.msk [vmem:[%s1731_s1 + $0x1f] sm:$0x2] %vm403_vm8, %v402_v47   ;;  %vm562_vm8 = vcmask 334976  }
  0xc4   :  { %v411_v48 = vpop.permute.xlu0 %410  }
  0xc5   :  { %838 = vst.msk [vmem:[%s1731_s1 + $0x19] sm:$0x1] %vm412_vm9, %v411_v48   ;;  %839 = vst.msk [vmem:[%s1731_s1 + $0x38] sm:$0x2] %vm412_vm9, %v411_v48   ;;  %v421_v49 = vpop.permute.xlu1 %420   ;;  %vm572_vm9 = vcmask 334968  }
  0xc6   :  { %841 = vst.msk [vmem:[%s1731_s1 + $0x12] sm:$0x1] %vm422_vm10, %v421_v49   ;;  %842 = vst.msk [vmem:[%s1731_s1 + $0x31] sm:$0x2] %vm422_vm10, %v421_v49   ;;  %vm582_vm10 = vcmask 334960  }
  0xc8   :  { %v431_v50 = vpop.permute.xlu0 %430  }
  0xc9   :  { %844 = vst.msk [vmem:[%s1731_s1 + $0xb] sm:$0x1] %vm432_vm11, %v431_v50   ;;  %845 = vst.msk [vmem:[%s1731_s1 + $0x2a] sm:$0x2] %vm432_vm11, %v431_v50   ;;  %v441_v51 = vpop.permute.xlu1 %440   ;;  %vm592_vm11 = vcmask 334952  }
  0xca   :  { %847 = vst.msk [vmem:[%s1731_s1 + $0x4] sm:$0x1] %vm442_vm12, %v441_v51   ;;  %848 = vst.msk [vmem:[%s1731_s1 + $0x23] sm:$0x2] %vm442_vm12, %v441_v51   ;;  %vm602_vm12 = vcmask 334944  }
  0xcc   :  { %v451_v52 = vpop.permute.xlu0 %450  }
  0xcd   :  { %850 = vst.msk [vmem:[%s1731_s1 + $0x1d] sm:$0x1] %vm452_vm13, %v451_v52   ;;  %851 = vst.msk [vmem:[%s1731_s1 + $0x3c] sm:$0x2] %vm452_vm13, %v451_v52   ;;  %v461_v53 = vpop.permute.xlu1 %460   ;;  %vm612_vm13 = vcmask 334936  }
  0xce   :  { %853 = vst.msk [vmem:[%s1731_s1 + $0x16] sm:$0x1] %vm462_vm14, %v461_v53   ;;  %854 = vst.msk [vmem:[%s1731_s1 + $0x35] sm:$0x2] %vm462_vm14, %v461_v53   ;;  %vm622_vm14 = vcmask 334928  }
  0xd0   :  { %v471_v54 = vpop.permute.xlu0 %470  }
  0xd1   :  { %856 = vst.msk [vmem:[%s1731_s1 + $0xf] sm:$0x1] %vm472_vm15, %v471_v54   ;;  %857 = vst.msk [vmem:[%s1731_s1 + $0x2e] sm:$0x2] %vm472_vm15, %v471_v54   ;;  %v481_v55 = vpop.permute.xlu1 %480   ;;  %vm632_vm15 = vcmask 334920  }
  0xd2   :  { %859 = vst.msk [vmem:[%s1731_s1 + $0x8] sm:$0x1] %vm482_vm0, %v481_v55   ;;  %860 = vst.msk [vmem:[%s1731_s1 + $0x27] sm:$0x2] %vm482_vm0, %v481_v55   ;;  %vm642_vm0 = vcmask 326720  }
  0xd4   :  { %v491_v56 = vpop.permute.xlu0 %490  }
  0xd5   :  { %862 = vst.msk [vmem:[%s1731_s1 + $0x1] sm:$0x1] %vm492_vm1, %v491_v56   ;;  %863 = vst.msk [vmem:[%s1731_s1 + $0x20] sm:$0x2] %vm492_vm1, %v491_v56   ;;  %v501_v57 = vpop.permute.xlu1 %500   ;;  %vm652_vm1 = vcmask 318520  }
  0xd6   :  { %865 = vst.msk [vmem:[%s1731_s1 + $0x1a] sm:$0x1] %vm502_vm2, %v501_v57   ;;  %866 = vst.msk [vmem:[%s1731_s1 + $0x39] sm:$0x2] %vm502_vm2, %v501_v57   ;;  %vm662_vm2 = vcmask 310320  }
  0xd8   :  { %v511_v58 = vpop.permute.xlu0 %510  }
  0xd9   :  { %868 = vst.msk [vmem:[%s1731_s1 + $0x13] sm:$0x1] %vm512_vm3, %v511_v58   ;;  %869 = vst.msk [vmem:[%s1731_s1 + $0x32] sm:$0x2] %vm512_vm3, %v511_v58   ;;  %v521_v59 = vpop.permute.xlu1 %520   ;;  %vm672_vm3 = vcmask 302120  }
  0xda   :  { %871 = vst.msk [vmem:[%s1731_s1 + $0xc] sm:$0x1] %vm522_vm4, %v521_v59   ;;  %872 = vst.msk [vmem:[%s1731_s1 + $0x2b] sm:$0x2] %vm522_vm4, %v521_v59   ;;  %vm682_vm4 = vcmask 293920  }
  0xdc   :  { %v531_v60 = vpop.permute.xlu0 %530  }
  0xdd   :  { %874 = vst.msk [vmem:[%s1731_s1 + $0x5] sm:$0x1] %vm532_vm5, %v531_v60   ;;  %875 = vst.msk [vmem:[%s1731_s1 + $0x24] sm:$0x2] %vm532_vm5, %v531_v60   ;;  %v541_v61 = vpop.permute.xlu1 %540   ;;  %vm692_vm5 = vcmask 285720  }
  0xde   :  { %877 = vst.msk [vmem:[%s1731_s1 + $0x1e] sm:$0x1] %vm542_vm6, %v541_v61   ;;  %878 = vst.msk [vmem:[%s1731_s1 + $0x3d] sm:$0x2] %vm542_vm6, %v541_v61   ;;  %vm702_vm6 = vcmask 277520  }
  0xe0   :  { %v551_v62 = vpop.permute.xlu0 %550  }
  0xe1   :  { %880 = vst.msk [vmem:[%s1731_s1 + $0x17] sm:$0x1] %vm552_vm7, %v551_v62   ;;  %881 = vst.msk [vmem:[%s1731_s1 + $0x36] sm:$0x2] %vm552_vm7, %v551_v62   ;;  %v561_v63 = vpop.permute.xlu1 %560   ;;  %vm712_vm7 = vcmask 269320  }
  0xe2   :  { %883 = vst.msk [vmem:[%s1731_s1 + $0x10] sm:$0x1] %vm562_vm8, %v561_v63   ;;  %884 = vst.msk [vmem:[%s1731_s1 + $0x2f] sm:$0x2] %vm562_vm8, %v561_v63  }
  0xe4   :  { %v571_v0 = vpop.permute.xlu0 %570  }
  0xe5   :  { %886 = vst.msk [vmem:[%s1731_s1 + $0x9] sm:$0x1] %vm572_vm9, %v571_v0   ;;  %887 = vst.msk [vmem:[%s1731_s1 + $0x28] sm:$0x2] %vm572_vm9, %v571_v0   ;;  %v581_v1 = vpop.permute.xlu1 %580  }
  0xe6   :  { %889 = vst.msk [vmem:[%s1731_s1 + $0x2] sm:$0x1] %vm582_vm10, %v581_v1   ;;  %890 = vst.msk [vmem:[%s1731_s1 + $0x21] sm:$0x2] %vm582_vm10, %v581_v1  }
  0xe8   :  { %v591_v2 = vpop.permute.xlu0 %590  }
  0xe9   :  { %892 = vst.msk [vmem:[%s1731_s1 + $0x1b] sm:$0x1] %vm592_vm11, %v591_v2   ;;  %893 = vst.msk [vmem:[%s1731_s1 + $0x3a] sm:$0x2] %vm592_vm11, %v591_v2   ;;  %v601_v3 = vpop.permute.xlu1 %600  }
  0xea   :  { %895 = vst.msk [vmem:[%s1731_s1 + $0x14] sm:$0x1] %vm602_vm12, %v601_v3   ;;  %896 = vst.msk [vmem:[%s1731_s1 + $0x33] sm:$0x2] %vm602_vm12, %v601_v3  }
  0xec   :  { %v611_v4 = vpop.permute.xlu0 %610  }
  0xed   :  { %898 = vst.msk [vmem:[%s1731_s1 + $0xd] sm:$0x1] %vm612_vm13, %v611_v4   ;;  %899 = vst.msk [vmem:[%s1731_s1 + $0x2c] sm:$0x2] %vm612_vm13, %v611_v4   ;;  %v621_v5 = vpop.permute.xlu1 %620  }
  0xee   :  { %901 = vst.msk [vmem:[%s1731_s1 + $0x6] sm:$0x1] %vm622_vm14, %v621_v5   ;;  %902 = vst.msk [vmem:[%s1731_s1 + $0x25] sm:$0x2] %vm622_vm14, %v621_v5  }
  0xf0   :  { %v631_v6 = vpop.permute.xlu0 %630  }
  0xf1   :  { %904 = vst.msk [vmem:[%s1731_s1 + $0x1f] sm:$0x1] %vm632_vm15, %v631_v6   ;;  %905 = vst.msk [vmem:[%s1731_s1 + $0x3e] sm:$0x2] %vm632_vm15, %v631_v6   ;;  %v641_v7 = vpop.permute.xlu1 %640  }
  0xf2   :  { %907 = vst.msk [vmem:[%s1731_s1 + $0x18] sm:$0x1] %vm642_vm0, %v641_v7   ;;  %908 = vst.msk [vmem:[%s1731_s1 + $0x37] sm:$0x2] %vm642_vm0, %v641_v7  }
  0xf4   :  { %v651_v8 = vpop.permute.xlu0 %650  }
  0xf5   :  { %910 = vst.msk [vmem:[%s1731_s1 + $0x11] sm:$0x1] %vm652_vm1, %v651_v8   ;;  %911 = vst.msk [vmem:[%s1731_s1 + $0x30] sm:$0x2] %vm652_vm1, %v651_v8   ;;  %v661_v9 = vpop.permute.xlu1 %660  }
  0xf6   :  { %913 = vst.msk [vmem:[%s1731_s1 + $0xa] sm:$0x1] %vm662_vm2, %v661_v9   ;;  %914 = vst.msk [vmem:[%s1731_s1 + $0x29] sm:$0x2] %vm662_vm2, %v661_v9  }
  0xf8   :  { %v671_v10 = vpop.permute.xlu0 %670  }
  0xf9   :  { %916 = vst.msk [vmem:[%s1731_s1 + $0x3] sm:$0x1] %vm672_vm3, %v671_v10   ;;  %917 = vst.msk [vmem:[%s1731_s1 + $0x22] sm:$0x2] %vm672_vm3, %v671_v10   ;;  %v681_v11 = vpop.permute.xlu1 %680  }
  0xfa   :  { %919 = vst.msk [vmem:[%s1731_s1 + $0x1c] sm:$0x1] %vm682_vm4, %v681_v11   ;;  %920 = vst.msk [vmem:[%s1731_s1 + $0x3b] sm:$0x2] %vm682_vm4, %v681_v11  }
  0xfc   :  { %v691_v12 = vpop.permute.xlu0 %690  }
  0xfd   :  { %922 = vst.msk [vmem:[%s1731_s1 + $0x15] sm:$0x1] %vm692_vm5, %v691_v12   ;;  %923 = vst.msk [vmem:[%s1731_s1 + $0x34] sm:$0x2] %vm692_vm5, %v691_v12   ;;  %v701_v13 = vpop.permute.xlu1 %700  }
  0xfe   :  { %925 = vst.msk [vmem:[%s1731_s1 + $0xe] sm:$0x1] %vm702_vm6, %v701_v13   ;;  %926 = vst.msk [vmem:[%s1731_s1 + $0x2d] sm:$0x2] %vm702_vm6, %v701_v13  }
 0x100   :  { %v711_v14 = vpop.permute.xlu0 %710  }
 0x101   :  { %928 = vst.msk [vmem:[%s1731_s1 + $0x7] sm:$0x1] %vm712_vm7, %v711_v14   ;;  %929 = vst.msk [vmem:[%s1731_s1 + $0x26] sm:$0x2] %vm712_vm7, %v711_v14  }

// kernel: stsa_encoder_forward.3
= control target key start
LH: loop header
LB: loop body
LE: loop exit
PB: predicated region body
PF: predicated region fallthrough
CT: control target
= control target key end

     0   :  { %vm66_vm0 = vcmask 334848   ;;  %vm192_vm1 = vcmask 261120   ;;  %v2896_v18 = vmov 0.0   ;;  %vm198_vm2 = vcmask 253952   ;;  %s4179_s1 = inlined_call_operand.vmem [shape: f32[2,32,41], index: 1, kind: input, shape index: {}]   ;;  %s4180_s2 = inlined_call_operand.vmem [shape: f32[41,41], index: 2, kind: input, shape index: {}]   ;;  %s4181_s0 = inlined_call_operand.vmem [shape: f32[82,32], index: 0, kind: input, shape index: {}]   ;;  %s4182_s7 = inlined_call_operand.vmem [shape: f32[32,64], index: 7, kind: input, shape index: {}]   ;;  %s4183_s8 = inlined_call_operand.vmem [shape: f32[32,64], index: 8, kind: input, shape index: {}]   ;;  %s4184_s3 = inlined_call_operand.vmem [shape: f32[1,32], index: 3, kind: input, shape index: {}]   ;;  %s4185_s5 = inlined_call_operand.vmem [shape: f32[1,32], index: 5, kind: input, shape index: {}]   ;;  %s4186_s6 = inlined_call_operand.vmem [shape: f32[1,32], index: 6, kind: input, shape index: {}]   ;;  %s4187_s4 = inlined_call_operand.vmem [shape: f32[1,32], index: 4, kind: input, shape index: {}]   ;;  %s4188_s13 = inlined_call_operand.vmem [shape: f32[41,41], index: 13, kind: input, shape index: {}]   ;;  %s4189_s12 = inlined_call_operand.vmem [shape: f32[41,41], index: 12, kind: input, shape index: {}]   ;;  %s4190_s10 = inlined_call_operand.vmem [shape: f32[64,32], index: 10, kind: input, shape index: {}]   ;;  %s4191_s14 = inlined_call_operand.vmem [shape: f32[41,1], index: 14, kind: input, shape index: {}]   ;;  %s4192_s9 = inlined_call_operand.vmem [shape: f32[1,64], index: 9, kind: input, shape index: {}]   ;;  %s4193_s11 = inlined_call_operand.vmem [shape: f32[1,32], index: 11, kind: input, shape index: {}]   ;;  %s4194_s15 = inlined_call_operand.vmem [shape: f32[1,32], index: 15, kind: input, shape index: {}]   ;;  %s4195_s16 = inlined_call_operand.vmem [shape: f32[1,32], index: 16, kind: input, shape index: {}]   ;;  %s4196_s17 = inlined_call_operand.vmem [shape: f32[2,41,32], index: 17, kind: output, shape index: {}]  }
   0x1   :  { %4199 = sst [smem:[#allocation3_spill]] %s4179_s1  ;;  %v3062_v14 = vld [vmem:[%s4181_s0 + $0x8] sm:$0xff]  ;;  %v3069_v16 = vld [vmem:[%s4181_s0] sm:$0xff]  ;;  %v680_v19 = vld [vmem:[%s4182_s7 + $0x18] sm:$0xff]  ;;  %vm1517_vm3 = vcmask 1040384   ;;  %vm370_vm4 = vcmask 254976  }
   0x2   :  { %4200 = sst [smem:[#allocation4_spill]] %s4180_s2  ;;  %v343_v15 = vsel %vm192_vm1, %v3062_v14, 0.0  ;;  %v340_v17 = vsel %vm192_vm1, %v3069_v16, 0.0  ;;  %v679_v20 = vld [vmem:[%s4182_s7 + $0x10] sm:$0xff]  ;;  %v678_v21 = vld [vmem:[%s4182_s7 + $0x8] sm:$0xff]  ;;  %v677_v22 = vld [vmem:[%s4182_s7] sm:$0xff] }
   0x3   :  { %s4201_s26 = sld [smem:[#allocation3_spill]]  ;;  %344 = vadd.xlane.f32.xlu1 %v343_v15  ;;  %341 = vadd.xlane.f32.xlu0 %v340_v17  ;;  %v3108_v36 = vld [vmem:[%s4181_s0 + $0x10] sm:$0xff]  ;;  %v3122_v42 = vld [vmem:[%s4181_s0 + $0x18] sm:$0xff]  ;;  %v3139_v48 = vld [vmem:[%s4181_s0 + $0x20] sm:$0xff]  ;;  %vm2897_vm5 = vmmov 0   ;;  %vm1321_vm7 = vcmask 523264  }
   0x4   :  { %s4202_s19 = sld [smem:[#allocation4_spill]]  ;;  %v346_v40 = vsel %vm192_vm1, %v3108_v36, 0.0  ;;  %v349_v46 = vsel %vm192_vm1, %v3122_v42, 0.0  ;;  %v352_v51 = vsel %vm192_vm1, %v3139_v48, 0.0  ;;  %v3150_v52 = vld [vmem:[%s4181_s0 + $0x28] sm:$0xff]  ;;  %v3159_v55 = vld [vmem:[%s4181_s0 + $0x30] sm:$0xff] }
   0x5   :  { %v355_v54 = vsel %vm192_vm1, %v3150_v52, 0.0  ;;  %v358_v58 = vsel %vm192_vm1, %v3159_v55, 0.0  ;;  %v3170_v59 = vld [vmem:[%s4181_s0 + $0x38] sm:$0xff]  ;;  %v3181_v63 = vld [vmem:[%s4181_s0 + $0x40] sm:$0xff] }
   0x6   :  { %v361_v62 = vsel %vm192_vm1, %v3170_v59, 0.0 }
   0x9   :  { %v65_v0 = vld [vmem:[%s4201_s26 + $0x18] sm:$0xff]  ;;  %v64_v1 = vld [vmem:[%s4201_s26 + $0x10] sm:$0xff]  ;;  %v63_v5 = vld [vmem:[%s4201_s26 + $0x8] sm:$0xff] }
   0xa   :  { %2552 = vmatprep.subr.msk.mxu0 %vm66_vm0, %v65_v0  ;;  %v2347_v2 = vld [vmem:[%s4201_s26 + $0x38] sm:$0xff]  ;;  %v56_v3 = vld [vmem:[%s4202_s19] sm:$0xff]  ;;  %v2346_v4 = vld [vmem:[%s4201_s26 + $0x30] sm:$0xff] }
   0xb   :  { %2553 = vmatpush3.xpose.msk.msra.mxu0 %vm66_vm0, %v65_v0  ;;  %2569 = vmatprep.subr.msk.mxu1 %vm66_vm0, %v2347_v2  ;;  %v2345_v6 = vld [vmem:[%s4201_s26 + $0x28] sm:$0xff]  ;;  %v62_v7 = vld [vmem:[%s4201_s26] sm:$0xff]  ;;  %v58_v10 = vld [vmem:[%s4202_s19 + $0x10] sm:$0xff] }
   0xc   :  { %2554 = vmatprep.subr.msk.mxu0 %vm66_vm0, %v64_v1  ;;  %2560 = vmatprep.mubr.msk.f32.mxu0 %vm66_vm0, %v56_v3  ;;  %v2344_v8 = vld [vmem:[%s4201_s26 + $0x20] sm:$0xff]  ;;  %v57_v9 = vld [vmem:[%s4202_s19 + $0x8] sm:$0xff]  ;;  %v59_v11 = vld [vmem:[%s4202_s19 + $0x18] sm:$0xff] }
   0xd   :  { %2570 = vmatpush3.xpose.msk.msra.mxu1 %vm66_vm0, %v2347_v2  ;;  %2577 = vmatprep.mubr.msk.f32.mxu1 %vm66_vm0, %v56_v3  ;;  %v60_v12 = vld [vmem:[%s4202_s19 + $0x20] sm:$0xff]  ;;  %v61_v13 = vld [vmem:[%s4202_s19 + $0x28] sm:$0x1]  ;;  %v364_v2 = vsel %vm192_vm1, %v3181_v63, 0.0 }
   0xe   :  { %2571 = vmatprep.subr.msk.mxu1 %vm66_vm0, %v2346_v4  ;;  %v3192_v3 = vld [vmem:[%s4181_s0 + $0x48] sm:$0xff] }
   0xf   :  { %2555 = vmatpush3.xpose.msk.msra.mxu0 %vm66_vm0, %v64_v1 }
  0x10   :  { %2556 = vmatprep.subr.msk.mxu0 %vm66_vm0, %v63_v5 }
  0x11   :  { %2572 = vmatpush3.xpose.msk.msra.mxu1 %vm66_vm0, %v2346_v4 }
  0x12   :  { %2573 = vmatprep.subr.msk.mxu1 %vm66_vm0, %v2345_v6 }
  0x13   :  { %2557 = vmatpush3.xpose.msk.msra.mxu0 %vm66_vm0, %v63_v5 }
  0x14   :  { %2558 = vmatprep.subr.msk.mxu0 %vm66_vm0, %v62_v7 }
  0x15   :  { %2574 = vmatpush3.xpose.msk.msra.mxu1 %vm66_vm0, %v2345_v6  ;;  %v367_v6 = vsel %vm192_vm1, %v3192_v3, 0.0 }
  0x16   :  { %2575 = vmatprep.subr.msk.mxu1 %vm66_vm0, %v2344_v8 }
  0x17   :  { %2559 = vmatpush3.xpose.msk.msra.mxu0 %vm66_vm0, %v62_v7  ;;  %v3203_v7 = vld [vmem:[%s4181_s0 + $0x50] sm:$0x3] }
  0x18   :  { %2586 = vmatprep.subr.mxu0 %v2896_v18 }
  0x19   :  { %2576 = vmatpush3.xpose.msk.msra.mxu1 %vm66_vm0, %v2344_v8 }
  0x1a   :  { %2561 = vmatmul.mubr.msk.f32.vlgmr.msra.gmra.mxu0 %vm66_vm0, %v57_v9  ;;  %2627 = vmatprep.subr.mxu1 %v2896_v18 }
  0x1b   :  { %2563 = vmatprep.mubr.msk.f32.mxu0 %vm66_vm0, %v58_v10 }
  0x1c   :  { %2578 = vmatmul.mubr.msk.f32.vlgmr.msra.gmra.mxu1 %vm66_vm0, %v57_v9 }
  0x1d   :  { %2580 = vmatprep.mubr.msk.f32.mxu1 %vm66_vm0, %v58_v10  ;;  %2628 = vmatpush3.msra.mxu1 %v680_v19  ;;  %v371_v10 = vsel %vm370_vm4, %v3203_v7, 0.0 }
  0x1e   :  { %2564 = vmatmul.mubr.msk.f32.gmra.mxu0 %vm66_vm0, %v59_v11  ;;  %2629 = vmatprep.subr.mxu1 %v2896_v18 }
  0x1f   :  { %2566 = vmatprep.mubr.msk.f32.mxu0 %vm66_vm0, %v60_v12  ;;  %2630 = vmatpush3.msra.mxu1 %v679_v20 }
  0x20   :  { %2581 = vmatmul.mubr.msk.f32.gmra.mxu1 %vm66_vm0, %v59_v11  ;;  %2631 = vmatprep.subr.mxu1 %v2896_v18 }
  0x21   :  { %2583 = vmatprep.mubr.msk.f32.mxu1 %vm66_vm0, %v60_v12  ;;  %2632 = vmatpush3.msra.mxu1 %v678_v21 }
  0x22   :  { %2567 = vmatmul.mubr.msk.f32.gmra.mxu0 %vm66_vm0, %v61_v13  ;;  %2633 = vmatprep.subr.mxu1 %v2896_v18 }
  0x23   :  { %2634 = vmatpush3.msra.mxu1 %v677_v22  ;;  %2594 = vmatprep.mubr.msk.f32.mxu0 %vm2897_vm5, %v2896_v18 }
  0x24   :  { %2584 = vmatmul.mubr.msk.f32.gmra.mxu1 %vm66_vm0, %v61_v13 }
  0x25   :  { %2635 = vmatprep.mubr.msk.f32.mxu1 %vm2897_vm5, %v2896_v18 }
  0x8c   :  { %v345_v12 = vpop.xlane.xlu1 %344  ;;  %v342_v13 = vpop.xlane.xlu0 %341 }
  0xda   :  { %v2562_v23 = vpop.f32.mrf.mxu0 }
  0xdb   :  { %194 = vst.msk [vmem:[#allocation2 + $0x8] sm:$0xff] %vm192_vm1, %v2562_v23 }
  0xdc   :  { %v163_v24 = vpop.f32.mrf.mxu0  ;;  %v2579_v25 = vpop.f32.mrf.mxu1 }
  0xdd   :  { %193 = vst.msk [vmem:[#allocation2] sm:$0xff] %vm192_vm1, %v163_v24  ;;  %313 = vst.msk [vmem:[#allocation2 + $0x31] sm:$0xff] %vm192_vm1, %v2579_v25 }
  0xde   :  { %v2565_v26 = vpop.f32.mrf.mxu0  ;;  %v283_v27 = vpop.f32.mrf.mxu1 }
  0xdf   :  { %196 = vst.msk [vmem:[#allocation2 + $0x18] sm:$0xff] %vm192_vm1, %v2565_v26  ;;  %312 = vst.msk [vmem:[#allocation2 + $0x29] sm:$0xff] %vm192_vm1, %v283_v27 }
  0xe0   :  { %v173_v28 = vpop.f32.mrf.mxu0  ;;  %v2582_v29 = vpop.f32.mrf.mxu1 }
  0xe1   :  { %195 = vst.msk [vmem:[#allocation2 + $0x10] sm:$0xff] %vm192_vm1, %v173_v28  ;;  %315 = vst.msk [vmem:[#allocation2 + $0x41] sm:$0xff] %vm192_vm1, %v2582_v29 }
  0xe2   :  { %v3097_v30 = vld [vmem:[#allocation2 + $0x8] sm:$0xff]  ;;  %v2568_v31 = vpop.f32.mrf.mxu0  ;;  %v293_v32 = vpop.f32.mrf.mxu1 }
  0xe3   :  { %v377_v33 = vsel %vm192_vm1, %v3097_v30, 0.0  ;;  %199 = vst.msk [vmem:[#allocation2 + $0x28] sm:$0x1] %vm198_vm2, %v2568_v31 }
  0xe4   :  { %314 = vst.msk [vmem:[#allocation2 + $0x39] sm:$0xff] %vm192_vm1, %v293_v32  ;;  %378 = vadd.xlane.f32.xlu1 %v377_v33  ;;  %v3103_v34 = vld [vmem:[#allocation2] sm:$0xff]  ;;  %v183_v35 = vpop.f32.mrf.mxu0  ;;  %v2585_v37 = vpop.f32.mrf.mxu1 }
  0xe5   :  { %v374_v38 = vsel %vm192_vm1, %v3103_v34, 0.0  ;;  %197 = vst.msk [vmem:[#allocation2 + $0x20] sm:$0xff] %vm192_vm1, %v183_v35 }
  0xe6   :  { %317 = vst.msk [vmem:[#allocation2 + $0x51] sm:$0x1] %vm198_vm2, %v2585_v37  ;;  %375 = vadd.xlane.f32.xlu0 %v374_v38  ;;  %v303_v39 = vpop.f32.mrf.mxu1  ;;  %v3126_v44 = vld [vmem:[#allocation2 + $0x18] sm:$0xff]  ;;  %v3163_v57 = vld [vmem:[#allocation2 + $0x30] sm:$0xff] }
  0xe7   :  { %316 = vst.msk [vmem:[#allocation2 + $0x49] sm:$0xff] %vm192_vm1, %v303_v39  ;;  %v383_v49 = vsel %vm192_vm1, %v3126_v44, 0.0  ;;  %v392_v60 = vsel %vm192_vm1, %v3163_v57, 0.0 }
  0xe8   :  { %v3117_v41 = vld [vmem:[#allocation2 + $0x10] sm:$0xff] }
  0xe9   :  { %v380_v43 = vsel %vm192_vm1, %v3117_v41, 0.0 }
  0xea   :  { %381 = vadd.xlane.f32.xlu1 %v380_v43  ;;  %347 = vadd.xlane.f32.xlu0 %v346_v40  ;;  %v3128_v45 = vld [vmem:[#allocation2 + $0x28] sm:$0x1] }
  0xeb   :  { %2717 = vmatprep.subr.msk.mxu1 %vm1517_vm3, %v3128_v45  ;;  %v3152_v53 = vld [vmem:[#allocation2 + $0x28] sm:$0xff]  ;;  %v3174_v61 = vld [vmem:[#allocation2 + $0x38] sm:$0xff]  ;;  %v3185_v1 = vld [vmem:[#allocation2 + $0x40] sm:$0xff] }
  0xec   :  { %v3134_v47 = vld [vmem:[#allocation2 + $0x20] sm:$0xff]  ;;  %v389_v56 = vsel %vm192_vm1, %v3152_v53, 0.0  ;;  %v395_v0 = vsel %vm192_vm1, %v3174_v61, 0.0  ;;  %v398_v4 = vsel %vm192_vm1, %v3185_v1, 0.0 }
  0xed   :  { %v386_v50 = vsel %vm192_vm1, %v3134_v47, 0.0 }
  0xee   :  { %384 = vadd.xlane.f32.xlu1 %v383_v49  ;;  %350 = vadd.xlane.f32.xlu0 %v349_v46  ;;  %v3196_v5 = vld [vmem:[#allocation2 + $0x48] sm:$0xff]  ;;  %v3207_v9 = vld [vmem:[#allocation2 + $0x50] sm:$0x3] }
  0xef   :  { %v401_v8 = vsel %vm192_vm1, %v3196_v5, 0.0  ;;  %v404_v11 = vsel %vm370_vm4, %v3207_v9, 0.0 }
  0xf2   :  { %387 = vadd.xlane.f32.xlu1 %v386_v50  ;;  %353 = vadd.xlane.f32.xlu0 %v352_v51 }
  0xf6   :  { %390 = vadd.xlane.f32.xlu1 %v389_v56  ;;  %356 = vadd.xlane.f32.xlu0 %v355_v54 }
  0xfa   :  { %393 = vadd.xlane.f32.xlu1 %v392_v60  ;;  %359 = vadd.xlane.f32.xlu0 %v358_v58 }
  0xfe   :  { %396 = vadd.xlane.f32.xlu1 %v395_v0  ;;  %362 = vadd.xlane.f32.xlu0 %v361_v62 }
 0x102   :  { %399 = vadd.xlane.f32.xlu1 %v398_v4  ;;  %365 = vadd.xlane.f32.xlu0 %v364_v2 }
 0x106   :  { %402 = vadd.xlane.f32.xlu1 %v401_v8  ;;  %368 = vadd.xlane.f32.xlu0 %v367_v6 }
 0x10a   :  { %405 = vadd.xlane.f32.xlu1 %v404_v11  ;;  %372 = vadd.xlane.f32.xlu0 %v371_v10 }
 0x16d   :  { %v379_v15 = vpop.xlane.xlu1 %378 }
 0x16e   :  { %v408_v17 = vadd.f32 %v379_v15, %v345_v12 }
 0x16f   :  { %v376_v19 = vpop.xlane.xlu0 %375 }
 0x170   :  { %v419_v20 = vmul.f32 0.015625, %v408_v17  ;;  %v407_v21 = vadd.f32 %v376_v19, %v342_v13 }
 0x172   :  { %v418_v22 = vmul.f32 0.015625, %v407_v21  ;;  %v3214_v25 = vsub.f32 %v3097_v30, %v419_v20  ;;  %v3223_v29 = vsub.f32 %v3062_v14, %v419_v20 }
 0x173   :  { %v382_v23 = vpop.xlane.xlu1 %381  ;;  %v348_v24 = vpop.xlane.xlu0 %347 }
 0x174   :  { %v3217_v26 = vsub.f32 %v3069_v16, %v418_v22  ;;  %v3220_v27 = vsub.f32 %v3103_v34, %v418_v22  ;;  %v409_v28 = vadd.f32 %v382_v23, %v348_v24  ;;  %v496_v43 = vmul.f32 %v3214_v25, %v3214_v25 }
 0x175   :  { %v452_v50 = vmul.f32 %v3223_v29, %v3223_v29 }
 0x176   :  { %v420_v31 = vmul.f32 0.015625, %v409_v28  ;;  %v495_v32 = vmul.f32 %v3220_v27, %v3220_v27  ;;  %v451_v33 = vmul.f32 %v3217_v26, %v3217_v26  ;;  %v509_v62 = vsel %vm192_vm1, %v496_v43, 0.0 }
 0x177   :  { %v385_v35 = vpop.xlane.xlu1 %384  ;;  %v351_v37 = vpop.xlane.xlu0 %350  ;;  %v465_v4 = vsel %vm192_vm1, %v452_v50, 0.0 }
 0x178   :  { %v3230_v38 = vsub.f32 %v3117_v41, %v420_v31  ;;  %v410_v39 = vadd.f32 %v385_v35, %v351_v37  ;;  %v506_v40 = vsel %vm192_vm1, %v495_v32, 0.0  ;;  %v3236_v46 = vsub.f32 %v3108_v36, %v420_v31 }
 0x179   :  { %507 = vadd.xlane.f32.xlu1 %v506_v40  ;;  %v462_v49 = vsel %vm192_vm1, %v451_v33, 0.0 }
 0x17a   :  { %v421_v51 = vmul.f32 0.015625, %v410_v39  ;;  %463 = vadd.xlane.f32.xlu0 %v462_v49  ;;  %v497_v0 = vmul.f32 %v3230_v38, %v3230_v38  ;;  %v453_v6 = vmul.f32 %v3236_v46, %v3236_v46 }
 0x17b   :  { %v388_v54 = vpop.xlane.xlu1 %387  ;;  %v354_v56 = vpop.xlane.xlu0 %353 }
 0x17c   :  { %v3242_v58 = vsub.f32 %v3126_v44, %v421_v51  ;;  %v411_v60 = vadd.f32 %v388_v54, %v354_v56  ;;  %v3248_v2 = vsub.f32 %v3122_v42, %v421_v51  ;;  %v512_v15 = vsel %vm192_vm1, %v497_v0, 0.0 }
 0x17d   :  { %510 = vadd.xlane.f32.xlu1 %v509_v62  ;;  %v468_v20 = vsel %vm192_vm1, %v453_v6, 0.0 }
 0x17e   :  { %v422_v8 = vmul.f32 0.015625, %v411_v60  ;;  %466 = vadd.xlane.f32.xlu0 %v465_v4  ;;  %v498_v17 = vmul.f32 %v3242_v58, %v3242_v58  ;;  %v454_v21 = vmul.f32 %v3248_v2, %v3248_v2 }
 0x17f   :  { %v391_v10 = vpop.xlane.xlu1 %390  ;;  %v357_v11 = vpop.xlane.xlu0 %356 }
 0x180   :  { %v3254_v12 = vsub.f32 %v3134_v47, %v422_v8  ;;  %v412_v13 = vadd.f32 %v391_v10, %v357_v11  ;;  %v3260_v19 = vsub.f32 %v3139_v48, %v422_v8  ;;  %v515_v32 = vsel %vm192_vm1, %v498_v17, 0.0 }
 0x181   :  { %513 = vadd.xlane.f32.xlu1 %v512_v15  ;;  %v471_v37 = vsel %vm192_vm1, %v454_v21, 0.0 }
 0x182   :  { %v423_v22 = vmul.f32 0.015625, %v412_v13  ;;  %469 = vadd.xlane.f32.xlu0 %v468_v20  ;;  %v499_v33 = vmul.f32 %v3254_v12, %v3254_v12  ;;  %v455_v39 = vmul.f32 %v3260_v19, %v3260_v19 }
 0x183   :  { %v394_v23 = vpop.xlane.xlu1 %393  ;;  %v360_v24 = vpop.xlane.xlu0 %359 }
 0x184   :  { %v3266_v28 = vsub.f32 %v3152_v53, %v423_v22  ;;  %v413_v31 = vadd.f32 %v394_v23, %v360_v24  ;;  %v3272_v35 = vsub.f32 %v3150_v52, %v423_v22  ;;  %v518_v51 = vsel %vm192_vm1, %v499_v33, 0.0 }
 0x185   :  { %516 = vadd.xlane.f32.xlu1 %v515_v32  ;;  %v474_v56 = vsel %vm192_vm1, %v455_v39, 0.0 }
 0x186   :  { %v424_v40 = vmul.f32 0.015625, %v413_v31  ;;  %472 = vadd.xlane.f32.xlu0 %v471_v37  ;;  %v500_v52 = vmul.f32 %v3266_v28, %v3266_v28  ;;  %v456_v60 = vmul.f32 %v3272_v35, %v3272_v35 }
 0x187   :  { %v397_v43 = vpop.xlane.xlu1 %396  ;;  %v363_v53 = vpop.xlane.xlu0 %362 }
 0x188   :  { %v3278_v49 = vsub.f32 %v3163_v57, %v424_v40  ;;  %v414_v50 = vadd.f32 %v397_v43, %v363_v53  ;;  %v3284_v54 = vsub.f32 %v3159_v55, %v424_v40  ;;  %v521_v8 = vsel %vm192_vm1, %v500_v52, 0.0 }
 0x189   :  { %519 = vadd.xlane.f32.xlu1 %v518_v51  ;;  %v477_v11 = vsel %vm192_vm1, %v456_v60, 0.0  ;;  %v683_v60 = vld [vmem:[%s4183_s8 + $0x10] sm:$0xff] }
 0x18a   :  { %v425_v62 = vmul.f32 0.015625, %v414_v50  ;;  %475 = vadd.xlane.f32.xlu0 %v474_v56  ;;  %v501_v55 = vmul.f32 %v3278_v49, %v3278_v49  ;;  %v457_v13 = vmul.f32 %v3284_v54, %v3284_v54 }
 0x18b   :  { %v400_v0 = vpop.xlane.xlu1 %399  ;;  %v366_v57 = vpop.xlane.xlu0 %365 }
 0x18c   :  { %v3290_v4 = vsub.f32 %v3174_v61, %v425_v62  ;;  %v415_v6 = vadd.f32 %v400_v0, %v366_v57  ;;  %v3296_v10 = vsub.f32 %v3170_v59, %v425_v62  ;;  %v524_v22 = vsel %vm192_vm1, %v501_v55, 0.0  ;;  %v682_v57 = vld [vmem:[%s4183_s8 + $0x8] sm:$0xff] }
 0x18d   :  { %522 = vadd.xlane.f32.xlu1 %v521_v8  ;;  %v480_v24 = vsel %vm192_vm1, %v457_v13, 0.0  ;;  %v681_v8 = vld [vmem:[%s4183_s8] sm:$0xff] }
 0x18e   :  { %v426_v15 = vmul.f32 0.015625, %v415_v6  ;;  %478 = vadd.xlane.f32.xlu0 %v477_v11  ;;  %v502_v59 = vmul.f32 %v3290_v4, %v3290_v4  ;;  %v458_v31 = vmul.f32 %v3296_v10, %v3296_v10 }
 0x18f   :  { %v403_v17 = vpop.xlane.xlu1 %402  ;;  %v369_v61 = vpop.xlane.xlu0 %368 }
 0x190   :  { %v3302_v20 = vsub.f32 %v3185_v1, %v426_v15  ;;  %v416_v21 = vadd.f32 %v403_v17, %v369_v61  ;;  %v3308_v23 = vsub.f32 %v3181_v63, %v426_v15  ;;  %v527_v40 = vsel %vm192_vm1, %v502_v59, 0.0 }
 0x191   :  { %525 = vadd.xlane.f32.xlu1 %v524_v22  ;;  %v483_v53 = vsel %vm192_vm1, %v458_v31, 0.0 }
 0x192   :  { %v427_v32 = vmul.f32 0.015625, %v416_v21  ;;  %481 = vadd.xlane.f32.xlu0 %v480_v24  ;;  %v503_v63 = vmul.f32 %v3302_v20, %v3302_v20  ;;  %v459_v50 = vmul.f32 %v3308_v23, %v3308_v23 }
 0x193   :  { %v406_v33 = vpop.xlane.xlu1 %405  ;;  %v373_v1 = vpop.xlane.xlu0 %372 }
 0x194   :  { %v3314_v37 = vsub.f32 %v3196_v5, %v427_v32  ;;  %v417_v39 = vadd.f32 %v406_v33, %v373_v1  ;;  %v3320_v43 = vsub.f32 %v3192_v3, %v427_v32  ;;  %v684_v5 = vld [vmem:[%s4183_s8 + $0x18] sm:$0xff]  ;;  %v530_v56 = vsel %vm192_vm1, %v503_v63, 0.0 }
 0x195   :  { %528 = vadd.xlane.f32.xlu1 %v527_v40  ;;  %2587 = vmatpush3.msra.mxu0 %v684_v5  ;;  %v486_v0 = vsel %vm192_vm1, %v459_v50, 0.0 }
 0x196   :  { %v428_v51 = vmul.f32 0.015625, %v417_v39  ;;  %484 = vadd.xlane.f32.xlu0 %v483_v53  ;;  %v504_v3 = vmul.f32 %v3314_v37, %v3314_v37  ;;  %2588 = vmatprep.subr.mxu0 %v2896_v18 }
 0x197   :  { %2589 = vmatpush3.msra.mxu0 %v683_v60 }
 0x198   :  { %v3329_v52 = vsub.f32 %v3207_v9, %v428_v51  ;;  %v3339_v62 = vsub.f32 %v3203_v7, %v428_v51  ;;  %v460_v9 = vmul.f32 %v3320_v43, %v3320_v43  ;;  %2590 = vmatprep.subr.mxu0 %v2896_v18  ;;  %v533_v6 = vsel %vm192_vm1, %v504_v3, 0.0 }
 0x199   :  { %531 = vadd.xlane.f32.xlu1 %v530_v56  ;;  %2591 = vmatpush3.msra.mxu0 %v682_v57 }
 0x19a   :  { %487 = vadd.xlane.f32.xlu0 %v486_v0  ;;  %v505_v7 = vmul.f32 %v3329_v52, %v3329_v52  ;;  %2592 = vmatprep.subr.mxu0 %v2896_v18  ;;  %v489_v55 = vsel %vm192_vm1, %v460_v9, 0.0  ;;  %v461_v11 = vmul.f32 %v3339_v62, %v3339_v62 }
 0x19b   :  { %2593 = vmatpush3.msra.mxu0 %v681_v8 }
 0x19c   :  { %2668 = vmatprep.subr.mxu0 %v2896_v18  ;;  %v536_v13 = vsel %vm370_vm4, %v505_v7, 0.0  ;;  %v492_v15 = vsel %vm370_vm4, %v461_v11, 0.0  ;;  %v3373_v11 = vld [vmem:[%s4185_s5] ss:$0 sm:$0xff] }
 0x19d   :  { %534 = vadd.xlane.f32.xlu1 %v533_v6 }
 0x19e   :  { %490 = vadd.xlane.f32.xlu0 %v489_v55  ;;  %v3368_v55 = vld [vmem:[%s4184_s3] ss:$0 sm:$0xff] }
 0x1a1   :  { %537 = vadd.xlane.f32.xlu1 %v536_v13 }
 0x1a2   :  { %493 = vadd.xlane.f32.xlu0 %v492_v15 }
 0x202   :  { %v508_v17 = vpop.xlane.xlu1 %507 }
 0x203   :  { %v464_v61 = vpop.xlane.xlu0 %463 }
 0x204   :  { %v539_v21 = vadd.f32 %v508_v17, %v464_v61 }
 0x206   :  { %v550_v22 = vmul.f32 0.015625, %v539_v21  ;;  %v511_v59 = vpop.xlane.xlu1 %510 }
 0x207   :  { %v467_v24 = vpop.xlane.xlu0 %466 }
 0x208   :  { %v561_v31 = vadd.f32 1e-05, %v550_v22  ;;  %v540_v32 = vadd.f32 %v511_v59, %v467_v24  ;;  %v3380_v22 = vld [vmem:[%s4186_s6] ss:$0 sm:$0xff] }
 0x209   :  { %v3385_v59 = vld [vmem:[%s4187_s4] ss:$0 sm:$0xff] }
 0x20a   :  { %2806 = vrsqrt.f32 %v561_v31  ;;  %v551_v33 = vmul.f32 0.015625, %v540_v32  ;;  %v514_v1 = vpop.xlane.xlu1 %513 }
 0x20b   :  { %v470_v39 = vpop.xlane.xlu0 %469 }
 0x20c   :  { %v562_v40 = vadd.f32 1e-05, %v551_v33  ;;  %v541_v63 = vadd.f32 %v514_v1, %v470_v39 }
 0x20e   :  { %2808 = vrsqrt.f32 %v562_v40  ;;  %v552_v53 = vmul.f32 0.015625, %v541_v63  ;;  %v517_v50 = vpop.xlane.xlu1 %516 }
 0x20f   :  { %v473_v51 = vpop.xlane.xlu0 %472 }
 0x210   :  { %v563_v5 = vadd.f32 1e-05, %v552_v53  ;;  %v542_v56 = vadd.f32 %v517_v50, %v473_v51 }
 0x212   :  { %2810 = vrsqrt.f32 %v563_v5  ;;  %v553_v3 = vmul.f32 0.015625, %v542_v56  ;;  %v520_v60 = vpop.xlane.xlu1 %519 }
 0x213   :  { %v476_v0 = vpop.xlane.xlu0 %475 }
 0x214   :  { %v564_v9 = vadd.f32 1e-05, %v553_v3  ;;  %v543_v57 = vadd.f32 %v520_v60, %v476_v0 }
 0x216   :  { %2812 = vrsqrt.f32 %v564_v9  ;;  %v554_v6 = vmul.f32 0.015625, %v543_v57  ;;  %v523_v7 = vpop.xlane.xlu1 %522 }
 0x217   :  { %v2807_v8 = vpop.eup %2806  ;;  %v479_v13 = vpop.xlane.xlu0 %478 }
 0x218   :  { %v583_v15 = vmul.f32 %v2807_v8, %v3217_v26  ;;  %v630_v17 = vmul.f32 %v2807_v8, %v3220_v27  ;;  %v565_v61 = vadd.f32 1e-05, %v554_v6  ;;  %v544_v21 = vadd.f32 %v523_v7, %v479_v13 }
 0x21a   :  { %v601_v24 = vmul.f32 %v3368_v55, %v583_v15  ;;  %v648_v31 = vmul.f32 %v3373_v11, %v630_v17  ;;  %2814 = vrsqrt.f32 %v565_v61  ;;  %v555_v26 = vmul.f32 0.015625, %v544_v21  ;;  %v526_v32 = vpop.xlane.xlu1 %525 }
 0x21b   :  { %v2809_v27 = vpop.eup %2808  ;;  %v482_v33 = vpop.xlane.xlu0 %481 }
 0x21c   :  { %v566_v1 = vadd.f32 1e-05, %v555_v26  ;;  %v545_v39 = vadd.f32 %v526_v32, %v482_v33  ;;  %v666_v40 = vadd.f32 %v3380_v22, %v648_v31  ;;  %v619_v63 = vadd.f32 %v3385_v59, %v601_v24 }
 0x21d   :  { %v631_v53 = vmul.f32 %v2809_v27, %v3214_v25  ;;  %v584_v50 = vmul.f32 %v2809_v27, %v3223_v29 }
 0x21e   :  { %2816 = vrsqrt.f32 %v566_v1  ;;  %v556_v51 = vmul.f32 0.015625, %v545_v39  ;;  %2595 = vmatmul.mubr.msk.f32.vlgmr.msra.gmra.mxu0 %vm192_vm1, %v666_v40  ;;  %2636 = vmatmul.mubr.msk.f32.vlgmr.msra.gmra.mxu1 %vm192_vm1, %v619_v63  ;;  %v529_v5 = vpop.xlane.xlu1 %528 }
 0x21f   :  { %v2811_v56 = vpop.eup %2810  ;;  %2718 = vmatpush3.msk.msra.mxu1 %vm1517_vm3, %v3128_v45  ;;  %v485_v3 = vpop.xlane.xlu0 %484  ;;  %2597 = vmatprep.mubr.msk.f32.mxu0 %vm2897_vm5, %v2896_v18  ;;  %v649_v60 = vmul.f32 %v3373_v11, %v631_v53  ;;  %v602_v25 = vmul.f32 %v3368_v55, %v584_v50 }
 0x220   :  { %v567_v29 = vadd.f32 1e-05, %v556_v51  ;;  %2719 = vmatprep.subr.mxu1 %v3134_v47  ;;  %v546_v0 = vadd.f32 %v529_v5, %v485_v3  ;;  %2638 = vmatprep.mubr.msk.f32.mxu1 %vm2897_vm5, %v2896_v18  ;;  %v632_v9 = vmul.f32 %v2811_v56, %v3230_v38  ;;  %v585_v57 = vmul.f32 %v2811_v56, %v3236_v46 }
 0x221   :  { %2720 = vmatpush3.msra.mxu1 %v3134_v47  ;;  %v667_v45 = vadd.f32 %v3380_v22, %v649_v60  ;;  %v620_v6 = vadd.f32 %v3385_v59, %v602_v25 }
 0x222   :  { %2818 = vrsqrt.f32 %v567_v29  ;;  %v557_v7 = vmul.f32 0.015625, %v546_v0  ;;  %2721 = vmatprep.subr.mxu1 %v3126_v44  ;;  %v532_v8 = vpop.xlane.xlu1 %531  ;;  %v650_v13 = vmul.f32 %v3373_v11, %v632_v9  ;;  %v603_v15 = vmul.f32 %v3368_v55, %v585_v57 }
 0x223   :  { %v2813_v17 = vpop.eup %2812  ;;  %2598 = vmatmul.mubr.msk.f32.gmra.mxu0 %vm192_vm1, %v667_v45  ;;  %2639 = vmatmul.mubr.msk.f32.gmra.mxu1 %vm192_vm1, %v620_v6  ;;  %v488_v38 = vpop.xlane.xlu0 %487 }
 0x224   :  { %v568_v47 = vadd.f32 1e-05, %v557_v7  ;;  %2722 = vmatpush3.msra.mxu1 %v3126_v44  ;;  %v547_v46 = vadd.f32 %v532_v8, %v488_v38  ;;  %2600 = vmatprep.mubr.msk.f32.mxu0 %vm2897_vm5, %v2896_v18  ;;  %v668_v61 = vadd.f32 %v3380_v22, %v650_v13  ;;  %v621_v21 = vadd.f32 %v3385_v59, %v603_v15 }
 0x225   :  { %2723 = vmatprep.subr.mxu1 %v3117_v41  ;;  %2641 = vmatprep.mubr.msk.f32.mxu1 %vm2897_vm5, %v2896_v18  ;;  %v633_v24 = vmul.f32 %v2813_v17, %v3242_v58  ;;  %v586_v31 = vmul.f32 %v2813_v17, %v3248_v2 }
 0x226   :  { %2820 = vrsqrt.f32 %v568_v47  ;;  %v558_v26 = vmul.f32 0.015625, %v547_v46  ;;  %2724 = vmatpush3.msra.mxu1 %v3117_v41  ;;  %v535_v44 = vpop.xlane.xlu1 %534 }
 0x227   :  { %v2815_v32 = vpop.eup %2814  ;;  %2725 = vmatprep.subr.mxu1 %v3097_v30  ;;  %2601 = vmatmul.mubr.msk.f32.gmra.mxu0 %vm192_vm1, %v668_v61  ;;  %v491_v27 = vpop.xlane.xlu0 %490  ;;  %v651_v33 = vmul.f32 %v3373_v11, %v633_v24  ;;  %v604_v1 = vmul.f32 %v3368_v55, %v586_v31 }
 0x228   :  { %v569_v39 = vadd.f32 1e-05, %v558_v26  ;;  %2642 = vmatmul.mubr.msk.f32.gmra.mxu1 %vm192_vm1, %v621_v21  ;;  %v548_v58 = vadd.f32 %v535_v44, %v491_v27  ;;  %2603 = vmatprep.mubr.msk.f32.mxu0 %vm2897_vm5, %v2896_v18  ;;  %v634_v41 = vmul.f32 %v2815_v32, %v3254_v12  ;;  %v587_v2 = vmul.f32 %v2815_v32, %v3260_v19 }
 0x229   :  { %2726 = vmatpush3.msra.mxu1 %v3097_v30  ;;  %2644 = vmatprep.mubr.msk.f32.mxu1 %vm2897_vm5, %v2896_v18  ;;  %v669_v40 = vadd.f32 %v3380_v22, %v651_v33  ;;  %v622_v63 = vadd.f32 %v3385_v59, %v604_v1  ;;  %v3445_v30 = vld [vmem:[%s4181_s0 + $0x28] sm:$0x1] }
 0x22a   :  { %2822 = vrsqrt.f32 %v569_v39  ;;  %2727 = vmatprep.subr.mxu1 %v3103_v34  ;;  %v559_v53 = vmul.f32 0.015625, %v548_v58  ;;  %v538_v50 = vpop.xlane.xlu1 %537  ;;  %v652_v51 = vmul.f32 %v3373_v11, %v634_v41  ;;  %v605_v12 = vmul.f32 %v3368_v55, %v587_v2 }
 0x22b   :  { %v2817_v19 = vpop.eup %2816  ;;  %2728 = vmatpush3.msra.mxu1 %v3103_v34  ;;  %2604 = vmatmul.mubr.msk.f32.gmra.mxu0 %vm192_vm1, %v669_v40  ;;  %v494_v5 = vpop.xlane.xlu0 %493 }
 0x22c   :  { %v570_v56 = vadd.f32 1e-05, %v559_v53  ;;  %2645 = vmatmul.mubr.msk.f32.gmra.mxu1 %vm192_vm1, %v622_v63  ;;  %v549_v3 = vadd.f32 %v538_v50, %v494_v5  ;;  %2606 = vmatprep.mubr.msk.f32.mxu0 %vm2897_vm5, %v2896_v18  ;;  %v670_v60 = vadd.f32 %v3380_v22, %v652_v51  ;;  %v623_v25 = vadd.f32 %v3385_v59, %v605_v12  ;;  %v1491_v53 = vld [vmem:[%s4188_s13 + $0x20] sm:$0xff]  ;;  %v1492_v50 = vld [vmem:[%s4188_s13 + $0x28] sm:$0x1]  ;;  %v1478_v5 = vld [vmem:[%s4189_s12 + $0x18] sm:$0xff] }
 0x22d   :  { %2647 = vmatprep.mubr.msk.f32.mxu1 %vm2897_vm5, %v2896_v18  ;;  %v635_v29 = vmul.f32 %v2817_v19, %v3266_v28  ;;  %v588_v34 = vmul.f32 %v2817_v19, %v3272_v35  ;;  %2738 = vmatprep.subr.msk.mxu1 %vm1517_vm3, %v3445_v30  ;;  %v3567_v51 = vld [vmem:[%s4189_s12] sm:$0xff]  ;;  %v1477_v19 = vld [vmem:[%s4189_s12 + $0x10] sm:$0xff] }
 0x22e   :  { %2824 = vrsqrt.f32 %v570_v56  ;;  %v560_v0 = vmul.f32 0.015625, %v549_v3  ;;  %v1911_v12 = vld [vmem:[#allocation2 + $0x39] sm:$0xff]  ;;  %v1480_v3 = vld [vmem:[%s4189_s12 + $0x28] sm:$0x1] }
 0x22f   :  { %v2819_v9 = vpop.eup %2818  ;;  %2607 = vmatmul.mubr.msk.f32.gmra.mxu0 %vm192_vm1, %v670_v60  ;;  %v653_v57 = vmul.f32 %v3373_v11, %v635_v29  ;;  %v606_v45 = vmul.f32 %v3368_v55, %v588_v34  ;;  %v1479_v56 = vld [vmem:[%s4189_s12 + $0x20] sm:$0xff]  ;;  %v1902_v60 = vld [vmem:[%s4181_s0 + $0x51] sm:$0x1]  ;;  %v1313_v29 = vld [vmem:[%s4190_s10 + $0x38] sm:$0xff] }
 0x230   :  { %v571_v6 = vadd.f32 1e-05, %v560_v0  ;;  %2648 = vmatmul.mubr.msk.f32.gmra.mxu1 %vm192_vm1, %v623_v25  ;;  %2609 = vmatprep.mubr.msk.f32.mxu0 %vm2897_vm5, %v2896_v18  ;;  %v636_v28 = vmul.f32 %v2819_v9, %v3278_v49  ;;  %v589_v35 = vmul.f32 %v2819_v9, %v3284_v54  ;;  %v1901_v25 = vld [vmem:[%s4181_s0 + $0x49] sm:$0xff]  ;;  %v1900_v0 = vld [vmem:[%s4181_s0 + $0x41] sm:$0xff] }
 0x231   :  { %2650 = vmatprep.mubr.msk.f32.mxu1 %vm2897_vm5, %v2896_v18  ;;  %v671_v7 = vadd.f32 %v3380_v22, %v653_v57  ;;  %v624_v8 = vadd.f32 %v3385_v59, %v606_v45  ;;  %2669 = vmatpush3.msra.mxu0 %v1313_v29  ;;  %v1312_v34 = vld [vmem:[%s4190_s10 + $0x30] sm:$0xff]  ;;  %v1311_v9 = vld [vmem:[%s4190_s10 + $0x28] sm:$0xff]  ;;  %v1899_v57 = vld [vmem:[%s4181_s0 + $0x39] sm:$0xff] }
 0x232   :  { %2826 = vrsqrt.f32 %v571_v6  ;;  %v654_v13 = vmul.f32 %v3373_v11, %v636_v28  ;;  %v607_v15 = vmul.f32 %v3368_v55, %v589_v35  ;;  %2670 = vmatprep.subr.mxu0 %v2896_v18  ;;  %v1310_v45 = vld [vmem:[%s4190_s10 + $0x20] sm:$0xff]  ;;  %v1908_v6 = vld [vmem:[%s4188_s13 + $0x28] sm:$0x1]  ;;  %v1898_v28 = vld [vmem:[%s4181_s0 + $0x31] sm:$0xff] }
 0x233   :  { %v2821_v17 = vpop.eup %2820  ;;  %2610 = vmatmul.mubr.msk.f32.gmra.mxu0 %vm192_vm1, %v671_v7  ;;  %v1897_v35 = vld [vmem:[%s4181_s0 + $0x29] sm:$0xff]  ;;  %v1309_v7 = vld [vmem:[%s4190_s10 + $0x18] sm:$0xff] }
 0x234   :  { %2651 = vmatmul.mubr.msk.f32.gmra.mxu1 %vm192_vm1, %v624_v8  ;;  %2612 = vmatprep.mubr.msk.f32.mxu0 %vm2897_vm5, %v2896_v18  ;;  %v672_v49 = vadd.f32 %v3380_v22, %v654_v13  ;;  %v625_v54 = vadd.f32 %v3385_v59, %v607_v15  ;;  %v637_v38 = vmul.f32 %v2821_v17, %v3290_v4  ;;  %v1896_v8 = vld [vmem:[%s4189_s12 + $0x28] sm:$0x1]  ;;  %v1308_v13 = vld [vmem:[%s4190_s10 + $0x10] sm:$0xff] }
 0x235   :  { %2653 = vmatprep.mubr.msk.f32.mxu1 %vm2897_vm5, %v2896_v18  ;;  %v590_v47 = vmul.f32 %v2821_v17, %v3296_v10  ;;  %2671 = vmatpush3.msra.mxu0 %v1312_v34  ;;  %v1307_v15 = vld [vmem:[%s4190_s10 + $0x8] sm:$0xff]  ;;  %v1306_v17 = vld [vmem:[%s4190_s10] sm:$0xff] }
 0x236   :  { %v655_v46 = vmul.f32 %v3373_v11, %v637_v38  ;;  %2672 = vmatprep.subr.mxu0 %v2896_v18  ;;  %v2149_v38 = vld [vmem:[%s4191_s14 + $0x10] sm:$0xff] }
 0x237   :  { %v2823_v61 = vpop.eup %2822  ;;  %2613 = vmatmul.mubr.msk.f32.gmra.mxu0 %vm192_vm1, %v672_v49  ;;  %v608_v21 = vmul.f32 %v3368_v55, %v590_v47  ;;  %v2898_v49 = vmov 0   ;;  %v2150_v47 = vld [vmem:[%s4191_s14 + $0x18] sm:$0xff] }
 0x238   :  { %2654 = vmatmul.mubr.msk.f32.gmra.mxu1 %vm192_vm1, %v625_v54  ;;  %2615 = vmatprep.mubr.msk.f32.mxu0 %vm2897_vm5, %v2896_v18  ;;  %v673_v24 = vadd.f32 %v3380_v22, %v655_v46  ;;  %v638_v4 = vmul.f32 %v2823_v61, %v3302_v20  ;;  %v591_v31 = vmul.f32 %v2823_v61, %v3308_v23  ;;  %v2148_v54 = vld [vmem:[%s4191_s14 + $0x8] sm:$0xff]  ;;  %v1732_v46 = vld [vmem:[%s4191_s14] sm:$0xff] }
 0x239   :  { %2656 = vmatprep.mubr.msk.f32.mxu1 %vm2897_vm5, %v2896_v18  ;;  %v626_v10 = vadd.f32 %v3385_v59, %v608_v21  ;;  %2673 = vmatpush3.msra.mxu0 %v1311_v9  ;;  %v2151_v61 = vld [vmem:[%s4191_s14 + $0x20] sm:$0xff] }
 0x23a   :  { %v656_v26 = vmul.f32 %v3373_v11, %v638_v4  ;;  %v609_v44 = vmul.f32 %v3368_v55, %v591_v31  ;;  %2674 = vmatprep.subr.mxu0 %v2896_v18  ;;  %2805 = vset.pattern.permute.xlu1 %v2898_v49  ;;  %v3691_v4 = vld [vmem:[%s4192_s9] ss:$0 sm:$0xff]  ;;  %v2152_v31 = vld [vmem:[%s4191_s14 + $0x28] sm:$0x1] }
 0x23b   :  { %v2825_v32 = vpop.eup %2824  ;;  %2616 = vmatmul.mubr.msk.f32.gmra.mxu0 %vm192_vm1, %v673_v24  ;;  %2804 = vset.pattern.permute.xlu0 %v2898_v49 }
 0x23c   :  { %2657 = vmatmul.mubr.msk.f32.gmra.mxu1 %vm192_vm1, %v626_v10  ;;  %2618 = vmatprep.mubr.msk.f32.mxu0 %vm2897_vm5, %v2896_v18  ;;  %v674_v20 = vadd.f32 %v3380_v22, %v656_v26  ;;  %v627_v23 = vadd.f32 %v3385_v59, %v609_v44  ;;  %v639_v27 = vmul.f32 %v2825_v32, %v3314_v37  ;;  %v1737_v26 = vld [vmem:[%s4191_s14 + $0x28] sm:$0x1] }
 0x23d   :  { %2659 = vmatprep.mubr.msk.f32.mxu1 %vm2897_vm5, %v2896_v18  ;;  %v592_v33 = vmul.f32 %v2825_v32, %v3320_v43  ;;  %2675 = vmatpush3.msra.mxu0 %v1310_v45 }
 0x23e   :  { %v657_v1 = vmul.f32 %v3373_v11, %v639_v27  ;;  %2676 = vmatprep.subr.mxu0 %v2896_v18  ;;  %2160 = vperm.xlu1 %2805, %v2148_v54  }
 0x23f   :  { %v2827_v39 = vpop.eup %2826  ;;  %2619 = vmatmul.mubr.msk.f32.gmra.mxu0 %vm192_vm1, %v674_v20  ;;  %v610_v58 = vmul.f32 %v3368_v55, %v592_v33  ;;  %2155 = vperm.xlu0 %2804, %v1732_v46  }
 0x240   :  { %2660 = vmatmul.mubr.msk.f32.gmra.mxu1 %vm192_vm1, %v627_v23  ;;  %2621 = vmatprep.mubr.msk.f32.mxu0 %vm2897_vm5, %v2896_v18  ;;  %v675_v41 = vadd.f32 %v3380_v22, %v657_v1  ;;  %v640_v37 = vmul.f32 %v2827_v39, %v3329_v52  ;;  %v593_v2 = vmul.f32 %v2827_v39, %v3339_v62 }
 0x241   :  { %2662 = vmatprep.mubr.msk.f32.mxu1 %vm2897_vm5, %v2896_v18  ;;  %v628_v43 = vadd.f32 %v3385_v59, %v610_v58  ;;  %2677 = vmatpush3.msra.mxu0 %v1309_v7 }
 0x242   :  { %v658_v40 = vmul.f32 %v3373_v11, %v640_v37  ;;  %v611_v63 = vmul.f32 %v3368_v55, %v593_v2  ;;  %v1487_v11 = vld [vmem:[%s4188_s13] sm:$0xff]  ;;  %v1488_v55 = vld [vmem:[%s4188_s13 + $0x8] sm:$0xff]  ;;  %2678 = vmatprep.subr.mxu0 %v2896_v18  ;;  %2165 = vperm.xlu1 %2805, %v2149_v38  }
 0x243   :  { %2622 = vmatmul.mubr.msk.f32.gmra.mxu0 %vm192_vm1, %v675_v41  ;;  %1755 = vperm.xlu0 %2804, %v2150_v47  }
 0x244   :  { %2663 = vmatmul.mubr.msk.f32.gmra.mxu1 %vm192_vm1, %v628_v43  ;;  %2624 = vmatprep.mubr.msk.f32.mxu0 %vm2897_vm5, %v2896_v18  ;;  %v676_v52 = vadd.f32 %v3380_v22, %v658_v40  ;;  %v629_v62 = vadd.f32 %v3385_v59, %v611_v63  ;;  %v1489_v22 = vld [vmem:[%s4188_s13 + $0x10] sm:$0xff]  ;;  %v1490_v59 = vld [vmem:[%s4188_s13 + $0x18] sm:$0xff] }
 0x245   :  { %2665 = vmatprep.mubr.msk.f32.mxu1 %vm2897_vm5, %v2896_v18  ;;  %2679 = vmatpush3.msra.mxu0 %v1308_v13 }
 0x246   :  { %2680 = vmatprep.subr.mxu0 %v2896_v18  ;;  %2170 = vperm.xlu1 %2805, %v2150_v47  }
 0x247   :  { %2625 = vmatmul.mubr.msk.f32.gmra.mxu0 %vm192_vm1, %v676_v52  ;;  %1765 = vperm.xlu0 %2804, %v1737_v26  }
 0x248   :  { %2666 = vmatmul.mubr.msk.f32.gmra.mxu1 %vm192_vm1, %v629_v62  ;;  %2684 = vmatprep.mubr.msk.f32.mxu0 %vm2897_vm5, %v2896_v18 }
 0x249   :  { %2729 = vmatprep.mubr.msk.f32.mxu1 %vm66_vm0, %v1487_v11  ;;  %2681 = vmatpush3.msra.mxu0 %v1307_v15 }
 0x24a   :  { %2682 = vmatprep.subr.mxu0 %v2896_v18  ;;  %2175 = vperm.xlu1 %2805, %v2151_v61  }
 0x24b   :  { %2683 = vmatpush3.msra.mxu0 %v1306_v17 }
 0x24c   :  { %2730 = vmatmul.mubr.msk.f32.vlgmr.msra.gmra.mxu1 %vm66_vm0, %v1488_v55 }
 0x24d   :  { %2739 = vmatpush3.msk.msra.mxu1 %vm1517_vm3, %v3445_v30  ;;  %2732 = vmatprep.mubr.msk.f32.mxu1 %vm66_vm0, %v1489_v22  ;;  %v1910_v30 = vld [vmem:[#allocation2 + $0x31] sm:$0xff] }
 0x24e   :  { %2740 = vmatprep.subr.mxu1 %v3139_v48  ;;  %2180 = vperm.xlu1 %2805, %v2152_v31  }
 0x24f   :  { %2741 = vmatpush3.msra.mxu1 %v3139_v48  ;;  %v1914_v48 = vld [vmem:[#allocation2 + $0x51] sm:$0x1] }
 0x250   :  { %2742 = vmatprep.subr.mxu1 %v3122_v42  ;;  %2733 = vmatmul.mubr.msk.f32.gmra.mxu1 %vm66_vm0, %v1490_v59 }
 0x251   :  { %2743 = vmatpush3.msra.mxu1 %v3122_v42  ;;  %2735 = vmatprep.mubr.msk.f32.mxu1 %vm66_vm0, %v1491_v53  ;;  %v3578_v42 = vld [vmem:[%s4189_s12 + $0x8] sm:$0xff] }
 0x252   :  { %2744 = vmatprep.subr.mxu1 %v3108_v36  ;;  %1740 = vperm.xlu1 %2805, %v1732_v46  }
 0x253   :  { %2745 = vmatpush3.msra.mxu1 %v3108_v36  ;;  %v1912_v36 = vld [vmem:[#allocation2 + $0x41] sm:$0xff] }
 0x254   :  { %2746 = vmatprep.subr.mxu1 %v3062_v14  ;;  %2736 = vmatmul.mubr.msk.f32.gmra.mxu1 %vm66_vm0, %v1492_v50 }
 0x255   :  { %2747 = vmatpush3.msra.mxu1 %v3062_v14  ;;  %2750 = vmatprep.mubr.msk.f32.mxu1 %vm66_vm0, %v3567_v51  ;;  %v1913_v14 = vld [vmem:[#allocation2 + $0x49] sm:$0xff] }
 0x256   :  { %2748 = vmatprep.subr.mxu1 %v3069_v16  ;;  %1745 = vperm.xlu1 %2805, %v2148_v54  }
 0x257   :  { %2749 = vmatpush3.msra.mxu1 %v3069_v16  ;;  %v1909_v16 = vld [vmem:[#allocation2 + $0x29] sm:$0xff] }
 0x258   :  { %2759 = vmatprep.subr.msk.mxu1 %vm1517_vm3, %v1914_v48  ;;  %2751 = vmatmul.mubr.msk.f32.vlgmr.msra.gmra.mxu1 %vm66_vm0, %v3578_v42 }
 0x259   :  { %2760 = vmatpush3.msk.msra.mxu1 %vm1517_vm3, %v1914_v48  ;;  %2753 = vmatprep.mubr.msk.f32.mxu1 %vm66_vm0, %v1477_v19 }
 0x25a   :  { %2761 = vmatprep.subr.mxu1 %v1913_v14  ;;  %1750 = vperm.xlu1 %2805, %v2149_v38  }
 0x25b   :  { %2762 = vmatpush3.msra.mxu1 %v1913_v14 }
 0x25c   :  { %2763 = vmatprep.subr.mxu1 %v1912_v36  ;;  %2754 = vmatmul.mubr.msk.f32.gmra.mxu1 %vm66_vm0, %v1478_v5 }
 0x25d   :  { %2764 = vmatpush3.msra.mxu1 %v1912_v36  ;;  %2756 = vmatprep.mubr.msk.f32.mxu1 %vm66_vm0, %v1479_v56 }
 0x25e   :  { %2765 = vmatprep.subr.mxu1 %v1911_v12  ;;  %1760 = vperm.xlu1 %2805, %v2151_v61  }
 0x25f   :  { %2766 = vmatpush3.msra.mxu1 %v1911_v12 }
 0x260   :  { %2767 = vmatprep.subr.mxu1 %v1910_v30  ;;  %2757 = vmatmul.mubr.msk.f32.gmra.mxu1 %vm66_vm0, %v1480_v3 }
 0x261   :  { %2768 = vmatpush3.msra.mxu1 %v1910_v30  ;;  %2771 = vmatprep.mubr.msk.f32.mxu1 %vm66_vm0, %v1487_v11 }
 0x262   :  { %2769 = vmatprep.subr.mxu1 %v1909_v16 }
 0x263   :  { %2770 = vmatpush3.msra.mxu1 %v1909_v16 }
 0x264   :  { %2772 = vmatmul.mubr.msk.f32.vlgmr.msra.gmra.mxu1 %vm66_vm0, %v1488_v55  ;;  %2780 = vmatprep.subr.msk.mxu1 %vm1517_vm3, %v1902_v60 }
 0x265   :  { %2781 = vmatpush3.msk.msra.mxu1 %vm1517_vm3, %v1902_v60  ;;  %2774 = vmatprep.mubr.msk.f32.mxu1 %vm66_vm0, %v1489_v22 }
 0x266   :  { %2782 = vmatprep.subr.mxu1 %v1901_v25 }
 0x267   :  { %2783 = vmatpush3.msra.mxu1 %v1901_v25 }
 0x268   :  { %2775 = vmatmul.mubr.msk.f32.gmra.mxu1 %vm66_vm0, %v1490_v59  ;;  %2784 = vmatprep.subr.mxu1 %v1900_v0 }
 0x269   :  { %2777 = vmatprep.mubr.msk.f32.mxu1 %vm66_vm0, %v1491_v53  ;;  %2785 = vmatpush3.msra.mxu1 %v1900_v0 }
 0x26a   :  { %2786 = vmatprep.subr.mxu1 %v1899_v57 }
 0x26b   :  { %2787 = vmatpush3.msra.mxu1 %v1899_v57 }
 0x26c   :  { %2778 = vmatmul.mubr.msk.f32.gmra.mxu1 %vm66_vm0, %v1908_v6  ;;  %2788 = vmatprep.subr.mxu1 %v1898_v28 }
 0x26d   :  { %2789 = vmatpush3.msra.mxu1 %v1898_v28  ;;  %2792 = vmatprep.mubr.msk.f32.mxu1 %vm66_vm0, %v3567_v51 }
 0x26e   :  { %2790 = vmatprep.subr.mxu1 %v1897_v35 }
 0x26f   :  { %2791 = vmatpush3.msra.mxu1 %v1897_v35 }
 0x270   :  { %2793 = vmatmul.mubr.msk.f32.vlgmr.msra.gmra.mxu1 %vm66_vm0, %v3578_v42 }
 0x271   :  { %2795 = vmatprep.mubr.msk.f32.mxu1 %vm66_vm0, %v1477_v19 }
 0x274   :  { %2796 = vmatmul.mubr.msk.f32.gmra.mxu1 %vm66_vm0, %v1478_v5 }
 0x275   :  { %2798 = vmatprep.mubr.msk.f32.mxu1 %vm66_vm0, %v1479_v56 }
 0x278   :  { %2799 = vmatmul.mubr.msk.f32.gmra.mxu1 %vm66_vm0, %v1896_v8 }
 0x2de   :  { %v784_v21 = vpop.f32.mrf.mxu0  ;;  %v937_v24 = vpop.f32.mrf.mxu1 }
 0x2df   :  { %v938_v10 = vadd.f32 %v937_v24, %v784_v21 }
 0x2e0   :  { %v2596_v44 = vpop.f32.mrf.mxu0  ;;  %v2637_v32 = vpop.f32.mrf.mxu1 }
 0x2e1   :  { %v3700_v20 = vadd.f32 %v3691_v4, %v938_v10 }
 0x2e3   :  { %v3703_v23 = vmul.f32 0.70710677, %v3700_v20  ;;  %v789_v27 = vpop.f32.mrf.mxu0  ;;  %v942_v33 = vpop.f32.mrf.mxu1  ;;  %v3738_v32 = vmul.f32 0.5, %v3700_v20 }
 0x2e4   :  { %v943_v1 = vadd.f32 %v942_v33, %v789_v27 }
 0x2e5   :  { %v1031_v39 = vand.u32 2147483647, %v3703_v23  ;;  %v2599_v58 = vpop.f32.mrf.mxu0  ;;  %v2640_v41 = vpop.f32.mrf.mxu1  ;;  %vm1251_vm6 = vcmp.ge.f32.partialorder %v3703_v23, 0.0 }
 0x2e6   :  { %v999_v37 = vadd.f32 %v3691_v4, %v943_v1 }
 0x2e7   :  { %v1042_v2 = vmul.f32 0.3275911, %v1031_v39  ;;  %v794_v43 = vpop.f32.mrf.mxu0  ;;  %v1185_v5 = vsub.f32 0.0, %v1031_v39 }
 0x2e8   :  { %v3707_v40 = vmul.f32 0.70710677, %v999_v37  ;;  %v947_v63 = vpop.f32.mrf.mxu1  ;;  %v3740_v27 = vmul.f32 0.5, %v999_v37 }
 0x2e9   :  { %v1053_v52 = vadd.f32 1.0, %v1042_v2  ;;  %v948_v62 = vadd.f32 %v947_v63, %v794_v43  ;;  %v2602_v11 = vpop.f32.mrf.mxu0  ;;  %v1196_v6 = vmul.f32 %v1185_v5, %v1031_v39 }
 0x2ea   :  { %v1032_v55 = vand.u32 2147483647, %v3707_v40  ;;  %v2643_v22 = vpop.f32.mrf.mxu1  ;;  %vm1252_vm8 = vcmp.ge.f32.partialorder %v3707_v40, 0.0 }
 0x2eb   :  { %2828 = vrcp.f32 %v1053_v52  ;;  %v3711_v59 = vadd.f32 %v3691_v4, %v948_v62  ;;  %v799_v53 = vpop.f32.mrf.mxu0  ;;  %v1207_v46 = vmul.f32 1.442695, %v1196_v6 }
 0x2ec   :  { %v1043_v50 = vmul.f32 0.3275911, %v1032_v55  ;;  %v952_v51 = vpop.f32.mrf.mxu1  ;;  %v1186_v0 = vsub.f32 0.0, %v1032_v55 }
 0x2ed   :  { %v3714_v42 = vmul.f32 0.70710677, %v3711_v59  ;;  %v953_v48 = vadd.f32 %v952_v51, %v799_v53  ;;  %v2605_v14 = vpop.f32.mrf.mxu0 }
 0x2ee   :  { %v1054_v36 = vadd.f32 1.0, %v1043_v50  ;;  %v2646_v12 = vpop.f32.mrf.mxu1  ;;  %v1197_v49 = vmul.f32 %v1186_v0, %v1032_v55  ;;  %v3757_v14 = vmul.f32 0.5, %v3711_v59 }
 0x2ef   :  { %v1033_v30 = vand.u32 2147483647, %v3714_v42  ;;  %v3718_v16 = vadd.f32 %v3691_v4, %v953_v48  ;;  %v804_v19 = vpop.f32.mrf.mxu0  ;;  %vm1253_vm9 = vcmp.ge.f32.partialorder %v3714_v42, 0.0 }
 0x2f0   :  { %2830 = vrcp.f32 %v1054_v36  ;;  %v957_v56 = vpop.f32.mrf.mxu1  ;;  %v1209_v41 = vmul.f32 1.442695, %v1197_v49 }
 0x2f1   :  { %v1044_v3 = vmul.f32 0.3275911, %v1033_v30  ;;  %v3721_v60 = vmul.f32 0.70710677, %v3718_v16  ;;  %v2608_v25 = vpop.f32.mrf.mxu0  ;;  %v958_v29 = vadd.f32 %v957_v56, %v804_v19  ;;  %v1187_v61 = vsub.f32 0.0, %v1033_v30 }
 0x2f2   :  { %v2649_v34 = vpop.f32.mrf.mxu1 }
 0x2f3   :  { %v1055_v9 = vadd.f32 1.0, %v1044_v3  ;;  %v1034_v57 = vand.u32 2147483647, %v3721_v60  ;;  %v809_v45 = vpop.f32.mrf.mxu0  ;;  %v3725_v28 = vadd.f32 %v3691_v4, %v958_v29  ;;  %v1198_v52 = vmul.f32 %v1187_v61, %v1033_v30 }
 0x2f4   :  { %v962_v35 = vpop.f32.mrf.mxu1  ;;  %vm1254_vm10 = vcmp.ge.f32.partialorder %v3721_v60, 0.0 }
 0x2f5   :  { %2832 = vrcp.f32 %v1055_v9  ;;  %v1045_v7 = vmul.f32 0.3275911, %v1034_v57  ;;  %v2611_v8 = vpop.f32.mrf.mxu0  ;;  %v3728_v13 = vmul.f32 0.70710677, %v3725_v28  ;;  %v963_v15 = vadd.f32 %v962_v35, %v809_v45 }
 0x2f6   :  { %v2652_v17 = vpop.f32.mrf.mxu1  ;;  %v1188_v2 = vsub.f32 0.0, %v1034_v57  ;;  %v1211_v59 = vmul.f32 1.442695, %v1198_v52 }
 0x2f7   :  { %v1056_v54 = vadd.f32 1.0, %v1045_v7  ;;  %v814_v38 = vpop.f32.mrf.mxu0  ;;  %v1035_v21 = vand.u32 2147483647, %v3728_v13  ;;  %v3734_v24 = vadd.f32 %v3691_v4, %v963_v15  ;;  %vm1255_vm11 = vcmp.ge.f32.partialorder %v3728_v13, 0.0 }
 0x2f8   :  { %v3730_v47 = vpop.eup %2828  ;;  %v967_v31 = vpop.f32.mrf.mxu1  ;;  %v1199_v19 = vmul.f32 %v1188_v2, %v1034_v57 }
 0x2f9   :  { %v1086_v10 = vmul.f32 1.0614054, %v3730_v47  ;;  %2834 = vrcp.f32 %v1056_v54  ;;  %v968_v26 = vadd.f32 %v967_v31, %v814_v38  ;;  %v2614_v44 = vpop.f32.mrf.mxu0  ;;  %v1046_v33 = vmul.f32 0.3275911, %v1035_v21 }
 0x2fa   :  { %v3743_v1 = vmul.f32 0.70710677, %v3734_v24  ;;  %v2655_v39 = vpop.f32.mrf.mxu1  ;;  %2836 = vpow2.f32 %v1207_v46  ;;  %v1189_v22 = vsub.f32 0.0, %v1035_v21  ;;  %v1213_v38 = vmul.f32 1.442695, %v1199_v19 }
 0x2fb   :  { %v1097_v58 = vadd.f32 -1.4531521, %v1086_v10  ;;  %v3746_v43 = vadd.f32 %v3691_v4, %v968_v26  ;;  %v819_v63 = vpop.f32.mrf.mxu0  ;;  %v1057_v62 = vadd.f32 1.0, %v1046_v33 }
 0x2fc   :  { %v1036_v20 = vand.u32 2147483647, %v3743_v1  ;;  %v972_v11 = vpop.f32.mrf.mxu1  ;;  %v1200_v45 = vmul.f32 %v1189_v22, %v1035_v21  ;;  %vm1256_vm12 = vcmp.ge.f32.partialorder %v3743_v1, 0.0 }
 0x2fd   :  { %v3749_v37 = vpop.eup %2830  ;;  %v1108_v55 = vmul.f32 %v3730_v47, %v1097_v58  ;;  %v3753_v53 = vmul.f32 0.70710677, %v3746_v43  ;;  %v973_v50 = vadd.f32 %v972_v11, %v819_v63  ;;  %v2617_v51 = vpop.f32.mrf.mxu0  ;;  %2838 = vrcp.f32 %v1057_v62 }
 0x2fe   :  { %v1087_v48 = vmul.f32 1.0614054, %v3749_v37  ;;  %v1047_v36 = vmul.f32 0.3275911, %v1036_v20  ;;  %v2658_v12 = vpop.f32.mrf.mxu1  ;;  %2840 = vpow2.f32 %v1209_v41  ;;  %v1190_v29 = vsub.f32 0.0, %v1036_v20 }
 0x2ff   :  { %v1119_v30 = vadd.f32 1.4214138, %v1108_v55  ;;  %v1037_v5 = vand.u32 2147483647, %v3753_v53  ;;  %v824_v56 = vpop.f32.mrf.mxu0  ;;  %v3761_v34 = vadd.f32 %v3691_v4, %v973_v50  ;;  %v1215_v39 = vmul.f32 1.442695, %v1200_v45 }
 0x300   :  { %v1098_v3 = vadd.f32 -1.4531521, %v1087_v48  ;;  %v1058_v25 = vadd.f32 1.0, %v1047_v36  ;;  %v977_v0 = vpop.f32.mrf.mxu1  ;;  %v1201_v31 = vmul.f32 %v1190_v29, %v1036_v20  ;;  %vm1257_vm13 = vcmp.ge.f32.partialorder %v3753_v53, 0.0 }
 0x301   :  { %v1130_v9 = vmul.f32 %v3730_v47, %v1119_v30  ;;  %v1048_v6 = vmul.f32 0.3275911, %v1037_v5  ;;  %v2620_v35 = vpop.f32.mrf.mxu0  ;;  %v1191_v8 = vsub.f32 0.0, %v1037_v5  ;;  %v3768_v15 = vmul.f32 0.70710677, %v3761_v34 }
 0x302   :  { %v3764_v7 = vpop.eup %2832  ;;  %v1109_v57 = vmul.f32 %v3749_v37, %v1098_v3  ;;  %2842 = vrcp.f32 %v1058_v25  ;;  %v2661_v17 = vpop.f32.mrf.mxu1  ;;  %v1217_v51 = vmul.f32 1.442695, %v1201_v31  ;;  %v978_v36 = vadd.f32 %v977_v0, %v824_v56 }
 0x303   :  { %v1141_v49 = vadd.f32 -0.28449672, %v1130_v9  ;;  %v1088_v54 = vmul.f32 1.0614054, %v3764_v7  ;;  %v829_v46 = vpop.f32.mrf.mxu0  ;;  %v1059_v21 = vadd.f32 1.0, %v1048_v6  ;;  %2844 = vpow2.f32 %v1211_v59 }
 0x304   :  { %v1120_v61 = vadd.f32 1.4214138, %v1109_v57  ;;  %v1038_v10 = vand.u32 2147483647, %v3768_v15  ;;  %v982_v26 = vpop.f32.mrf.mxu1  ;;  %v1202_v63 = vmul.f32 %v1191_v8, %v1037_v5  ;;  %v3786_v59 = vadd.f32 %v3691_v4, %v978_v36 }
 0x305   :  { %v1152_v44 = vmul.f32 %v3730_v47, %v1141_v49  ;;  %v1099_v33 = vadd.f32 -1.4531521, %v1088_v54  ;;  %v2623_v58 = vpop.f32.mrf.mxu0  ;;  %2846 = vrcp.f32 %v1059_v21  ;;  %v3793_v17 = vmul.f32 0.5, %v3718_v16 }
 0x306   :  { %v3773_v41 = vpop.eup %2834  ;;  %v1131_v2 = vmul.f32 %v3749_v37, %v1120_v61  ;;  %v1049_v52 = vmul.f32 0.3275911, %v1038_v10  ;;  %v2664_v62 = vpop.f32.mrf.mxu1  ;;  %2848 = vpow2.f32 %v1213_v38  ;;  %v1219_v9 = vmul.f32 1.442695, %v1202_v63 }
 0x307   :  { %v1163_v11 = vadd.f32 0.2548296, %v1152_v44  ;;  %v1110_v20 = vmul.f32 %v3764_v7, %v1099_v33  ;;  %v1089_v55 = vmul.f32 1.0614054, %v3773_v41  ;;  %v3778_v22 = vpop.f32.mrf.mxu0  ;;  %v2837_v30 = vpop.eup %2836  ;;  %2850 = vpow2.f32 %v1215_v39 }
 0x308   :  { %v1142_v50 = vadd.f32 -0.28449672, %v1131_v2  ;;  %v1060_v48 = vadd.f32 1.0, %v1049_v52  ;;  %v3781_v12 = vpop.f32.mrf.mxu1  ;;  %v983_v31 = vadd.f32 %v982_v26, %v829_v46  ;;  %v3799_v33 = vmul.f32 0.70710677, %v3786_v59 }
 0x309   :  { %v1174_v19 = vmul.f32 %v3730_v47, %v1163_v11  ;;  %v1121_v5 = vadd.f32 1.4214138, %v1110_v20  ;;  %v1100_v3 = vadd.f32 -1.4531521, %v1089_v55  ;;  %v2626_v25 = vpop.f32.mrf.mxu0  ;;  %v1192_v47 = vsub.f32 0.0, %v1038_v10 }
 0x30a   :  { %v1153_v29 = vmul.f32 %v3749_v37, %v1142_v50  ;;  %2852 = vrcp.f32 %v1060_v48  ;;  %v2667_v45 = vpop.f32.mrf.mxu1  ;;  %v3788_v6 = vpop.eup %2838  ;;  %v3813_v55 = vadd.f32 %v3691_v4, %v983_v31  ;;  %vm1258_vm14 = vcmp.ge.f32.partialorder %v3768_v15, 0.0 }
 0x30b   :  { %v1229_v56 = vmul.f32 %v2837_v30, %v1174_v19  ;;  %v1132_v0 = vmul.f32 %v3764_v7, %v1121_v5  ;;  %v1111_v35 = vmul.f32 %v3773_v41, %v1100_v3  ;;  %v2841_v57 = vpop.eup %2840  ;;  %v1090_v49 = vmul.f32 1.0614054, %v3788_v6 }
 0x30c   :  { %v1164_v8 = vadd.f32 0.2548296, %v1153_v29  ;;  %2854 = vpow2.f32 %v1217_v51  ;;  %v1203_v63 = vmul.f32 %v1192_v47, %v1038_v10  ;;  %vm1259_vm15 = vcmp.ge.f32.partialorder %v3799_v33, 0.0 }
 0x30d   :  { %v1240_v54 = vsub.f32 1.0, %v1229_v56  ;;  %v1143_v38 = vadd.f32 -0.28449672, %v1132_v0  ;;  %v1122_v61 = vadd.f32 1.4214138, %v1111_v35  ;;  %2856 = vpow2.f32 %v1219_v9 }
 0x30e   :  { %v1175_v21 = vmul.f32 %v3749_v37, %v1164_v8  ;;  %v1101_v44 = vadd.f32 -1.4531521, %v1090_v49  ;;  %v3808_v37 = vand.u32 2147483647, %v3799_v33  ;;  %v1221_v23 = vmul.f32 1.442695, %v1203_v63 }
 0x30f   :  { %v3801_v39 = vpop.eup %2842  ;;  %v1262_v16 = vsub.f32 0.0, %v1240_v54  ;;  %v1154_v58 = vmul.f32 %v3764_v7, %v1143_v38  ;;  %v1133_v2 = vmul.f32 %v3773_v41, %v1122_v61 }
 0x310   :  { %v1230_v52 = vmul.f32 %v2841_v57, %v1175_v21  ;;  %v1112_v62 = vmul.f32 %v3788_v6, %v1101_v44  ;;  %v1091_v46 = vmul.f32 1.0614054, %v3801_v39  ;;  %v2845_v50 = vpop.eup %2844  ;;  %v1050_v3 = vmul.f32 0.3275911, %v3808_v37 }
 0x311   :  { %v1273_v26 = vsel %vm1251_vm6, %v1240_v54, %v1262_v16  ;;  %v1165_v11 = vadd.f32 0.2548296, %v1154_v58  ;;  %v1144_v20 = vadd.f32 -0.28449672, %v1133_v2 }
 0x312   :  { %v1284_v51 = vadd.f32 1.0, %v1273_v26  ;;  %v1241_v48 = vsub.f32 1.0, %v1230_v52  ;;  %v1123_v10 = vadd.f32 1.4214138, %v1112_v62  ;;  %v1102_v36 = vadd.f32 -1.4531521, %v1091_v46  ;;  %v3816_v30 = vpop.eup %2846 }
 0x313   :  { %v1176_v19 = vmul.f32 %v3764_v7, %v1165_v11  ;;  %v1155_v5 = vmul.f32 %v3773_v41, %v1144_v20  ;;  %v2849_v25 = vpop.eup %2848  ;;  %v1092_v47 = vmul.f32 1.0614054, %v3816_v30  ;;  %v1061_v57 = vadd.f32 1.0, %v1050_v3 }
 0x314   :  { %v1295_v29 = vmul.f32 %v1284_v51, %v3738_v32  ;;  %v1263_v9 = vsub.f32 0.0, %v1241_v48  ;;  %v1134_v45 = vmul.f32 %v3788_v6, %v1123_v10  ;;  %v1113_v56 = vmul.f32 %v3801_v39, %v1102_v36  ;;  %v2851_v8 = vpop.eup %2850 }
 0x315   :  { %v1231_v0 = vmul.f32 %v2845_v50, %v1176_v19  ;;  %v1166_v35 = vadd.f32 0.2548296, %v1155_v5  ;;  %v3829_v32 = vmul.f32 0.70710677, %v3813_v55  ;;  %v1103_v44 = vadd.f32 -1.4531521, %v1092_v47 }
 0x316   :  { %v1274_v7 = vsel %vm1252_vm8, %v1241_v48, %v1263_v9  ;;  %v1145_v49 = vadd.f32 -0.28449672, %v1134_v45  ;;  %v1124_v54 = vadd.f32 1.4214138, %v1113_v56  ;;  %2685 = vmatmul.mubr.msk.f32.vlgmr.msra.gmra.mxu0 %vm1321_vm7, %v1295_v29  ;;  %2858 = vrcp.f32 %v1061_v57 }
 0x317   :  { %v3832_v38 = vpop.eup %2852  ;;  %v1285_v61 = vadd.f32 1.0, %v1274_v7  ;;  %v1242_v31 = vsub.f32 1.0, %v1231_v0  ;;  %v1177_v21 = vmul.f32 %v3773_v41, %v1166_v35  ;;  %2687 = vmatprep.mubr.msk.f32.mxu0 %vm2897_vm5, %v2896_v18  ;;  %v1114_v46 = vmul.f32 %v3816_v30, %v1103_v44 }
 0x318   :  { %v1156_v40 = vmul.f32 %v3788_v6, %v1145_v49  ;;  %v1135_v16 = vmul.f32 %v3801_v39, %v1124_v54  ;;  %v1093_v58 = vmul.f32 1.0614054, %v3832_v38  ;;  %2860 = vpow2.f32 %v1221_v23 }
 0x319   :  { %v2855_v2 = vpop.eup %2854  ;;  %v1296_v63 = vmul.f32 %v1285_v61, %v3740_v27  ;;  %v1264_v52 = vsub.f32 0.0, %v1242_v31  ;;  %v1232_v62 = vmul.f32 %v2849_v25, %v1177_v21  ;;  %v1125_v48 = vadd.f32 1.4214138, %v1114_v46 }
 0x31a   :  { %v1167_v26 = vadd.f32 0.2548296, %v1156_v40  ;;  %v1146_v41 = vadd.f32 -0.28449672, %v1135_v16  ;;  %v1104_v11 = vadd.f32 -1.4531521, %v1093_v58  ;;  %v2857_v20 = vpop.eup %2856  ;;  %v988_v10 = vadd.f32 %v3781_v12, %v3778_v22 }
 0x31b   :  { %v1275_v50 = vsel %vm1253_vm9, %v1242_v31, %v1264_v52  ;;  %v1243_v51 = vsub.f32 1.0, %v1232_v62  ;;  %2688 = vmatmul.mubr.msk.f32.gmra.mxu0 %vm1321_vm7, %v1296_v63  ;;  %v1136_v42 = vmul.f32 %v3816_v30, %v1125_v48  ;;  %v1193_v3 = vsub.f32 0.0, %v3808_v37 }
 0x31c   :  { %v1286_v27 = vadd.f32 1.0, %v1275_v50  ;;  %v1178_v36 = vmul.f32 %v3788_v6, %v1167_v26  ;;  %v1157_v19 = vmul.f32 %v3801_v39, %v1146_v41  ;;  %v1115_v5 = vmul.f32 %v3832_v38, %v1104_v11  ;;  %2690 = vmatprep.mubr.msk.f32.mxu0 %vm2897_vm5, %v2896_v18 }
 0x31d   :  { %v1265_v23 = vsub.f32 0.0, %v1243_v51  ;;  %v3855_v25 = vand.u32 2147483647, %v3829_v32  ;;  %v1147_v45 = vadd.f32 -0.28449672, %v1136_v42  ;;  %v3862_v0 = vadd.f32 %v3691_v4, %v988_v10 }
 0x31e   :  { %v1297_v22 = vmul.f32 %v1286_v27, %v3757_v14  ;;  %v1233_v12 = vmul.f32 %v2851_v8, %v1178_v36  ;;  %v1168_v29 = vadd.f32 0.2548296, %v1157_v19  ;;  %v1126_v6 = vadd.f32 1.4214138, %v1115_v5 }
 0x31f   :  { %v1276_v9 = vsel %vm1254_vm10, %v1243_v51, %v1265_v23  ;;  %v1051_v56 = vmul.f32 0.3275911, %v3855_v25  ;;  %v1158_v14 = vmul.f32 %v3816_v30, %v1147_v45  ;;  %v1204_v8 = vmul.f32 %v1193_v3, %v3808_v37 }
 0x320   :  { %v1287_v35 = vadd.f32 1.0, %v1276_v9  ;;  %v1244_v47 = vsub.f32 1.0, %v1233_v12  ;;  %v1179_v57 = vmul.f32 %v3801_v39, %v1168_v29  ;;  %v1137_v7 = vmul.f32 %v3832_v38, %v1126_v6  ;;  %2691 = vmatmul.mubr.msk.f32.gmra.mxu0 %vm1321_vm7, %v1297_v22 }
 0x321   :  { %v1062_v60 = vadd.f32 1.0, %v1051_v56  ;;  %2693 = vmatprep.mubr.msk.f32.mxu0 %vm2897_vm5, %v2896_v18  ;;  %v1169_v39 = vadd.f32 0.2548296, %v1158_v14  ;;  %v3875_v40 = vmul.f32 0.70710677, %v3862_v0  ;;  %v1013_v16 = vmul.f32 0.5, %v3725_v28 }
 0x322   :  { %v1298_v49 = vmul.f32 %v1287_v35, %v3793_v17  ;;  %v1266_v4 = vsub.f32 0.0, %v1244_v47  ;;  %v1234_v54 = vmul.f32 %v2855_v2, %v1179_v57  ;;  %v1148_v61 = vadd.f32 -0.28449672, %v1137_v7 }
 0x323   :  { %2862 = vrcp.f32 %v1062_v60  ;;  %v2859_v37 = vpop.eup %2858  ;;  %v1180_v58 = vmul.f32 %v3816_v30, %v1169_v39  ;;  %v1223_v2 = vmul.f32 1.442695, %v1204_v8  ;;  %v1041_v41 = vand.u32 2147483647, %v3875_v40 }
 0x324   :  { %v1277_v31 = vsel %vm1255_vm11, %v1244_v47, %v1266_v4  ;;  %v1245_v21 = vsub.f32 1.0, %v1234_v54  ;;  %v1159_v44 = vmul.f32 %v3832_v38, %v1148_v61  ;;  %2694 = vmatmul.mubr.msk.f32.gmra.mxu0 %vm1321_vm7, %v1298_v49  ;;  %v1094_v52 = vmul.f32 1.0614054, %v2859_v37 }
 0x325   :  { %v1288_v17 = vadd.f32 1.0, %v1277_v31  ;;  %2696 = vmatprep.mubr.msk.f32.mxu0 %vm2897_vm5, %v2896_v18  ;;  %v2861_v62 = vpop.eup %2860  ;;  %v1235_v26 = vmul.f32 %v2857_v20, %v1180_v58  ;;  %v1014_v11 = vmul.f32 0.5, %v3734_v24  ;;  %v1194_v10 = vsub.f32 0.0, %v3855_v25 }
 0x326   :  { %v1267_v13 = vsub.f32 0.0, %v1245_v21  ;;  %v1170_v63 = vadd.f32 0.2548296, %v1159_v44  ;;  %v1105_v30 = vadd.f32 -1.4531521, %v1094_v52  ;;  %2864 = vpow2.f32 %v1223_v2 }
 0x327   :  { %v1299_v46 = vmul.f32 %v1288_v17, %v1013_v16  ;;  %v1246_v48 = vsub.f32 1.0, %v1235_v26  ;;  %v1052_v27 = vmul.f32 0.3275911, %v1041_v41  ;;  %v1205_v42 = vmul.f32 %v1194_v10, %v3855_v25 }
 0x328   :  { %v1278_v28 = vsel %vm1256_vm12, %v1245_v21, %v1267_v13  ;;  %v1181_v50 = vmul.f32 %v3832_v38, %v1170_v63  ;;  %v1116_v19 = vmul.f32 %v2859_v37, %v1105_v30  ;;  %v1015_v3 = vmul.f32 0.5, %v3746_v43 }
 0x329   :  { %v1289_v51 = vadd.f32 1.0, %v1278_v28  ;;  %2697 = vmatmul.mubr.msk.f32.gmra.mxu0 %vm1321_vm7, %v1299_v46  ;;  %v1268_v20 = vsub.f32 0.0, %v1246_v48  ;;  %v1063_v24 = vadd.f32 1.0, %v1052_v27  ;;  %v1016_v56 = vmul.f32 0.5, %v3761_v34 }
 0x32a   :  { %v1236_v36 = vmul.f32 %v2861_v62, %v1181_v50  ;;  %2699 = vmatprep.mubr.msk.f32.mxu0 %vm2897_vm5, %v2896_v18  ;;  %v1127_v5 = vadd.f32 1.4214138, %v1116_v19  ;;  %v1225_v47 = vmul.f32 1.442695, %v1205_v42  ;;  %v1195_v14 = vsub.f32 0.0, %v1041_v41 }
 0x32b   :  { %v1300_v1 = vmul.f32 %v1289_v51, %v1014_v11  ;;  %v1279_v23 = vsel %vm1257_vm13, %v1246_v48, %v1268_v20  ;;  %2866 = vrcp.f32 %v1063_v24  ;;  %v1017_v2 = vmul.f32 0.5, %v3786_v59 }
 0x32c   :  { %v1247_v38 = vsub.f32 1.0, %v1236_v36  ;;  %v1290_v22 = vadd.f32 1.0, %v1279_v23  ;;  %v1138_v29 = vmul.f32 %v2859_v37, %v1127_v5  ;;  %2868 = vpow2.f32 %v1225_v47 }
 0x32d   :  { %2700 = vmatmul.mubr.msk.f32.gmra.mxu0 %vm1321_vm7, %v1300_v1  ;;  %v1206_v4 = vmul.f32 %v1195_v14, %v1041_v41  ;;  %vm1260_vm0 = vcmp.ge.f32.partialorder %v3829_v32, 0.0  ;;  %v1018_v27 = vmul.f32 0.5, %v3813_v55  ;;  %vm1261_vm6 = vcmp.ge.f32.partialorder %v3875_v40, 0.0  ;;  %v2731_v55 = vpop.f32.mrf.mxu1 }
 0x32e   :  { %v1269_v12 = vsub.f32 0.0, %v1247_v38  ;;  %2702 = vmatprep.mubr.msk.f32.mxu0 %vm2897_vm5, %v2896_v18  ;;  %v1301_v53 = vmul.f32 %v1290_v22, %v1015_v3  ;;  %v1149_v45 = vadd.f32 -0.28449672, %v1138_v29  ;;  %v1019_v32 = vmul.f32 0.5, %v3862_v0 }
 0x32f   :  { %v1227_v16 = vmul.f32 1.442695, %v1206_v4  ;;  %v1587_v22 = vpop.f32.mrf.mxu1 }
 0x330   :  { %v2863_v6 = vpop.eup %2862  ;;  %v1280_v9 = vsel %vm1258_vm14, %v1247_v38, %v1269_v12  ;;  %v1160_v57 = vmul.f32 %v2859_v37, %v1149_v45 }
 0x331   :  { %v1291_v25 = vadd.f32 1.0, %v1280_v9  ;;  %v1095_v35 = vmul.f32 1.0614054, %v2863_v6  ;;  %2703 = vmatmul.mubr.msk.f32.gmra.mxu0 %vm1321_vm7, %v1301_v53  ;;  %2870 = vpow2.f32 %v1227_v16  ;;  %v2734_v12 = vpop.f32.mrf.mxu1 }
 0x332   :  { %2705 = vmatprep.mubr.msk.f32.mxu0 %vm2897_vm5, %v2896_v18  ;;  %v1171_v8 = vadd.f32 0.2548296, %v1160_v57 }
 0x333   :  { %v1302_v43 = vmul.f32 %v1291_v25, %v1016_v56  ;;  %v1106_v7 = vadd.f32 -1.4531521, %v1095_v35  ;;  %v2865_v49 = vpop.eup %2864  ;;  %v1597_v29 = vpop.f32.mrf.mxu1 }
 0x334   :  { %v1182_v60 = vmul.f32 %v2859_v37, %v1171_v8 }
 0x335   :  { %v1117_v15 = vmul.f32 %v2863_v6, %v1106_v7  ;;  %2706 = vmatmul.mubr.msk.f32.gmra.mxu0 %vm1321_vm7, %v1302_v43 }
 0x336   :  { %2708 = vmatprep.mubr.msk.f32.mxu0 %vm2897_vm5, %v2896_v18  ;;  %v1237_v54 = vmul.f32 %v2865_v49, %v1182_v60 }
 0x337   :  { %v1128_v34 = vadd.f32 1.4214138, %v1117_v15 }
 0x338   :  { %v2867_v39 = vpop.eup %2866  ;;  %v1248_v31 = vsub.f32 1.0, %v1237_v54 }
 0x339   :  { %v1139_v61 = vmul.f32 %v2863_v6, %v1128_v34  ;;  %v1096_v44 = vmul.f32 1.0614054, %v2867_v39  ;;  %v2869_v11 = vpop.eup %2868  ;;  %v3934_v34 = vld [vmem:[%s4193_s11] ss:$0 sm:$0xff] }
 0x33a   :  { %v1270_v17 = vsub.f32 0.0, %v1248_v31 }
 0x33b   :  { %v1150_v21 = vadd.f32 -0.28449672, %v1139_v61  ;;  %v1107_v37 = vadd.f32 -1.4531521, %v1096_v44 }
 0x33c   :  { %v1281_v13 = vsel %vm1259_vm15, %v1248_v31, %v1270_v17 }
 0x33d   :  { %v1161_v58 = vmul.f32 %v2863_v6, %v1150_v21  ;;  %v1292_v63 = vadd.f32 1.0, %v1281_v13  ;;  %v1118_v62 = vmul.f32 %v2867_v39, %v1107_v37  ;;  %v2156_v13 = vpop.permute.xlu0 %2155 }
 0x33e   :  { %v2871_v1 = vpop.eup %2870 }
 0x33f   :  { %v1172_v52 = vadd.f32 0.2548296, %v1161_v58  ;;  %v1303_v46 = vmul.f32 %v1292_v63, %v1017_v2  ;;  %v1129_v41 = vadd.f32 1.4214138, %v1118_v62 }
 0x341   :  { %v1183_v26 = vmul.f32 %v2863_v6, %v1172_v52  ;;  %v1140_v50 = vmul.f32 %v2867_v39, %v1129_v41  ;;  %2709 = vmatmul.mubr.msk.f32.gmra.mxu0 %vm1321_vm7, %v1303_v46  ;;  %v3917_v6 = vpop.f32.mrf.mxu1 }
 0x342   :  { %2711 = vmatprep.mubr.msk.f32.mxu0 %vm2897_vm5, %v2896_v18 }
 0x343   :  { %v1238_v28 = vmul.f32 %v2869_v11, %v1183_v26  ;;  %v1151_v30 = vadd.f32 -0.28449672, %v1140_v50  ;;  %v1607_v53 = vpop.f32.mrf.mxu1 }
 0x345   :  { %v1249_v33 = vsub.f32 1.0, %v1238_v28  ;;  %v1162_v59 = vmul.f32 %v2867_v39, %v1151_v30  ;;  %v2752_v9 = vpop.f32.mrf.mxu1 }
 0x346   :  { %v1709_v31 = vadd.f32 %v2752_v9, %v2731_v55 }
 0x347   :  { %v1271_v51 = vsub.f32 0.0, %v1249_v33  ;;  %v1173_v10 = vadd.f32 0.2548296, %v1162_v59  ;;  %v1703_v45 = vpop.f32.mrf.mxu1 }
 0x348   :  { %v1704_v15 = vadd.f32 %v1703_v45, %v1587_v22 }
 0x349   :  { %v1282_v48 = vsel %vm1260_vm0, %v1249_v33, %v1271_v51  ;;  %v1184_v19 = vmul.f32 %v2867_v39, %v1173_v10  ;;  %v2755_v56 = vpop.f32.mrf.mxu1  ;;  %v1756_v51 = vpop.permute.xlu0 %1755 }
 0x34a   :  { %v1293_v36 = vadd.f32 1.0, %v1282_v48  ;;  %v1719_v50 = vadd.f32 %v2755_v56, %v2734_v12 }
 0x34b   :  { %v1239_v24 = vmul.f32 %v2871_v1, %v1184_v19  ;;  %v1713_v40 = vpop.f32.mrf.mxu1 }
 0x34c   :  { %v1304_v20 = vmul.f32 %v1293_v36, %v1018_v27  ;;  %v1714_v52 = vadd.f32 %v1713_v40, %v1597_v29  ;;  %v1771_v36 = vadd.f32 %v1756_v51, %v1719_v50 }
 0x34d   :  { %v1250_v38 = vsub.f32 1.0, %v1239_v24  ;;  %v2758_v0 = vpop.f32.mrf.mxu1  ;;  %v1766_v9 = vpop.permute.xlu0 %1765 }
 0x34e   :  { %2712 = vmatmul.mubr.msk.f32.gmra.mxu0 %vm1321_vm7, %v1304_v20  ;;  %v1729_v22 = vadd.f32 %v2758_v0, %v3917_v6 }
 0x34f   :  { %2714 = vmatprep.mubr.msk.f32.mxu0 %vm2897_vm5, %v2896_v18  ;;  %v1272_v5 = vsub.f32 0.0, %v1250_v38  ;;  %v3919_v18 = vpop.permute.xlu1 %2160  ;;  %v1723_v47 = vpop.f32.mrf.mxu1  ;;  %vm2218_vm5 = vcmask 261121  }
 0x350   :  { %v1724_v20 = vadd.f32 %v1723_v47, %v1607_v53 }
 0x351   :  { %v1283_v23 = vsel %vm1261_vm6, %v1250_v38, %v1272_v5  ;;  %v2773_v57 = vpop.f32.mrf.mxu1 }
 0x352   :  { %v1294_v42 = vadd.f32 1.0, %v1283_v23 }
 0x353   :  { %v3921_v25 = vpop.permute.xlu1 %2165  ;;  %v2002_v7 = vpop.f32.mrf.mxu1 }
 0x354   :  { %v1305_v3 = vmul.f32 %v1294_v42, %v1019_v32 }
 0x355   :  { %v3929_v8 = vpop.f32.mrf.mxu1 }
 0x356   :  { %2715 = vmatmul.mubr.msk.f32.gmra.mxu0 %vm1321_vm7, %v1305_v3 }
 0x357   :  { %v3923_v35 = vpop.permute.xlu1 %2170  ;;  %v2012_v60 = vpop.f32.mrf.mxu1 }
 0x359   :  { %v3936_v54 = vpop.f32.mrf.mxu1 }
 0x35b   :  { %v3925_v43 = vpop.permute.xlu1 %2175  ;;  %v3941_v17 = vpop.f32.mrf.mxu1 }
 0x35d   :  { %v2794_v26 = vpop.f32.mrf.mxu1 }
 0x35e   :  { %v2124_v42 = vadd.f32 %v2794_v26, %v2773_v57 }
 0x35f   :  { %v3927_v14 = vpop.permute.xlu1 %2180  ;;  %v2118_v48 = vpop.f32.mrf.mxu1 }
 0x360   :  { %v2119_v24 = vadd.f32 %v2118_v48, %v2002_v7  ;;  %v2184_v40 = vadd.f32 %v3919_v18, %v2124_v42 }
 0x361   :  { %v2797_v5 = vpop.f32.mrf.mxu1 }
 0x362   :  { %v2183_v12 = vadd.f32 %v2156_v13, %v2119_v24 }
 0x363   :  { %v1741_v49 = vpop.permute.xlu1 %1740  ;;  %v2128_v53 = vpop.f32.mrf.mxu1 }
 0x364   :  { %v1768_v61 = vadd.f32 %v1741_v49, %v1704_v15  ;;  %v2129_v47 = vadd.f32 %v2128_v53, %v2012_v60  ;;  %v2195_v15 = vrot.slane %v2183_v12, 7  ;;  %v1773_v49 = vadd.f32 %v1766_v9, %v1729_v22 }
 0x367   :  { %v1746_v16 = vpop.permute.xlu1 %1745 }
 0x368   :  { %v1769_v2 = vadd.f32 %v1746_v16, %v1709_v31 }
 0x36b   :  { %v1751_v41 = vpop.permute.xlu1 %1750 }
 0x36c   :  { %v1770_v33 = vadd.f32 %v1751_v41, %v1714_v52 }
 0x36f   :  { %v1761_v23 = vpop.permute.xlu1 %1760 }
 0x370   :  { %v1772_v29 = vadd.f32 %v1761_v23, %v1724_v20 }
 0x3d6   :  { %v1421_v4 = vpop.f32.mrf.mxu0 }
 0x3d7   :  { %v1422_v39 = vadd.f32 %v3934_v34, %v1421_v4 }
 0x3d8   :  { %v2686_v21 = vpop.f32.mrf.mxu0 }
 0x3d9   :  { %v3939_v44 = vadd.f32 %v1768_v61, %v1422_v39  ;;  %v2196_v61 = vrot.slane %v2184_v40, 7  ;;  %v2185_v39 = vadd.f32 %v3921_v25, %v2129_v47 }
 0x3db   :  { %v1426_v58 = vpop.f32.mrf.mxu0  ;;  %v1780_v37 = vsel %vm192_vm1, %v3939_v44, 0.0  ;;  %v2197_v13 = vsel %vm1517_vm3, %v2195_v15, %v2196_v61 }
 0x3dc   :  { %v1427_v63 = vadd.f32 %v3934_v34, %v1426_v58  ;;  %1781 = vadd.xlane.f32.xlu1 %v1780_v37  ;;  %v2198_v37 = vrot.slane %v2185_v39, 7 }
 0x3dd   :  { %v2689_v62 = vpop.f32.mrf.mxu0 }
 0x3de   :  { %v3946_v46 = vadd.f32 %v1769_v2, %v1427_v63  ;;  %v2199_v41 = vsel %vm1517_vm3, %v2196_v61, %v2198_v37 }
 0x3e0   :  { %v1431_v11 = vpop.f32.mrf.mxu0  ;;  %v1783_v28 = vsel %vm192_vm1, %v3946_v46, 0.0 }
 0x3e1   :  { %v1432_v30 = vadd.f32 %v3934_v34, %v1431_v11  ;;  %1784 = vadd.xlane.f32.xlu0 %v1783_v28  ;;  %v2134_v11 = vadd.f32 %v2797_v5, %v3929_v8 }
 0x3e2   :  { %v2692_v59 = vpop.f32.mrf.mxu0 }
 0x3e3   :  { %v3951_v10 = vadd.f32 %v1770_v33, %v1432_v30  ;;  %v2186_v33 = vadd.f32 %v3923_v35, %v2134_v11  ;;  %v2800_v30 = vpop.f32.mrf.mxu1 }
 0x3e4   :  { %v1436_v27 = vpop.f32.mrf.mxu0 }
 0x3e5   :  { %v1437_v19 = vadd.f32 %v3934_v34, %v1436_v27  ;;  %v1786_v1 = vsel %vm192_vm1, %v3951_v10, 0.0  ;;  %v2200_v51 = vrot.slane %v2186_v33, 7  ;;  %v2138_v59 = vpop.f32.mrf.mxu1 }
 0x3e6   :  { %v2695_v38 = vpop.f32.mrf.mxu0  ;;  %1787 = vadd.xlane.f32.xlu0 %v1786_v1  ;;  %v2139_v27 = vadd.f32 %v2138_v59, %v3941_v17 }
 0x3e7   :  { %v3956_v32 = vadd.f32 %v1771_v36, %v1437_v19  ;;  %v2201_v1 = vsel %vm1517_vm3, %v2198_v37, %v2200_v51  ;;  %v2144_v38 = vadd.f32 %v2800_v30, %v3936_v54 }
 0x3e8   :  { %v2187_v20 = vadd.f32 %v3925_v43, %v2139_v27 }
 0x3e9   :  { %v1441_v3 = vpop.f32.mrf.mxu0  ;;  %v1789_v55 = vsel %vm192_vm1, %v3956_v32, 0.0 }
 0x3ea   :  { %v1442_v45 = vadd.f32 %v3934_v34, %v1441_v3  ;;  %1790 = vadd.xlane.f32.xlu1 %v1789_v55  ;;  %v2202_v35 = vrot.slane %v2187_v20, 7  ;;  %v2188_v55 = vadd.f32 %v3927_v14, %v2144_v38 }
 0x3eb   :  { %v2698_v56 = vpop.f32.mrf.mxu0 }
 0x3ec   :  { %v3963_v7 = vadd.f32 %v1772_v29, %v1442_v45  ;;  %v2203_v42 = vsel %vm1517_vm3, %v2200_v51, %v2202_v35  ;;  %v2204_v22 = vrot.slane %v2188_v55, 7 }
 0x3ed   :  { %v1446_v57 = vpop.f32.mrf.mxu0 }
 0x3ee   :  { %v1447_v4 = vadd.f32 %v3934_v34, %v1446_v57  ;;  %v1792_v6 = vsel %vm192_vm1, %v3963_v7, 0.0  ;;  %v2205_v54 = vsel %vm1517_vm3, %v2202_v35, %v2204_v22 }
 0x3ef   :  { %v2701_v0 = vpop.f32.mrf.mxu0  ;;  %1793 = vadd.xlane.f32.xlu0 %v1792_v6 }
 0x3f0   :  { %v3969_v31 = vadd.f32 %v2195_v15, %v1447_v4  ;;  %v3971_v18 = vadd.f32 %v1773_v49, %v1447_v4 }
 0x3f1   :  { %v1451_v60 = vpop.f32.mrf.mxu0 }
 0x3f2   :  { %v2219_v21 = vsel %vm2218_vm5, %v3969_v31, 0.0  ;;  %v1795_v16 = vsel %vm198_vm2, %v3971_v18, 0.0  ;;  %v1452_v58 = vadd.f32 %v3934_v34, %v1451_v60 }
 0x3f3   :  { %2220 = vadd.xlane.f32.xlu0 %v2219_v21  ;;  %1796 = vadd.xlane.f32.xlu1 %v1795_v16  ;;  %v2704_v2 = vpop.f32.mrf.mxu0 }
 0x3f4   :  { %v3979_v25 = vadd.f32 %v2197_v13, %v1452_v58 }
 0x3f5   :  { %v1456_v63 = vpop.f32.mrf.mxu0 }
 0x3f6   :  { %v1457_v52 = vadd.f32 %v3934_v34, %v1456_v63  ;;  %v2222_v62 = vsel %vm192_vm1, %v3979_v25, 0.0 }
 0x3f7   :  { %v2707_v26 = vpop.f32.mrf.mxu0  ;;  %2223 = vadd.xlane.f32.xlu1 %v2222_v62 }
 0x3f8   :  { %v3986_v28 = vadd.f32 %v2199_v41, %v1457_v52 }
 0x3fa   :  { %v2225_v50 = vsel %vm192_vm1, %v3986_v28, 0.0 }
 0x3fb   :  { %2226 = vadd.xlane.f32.xlu0 %v2225_v50 }
 0x401   :  { %v1461_v48 = vpop.f32.mrf.mxu0 }
 0x402   :  { %v1462_v36 = vadd.f32 %v3934_v34, %v1461_v48 }
 0x403   :  { %v2710_v19 = vpop.f32.mrf.mxu0 }
 0x404   :  { %v3994_v8 = vadd.f32 %v2201_v1, %v1462_v36 }
 0x406   :  { %v2228_v24 = vsel %vm192_vm1, %v3994_v8, 0.0 }
 0x407   :  { %2229 = vadd.xlane.f32.xlu1 %v2228_v24 }
 0x40e   :  { %v1466_v5 = vpop.f32.mrf.mxu0 }
 0x40f   :  { %v1467_v23 = vadd.f32 %v3934_v34, %v1466_v5 }
 0x410   :  { %v2713_v17 = vpop.f32.mrf.mxu0 }
 0x411   :  { %v4002_v3 = vadd.f32 %v2203_v42, %v1467_v23 }
 0x413   :  { %v2231_v43 = vsel %vm192_vm1, %v4002_v3, 0.0 }
 0x414   :  { %2232 = vadd.xlane.f32.xlu0 %v2231_v43 }
 0x416   :  { %v1471_v12 = vpop.f32.mrf.mxu0 }
 0x417   :  { %v1472_v29 = vadd.f32 %v3934_v34, %v1471_v12 }
 0x418   :  { %v2716_v9 = vpop.f32.mrf.mxu0 }
 0x419   :  { %v4009_v45 = vadd.f32 %v2205_v54, %v1472_v29 }
 0x41b   :  { %v2234_v53 = vsel %vm370_vm4, %v4009_v45, 0.0 }
 0x41c   :  { %2235 = vadd.xlane.f32.xlu1 %v2234_v53 }
 0x465   :  { %v1782_v56 = vpop.xlane.xlu1 %1781 }
 0x466   :  { %v1799_v40 = vmul.f32 0.03125, %v1782_v56 }
 0x468   :  { %v4014_v14 = vsub.f32 %v3939_v44, %v1799_v40 }
 0x46a   :  { %v1785_v47 = vpop.xlane.xlu0 %1784  ;;  %v1811_v57 = vmul.f32 %v4014_v14, %v4014_v14 }
 0x46b   :  { %v1800_v15 = vmul.f32 0.03125, %v1785_v47 }
 0x46c   :  { %v1817_v34 = vsel %vm192_vm1, %v1811_v57, 0.0 }
 0x46d   :  { %v4020_v49 = vsub.f32 %v3946_v46, %v1800_v15  ;;  %1818 = vadd.xlane.f32.xlu0 %v1817_v34 }
 0x46f   :  { %v1788_v4 = vpop.xlane.xlu0 %1787  ;;  %v1812_v6 = vmul.f32 %v4020_v49, %v4020_v49 }
 0x470   :  { %v1801_v0 = vmul.f32 0.03125, %v1788_v4 }
 0x471   :  { %v1820_v61 = vsel %vm192_vm1, %v1812_v6, 0.0 }
 0x472   :  { %v4026_v44 = vsub.f32 %v3951_v10, %v1801_v0  ;;  %1821 = vadd.xlane.f32.xlu1 %v1820_v61  ;;  %v4088_v61 = vld [vmem:[%s4194_s15] ss:$0 sm:$0xff] }
 0x473   :  { %v1791_v39 = vpop.xlane.xlu1 %1790 }
 0x474   :  { %v1802_v60 = vmul.f32 0.03125, %v1791_v39  ;;  %v1813_v21 = vmul.f32 %v4026_v44, %v4026_v44 }
 0x476   :  { %v4031_v46 = vsub.f32 %v3956_v32, %v1802_v60  ;;  %v1823_v16 = vsel %vm192_vm1, %v1813_v21, 0.0  ;;  %v4094_v21 = vld [vmem:[%s4195_s16] ss:$0 sm:$0xff] }
 0x477   :  { %1824 = vadd.xlane.f32.xlu0 %v1823_v16 }
 0x478   :  { %v1794_v58 = vpop.xlane.xlu0 %1793  ;;  %v1814_v37 = vmul.f32 %v4031_v46, %v4031_v46 }
 0x479   :  { %v1803_v2 = vmul.f32 0.03125, %v1794_v58 }
 0x47a   :  { %v1826_v10 = vsel %vm192_vm1, %v1814_v37, 0.0 }
 0x47b   :  { %v4038_v13 = vsub.f32 %v3963_v7, %v1803_v2  ;;  %1827 = vadd.xlane.f32.xlu1 %v1826_v10 }
 0x47c   :  { %v1797_v63 = vpop.xlane.xlu1 %1796  ;;  %v2221_v52 = vpop.xlane.xlu0 %2220 }
 0x47d   :  { %v1804_v62 = vmul.f32 0.03125, %v1797_v63  ;;  %v2237_v26 = vmul.f32 0.03125, %v2221_v52  ;;  %v1815_v32 = vmul.f32 %v4038_v13, %v4038_v13 }
 0x47f   :  { %v4043_v41 = vsub.f32 %v3971_v18, %v1804_v62  ;;  %v4046_v11 = vsub.f32 %v3969_v31, %v2237_v26  ;;  %v1829_v50 = vsel %vm192_vm1, %v1815_v32, 0.0 }
 0x480   :  { %1830 = vadd.xlane.f32.xlu0 %v1829_v50  ;;  %v2224_v33 = vpop.xlane.xlu1 %2223 }
 0x481   :  { %v1816_v7 = vmul.f32 %v4043_v41, %v4043_v41  ;;  %v2249_v30 = vmul.f32 %v4046_v11, %v4046_v11  ;;  %v2238_v51 = vmul.f32 0.03125, %v2224_v33 }
 0x483   :  { %v1832_v59 = vsel %vm198_vm2, %v1816_v7, 0.0  ;;  %v2255_v48 = vsel %vm2218_vm5, %v2249_v30, 0.0  ;;  %v4056_v18 = vsub.f32 %v3979_v25, %v2238_v51 }
 0x484   :  { %1833 = vadd.xlane.f32.xlu1 %v1832_v59  ;;  %2256 = vadd.xlane.f32.xlu0 %v2255_v48  ;;  %v2227_v31 = vpop.xlane.xlu0 %2226 }
 0x485   :  { %v2239_v27 = vmul.f32 0.03125, %v2227_v31  ;;  %v2250_v36 = vmul.f32 %v4056_v18, %v4056_v18 }
 0x487   :  { %v4061_v19 = vsub.f32 %v3986_v28, %v2239_v27  ;;  %v2258_v1 = vsel %vm192_vm1, %v2250_v36, 0.0 }
 0x488   :  { %2259 = vadd.xlane.f32.xlu1 %v2258_v1 }
 0x489   :  { %v2251_v20 = vmul.f32 %v4061_v19, %v4061_v19 }
 0x48b   :  { %v2261_v24 = vsel %vm192_vm1, %v2251_v20, 0.0 }
 0x48c   :  { %2262 = vadd.xlane.f32.xlu0 %v2261_v24 }
 0x490   :  { %v2230_v25 = vpop.xlane.xlu1 %2229 }
 0x491   :  { %v2240_v35 = vmul.f32 0.03125, %v2230_v25 }
 0x493   :  { %v4068_v38 = vsub.f32 %v3994_v8, %v2240_v35 }
 0x495   :  { %v2252_v5 = vmul.f32 %v4068_v38, %v4068_v38 }
 0x497   :  { %v2264_v28 = vsel %vm192_vm1, %v2252_v5, 0.0 }
 0x498   :  { %2265 = vadd.xlane.f32.xlu1 %v2264_v28 }
 0x49d   :  { %v2233_v23 = vpop.xlane.xlu0 %2232 }
 0x49e   :  { %v2241_v17 = vmul.f32 0.03125, %v2233_v23 }
 0x4a0   :  { %v4074_v42 = vsub.f32 %v4002_v3, %v2241_v17 }
 0x4a2   :  { %v2253_v55 = vmul.f32 %v4074_v42, %v4074_v42 }
 0x4a4   :  { %v2267_v43 = vsel %vm192_vm1, %v2253_v55, 0.0 }
 0x4a5   :  { %2268 = vadd.xlane.f32.xlu0 %v2267_v43  ;;  %v2236_v22 = vpop.xlane.xlu1 %2235 }
 0x4a6   :  { %v2242_v8 = vmul.f32 0.03125, %v2236_v22 }
 0x4a8   :  { %v4080_v12 = vsub.f32 %v4009_v45, %v2242_v8 }
 0x4aa   :  { %v2254_v29 = vmul.f32 %v4080_v12, %v4080_v12 }
 0x4ac   :  { %v2270_v9 = vsel %vm370_vm4, %v2254_v29, 0.0 }
 0x4ad   :  { %2271 = vadd.xlane.f32.xlu1 %v2270_v9 }
 0x4f6   :  { %v1819_v54 = vpop.xlane.xlu0 %1818 }
 0x4f7   :  { %v1835_v3 = vmul.f32 0.03125, %v1819_v54 }
 0x4f9   :  { %v1841_v53 = vadd.f32 1e-05, %v1835_v3 }
 0x4fb   :  { %2872 = vrsqrt.f32 %v1841_v53  ;;  %v1822_v56 = vpop.xlane.xlu1 %1821 }
 0x4fc   :  { %v1836_v40 = vmul.f32 0.03125, %v1822_v56 }
 0x4fe   :  { %v1842_v47 = vadd.f32 1e-05, %v1836_v40 }
 0x500   :  { %2874 = vrsqrt.f32 %v1842_v47  ;;  %v1825_v57 = vpop.xlane.xlu0 %1824 }
 0x501   :  { %v1837_v15 = vmul.f32 0.03125, %v1825_v57 }
 0x503   :  { %v1843_v34 = vadd.f32 1e-05, %v1837_v15 }
 0x504   :  { %v1828_v4 = vpop.xlane.xlu1 %1827 }
 0x505   :  { %2876 = vrsqrt.f32 %v1843_v34  ;;  %v1838_v45 = vmul.f32 0.03125, %v1828_v4 }
 0x507   :  { %v1844_v6 = vadd.f32 1e-05, %v1838_v45 }
 0x508   :  { %v2873_v0 = vpop.eup %2872 }
 0x509   :  { %v1853_v39 = vmul.f32 %v2873_v0, %v4014_v14  ;;  %2878 = vrsqrt.f32 %v1844_v6  ;;  %v1831_v60 = vpop.xlane.xlu0 %1830 }
 0x50a   :  { %v1839_v16 = vmul.f32 0.03125, %v1831_v60 }
 0x50b   :  { %v1866_v58 = vmul.f32 %v4088_v61, %v1853_v39 }
 0x50c   :  { %v1845_v37 = vadd.f32 1e-05, %v1839_v16 }
 0x50d   :  { %v2875_v2 = vpop.eup %2874  ;;  %v1879_v10 = vadd.f32 %v4094_v21, %v1866_v58  ;;  %v1834_v63 = vpop.xlane.xlu1 %1833 }
 0x50e   :  { %v2257_v52 = vpop.xlane.xlu0 %2256  ;;  %v1854_v62 = vmul.f32 %v2875_v2, %v4020_v49  ;;  %2880 = vrsqrt.f32 %v1845_v37  ;;  %v1840_v14 = vmul.f32 0.03125, %v1834_v63 }
 0x50f   :  { %v2273_v26 = vmul.f32 0.03125, %v2257_v52  ;;  %1885 = vst.msk [vmem:[%s4196_s17] sm:$0xff] %vm192_vm1, %v1879_v10 }
 0x510   :  { %v1867_v32 = vmul.f32 %v4088_v61, %v1854_v62  ;;  %v1846_v50 = vadd.f32 1e-05, %v1840_v14 }
 0x511   :  { %v2279_v33 = vadd.f32 1e-05, %v2273_v26  ;;  %v2260_v51 = vpop.xlane.xlu1 %2259 }
 0x512   :  { %v2877_v7 = vpop.eup %2876  ;;  %v1880_v30 = vadd.f32 %v4094_v21, %v1867_v32  ;;  %2882 = vrsqrt.f32 %v1846_v50  ;;  %v2274_v49 = vmul.f32 0.03125, %v2260_v51 }
 0x513   :  { %v1855_v59 = vmul.f32 %v2877_v7, %v4026_v44  ;;  %2884 = vrsqrt.f32 %v2279_v33 }
 0x514   :  { %1886 = vst.msk [vmem:[%s4196_s17 + $0x8] sm:$0xff] %vm192_vm1, %v1880_v30  ;;  %v2280_v31 = vadd.f32 1e-05, %v2274_v49 }
 0x515   :  { %v1868_v48 = vmul.f32 %v4088_v61, %v1855_v59  ;;  %v2263_v36 = vpop.xlane.xlu0 %2262 }
 0x516   :  { %v2879_v27 = vpop.eup %2878  ;;  %2886 = vrsqrt.f32 %v2280_v31  ;;  %v2275_v24 = vmul.f32 0.03125, %v2263_v36 }
 0x517   :  { %v1881_v1 = vadd.f32 %v4094_v21, %v1868_v48  ;;  %v1856_v20 = vmul.f32 %v2879_v27, %v4031_v46 }
 0x518   :  { %v2281_v25 = vadd.f32 1e-05, %v2275_v24 }
 0x519   :  { %1887 = vst.msk [vmem:[%s4196_s17 + $0x10] sm:$0xff] %vm192_vm1, %v1881_v1  ;;  %v1869_v44 = vmul.f32 %v4088_v61, %v1856_v20 }
 0x51a   :  { %2888 = vrsqrt.f32 %v2281_v25 }
 0x51b   :  { %v2881_v35 = vpop.eup %2880  ;;  %v1882_v5 = vadd.f32 %v4094_v21, %v1869_v44 }
 0x51c   :  { %v1857_v28 = vmul.f32 %v2881_v35, %v4038_v13 }
 0x51d   :  { %1888 = vst.msk [vmem:[%s4196_s17 + $0x18] sm:$0xff] %vm192_vm1, %v1882_v5 }
 0x51e   :  { %v1870_v46 = vmul.f32 %v4088_v61, %v1857_v28 }
 0x51f   :  { %v2883_v23 = vpop.eup %2882 }
 0x520   :  { %v2885_v17 = vpop.eup %2884  ;;  %v1883_v55 = vadd.f32 %v4094_v21, %v1870_v46  ;;  %v1858_v43 = vmul.f32 %v2883_v23, %v4043_v41 }
 0x521   :  { %v2291_v22 = vmul.f32 %v2885_v17, %v4046_v11  ;;  %v2266_v29 = vpop.xlane.xlu1 %2265 }
 0x522   :  { %1889 = vst.msk [vmem:[%s4196_s17 + $0x20] sm:$0xff] %vm192_vm1, %v1883_v55  ;;  %v1871_v13 = vmul.f32 %v4088_v61, %v1858_v43  ;;  %v2276_v3 = vmul.f32 0.03125, %v2266_v29 }
 0x523   :  { %v2304_v8 = vmul.f32 %v4088_v61, %v2291_v22  ;;  %v2887_v9 = vpop.eup %2886 }
 0x524   :  { %v1884_v54 = vadd.f32 %v4094_v21, %v1871_v13  ;;  %v2292_v41 = vmul.f32 %v2887_v9, %v4056_v18  ;;  %v2282_v11 = vadd.f32 1e-05, %v2276_v3 }
 0x525   :  { %v2317_v53 = vadd.f32 %v4094_v21, %v2304_v8 }
 0x526   :  { %1890 = vst.msk [vmem:[%s4196_s17 + $0x28] sm:$0x1] %vm198_vm2, %v1884_v54  ;;  %v2305_v56 = vmul.f32 %v4088_v61, %v2292_v41  ;;  %2890 = vrsqrt.f32 %v2282_v11 }
 0x527   :  { %2429 = vst.msk [vmem:[%s4196_s17 + $0x2f] sm:$0xfe] %vm2218_vm5, %v2317_v53  ;;  %v2889_v40 = vpop.eup %2888 }
 0x528   :  { %v2318_v47 = vadd.f32 %v4094_v21, %v2305_v56  ;;  %v2293_v57 = vmul.f32 %v2889_v40, %v4061_v19 }
 0x52a   :  { %2430 = vst.msk [vmem:[%s4196_s17 + $0x37] sm:$0xff] %vm192_vm1, %v2318_v47  ;;  %v2306_v18 = vmul.f32 %v4088_v61, %v2293_v57 }
 0x52c   :  { %v2319_v15 = vadd.f32 %v4094_v21, %v2306_v18 }
 0x52e   :  { %v2269_v34 = vpop.xlane.xlu0 %2268  ;;  %2431 = vst.msk [vmem:[%s4196_s17 + $0x3f] sm:$0xff] %vm192_vm1, %v2319_v15 }
 0x52f   :  { %v2277_v4 = vmul.f32 0.03125, %v2269_v34 }
 0x531   :  { %v2283_v45 = vadd.f32 1e-05, %v2277_v4 }
 0x533   :  { %2892 = vrsqrt.f32 %v2283_v45  ;;  %v2891_v6 = vpop.eup %2890 }
 0x534   :  { %v2294_v19 = vmul.f32 %v2891_v6, %v4068_v38 }
 0x536   :  { %v2307_v0 = vmul.f32 %v4088_v61, %v2294_v19  ;;  %v2272_v39 = vpop.xlane.xlu1 %2271 }
 0x537   :  { %v2278_v60 = vmul.f32 0.03125, %v2272_v39 }
 0x538   :  { %v2320_v16 = vadd.f32 %v4094_v21, %v2307_v0 }
 0x539   :  { %v2284_v58 = vadd.f32 1e-05, %v2278_v60 }
 0x53a   :  { %2432 = vst.msk [vmem:[%s4196_s17 + $0x47] sm:$0xff] %vm192_vm1, %v2320_v16 }
 0x53b   :  { %2894 = vrsqrt.f32 %v2284_v58 }
 0x540   :  { %v2893_v37 = vpop.eup %2892 }
 0x541   :  { %v2295_v2 = vmul.f32 %v2893_v37, %v4074_v42 }
 0x543   :  { %v2308_v10 = vmul.f32 %v4088_v61, %v2295_v2 }
 0x545   :  { %v2321_v38 = vadd.f32 %v4094_v21, %v2308_v10 }
 0x547   :  { %2433 = vst.msk [vmem:[%s4196_s17 + $0x4f] sm:$0xff] %vm192_vm1, %v2321_v38 }
 0x548   :  { %v2895_v63 = vpop.eup %2894 }
 0x549   :  { %v2296_v52 = vmul.f32 %v2895_v63, %v4080_v12 }
 0x54b   :  { %v2309_v62 = vmul.f32 %v4088_v61, %v2296_v52 }
 0x54d   :  { %v2322_v14 = vadd.f32 %v4094_v21, %v2309_v62 }
 0x54f   :  { %2434 = vst.msk [vmem:[%s4196_s17 + $0x57] sm:$0x3] %vm370_vm4, %v2322_v14 }

// kernel: stsa_encoder_forward.2
= control target key start
LH: loop header
LB: loop body
LE: loop exit
PB: predicated region body
PF: predicated region fallthrough
CT: control target
= control target key end

     0   :  { %s6066_s27 = smov 0   ;;  %s7466_s0 = inlined_call_operand.vmem [shape: f32[2,82,32], index: 0, kind: input, shape index: {}]   ;;  %s7467_s1 = inlined_call_operand.vmem [shape: f32[2,1,32], index: 1, kind: input, shape index: {}]   ;;  %s7468_s2 = inlined_call_operand.vmem [shape: f32[2,1,32], index: 2, kind: input, shape index: {}]   ;;  %s7469_s3 = inlined_call_operand.vmem [shape: f32[2,32,96], index: 3, kind: input, shape index: {}]   ;;  %s7470_s4 = inlined_call_operand.vmem [shape: f32[2,1,96], index: 4, kind: input, shape index: {}]   ;;  %s7471_s5 = inlined_call_operand.vmem [shape: f32[2,32,32], index: 5, kind: input, shape index: {}]   ;;  %s7472_s6 = inlined_call_operand.vmem [shape: f32[2,1,32], index: 6, kind: input, shape index: {}]   ;;  %s7473_s7 = inlined_call_operand.vmem [shape: f32[2,2,41,32], index: 7, kind: output, shape index: {0}]   ;;  %s7474_s8 = inlined_call_operand.vmem [shape: f32[2,8,41,41], index: 8, kind: output, shape index: {1}]  }
   0x1 LB: > { %s4754_s28 = sadd.s32 4294967295, %s6006_s27   ;;  %p4758_p0 = scmp.ge.s32.totalorder %s6006_s27, 1  ;;  %s6006_s27 = sphi %s6066_s27, %s19_s27  }
   0x2   : > { %p317_p1 = scmp.lt.s32.totalorder %s6006_s27, 3 }
   0x4   : > { %p318_p2 = pnand %p4758_p0, %p317_p1 }
   0x5   : > { %p378_p3 = scmp.lt.s32.totalorder (!%p318_p2), %s4754_s28, 1  ;;  %s6010_s24 = smov (!%p318_p2), 96  }
   0x6   : > { %321 = sbr.rel (%p318_p2) target bundleno = 4515 (0x11a3), region = 48  ;;  %s6011_s25 = smov (!%p318_p2), 88  }
   0x7   : > { %s6012_s26 = smov (!%p318_p2), 120   ;;  %s6014_s30 = smov (!%p318_p2), 56  }
   0x8   : > { %s6015_s9 = smov (!%p318_p2), 80   ;;  %s6016_s12 = smov (!%p318_p2), 112  }
   0x9   : > { %s6017_s13 = smov (!%p318_p2), 72   ;;  %s6020_s22 = smov (!%p318_p2), 40  }
   0xb   : > { %s7476_s28 = smov (!%p378_p3, %s4754_s28), 1  ;;  %vm428_vm0 = vcmask 261120   ;;  %vm459_vm1 = vcmask 254976   ;;  %v6008_v52 = vmov 0.0   ;;  %vm6009_vm2 = vmmov 0  }
   0xc   : > { %s5762_s29 = smul.u32 88, %s7476_s28  ;;  %s5032_s11 = sshll.u32 %s7476_s28, 5  ;;  %5297 = vmatprep.subr.mxu0 %v6008_v52  ;;  %5305 = vmatprep.mubr.msk.f32.mxu0 %vm6009_vm2, %v6008_v52  ;;  %vm790_vm3 = vcmask 64512   ;;  %vm2690_vm4 = vcmask 1046528   ;;  %vm1025_vm5 = vcmask 1040384   ;;  %vm916_vm6 = vcmask 334848  }
   0xd   : > { %s393_s14 = scalar_lea.vmem %s7469_s3, %s5032_s11  ;;  %s385_s17 = scalar_lea.vmem %s7467_s1, %s7476_s28  ;;  %vm932_vm7 = vcmask 327680   ;;  %vm2683_vm8 = vcmask 253952  }
   0xe   : > { %s6080_s10 = scalar_lea.vmem %s7466_s0, %s5762_s29  ;;  %v611_v53 = vld [vmem:[%s393_s14 + $0x18] sm:$0xff]  ;;  %v610_v54 = vld [vmem:[%s393_s14 + $0x10] sm:$0xff]  ;;  %v609_v55 = vld [vmem:[%s393_s14 + $0x8] sm:$0xff]  ;;  %s388_s20 = scalar_lea.vmem %s7468_s2, %s7476_s28 }
   0xf   : > { %v415_v0 = vld [vmem:[%s6080_s10] sm:$0xff]  ;;  %v417_v1 = vld [vmem:[%s6080_s10 + $0x10] sm:$0xff]  ;;  %v416_v2 = vld [vmem:[%s6080_s10 + $0x8] sm:$0xff]  ;;  %5298 = vmatpush3.msra.mxu0 %v611_v53  ;;  %s396_s23 = scalar_lea.vmem %s7470_s4, %s7476_s28  ;;  %s6013_s29 = smov 64  }
  0x10   : > { %v429_v3 = vsel %vm428_vm0, %v415_v0, 0.0  ;;  %v435_v4 = vsel %vm428_vm0, %v417_v1, 0.0  ;;  %v418_v5 = vld [vmem:[%s6080_s10 + $0x18] sm:$0xff]  ;;  %v432_v6 = vsel %vm428_vm0, %v416_v2, 0.0  ;;  %v419_v8 = vld [vmem:[%s6080_s10 + $0x20] sm:$0xff]  ;;  %v420_v9 = vld [vmem:[%s6080_s10 + $0x28] sm:$0xff]  ;;  %5299 = vmatprep.subr.mxu0 %v6008_v52  ;;  %s6589_s21 = scalar_lea.vmem %s7471_s5, %s5032_s11 }
  0x11   : > { %430 = vadd.xlane.f32.xlu0 %v429_v3  ;;  %436 = vadd.xlane.f32.xlu1 %v435_v4  ;;  %v438_v7 = vsel %vm428_vm0, %v418_v5, 0.0  ;;  %v441_v10 = vsel %vm428_vm0, %v419_v8, 0.0  ;;  %v444_v11 = vsel %vm428_vm0, %v420_v9, 0.0  ;;  %v6123_v40 = vld [vmem:[%s6080_s10 + $0x30] sm:$0xff]  ;;  %v6130_v44 = vld [vmem:[%s6080_s10 + $0x38] sm:$0xff]  ;;  %v6133_v45 = vld [vmem:[%s6080_s10 + $0x40] sm:$0xff] }
  0x12   : > { %v447_v43 = vsel %vm428_vm0, %v6123_v40, 0.0  ;;  %v450_v46 = vsel %vm428_vm0, %v6130_v44, 0.0  ;;  %v453_v47 = vsel %vm428_vm0, %v6133_v45, 0.0  ;;  %v6140_v48 = vld [vmem:[%s6080_s10 + $0x48] sm:$0xff]  ;;  %v6143_v49 = vld [vmem:[%s6080_s10 + $0x50] sm:$0x3]  ;;  %5300 = vmatpush3.msra.mxu0 %v610_v54 }
  0x13   : > { %v456_v50 = vsel %vm428_vm0, %v6140_v48, 0.0  ;;  %v460_v51 = vsel %vm459_vm1, %v6143_v49, 0.0  ;;  %5301 = vmatprep.subr.mxu0 %v6008_v52  ;;  %v608_v56 = vld [vmem:[%s393_s14] sm:$0xff]  ;;  %s6018_s14 = smov 104   ;;  %s5764_s15 = smul.u32 384, %s7476_s28 }
  0x14   : > { %5302 = vmatpush3.msra.mxu0 %v609_v55  ;;  %s6019_s11 = smov 48  }
  0x15   : > { %433 = vadd.xlane.f32.xlu0 %v432_v6  ;;  %439 = vadd.xlane.f32.xlu1 %v438_v7  ;;  %s6534_s18 = scalar_lea.vmem %s7474_s8, %s5764_s15 }
  0x16   : > { %5303 = vmatprep.subr.mxu0 %v6008_v52 }
  0x17   : > { %5304 = vmatpush3.msra.mxu0 %v608_v56 }
  0x19   : > { %442 = vadd.xlane.f32.xlu0 %v441_v10  ;;  %445 = vadd.xlane.f32.xlu1 %v444_v11 }
  0x9a   : > { %v431_v12 = vpop.xlane.xlu0 %430  ;;  %v437_v13 = vpop.xlane.xlu1 %436 }
  0x9b   : > { %v464_v14 = vmul.f32 0.03125, %v431_v12  ;;  %v466_v15 = vmul.f32 0.03125, %v437_v13 }
  0x9d   : > { %v6094_v16 = vsub.f32 %v415_v0, %v464_v14  ;;  %v6096_v17 = vsub.f32 %v417_v1, %v466_v15 }
  0x9e   : > { %v434_v18 = vpop.xlane.xlu0 %433  ;;  %v440_v19 = vpop.xlane.xlu1 %439 }
  0x9f   : > { %v465_v20 = vmul.f32 0.03125, %v434_v18  ;;  %v467_v21 = vmul.f32 0.03125, %v440_v19  ;;  %v486_v22 = vmul.f32 %v6094_v16, %v6094_v16  ;;  %v488_v23 = vmul.f32 %v6096_v17, %v6096_v17 }
  0xa1   : > { %v6102_v24 = vsub.f32 %v416_v2, %v465_v20  ;;  %v6104_v25 = vsub.f32 %v418_v5, %v467_v21  ;;  %v497_v26 = vsel %vm428_vm0, %v486_v22, 0.0  ;;  %v503_v29 = vsel %vm428_vm0, %v488_v23, 0.0  ;;  %v6174_v22 = vld [vmem:[%s385_s17] ss:$0 sm:$0xff] }
  0xa2   : > { %498 = vadd.xlane.f32.xlu0 %v497_v26  ;;  %v443_v27 = vpop.xlane.xlu0 %442  ;;  %v446_v28 = vpop.xlane.xlu1 %445 }
  0xa3   : > { %v468_v30 = vmul.f32 0.03125, %v443_v27  ;;  %v469_v31 = vmul.f32 0.03125, %v446_v28  ;;  %v487_v32 = vmul.f32 %v6102_v24, %v6102_v24  ;;  %v489_v33 = vmul.f32 %v6104_v25, %v6104_v25 }
  0xa5   : > { %v6112_v34 = vsub.f32 %v419_v8, %v468_v30  ;;  %v6114_v35 = vsub.f32 %v420_v9, %v469_v31  ;;  %v500_v36 = vsel %vm428_vm0, %v487_v32, 0.0  ;;  %v506_v37 = vsel %vm428_vm0, %v489_v33, 0.0 }
  0xa6   : > { %504 = vadd.xlane.f32.xlu0 %v503_v29  ;;  %501 = vadd.xlane.f32.xlu1 %v500_v36  ;;  %v6184_v29 = vld [vmem:[%s388_s20] ss:$0 sm:$0xff] }
  0xa7   : > { %v490_v38 = vmul.f32 %v6112_v34, %v6112_v34  ;;  %v491_v39 = vmul.f32 %v6114_v35, %v6114_v35 }
  0xa9   : > { %v509_v41 = vsel %vm428_vm0, %v490_v38, 0.0  ;;  %v512_v42 = vsel %vm428_vm0, %v491_v39, 0.0 }
  0xaa   : > { %507 = vadd.xlane.f32.xlu1 %v506_v37  ;;  %510 = vadd.xlane.f32.xlu0 %v509_v41 }
  0xae   : > { %513 = vadd.xlane.f32.xlu1 %v512_v42  ;;  %448 = vadd.xlane.f32.xlu0 %v447_v43 }
  0xb2   : > { %451 = vadd.xlane.f32.xlu1 %v450_v46  ;;  %454 = vadd.xlane.f32.xlu0 %v453_v47 }
  0xb6   : > { %457 = vadd.xlane.f32.xlu1 %v456_v50  ;;  %461 = vadd.xlane.f32.xlu0 %v460_v51 }
 0x12b   : > { %v499_v57 = vpop.xlane.xlu0 %498 }
 0x12c   : > { %v530_v58 = vmul.f32 0.03125, %v499_v57 }
 0x12e   : > { %v541_v59 = vadd.f32 1e-05, %v530_v58 }
 0x12f   : > { %v502_v60 = vpop.xlane.xlu1 %501  ;;  %v505_v61 = vpop.xlane.xlu0 %504 }
 0x130   : > { %5786 = vrsqrt.f32 %v541_v59  ;;  %v531_v62 = vmul.f32 0.03125, %v502_v60  ;;  %v532_v63 = vmul.f32 0.03125, %v505_v61 }
 0x132   : > { %v542_v0 = vadd.f32 1e-05, %v531_v62  ;;  %v543_v1 = vadd.f32 1e-05, %v532_v63 }
 0x133   : > { %v508_v2 = vpop.xlane.xlu1 %507  ;;  %v511_v3 = vpop.xlane.xlu0 %510 }
 0x134   : > { %5788 = vrsqrt.f32 %v542_v0  ;;  %v533_v4 = vmul.f32 0.03125, %v508_v2  ;;  %v534_v5 = vmul.f32 0.03125, %v511_v3 }
 0x135   : > { %5790 = vrsqrt.f32 %v543_v1 }
 0x136   : > { %v544_v6 = vadd.f32 1e-05, %v533_v4  ;;  %v545_v7 = vadd.f32 1e-05, %v534_v5 }
 0x137   : > { %v514_v8 = vpop.xlane.xlu1 %513  ;;  %v449_v9 = vpop.xlane.xlu0 %448 }
 0x138   : > { %5792 = vrsqrt.f32 %v544_v6  ;;  %v535_v10 = vmul.f32 0.03125, %v514_v8  ;;  %v470_v11 = vmul.f32 0.03125, %v449_v9 }
 0x139   : > { %5794 = vrsqrt.f32 %v545_v7 }
 0x13a   : > { %v546_v12 = vadd.f32 1e-05, %v535_v10  ;;  %v6162_v13 = vsub.f32 %v6123_v40, %v470_v11 }
 0x13b   : > { %v452_v14 = vpop.xlane.xlu1 %451  ;;  %v455_v15 = vpop.xlane.xlu0 %454 }
 0x13c   : > { %v492_v18 = vmul.f32 %v6162_v13, %v6162_v13  ;;  %v471_v19 = vmul.f32 0.03125, %v452_v14  ;;  %v472_v20 = vmul.f32 0.03125, %v455_v15  ;;  %5796 = vrsqrt.f32 %v546_v12 }
 0x13d   : > { %v5787_v21 = vpop.eup %5786 }
 0x13e   : > { %v515_v23 = vsel %vm428_vm0, %v492_v18, 0.0  ;;  %v563_v26 = vmul.f32 %v5787_v21, %v6094_v16  ;;  %v6179_v27 = vsub.f32 %v6130_v44, %v471_v19  ;;  %v6182_v28 = vsub.f32 %v6133_v45, %v472_v20 }
 0x13f   : > { %516 = vadd.xlane.f32.xlu1 %v515_v23  ;;  %v458_v30 = vpop.xlane.xlu1 %457  ;;  %v462_v31 = vpop.xlane.xlu0 %461 }
 0x140   : > { %v580_v32 = vmul.f32 %v6174_v22, %v563_v26  ;;  %v473_v33 = vmul.f32 0.03125, %v458_v30  ;;  %v493_v36 = vmul.f32 %v6179_v27, %v6179_v27  ;;  %v494_v16 = vmul.f32 %v6182_v28, %v6182_v28 }
 0x141   : > { %v5789_v37 = vpop.eup %5788  ;;  %v474_v38 = vmul.f32 0.03125, %v462_v31 }
 0x142   : > { %v5791_v39 = vpop.eup %5790  ;;  %v597_v40 = vadd.f32 %v6184_v29, %v580_v32  ;;  %v564_v41 = vmul.f32 %v5789_v37, %v6102_v24  ;;  %v6194_v42 = vsub.f32 %v6140_v48, %v473_v33  ;;  %v518_v43 = vsel %vm428_vm0, %v493_v36, 0.0 }
 0x143   : > { %v565_v44 = vmul.f32 %v5791_v39, %v6096_v17  ;;  %519 = vadd.xlane.f32.xlu0 %v518_v43  ;;  %v521_v45 = vsel %vm428_vm0, %v494_v16, 0.0  ;;  %v6200_v46 = vsub.f32 %v6143_v49, %v474_v38 }
 0x144   : > { %5306 = vmatmul.mubr.msk.f32.vlgmr.msra.gmra.mxu0 %vm428_vm0, %v597_v40  ;;  %v581_v47 = vmul.f32 %v6174_v22, %v564_v41  ;;  %522 = vadd.xlane.f32.xlu1 %v521_v45  ;;  %v495_v24 = vmul.f32 %v6194_v42, %v6194_v42  ;;  %v6271_v41 = vld [vmem:[%s396_s23] ss:$0 sm:$0xff] }
 0x145   : > { %v5793_v48 = vpop.eup %5792  ;;  %5308 = vmatprep.mubr.msk.f32.mxu0 %vm6009_vm2, %v6008_v52  ;;  %v496_v17 = vmul.f32 %v6200_v46, %v6200_v46  ;;  %v582_v49 = vmul.f32 %v6174_v22, %v565_v44 }
 0x146   : > { %v598_v50 = vadd.f32 %v6184_v29, %v581_v47  ;;  %v566_v51 = vmul.f32 %v5793_v48, %v6104_v25  ;;  %v524_v53 = vsel %vm428_vm0, %v495_v24, 0.0  ;;  %v5795_v54 = vpop.eup %5794 }
 0x147   : > { %525 = vadd.xlane.f32.xlu0 %v524_v53  ;;  %v527_v55 = vsel %vm459_vm1, %v496_v17, 0.0  ;;  %v599_v57 = vadd.f32 %v6184_v29, %v582_v49  ;;  %v567_v59 = vmul.f32 %v5795_v54, %v6112_v34 }
 0x148   : > { %5309 = vmatmul.mubr.msk.f32.gmra.mxu0 %vm428_vm0, %v598_v50  ;;  %528 = vadd.xlane.f32.xlu1 %v527_v55  ;;  %v583_v58 = vmul.f32 %v6174_v22, %v566_v51 }
 0x149   : > { %5311 = vmatprep.mubr.msk.f32.mxu0 %vm6009_vm2, %v6008_v52  ;;  %v5797_v56 = vpop.eup %5796  ;;  %v584_v60 = vmul.f32 %v6174_v22, %v567_v59 }
 0x14a   : > { %v600_v25 = vadd.f32 %v6184_v29, %v583_v58  ;;  %v568_v61 = vmul.f32 %v5797_v56, %v6114_v35 }
 0x14b   : > { %v601_v62 = vadd.f32 %v6184_v29, %v584_v60 }
 0x14c   : > { %5312 = vmatmul.mubr.msk.f32.gmra.mxu0 %vm428_vm0, %v599_v57  ;;  %v585_v34 = vmul.f32 %v6174_v22, %v568_v61 }
 0x14d   : > { %5314 = vmatprep.mubr.msk.f32.mxu0 %vm6009_vm2, %v6008_v52 }
 0x14e   : > { %v602_v63 = vadd.f32 %v6184_v29, %v585_v34 }
 0x150   : > { %5315 = vmatmul.mubr.msk.f32.gmra.mxu0 %vm428_vm0, %v600_v25 }
 0x151   : > { %5317 = vmatprep.mubr.msk.f32.mxu0 %vm6009_vm2, %v6008_v52 }
 0x154   : > { %5318 = vmatmul.mubr.msk.f32.gmra.mxu0 %vm428_vm0, %v601_v62 }
 0x155   : > { %5320 = vmatprep.mubr.msk.f32.mxu0 %vm6009_vm2, %v6008_v52 }
 0x158   : > { %5321 = vmatmul.mubr.msk.f32.gmra.mxu0 %vm428_vm0, %v602_v63 }
 0x159   : > { %5323 = vmatprep.mubr.msk.f32.mxu0 %vm6009_vm2, %v6008_v52 }
 0x1c8   : > { %v517_v35 = vpop.xlane.xlu1 %516 }
 0x1c9   : > { %v536_v0 = vmul.f32 0.03125, %v517_v35 }
 0x1cb   : > { %v547_v1 = vadd.f32 1e-05, %v536_v0 }
 0x1cc   : > { %v520_v2 = vpop.xlane.xlu0 %519 }
 0x1cd   : > { %5798 = vrsqrt.f32 %v547_v1  ;;  %v537_v3 = vmul.f32 0.03125, %v520_v2  ;;  %v523_v4 = vpop.xlane.xlu1 %522 }
 0x1ce   : > { %v538_v5 = vmul.f32 0.03125, %v523_v4 }
 0x1cf   : > { %v548_v6 = vadd.f32 1e-05, %v537_v3 }
 0x1d0   : > { %v549_v7 = vadd.f32 1e-05, %v538_v5  ;;  %v526_v8 = vpop.xlane.xlu0 %525 }
 0x1d1   : > { %5800 = vrsqrt.f32 %v548_v6  ;;  %v539_v9 = vmul.f32 0.03125, %v526_v8  ;;  %v529_v10 = vpop.xlane.xlu1 %528 }
 0x1d2   : > { %5802 = vrsqrt.f32 %v549_v7  ;;  %v540_v11 = vmul.f32 0.03125, %v529_v10 }
 0x1d3   : > { %v550_v12 = vadd.f32 1e-05, %v539_v9 }
 0x1d4   : > { %v551_v14 = vadd.f32 1e-05, %v540_v11 }
 0x1d5   : > { %5804 = vrsqrt.f32 %v550_v12 }
 0x1d6   : > { %5806 = vrsqrt.f32 %v551_v14 }
 0x1da   : > { %v5799_v15 = vpop.eup %5798 }
 0x1db   : > { %v569_v18 = vmul.f32 %v5799_v15, %v6162_v13 }
 0x1dd   : > { %v586_v19 = vmul.f32 %v6174_v22, %v569_v18 }
 0x1de   : > { %v5801_v20 = vpop.eup %5800 }
 0x1df   : > { %v5803_v21 = vpop.eup %5802  ;;  %v603_v23 = vadd.f32 %v6184_v29, %v586_v19  ;;  %v570_v26 = vmul.f32 %v5801_v20, %v6179_v27 }
 0x1e0   : > { %v571_v30 = vmul.f32 %v5803_v21, %v6182_v28 }
 0x1e1   : > { %5324 = vmatmul.mubr.msk.f32.gmra.mxu0 %vm428_vm0, %v603_v23  ;;  %v587_v31 = vmul.f32 %v6174_v22, %v570_v26 }
 0x1e2   : > { %v5805_v32 = vpop.eup %5804  ;;  %5326 = vmatprep.mubr.msk.f32.mxu0 %vm6009_vm2, %v6008_v52  ;;  %v588_v13 = vmul.f32 %v6174_v22, %v571_v30 }
 0x1e3   : > { %v5807_v33 = vpop.eup %5806  ;;  %v604_v36 = vadd.f32 %v6184_v29, %v587_v31  ;;  %v572_v16 = vmul.f32 %v5805_v32, %v6194_v42 }
 0x1e4   : > { %v605_v27 = vadd.f32 %v6184_v29, %v588_v13  ;;  %v573_v37 = vmul.f32 %v5807_v33, %v6200_v46 }
 0x1e5   : > { %5327 = vmatmul.mubr.msk.f32.gmra.mxu0 %vm428_vm0, %v604_v36  ;;  %v589_v28 = vmul.f32 %v6174_v22, %v572_v16 }
 0x1e6   : > { %5329 = vmatprep.mubr.msk.f32.mxu0 %vm6009_vm2, %v6008_v52  ;;  %v590_v39 = vmul.f32 %v6174_v22, %v573_v37 }
 0x1e7   : > { %v606_v38 = vadd.f32 %v6184_v29, %v589_v28 }
 0x1e8   : > { %v607_v40 = vadd.f32 %v6184_v29, %v590_v39 }
 0x1e9   : > { %5330 = vmatmul.mubr.msk.f32.gmra.mxu0 %vm428_vm0, %v605_v27 }
 0x1ea   : > { %5332 = vmatprep.mubr.msk.f32.mxu0 %vm6009_vm2, %v6008_v52 }
 0x1ed   : > { %5333 = vmatmul.mubr.msk.f32.gmra.mxu0 %vm428_vm0, %v606_v38 }
 0x1ee   : > { %5335 = vmatprep.mubr.msk.f32.mxu0 %vm6009_vm2, %v6008_v52 }
 0x1f1   : > { %5336 = vmatmul.mubr.msk.f32.gmra.mxu0 %vm428_vm0, %v607_v40 }
 0x204   : > { %v718_v42 = vpop.f32.mrf.mxu0 }
 0x205   : > { %v6274_v22 = vadd.f32 %v6271_v41, %v718_v42 }
 0x206   : > { %v5307_v43 = vpop.f32.mrf.mxu0 }
 0x207   : > { %5350 = vmatprep.mubr.msk.f32.mxu1 %vm790_vm3, %v6274_v22 }
 0x208   : > { %v723_v29 = vpop.f32.mrf.mxu0 }
 0x209   : > { %v6301_v55 = vadd.f32 %v6271_v41, %v723_v29 }
 0x20a   : > { %v5310_v44 = vpop.f32.mrf.mxu0 }
 0x20c   : > { %v728_v52 = vpop.f32.mrf.mxu0 }
 0x20d   : > { %v6294_v54 = vadd.f32 %v6271_v41, %v728_v52 }
 0x20e   : > { %v5313_v45 = vpop.f32.mrf.mxu0 }
 0x210   : > { %v733_v46 = vpop.f32.mrf.mxu0 }
 0x211   : > { %v6284_v49 = vadd.f32 %v6271_v41, %v733_v46 }
 0x212   : > { %v5316_v47 = vpop.f32.mrf.mxu0 }
 0x214   : > { %v738_v24 = vpop.f32.mrf.mxu0 }
 0x215   : > { %v6279_v48 = vadd.f32 %v6271_v41, %v738_v24 }
 0x216   : > { %v5319_v17 = vpop.f32.mrf.mxu0 }
 0x217   : > { %786 = vrot.lane.b32.xlu1 %v6279_v48, %s6010_s24 }
 0x218   : > { %v743_v50 = vpop.f32.mrf.mxu0 }
 0x219   : > { %v6287_v51 = vadd.f32 %v6271_v41, %v743_v50 }
 0x21a   : > { %v5322_v53 = vpop.f32.mrf.mxu0 }
 0x21b   : > { %788 = vrot.lane.b32.xlu0 %v6287_v51, %s6010_s24  ;;  %784 = vrot.lane.b32.xlu1 %v6284_v49, %s6010_s24 }
 0x21f   : > { %1146 = vrot.lane.b32.xlu0 %v6287_v51, %s6011_s25  ;;  %782 = vrot.lane.b32.xlu1 %v6294_v54, %s6010_s24 }
 0x223   : > { %1144 = vrot.lane.b32.xlu0 %v6279_v48, %s6011_s25  ;;  %780 = vrot.lane.b32.xlu1 %v6301_v55, %s6010_s24 }
 0x227   : > { %1142 = vrot.lane.b32.xlu0 %v6284_v49, %s6011_s25  ;;  %778 = vrot.lane.b32.xlu1 %v6274_v22, %s6010_s24 }
 0x22b   : > { %1138 = vrot.lane.b32.xlu0 %v6301_v55, %s6011_s25  ;;  %1140 = vrot.lane.b32.xlu1 %v6294_v54, %s6011_s25 }
 0x22f   : > { %1124 = vrot.lane.b32.xlu0 %v6274_v22, %s6012_s26  ;;  %1136 = vrot.lane.b32.xlu1 %v6274_v22, %s6011_s25 }
 0x233   : > { %1128 = vrot.lane.b32.xlu0 %v6294_v54, %s6012_s26  ;;  %1126 = vrot.lane.b32.xlu1 %v6301_v55, %s6012_s26 }
 0x237   : > { %1132 = vrot.lane.b32.xlu0 %v6279_v48, %s6012_s26  ;;  %1130 = vrot.lane.b32.xlu1 %v6284_v49, %s6012_s26 }
 0x23b   : > { %1000 = vrot.lane.b32.xlu0 %v6287_v51, %s6013_s29  ;;  %1134 = vrot.lane.b32.xlu1 %v6287_v51, %s6012_s26 }
 0x23f   : > { %998 = vrot.lane.b32.xlu1 %v6279_v48, %s6013_s29 }
 0x243   : > { %996 = vrot.lane.b32.xlu1 %v6284_v49, %s6013_s29 }
 0x247   : > { %994 = vrot.lane.b32.xlu1 %v6294_v54, %s6013_s29 }
 0x289   : > { %v787_v56 = vpop.permute.xlu1 %786 }
 0x28d   : > { %v785_v57 = vpop.permute.xlu1 %784  ;;  %v789_v58 = vpop.permute.xlu0 %788 }
 0x28e   : > { %5338 = vmatprep.subr.msk.mxu1 %vm790_vm3, %v789_v58 }
 0x28f   : > { %5339 = vmatpush3.xpose.msk.msra.mxu1 %vm790_vm3, %v789_v58 }
 0x290   : > { %5340 = vmatprep.subr.msk.mxu1 %vm790_vm3, %v787_v56 }
 0x291   : > { %v783_v59 = vpop.permute.xlu1 %782  ;;  %v1147_v25 = vpop.permute.xlu0 %1146 }
 0x292   : > { %5380 = vmatprep.subr.msk.mxu0 %vm790_vm3, %v1147_v25 }
 0x293   : > { %5341 = vmatpush3.xpose.msk.msra.mxu1 %vm790_vm3, %v787_v56  ;;  %5381 = vmatpush3.xpose.msk.msra.mxu0 %vm790_vm3, %v1147_v25 }
 0x294   : > { %5342 = vmatprep.subr.msk.mxu1 %vm790_vm3, %v785_v57 }
 0x295   : > { %v781_v60 = vpop.permute.xlu1 %780  ;;  %v1145_v61 = vpop.permute.xlu0 %1144 }
 0x296   : > { %5382 = vmatprep.subr.msk.mxu0 %vm790_vm3, %v1145_v61 }
 0x297   : > { %5343 = vmatpush3.xpose.msk.msra.mxu1 %vm790_vm3, %v785_v57  ;;  %5383 = vmatpush3.xpose.msk.msra.mxu0 %vm790_vm3, %v1145_v61 }
 0x298   : > { %5344 = vmatprep.subr.msk.mxu1 %vm790_vm3, %v783_v59 }
 0x299   : > { %v779_v62 = vpop.permute.xlu1 %778  ;;  %v1143_v34 = vpop.permute.xlu0 %1142 }
 0x29a   : > { %5384 = vmatprep.subr.msk.mxu0 %vm790_vm3, %v1143_v34 }
 0x29b   : > { %5345 = vmatpush3.xpose.msk.msra.mxu1 %vm790_vm3, %v783_v59  ;;  %5385 = vmatpush3.xpose.msk.msra.mxu0 %vm790_vm3, %v1143_v34 }
 0x29c   : > { %5346 = vmatprep.subr.msk.mxu1 %vm790_vm3, %v781_v60 }
 0x29d   : > { %v1141_v63 = vpop.permute.xlu1 %1140  ;;  %v1139_v35 = vpop.permute.xlu0 %1138 }
 0x29e   : > { %5386 = vmatprep.subr.msk.mxu0 %vm790_vm3, %v1141_v63 }
 0x29f   : > { %5347 = vmatpush3.xpose.msk.msra.mxu1 %vm790_vm3, %v781_v60  ;;  %5387 = vmatpush3.xpose.msk.msra.mxu0 %vm790_vm3, %v1141_v63 }
 0x2a0   : > { %5348 = vmatprep.subr.msk.mxu1 %vm790_vm3, %v779_v62  ;;  %5388 = vmatprep.subr.msk.mxu0 %vm790_vm3, %v1139_v35 }
 0x2a1   : > { %v748_v0 = vpop.f32.mrf.mxu0  ;;  %v1137_v1 = vpop.permute.xlu1 %1136 }
 0x2a2   : > { %v1125_v2 = vpop.permute.xlu0 %1124  ;;  %v6360_v4 = vadd.f32 %v6271_v41, %v748_v0 }
 0x2a3   : > { %5392 = vmatprep.mubr.msk.f32.mxu0 %vm790_vm3, %v1125_v2  ;;  %5349 = vmatpush3.xpose.msk.msra.mxu1 %vm790_vm3, %v779_v62  ;;  %v5325_v3 = vpop.f32.mrf.mxu0 }
 0x2a4   : > { %5389 = vmatpush3.xpose.msk.msra.mxu0 %vm790_vm3, %v1139_v35  ;;  %v2692_v10 = vrot.slane %v6360_v4, 1 }
 0x2a5   : > { %5390 = vmatprep.subr.msk.mxu0 %vm790_vm3, %v1137_v1  ;;  %v1127_v5 = vpop.permute.xlu1 %1126  ;;  %v753_v6 = vpop.f32.mrf.mxu0 }
 0x2a6   : > { %v1129_v7 = vpop.permute.xlu0 %1128  ;;  %5351 = vmatmul.mubr.msk.f32.vlgmr.msra.gmra.mxu1 %vm790_vm3, %v6301_v55  ;;  %v754_v8 = vadd.f32 %v6271_v41, %v753_v6 }
 0x2a7   : > { %5353 = vmatprep.mubr.msk.f32.mxu1 %vm790_vm3, %v6294_v54  ;;  %v5328_v9 = vpop.f32.mrf.mxu0 }
 0x2a8   : > { %5391 = vmatpush3.xpose.msk.msra.mxu0 %vm790_vm3, %v1137_v1  ;;  %v2694_v11 = vrot.slane %v754_v8, 1 }
 0x2a9   : > { %v1131_v12 = vpop.permute.xlu1 %1130  ;;  %v758_v14 = vpop.f32.mrf.mxu0 }
 0x2aa   : > { %v1133_v15 = vpop.permute.xlu0 %1132  ;;  %5354 = vmatmul.mubr.msk.f32.gmra.mxu1 %vm790_vm3, %v6284_v49  ;;  %v6376_v18 = vsel %vm2690_vm4, %v2692_v10, %v2694_v11  ;;  %v759_v19 = vadd.f32 %v6271_v41, %v758_v14 }
 0x2ab   : > { %5393 = vmatmul.mubr.msk.f32.vlgmr.msra.gmra.mxu0 %vm790_vm3, %v1127_v5  ;;  %5356 = vmatprep.mubr.msk.f32.mxu1 %vm790_vm3, %v6279_v48  ;;  %v5331_v20 = vpop.f32.mrf.mxu0 }
 0x2ac   : > { %5395 = vmatprep.mubr.msk.f32.mxu0 %vm790_vm3, %v1129_v7  ;;  %v2696_v21 = vrot.slane %v759_v19, 1 }
 0x2ad   : > { %v1135_v23 = vpop.permute.xlu1 %1134  ;;  %v763_v26 = vpop.f32.mrf.mxu0 }
 0x2ae   : > { %v1001_v30 = vpop.permute.xlu0 %1000  ;;  %5357 = vmatmul.mubr.msk.f32.gmra.mxu1 %vm790_vm3, %v6287_v51  ;;  %v6386_v31 = vsel %vm2690_vm4, %v2694_v11, %v2696_v21  ;;  %v764_v32 = vadd.f32 %v6271_v41, %v763_v26 }
 0x2af   : > { %5359 = vmatprep.subr.msk.mxu1 %vm1025_vm5, %v1001_v30  ;;  %5396 = vmatmul.mubr.msk.f32.gmra.mxu0 %vm790_vm3, %v1131_v12  ;;  %v5334_v13 = vpop.f32.mrf.mxu0 }
 0x2b0   : > { %5360 = vmatpush3.msk.msra.mxu1 %vm1025_vm5, %v1001_v30  ;;  %5398 = vmatprep.mubr.msk.f32.mxu0 %vm790_vm3, %v1133_v15  ;;  %v2698_v33 = vrot.slane %v764_v32, 1 }
 0x2b1   : > { %v999_v36 = vpop.permute.xlu1 %998  ;;  %v768_v16 = vpop.f32.mrf.mxu0 }
 0x2b2   : > { %5361 = vmatprep.subr.mxu1 %v999_v36  ;;  %v6394_v27 = vsel %vm2690_vm4, %v2696_v21, %v2698_v33  ;;  %v769_v28 = vadd.f32 %v6271_v41, %v768_v16 }
 0x2b3   : > { %5399 = vmatmul.mubr.msk.f32.gmra.mxu0 %vm790_vm3, %v1135_v23  ;;  %5362 = vmatpush3.msra.mxu1 %v999_v36  ;;  %v5337_v37 = vpop.f32.mrf.mxu0 }
 0x2b4   : > { %v6398_v38 = vrot.slane %v769_v28, 1 }
 0x2b5   : > { %v997_v39 = vpop.permute.xlu1 %996 }
 0x2b6   : > { %5363 = vmatprep.subr.mxu1 %v997_v39  ;;  %v6402_v40 = vsel %vm2690_vm4, %v2698_v33, %v6398_v38 }
 0x2b7   : > { %5364 = vmatpush3.msra.mxu1 %v997_v39 }
 0x2b9   : > { %v995_v42 = vpop.permute.xlu1 %994 }
 0x2ba   : > { %5365 = vmatprep.subr.mxu1 %v995_v42 }
 0x2bb   : > { %5366 = vmatpush3.msra.mxu1 %v995_v42 }
 0x366   : > { %v5352_v43 = vpop.f32.mrf.mxu1 }
 0x367   : > { %v911_v29 = vmul.f32 0.35355338, %v5352_v43 }
 0x368   : > { %v881_v41 = vpop.f32.mrf.mxu1 }
 0x369   : > { %v910_v44 = vmul.f32 0.35355338, %v881_v41  ;;  %v920_v52 = vsel %vm916_vm6, %v911_v29, -inf }
 0x36a   : > { %921 = vmax.xlane.f32.xlu1 %v920_v52  ;;  %v5355_v45 = vpop.f32.mrf.mxu1 }
 0x36b   : > { %v5394_v46 = vpop.f32.mrf.mxu0  ;;  %v917_v47 = vsel %vm916_vm6, %v910_v44, -inf  ;;  %v913_v59 = vmul.f32 0.35355338, %v5355_v45 }
 0x36c   : > { %v1268_v24 = vmul.f32 0.35355338, %v5394_v46  ;;  %918 = vmax.xlane.f32.xlu0 %v917_v47  ;;  %v891_v17 = vpop.f32.mrf.mxu1 }
 0x36d   : > { %v1238_v50 = vpop.f32.mrf.mxu0  ;;  %v912_v35 = vmul.f32 0.35355338, %v891_v17  ;;  %v926_v0 = vsel %vm916_vm6, %v913_v59, -inf }
 0x36e   : > { %v1267_v53 = vmul.f32 0.35355338, %v1238_v50  ;;  %v1276_v56 = vsel %vm916_vm6, %v1268_v24, -inf  ;;  %v5358_v57 = vpop.f32.mrf.mxu1 }
 0x36f   : > { %1277 = vmax.xlane.f32.xlu1 %v1276_v56  ;;  %v5397_v58 = vpop.f32.mrf.mxu0  ;;  %v915_v62 = vmul.f32 0.35355338, %v5358_v57  ;;  %v923_v5 = vsel %vm916_vm6, %v912_v35, -inf }
 0x370   : > { %v1270_v25 = vmul.f32 0.35355338, %v5397_v58  ;;  %v1273_v60 = vsel %vm916_vm6, %v1267_v53, -inf  ;;  %v901_v6 = vpop.f32.mrf.mxu1 }
 0x371   : > { %1274 = vmax.xlane.f32.xlu0 %v1273_v60  ;;  %v1248_v61 = vpop.f32.mrf.mxu0  ;;  %v933_v2 = vsel %vm932_vm7, %v915_v62, -inf  ;;  %v914_v8 = vmul.f32 0.35355338, %v901_v6 }
 0x372   : > { %v1282_v34 = vsel %vm916_vm6, %v1270_v25, -inf  ;;  %v1269_v3 = vmul.f32 0.35355338, %v1248_v61 }
 0x373   : > { %1283 = vmax.xlane.f32.xlu1 %v1282_v34  ;;  %v5400_v63 = vpop.f32.mrf.mxu0  ;;  %v929_v14 = vsel %vm916_vm6, %v914_v8, -inf }
 0x374   : > { %v6410_v1 = vmul.f32 0.35355338, %v5400_v63  ;;  %v1279_v9 = vsel %vm916_vm6, %v1269_v3, -inf }
 0x375   : > { %927 = vmax.xlane.f32.xlu0 %v926_v0  ;;  %v1258_v11 = vpop.f32.mrf.mxu0 }
 0x376   : > { %v1288_v7 = vsel %vm932_vm7, %v6410_v1, -inf  ;;  %v6417_v12 = vmul.f32 0.35355338, %v1258_v11 }
 0x377   : > { %934 = vmax.xlane.f32.xlu1 %v933_v2 }
 0x378   : > { %v1285_v15 = vsel %vm916_vm6, %v6417_v12, -inf }
 0x379   : > { %924 = vmax.xlane.f32.xlu0 %v923_v5 }
 0x37b   : > { %1289 = vmax.xlane.f32.xlu1 %v1288_v7 }
 0x37d   : > { %1280 = vmax.xlane.f32.xlu0 %v1279_v9 }
 0x381   : > { %930 = vmax.xlane.f32.xlu0 %v929_v14 }
 0x385   : > { %1286 = vmax.xlane.f32.xlu0 %v1285_v15 }
 0x38c   : > { %990 = vrot.lane.b32.xlu1 %v6274_v22, %s6013_s29 }
 0x39b   : > { %992 = vrot.lane.b32.xlu0 %v6301_v55, %s6013_s29 }
 0x3f3   : > { %v922_v19 = vpop.xlane.xlu1 %921 }
 0x3f4   : > { %v937_v20 = vsub.f32 %v911_v29, %v922_v19 }
 0x3f5   : > { %v919_v21 = vpop.xlane.xlu0 %918 }
 0x3f6   : > { %v944_v23 = vmul.f32 1.442695, %v937_v20  ;;  %v936_v26 = vsub.f32 %v910_v44, %v919_v21 }
 0x3f8   : > { %5808 = vpow2.f32 %v944_v23  ;;  %v942_v30 = vmul.f32 1.442695, %v936_v26  ;;  %v1278_v32 = vpop.xlane.xlu1 %1277 }
 0x3f9   : > { %v1292_v13 = vsub.f32 %v1268_v24, %v1278_v32 }
 0x3fa   : > { %5810 = vpow2.f32 %v942_v30  ;;  %v1275_v33 = vpop.xlane.xlu0 %1274 }
 0x3fb   : > { %v1299_v36 = vmul.f32 1.442695, %v1292_v13  ;;  %v1291_v16 = vsub.f32 %v1267_v53, %v1275_v33 }
 0x3fc   : > { %v1284_v28 = vpop.xlane.xlu1 %1283 }
 0x3fd   : > { %5812 = vpow2.f32 %v1299_v36  ;;  %v1297_v37 = vmul.f32 1.442695, %v1291_v16  ;;  %v1294_v39 = vsub.f32 %v1270_v25, %v1284_v28 }
 0x3fe   : > { %v928_v42 = vpop.xlane.xlu0 %927 }
 0x3ff   : > { %5814 = vpow2.f32 %v1297_v37  ;;  %v939_v43 = vsub.f32 %v913_v59, %v928_v42  ;;  %v1303_v29 = vmul.f32 1.442695, %v1294_v39 }
 0x400   : > { %v935_v41 = vpop.xlane.xlu1 %934 }
 0x401   : > { %v948_v52 = vmul.f32 1.442695, %v939_v43  ;;  %v941_v45 = vsub.f32 %v915_v62, %v935_v41 }
 0x402   : > { %v925_v44 = vpop.xlane.xlu0 %924 }
 0x403   : > { %5816 = vpow2.f32 %v948_v52  ;;  %v938_v46 = vsub.f32 %v912_v35, %v925_v44  ;;  %v952_v24 = vmul.f32 1.442695, %v941_v45 }
 0x404   : > { %5818 = vpow2.f32 %v1303_v29  ;;  %v1290_v0 = vpop.xlane.xlu1 %1289 }
 0x405   : > { %v6426_v47 = vpop.eup %5808  ;;  %v946_v17 = vmul.f32 1.442695, %v938_v46  ;;  %v1296_v30 = vsub.f32 %v6410_v1, %v1290_v0 }
 0x406   : > { %v1281_v50 = vpop.xlane.xlu0 %1280  ;;  %v957_v53 = vsel %vm916_vm6, %v6426_v47, 0.0 }
 0x407   : > { %v6430_v56 = vpop.eup %5810  ;;  %5820 = vpow2.f32 %v946_v17  ;;  %v1293_v57 = vsub.f32 %v1269_v3, %v1281_v50  ;;  %958 = vadd.xlane.f32.xlu1 %v957_v53  ;;  %v1307_v32 = vmul.f32 1.442695, %v1296_v30 }
 0x408   : > { %v954_v58 = vsel %vm916_vm6, %v6430_v56, 0.0  ;;  %5822 = vpow2.f32 %v952_v24  ;;  %v991_v9 = vpop.permute.xlu1 %990 }
 0x409   : > { %v1301_v59 = vmul.f32 1.442695, %v1293_v57  ;;  %955 = vadd.xlane.f32.xlu0 %v954_v58 }
 0x40a   : > { %v6434_v25 = vpop.eup %5812  ;;  %v931_v60 = vpop.xlane.xlu0 %930 }
 0x40b   : > { %5824 = vpow2.f32 %v1301_v59  ;;  %v940_v61 = vsub.f32 %v914_v8, %v931_v60  ;;  %v1312_v62 = vsel %vm916_vm6, %v6434_v25, 0.0 }
 0x40c   : > { %v6438_v34 = vpop.eup %5814  ;;  %1313 = vadd.xlane.f32.xlu1 %v1312_v62 }
 0x40d   : > { %v950_v63 = vmul.f32 1.442695, %v940_v61  ;;  %v1309_v35 = vsel %vm916_vm6, %v6438_v34, 0.0 }
 0x40e   : > { %1310 = vadd.xlane.f32.xlu0 %v1309_v35  ;;  %v1287_v2 = vpop.xlane.xlu0 %1286 }
 0x40f   : > { %5826 = vpow2.f32 %v950_v63  ;;  %v1295_v13 = vsub.f32 %v6417_v12, %v1287_v2 }
 0x410   : > { %v6442_v3 = vpop.eup %5816  ;;  %5828 = vpow2.f32 %v1307_v32 }
 0x411   : > { %v963_v5 = vsel %vm916_vm6, %v6442_v3, 0.0  ;;  %v6446_v6 = vpop.eup %5818  ;;  %v1305_v33 = vmul.f32 1.442695, %v1295_v13 }
 0x412   : > { %964 = vadd.xlane.f32.xlu1 %v963_v5  ;;  %v993_v7 = vpop.permute.xlu0 %992  ;;  %v1318_v11 = vsel %vm916_vm6, %v6446_v6, 0.0 }
 0x413   : > { %5367 = vmatprep.subr.mxu1 %v993_v7  ;;  %5830 = vpow2.f32 %v1305_v33 }
 0x414   : > { %v6448_v8 = vpop.eup %5820  ;;  %5368 = vmatpush3.msra.mxu1 %v993_v7 }
 0x415   : > { %5369 = vmatprep.subr.mxu1 %v991_v9  ;;  %v960_v14 = vsel %vm916_vm6, %v6448_v8, 0.0  ;;  %v6454_v15 = vpop.eup %5822 }
 0x416   : > { %1319 = vadd.xlane.f32.xlu1 %v1318_v11  ;;  %961 = vadd.xlane.f32.xlu0 %v960_v14  ;;  %v969_v20 = vsel %vm932_vm7, %v6454_v15, 0.0 }
 0x417   : > { %5370 = vmatpush3.msra.mxu1 %v991_v9 }
 0x418   : > { %v6456_v19 = vpop.eup %5824 }
 0x419   : > { %v1315_v21 = vsel %vm916_vm6, %v6456_v19, 0.0 }
 0x41a   : > { %970 = vadd.xlane.f32.xlu1 %v969_v20  ;;  %1316 = vadd.xlane.f32.xlu0 %v1315_v21  ;;  %v1478_v20 = vld [vmem:[%s6589_s21 + $0x8] sm:$0xff] }
 0x41c   : > { %v6462_v23 = vpop.eup %5826 }
 0x41d   : > { %v966_v26 = vsel %vm916_vm6, %v6462_v23, 0.0  ;;  %v6478_v36 = vpop.eup %5828 }
 0x41e   : > { %967 = vadd.xlane.f32.xlu0 %v966_v26  ;;  %v1324_v16 = vsel %vm932_vm7, %v6478_v36, 0.0 }
 0x420   : > { %v6482_v28 = vpop.eup %5830 }
 0x421   : > { %v1321_v37 = vsel %vm916_vm6, %v6482_v28, 0.0 }
 0x42b   : > { %1354 = vrot.lane.b32.xlu1 %v6279_v48, %s6014_s30 }
 0x42f   : > { %1352 = vrot.lane.b32.xlu1 %v6284_v49, %s6014_s30 }
 0x433   : > { %1350 = vrot.lane.b32.xlu1 %v6294_v54, %s6014_s30 }
 0x434   : > { %1356 = vrot.lane.b32.xlu0 %v6287_v51, %s6014_s30 }
 0x437   : > { %1348 = vrot.lane.b32.xlu1 %v6301_v55, %s6014_s30 }
 0x453   : > { %1325 = vadd.xlane.f32.xlu0 %v1324_v16 }
 0x45b   : > { %1322 = vadd.xlane.f32.xlu1 %v1321_v37 }
 0x469   : > { %1723 = vrot.lane.b32.xlu0 %v6284_v49, %s6015_s9 }
 0x46c   : > { %1346 = vrot.lane.b32.xlu1 %v6274_v22, %s6014_s30 }
 0x46d   : > { %1711 = vrot.lane.b32.xlu0 %v6284_v49, %s6016_s12 }
 0x470   : > { %1727 = vrot.lane.b32.xlu1 %v6287_v51, %s6015_s9 }
 0x471   : > { %1715 = vrot.lane.b32.xlu0 %v6287_v51, %s6016_s12 }
 0x474   : > { %1725 = vrot.lane.b32.xlu1 %v6279_v48, %s6015_s9 }
 0x475   : > { %2199 = vrot.lane.b32.xlu0 %v6279_v48, %s6017_s13 }
 0x478   : > { %1721 = vrot.lane.b32.xlu1 %v6294_v54, %s6015_s9 }
 0x479   : > { %2195 = vrot.lane.b32.xlu0 %v6294_v54, %s6017_s13 }
 0x47c   : > { %1719 = vrot.lane.b32.xlu1 %v6301_v55, %s6015_s9 }
 0x47d   : > { %2191 = vrot.lane.b32.xlu0 %v6274_v22, %s6017_s13 }
 0x480   : > { %1717 = vrot.lane.b32.xlu1 %v6274_v22, %s6015_s9 }
 0x481   : > { %2181 = vrot.lane.b32.xlu0 %v6301_v55, %s6018_s14 }
 0x484   : > { %1705 = vrot.lane.b32.xlu1 %v6274_v22, %s6016_s12 }
 0x485   : > { %2185 = vrot.lane.b32.xlu0 %v6284_v49, %s6018_s14 }
 0x488   : > { %1707 = vrot.lane.b32.xlu1 %v6301_v55, %s6016_s12 }
 0x489   : > { %2189 = vrot.lane.b32.xlu0 %v6287_v51, %s6018_s14 }
 0x48c   : > { %1709 = vrot.lane.b32.xlu1 %v6294_v54, %s6016_s12 }
 0x490   : > { %1713 = vrot.lane.b32.xlu1 %v6279_v48, %s6016_s12  ;;  %v959_v1 = vpop.xlane.xlu1 %958 }
 0x491   : > { %5832 = vrcp.f32 %v959_v1 }
 0x492   : > { %v956_v12 = vpop.xlane.xlu0 %955 }
 0x493   : > { %5834 = vrcp.f32 %v956_v12 }
 0x494   : > { %2201 = vrot.lane.b32.xlu1 %v6287_v51, %s6017_s13 }
 0x495   : > { %v1314_v39 = vpop.xlane.xlu1 %1313 }
 0x496   : > { %5836 = vrcp.f32 %v1314_v39 }
 0x497   : > { %v1311_v42 = vpop.xlane.xlu0 %1310 }
 0x498   : > { %5838 = vrcp.f32 %v1311_v42  ;;  %2197 = vrot.lane.b32.xlu1 %v6284_v49, %s6017_s13 }
 0x49b   : > { %v965_v43 = vpop.xlane.xlu1 %964 }
 0x49c   : > { %5840 = vrcp.f32 %v965_v43  ;;  %2193 = vrot.lane.b32.xlu1 %v6301_v55, %s6017_s13 }
 0x49e   : > { %v5833_v41 = vpop.eup %5832 }
 0x49f   : > { %v975_v29 = vmul.f32 %v5833_v41, %v6426_v47  ;;  %v1320_v52 = vpop.xlane.xlu1 %1319  ;;  %v962_v45 = vpop.xlane.xlu0 %961 }
 0x4a0   : > { %v5835_v44 = vpop.eup %5834  ;;  %5842 = vrcp.f32 %v1320_v52  ;;  %2179 = vrot.lane.b32.xlu1 %v6274_v22, %s6018_s14 }
 0x4a1   : > { %985 = vst.msk [vmem:[%s6534_s18 + $0x8] sm:$0xff] %vm916_vm6, %v975_v29  ;;  %5844 = vrcp.f32 %v962_v45  ;;  %v973_v46 = vmul.f32 %v5835_v44, %v6430_v56 }
 0x4a3   : > { %v5837_v24 = vpop.eup %5836  ;;  %v971_v17 = vpop.xlane.xlu1 %970  ;;  %984 = vst.msk [vmem:[%s6534_s18] sm:$0xff] %vm916_vm6, %v973_v46  ;;  %5371 = vmatprep.mubr.msk.f32.mxu1 %vm916_vm6, %v973_v46 }
 0x4a4   : > { %v1317_v50 = vpop.xlane.xlu0 %1316  ;;  %v6546_v47 = vmul.f32 %v5837_v24, %v6434_v25  ;;  %5846 = vrcp.f32 %v971_v17  ;;  %2183 = vrot.lane.b32.xlu1 %v6294_v54, %s6018_s14  ;;  %5372 = vmatmul.mubr.msk.f32.vlgmr.msra.gmra.mxu1 %vm916_vm6, %v975_v29 }
 0x4a5   : > { %v5839_v53 = vpop.eup %5838  ;;  %5848 = vrcp.f32 %v1317_v50 }
 0x4a6   : > { %4812 = vst.msk [vmem:[%s6534_s18 + $0x38] sm:$0xff] %vm916_vm6, %v6546_v47  ;;  %v1328_v56 = vmul.f32 %v5839_v53, %v6438_v34 }
 0x4a7   : > { %v1355_v57 = vpop.permute.xlu1 %1354 }
 0x4a8   : > { %v968_v58 = vpop.xlane.xlu0 %967  ;;  %2187 = vrot.lane.b32.xlu1 %v6279_v48, %s6018_s14  ;;  %4811 = vst.msk [vmem:[%s6534_s18 + $0x30] sm:$0xff] %vm916_vm6, %v1328_v56 }
 0x4a9   : > { %5850 = vrcp.f32 %v968_v58  ;;  %v5841_v59 = vpop.eup %5840 }
 0x4aa   : > { %v979_v25 = vmul.f32 %v5841_v59, %v6442_v3 }
 0x4ab   : > { %v1353_v60 = vpop.permute.xlu1 %1352 }
 0x4ac   : > { %v1357_v61 = vpop.permute.xlu0 %1356  ;;  %987 = vst.msk [vmem:[%s6534_s18 + $0x18] sm:$0xff] %vm916_vm6, %v979_v25 }
 0x4ad   : > { %5401 = vmatprep.subr.msk.mxu1 %vm1025_vm5, %v1357_v61  ;;  %v5843_v62 = vpop.eup %5842 }
 0x4ae   : > { %5402 = vmatpush3.msk.msra.mxu1 %vm1025_vm5, %v1357_v61  ;;  %v5845_v34 = vpop.eup %5844  ;;  %v1334_v63 = vmul.f32 %v5843_v62, %v6446_v6 }
 0x4af   : > { %5403 = vmatprep.subr.mxu1 %v1355_v57  ;;  %v1351_v35 = vpop.permute.xlu1 %1350  ;;  %v977_v0 = vmul.f32 %v5845_v34, %v6448_v8 }
 0x4b0   : > { %5404 = vmatpush3.msra.mxu1 %v1355_v57  ;;  %4814 = vst.msk [vmem:[%s6534_s18 + $0x48] sm:$0xff] %vm916_vm6, %v1334_v63 }
 0x4b1   : > { %5405 = vmatprep.subr.mxu1 %v1353_v60  ;;  %v5847_v2 = vpop.eup %5846  ;;  %986 = vst.msk [vmem:[%s6534_s18 + $0x10] sm:$0xff] %vm916_vm6, %v977_v0  ;;  %5374 = vmatprep.mubr.msk.f32.mxu1 %vm916_vm6, %v977_v0 }
 0x4b2   : > { %5406 = vmatpush3.msra.mxu1 %v1353_v60  ;;  %v5849_v3 = vpop.eup %5848  ;;  %v983_v5 = vmul.f32 %v5847_v2, %v6454_v15  ;;  %v1123_v15 = vld [vmem:[%s6589_s21] sm:$0xff]  ;;  %v2691_v2 = vrot.slane %v6287_v51, 1 }
 0x4b3   : > { %5375 = vmatmul.mubr.msk.f32.gmra.mxu1 %vm916_vm6, %v979_v25  ;;  %5407 = vmatprep.subr.mxu1 %v1351_v35  ;;  %v1349_v6 = vpop.permute.xlu1 %1348  ;;  %v1332_v7 = vmul.f32 %v5849_v3, %v6456_v19 }
 0x4b4   : > { %5408 = vmatpush3.msra.mxu1 %v1351_v35  ;;  %989 = vst.msk [vmem:[%s6534_s18 + $0x28] sm:$0x1] %vm932_vm7, %v983_v5  ;;  %5433 = vmatprep.subr.mxu0 %v1123_v15 }
 0x4b5   : > { %5409 = vmatprep.subr.mxu1 %v1349_v6  ;;  %4813 = vst.msk [vmem:[%s6534_s18 + $0x40] sm:$0xff] %vm916_vm6, %v1332_v7  ;;  %5434 = vmatpush3.msra.mxu0 %v1123_v15 }
 0x4b6   : > { %v5851_v8 = vpop.eup %5850  ;;  %5410 = vmatpush3.msra.mxu1 %v1349_v6 }
 0x4b7   : > { %v981_v9 = vmul.f32 %v5851_v8, %v6462_v23 }
 0x4b9   : > { %988 = vst.msk [vmem:[%s6534_s18 + $0x20] sm:$0xff] %vm916_vm6, %v981_v9  ;;  %5377 = vmatprep.mubr.msk.f32.mxu1 %vm916_vm6, %v981_v9 }
 0x4ba   : > { %5378 = vmatmul.mubr.msk.f32.gmra.mxu1 %vm916_vm6, %v983_v5  ;;  %v6656_v5 = vsel %vm2690_vm4, %v2691_v2, %v2692_v10 }
 0x4bb   : > { %5413 = vmatprep.mubr.msk.f32.mxu1 %vm916_vm6, %v1328_v56 }
 0x4dc   : > { %v1326_v11 = vpop.xlane.xlu0 %1325 }
 0x4dd   : > { %5852 = vrcp.f32 %v1326_v11 }
 0x4e0   : > { %v1724_v24 = vpop.permute.xlu0 %1723 }
 0x4e4   : > { %v1323_v14 = vpop.xlane.xlu1 %1322  ;;  %v1712_v53 = vpop.permute.xlu0 %1711 }
 0x4e5   : > { %5854 = vrcp.f32 %v1323_v14 }
 0x4e8   : > { %v1347_v19 = vpop.permute.xlu1 %1346  ;;  %v1716_v57 = vpop.permute.xlu0 %1715 }
 0x4e9   : > { %5411 = vmatprep.subr.mxu1 %v1347_v19 }
 0x4ea   : > { %v5853_v21 = vpop.eup %5852  ;;  %5412 = vmatpush3.msra.mxu1 %v1347_v19 }
 0x4eb   : > { %5414 = vmatmul.mubr.msk.f32.vlgmr.msra.gmra.mxu1 %vm916_vm6, %v6546_v47  ;;  %5422 = vmatprep.subr.mxu1 %v1478_v20  ;;  %v1338_v23 = vmul.f32 %v5853_v21, %v6478_v36 }
 0x4ec   : > { %v1728_v26 = vpop.permute.xlu1 %1727  ;;  %5416 = vmatprep.mubr.msk.f32.mxu1 %vm916_vm6, %v1332_v7  ;;  %5423 = vmatpush3.msra.mxu1 %v1478_v20  ;;  %v2200_v59 = vpop.permute.xlu0 %2199 }
 0x4ed   : > { %5444 = vmatprep.subr.msk.mxu1 %vm790_vm3, %v1728_v26  ;;  %4816 = vst.msk [vmem:[%s6534_s18 + $0x58] sm:$0x1] %vm932_vm7, %v1338_v23 }
 0x4ef   : > { %5417 = vmatmul.mubr.msk.f32.gmra.mxu1 %vm916_vm6, %v1334_v63 }
 0x4f0   : > { %v1726_v1 = vpop.permute.xlu1 %1725  ;;  %v2196_v60 = vpop.permute.xlu0 %2195 }
 0x4f2   : > { %v5855_v30 = vpop.eup %5854 }
 0x4f3   : > { %v1336_v32 = vmul.f32 %v5855_v30, %v6482_v28 }
 0x4f4   : > { %v1722_v12 = vpop.permute.xlu1 %1721  ;;  %v2192_v62 = vpop.permute.xlu0 %2191 }
 0x4f5   : > { %4815 = vst.msk [vmem:[%s6534_s18 + $0x50] sm:$0xff] %vm916_vm6, %v1336_v32  ;;  %5419 = vmatprep.mubr.msk.f32.mxu1 %vm916_vm6, %v1336_v32 }
 0x4f6   : > { %5420 = vmatmul.mubr.msk.f32.gmra.mxu1 %vm916_vm6, %v1338_v23 }
 0x4f8   : > { %v1720_v39 = vpop.permute.xlu1 %1719  ;;  %v2182_v34 = vpop.permute.xlu0 %2181 }
 0x4fc   : > { %v1718_v42 = vpop.permute.xlu1 %1717  ;;  %v2186_v35 = vpop.permute.xlu0 %2185 }
 0x500   : > { %v1706_v43 = vpop.permute.xlu1 %1705  ;;  %v2190_v3 = vpop.permute.xlu0 %2189 }
 0x504   : > { %v1708_v41 = vpop.permute.xlu1 %1707 }
 0x508   : > { %v1710_v44 = vpop.permute.xlu1 %1709 }
 0x50c   : > { %v1714_v50 = vpop.permute.xlu1 %1713 }
 0x510   : > { %v2202_v56 = vpop.permute.xlu1 %2201 }
 0x514   : > { %v2198_v58 = vpop.permute.xlu1 %2197 }
 0x518   : > { %v2194_v25 = vpop.permute.xlu1 %2193 }
 0x51c   : > { %v2180_v61 = vpop.permute.xlu1 %2179 }
 0x520   : > { %v2184_v63 = vpop.permute.xlu1 %2183 }
 0x524   : > { %v2188_v0 = vpop.permute.xlu1 %2187 }
 0x564   : > { %v5373_v13 = vpop.f32.mrf.mxu1 }
 0x566   : > { %v1094_v33 = vpop.f32.mrf.mxu1 }
 0x567   : > { %5435 = vmatprep.mubr.msk.f32.mxu0 %vm790_vm3, %v1094_v33 }
 0x568   : > { %5436 = vmatmul.mubr.msk.f32.vlgmr.msra.gmra.mxu0 %vm790_vm3, %v5373_v13 }
 0x573   : > { %v5376_v36 = vpop.f32.mrf.mxu1 }
 0x575   : > { %v1104_v16 = vpop.f32.mrf.mxu1 }
 0x576   : > { %5438 = vmatprep.mubr.msk.f32.mxu0 %vm790_vm3, %v1104_v16 }
 0x577   : > { %5439 = vmatmul.mubr.msk.f32.gmra.mxu0 %vm790_vm3, %v5376_v36 }
 0x57a   : > { %v5379_v37 = vpop.f32.mrf.mxu1 }
 0x57c   : > { %v1114_v28 = vpop.f32.mrf.mxu1 }
 0x57d   : > { %5441 = vmatprep.mubr.msk.f32.mxu0 %vm790_vm3, %v1114_v28 }
 0x57e   : > { %5442 = vmatmul.mubr.msk.f32.gmra.mxu0 %vm790_vm3, %v5379_v37 }
 0x5ab   : > { %v5415_v29 = vpop.f32.mrf.mxu1 }
 0x5ad   : > { %v1449_v52 = vpop.f32.mrf.mxu1 }
 0x5ae   : > { %5424 = vmatprep.mubr.msk.f32.mxu1 %vm790_vm3, %v1449_v52 }
 0x5af   : > { %v5418_v45 = vpop.f32.mrf.mxu1  ;;  %5425 = vmatmul.mubr.msk.f32.vlgmr.msra.gmra.mxu1 %vm790_vm3, %v5415_v29 }
 0x5b0   : > { %5445 = vmatpush3.xpose.msk.msra.mxu1 %vm790_vm3, %v1728_v26 }
 0x5b1   : > { %5446 = vmatprep.subr.msk.mxu1 %vm790_vm3, %v1726_v1  ;;  %v1459_v46 = vpop.f32.mrf.mxu1 }
 0x5b2   : > { %5427 = vmatprep.mubr.msk.f32.mxu1 %vm790_vm3, %v1459_v46 }
 0x5b3   : > { %5428 = vmatmul.mubr.msk.f32.gmra.mxu1 %vm790_vm3, %v5418_v45 }
 0x5b4   : > { %5447 = vmatpush3.xpose.msk.msra.mxu1 %vm790_vm3, %v1726_v1 }
 0x5b5   : > { %5448 = vmatprep.subr.msk.mxu1 %vm790_vm3, %v1724_v24 }
 0x5b6   : > { %v5421_v17 = vpop.f32.mrf.mxu1 }
 0x5b8   : > { %5449 = vmatpush3.xpose.msk.msra.mxu1 %vm790_vm3, %v1724_v24  ;;  %v1469_v47 = vpop.f32.mrf.mxu1 }
 0x5b9   : > { %5450 = vmatprep.subr.msk.mxu1 %vm790_vm3, %v1722_v12  ;;  %5430 = vmatprep.mubr.msk.f32.mxu1 %vm790_vm3, %v1469_v47 }
 0x5ba   : > { %5431 = vmatmul.mubr.msk.f32.gmra.mxu1 %vm790_vm3, %v5421_v17 }
 0x5bb   : > { %5456 = vmatprep.mubr.msk.f32.mxu1 %vm790_vm3, %v1706_v43 }
 0x5bc   : > { %5451 = vmatpush3.xpose.msk.msra.mxu1 %vm790_vm3, %v1722_v12 }
 0x5bd   : > { %5452 = vmatprep.subr.msk.mxu1 %vm790_vm3, %v1720_v39 }
 0x5c0   : > { %5453 = vmatpush3.xpose.msk.msra.mxu1 %vm790_vm3, %v1720_v39 }
 0x5c1   : > { %5454 = vmatprep.subr.msk.mxu1 %vm790_vm3, %v1718_v42 }
 0x5c4   : > { %5455 = vmatpush3.xpose.msk.msra.mxu1 %vm790_vm3, %v1718_v42 }
 0x5c5   : > { %5497 = vmatprep.subr.msk.mxu1 %vm790_vm3, %v2202_v56 }
 0x5c7   : > { %5457 = vmatmul.mubr.msk.f32.vlgmr.msra.gmra.mxu1 %vm790_vm3, %v1708_v41 }
 0x5c8   : > { %5459 = vmatprep.mubr.msk.f32.mxu1 %vm790_vm3, %v1710_v44  ;;  %5498 = vmatpush3.xpose.msk.msra.mxu1 %vm790_vm3, %v2202_v56 }
 0x5c9   : > { %5499 = vmatprep.subr.msk.mxu1 %vm790_vm3, %v2200_v59 }
 0x5cb   : > { %5460 = vmatmul.mubr.msk.f32.gmra.mxu1 %vm790_vm3, %v1712_v53 }
 0x5cc   : > { %5462 = vmatprep.mubr.msk.f32.mxu1 %vm790_vm3, %v1714_v50  ;;  %5500 = vmatpush3.xpose.msk.msra.mxu1 %vm790_vm3, %v2200_v59 }
 0x5cd   : > { %5501 = vmatprep.subr.msk.mxu1 %vm790_vm3, %v2198_v58 }
 0x5cf   : > { %5463 = vmatmul.mubr.msk.f32.gmra.mxu1 %vm790_vm3, %v1716_v57 }
 0x5d0   : > { %5502 = vmatpush3.xpose.msk.msra.mxu1 %vm790_vm3, %v2198_v58  ;;  %5509 = vmatprep.mubr.msk.f32.mxu1 %vm790_vm3, %v2180_v61 }
 0x5d1   : > { %5503 = vmatprep.subr.msk.mxu1 %vm790_vm3, %v2196_v60 }
 0x5d4   : > { %5504 = vmatpush3.xpose.msk.msra.mxu1 %vm790_vm3, %v2196_v60 }
 0x5d5   : > { %5505 = vmatprep.subr.msk.mxu1 %vm790_vm3, %v2194_v25 }
 0x5d8   : > { %5506 = vmatpush3.xpose.msk.msra.mxu1 %vm790_vm3, %v2194_v25 }
 0x5d9   : > { %5507 = vmatprep.subr.msk.mxu1 %vm790_vm3, %v2192_v62 }
 0x5dc   : > { %5508 = vmatpush3.xpose.msk.msra.mxu1 %vm790_vm3, %v2192_v62 }
 0x5df   : > { %5510 = vmatmul.mubr.msk.f32.vlgmr.msra.gmra.mxu1 %vm790_vm3, %v2182_v34 }
 0x5e0   : > { %5512 = vmatprep.mubr.msk.f32.mxu1 %vm790_vm3, %v2184_v63 }
 0x5e3   : > { %5513 = vmatmul.mubr.msk.f32.gmra.mxu1 %vm790_vm3, %v2186_v35 }
 0x5e4   : > { %5515 = vmatprep.mubr.msk.f32.mxu1 %vm790_vm3, %v2188_v0 }
 0x5e7   : > { %5516 = vmatmul.mubr.msk.f32.gmra.mxu1 %vm790_vm3, %v2190_v3 }
 0x5e8   : > { %5562 = vmatprep.mubr.msk.f32.mxu1 %vm790_vm3, %v6656_v5 }
 0x628   : > { %v6661_v6 = vpop.f32.mrf.mxu0 }
 0x62a   : > { %v1676_v7 = vpop.f32.mrf.mxu0 }
 0x637   : > { %v5440_v9 = vpop.f32.mrf.mxu0 }
 0x639   : > { %v1686_v4 = vpop.f32.mrf.mxu0 }
 0x63e   : > { %v5443_v21 = vpop.f32.mrf.mxu0 }
 0x66f   : > { %v6663_v8 = vpop.f32.mrf.mxu1 }
 0x671   : > { %v1563_v11 = vpop.f32.mrf.mxu1 }
 0x672   : > { %v6665_v14 = vadd.f32 %v1676_v7, %v1563_v11 }
 0x673   : > { %v5429_v15 = vpop.f32.mrf.mxu1 }
 0x674   : > { %v6667_v19 = vadd.f32 %v5440_v9, %v5429_v15 }
 0x675   : > { %v1573_v10 = vpop.f32.mrf.mxu1 }
 0x676   : > { %v6669_v20 = vadd.f32 %v1686_v4, %v1573_v10 }
 0x67a   : > { %v5432_v23 = vpop.f32.mrf.mxu1 }
 0x67b   : > { %v6671_v26 = vadd.f32 %v5443_v21, %v5432_v23 }
 0x67c   : > { %v6673_v30 = vpop.f32.mrf.mxu1 }
 0x687   : > { %v5458_v32 = vpop.f32.mrf.mxu1 }
 0x688   : > { %v1849_v13 = vmul.f32 0.35355338, %v5458_v32 }
 0x689   : > { %v1819_v33 = vpop.f32.mrf.mxu1 }
 0x68a   : > { %v1848_v36 = vmul.f32 0.35355338, %v1819_v33  ;;  %v1857_v16 = vsel %vm916_vm6, %v1849_v13, -inf }
 0x68b   : > { %1858 = vmax.xlane.f32.xlu0 %v1857_v16  ;;  %v5461_v37 = vpop.f32.mrf.mxu1 }
 0x68c   : > { %v1851_v28 = vmul.f32 0.35355338, %v5461_v37  ;;  %v1854_v1 = vsel %vm916_vm6, %v1848_v36, -inf }
 0x68d   : > { %1855 = vmax.xlane.f32.xlu1 %v1854_v1  ;;  %v1829_v12 = vpop.f32.mrf.mxu1 }
 0x68e   : > { %v1850_v39 = vmul.f32 0.35355338, %v1829_v12  ;;  %v1863_v41 = vsel %vm916_vm6, %v1851_v28, -inf }
 0x68f   : > { %v5464_v42 = vpop.f32.mrf.mxu1 }
 0x690   : > { %v1853_v43 = vmul.f32 0.35355338, %v5464_v42  ;;  %v1860_v29 = vsel %vm916_vm6, %v1850_v39, -inf }
 0x691   : > { %1864 = vmax.xlane.f32.xlu1 %v1863_v41  ;;  %1861 = vmax.xlane.f32.xlu0 %v1860_v29  ;;  %v1839_v52 = vpop.f32.mrf.mxu1 }
 0x692   : > { %v1852_v45 = vmul.f32 0.35355338, %v1839_v52  ;;  %v1869_v44 = vsel %vm932_vm7, %v1853_v43, -inf }
 0x694   : > { %v1866_v46 = vsel %vm916_vm6, %v1852_v45, -inf }
 0x695   : > { %1870 = vmax.xlane.f32.xlu1 %v1869_v44  ;;  %1867 = vmax.xlane.f32.xlu0 %v1866_v46 }
 0x69f   : > { %v5511_v1 = vpop.f32.mrf.mxu1 }
 0x6a0   : > { %v6733_v41 = vmul.f32 0.35355338, %v5511_v1 }
 0x6a1   : > { %v2293_v12 = vpop.f32.mrf.mxu1 }
 0x6a2   : > { %v2331_v46 = vsel %vm916_vm6, %v6733_v41, -inf }
 0x6a6   : > { %1935 = vrot.lane.b32.xlu1 %v6279_v48, %s6019_s11 }
 0x6aa   : > { %1933 = vrot.lane.b32.xlu1 %v6284_v49, %s6019_s11 }
 0x6ab   : > { %1937 = vrot.lane.b32.xlu0 %v6287_v51, %s6019_s11 }
 0x6af   : > { %1931 = vrot.lane.b32.xlu0 %v6294_v54, %s6019_s11 }
 0x714   : > { %v1859_v24 = vpop.xlane.xlu0 %1858 }
 0x715   : > { %v1873_v17 = vsub.f32 %v1849_v13, %v1859_v24 }
 0x716   : > { %v1856_v50 = vpop.xlane.xlu1 %1855 }
 0x717   : > { %v1880_v47 = vmul.f32 1.442695, %v1873_v17  ;;  %v1872_v53 = vsub.f32 %v1848_v36, %v1856_v50 }
 0x719   : > { %5856 = vpow2.f32 %v1880_v47  ;;  %v1878_v56 = vmul.f32 1.442695, %v1872_v53 }
 0x71a   : > { %v1865_v57 = vpop.xlane.xlu1 %1864  ;;  %v1862_v58 = vpop.xlane.xlu0 %1861 }
 0x71b   : > { %5858 = vpow2.f32 %v1878_v56  ;;  %v1875_v59 = vsub.f32 %v1851_v28, %v1865_v57  ;;  %v1874_v25 = vsub.f32 %v1850_v39, %v1862_v58  ;;  %v5514_v39 = vpop.f32.mrf.mxu1 }
 0x71c   : > { %v6735_v52 = vmul.f32 0.35355338, %v5514_v39 }
 0x71d   : > { %v1884_v60 = vmul.f32 1.442695, %v1875_v59  ;;  %v1882_v61 = vmul.f32 1.442695, %v1874_v25  ;;  %v2303_v42 = vpop.f32.mrf.mxu1 }
 0x71e   : > { %v1871_v62 = vpop.xlane.xlu1 %1870  ;;  %v1868_v34 = vpop.xlane.xlu0 %1867  ;;  %v6739_v44 = vmul.f32 0.35355338, %v2303_v42  ;;  %v2337_v50 = vsel %vm916_vm6, %v6735_v52, -inf }
 0x71f   : > { %5860 = vpow2.f32 %v1884_v60  ;;  %v1877_v63 = vsub.f32 %v1853_v43, %v1871_v62  ;;  %v1876_v35 = vsub.f32 %v1852_v45, %v1868_v34  ;;  %v6731_v43 = vmul.f32 0.35355338, %v2293_v12  ;;  %v5517_v29 = vpop.f32.mrf.mxu1 }
 0x720   : > { %5862 = vpow2.f32 %v1882_v61  ;;  %v6743_v17 = vmul.f32 0.35355338, %v5517_v29  ;;  %v2334_v53 = vsel %vm916_vm6, %v6739_v44, -inf }
 0x721   : > { %v1888_v0 = vmul.f32 1.442695, %v1877_v63  ;;  %v1886_v2 = vmul.f32 1.442695, %v1876_v35  ;;  %v2328_v45 = vsel %vm916_vm6, %v6731_v43, -inf  ;;  %v2313_v24 = vpop.f32.mrf.mxu1 }
 0x722   : > { %v1936_v3 = vpop.permute.xlu1 %1935  ;;  %v1938_v7 = vpop.permute.xlu0 %1937  ;;  %v6747_v47 = vmul.f32 0.35355338, %v2313_v24  ;;  %v2343_v56 = vsel %vm932_vm7, %v6743_v17, -inf }
 0x723   : > { %5864 = vpow2.f32 %v1888_v0  ;;  %5465 = vmatprep.subr.msk.mxu0 %vm1025_vm5, %v1938_v7  ;;  %v2059_v0 = vld [vmem:[%s6589_s21 + $0x10] sm:$0xff] }
 0x724   : > { %5866 = vpow2.f32 %v1886_v2  ;;  %5466 = vmatpush3.msk.msra.mxu0 %vm1025_vm5, %v1938_v7  ;;  %v2340_v57 = vsel %vm916_vm6, %v6747_v47, -inf }
 0x725   : > { %5467 = vmatprep.subr.mxu0 %v1936_v3 }
 0x726   : > { %v6691_v9 = vpop.eup %5856  ;;  %v1934_v11 = vpop.permute.xlu1 %1933  ;;  %5468 = vmatpush3.msra.mxu0 %v1936_v3 }
 0x727   : > { %5469 = vmatprep.subr.mxu0 %v1934_v11  ;;  %v1893_v15 = vsel %vm916_vm6, %v6691_v9, 0.0  ;;  %v1932_v10 = vpop.permute.xlu0 %1931 }
 0x728   : > { %v6695_v4 = vpop.eup %5858  ;;  %1894 = vadd.xlane.f32.xlu1 %v1893_v15  ;;  %5470 = vmatpush3.msra.mxu0 %v1934_v11 }
 0x729   : > { %5471 = vmatprep.subr.mxu0 %v1932_v10  ;;  %v1890_v21 = vsel %vm916_vm6, %v6695_v4, 0.0 }
 0x72a   : > { %1891 = vadd.xlane.f32.xlu0 %v1890_v21  ;;  %5472 = vmatpush3.msra.mxu0 %v1932_v10 }
 0x72c   : > { %v6699_v23 = vpop.eup %5860 }
 0x72d   : > { %v6701_v32 = vpop.eup %5862  ;;  %v1899_v13 = vsel %vm916_vm6, %v6699_v23, 0.0 }
 0x72e   : > { %1900 = vadd.xlane.f32.xlu1 %v1899_v13  ;;  %v1896_v33 = vsel %vm916_vm6, %v6701_v32, 0.0 }
 0x72f   : > { %1897 = vadd.xlane.f32.xlu0 %v1896_v33 }
 0x730   : > { %v6707_v36 = vpop.eup %5864 }
 0x731   : > { %v6709_v16 = vpop.eup %5866  ;;  %v1905_v37 = vsel %vm932_vm7, %v6707_v36, 0.0 }
 0x732   : > { %1906 = vadd.xlane.f32.xlu1 %v1905_v37  ;;  %v1902_v28 = vsel %vm916_vm6, %v6709_v16, 0.0 }
 0x733   : > { %1903 = vadd.xlane.f32.xlu0 %v1902_v28 }
 0x743   : > { %1929 = vrot.lane.b32.xlu1 %v6301_v55, %s6019_s11 }
 0x747   : > { %2712 = vrot.lane.b32.xlu1 %v6398_v38, %s6010_s24 }
 0x749   : > { %1927 = vrot.lane.b32.xlu0 %v6274_v22, %s6019_s11 }
 0x74b   : > { %2708 = vrot.lane.b32.xlu1 %v6394_v27, %s6010_s24 }
 0x74d   : > { %2710 = vrot.lane.b32.xlu0 %v6402_v40, %s6010_s24 }
 0x74f   : > { %2704 = vrot.lane.b32.xlu1 %v6376_v18, %s6010_s24 }
 0x751   : > { %2706 = vrot.lane.b32.xlu0 %v6386_v31, %s6010_s24 }
 0x755   : > { %2702 = vrot.lane.b32.xlu0 %v6656_v5, %s6010_s24 }
 0x773   : > { %2329 = vmax.xlane.f32.xlu1 %v2328_v45 }
 0x774   : > { %2332 = vmax.xlane.f32.xlu0 %v2331_v46 }
 0x777   : > { %2338 = vmax.xlane.f32.xlu1 %v2337_v50 }
 0x778   : > { %2335 = vmax.xlane.f32.xlu0 %v2334_v53 }
 0x77b   : > { %2344 = vmax.xlane.f32.xlu1 %v2343_v56 }
 0x77c   : > { %2341 = vmax.xlane.f32.xlu0 %v2340_v57 }
 0x78c   : > { %2409 = vrot.lane.b32.xlu1 %v6279_v48, %s6020_s22 }
 0x790   : > { %2407 = vrot.lane.b32.xlu1 %v6284_v49, %s6020_s22 }
 0x792   : > { %2411 = vrot.lane.b32.xlu0 %v6287_v51, %s6020_s22 }
 0x796   : > { %2405 = vrot.lane.b32.xlu0 %v6294_v54, %s6020_s22 }
 0x7b1   : > { %v1895_v58 = vpop.xlane.xlu1 %1894 }
 0x7b2   : > { %5868 = vrcp.f32 %v1895_v58 }
 0x7b3   : > { %v1892_v59 = vpop.xlane.xlu0 %1891 }
 0x7b4   : > { %5870 = vrcp.f32 %v1892_v59 }
 0x7b7   : > { %v1901_v25 = vpop.xlane.xlu1 %1900 }
 0x7b8   : > { %5872 = vrcp.f32 %v1901_v25  ;;  %v1898_v60 = vpop.xlane.xlu0 %1897 }
 0x7b9   : > { %5874 = vrcp.f32 %v1898_v60 }
 0x7bb   : > { %v1907_v61 = vpop.xlane.xlu1 %1906 }
 0x7bc   : > { %5876 = vrcp.f32 %v1907_v61  ;;  %v1904_v48 = vpop.xlane.xlu0 %1903 }
 0x7bd   : > { %5878 = vrcp.f32 %v1904_v48 }
 0x7bf   : > { %v5869_v49 = vpop.eup %5868  ;;  %v1930_v51 = vpop.permute.xlu1 %1929 }
 0x7c0   : > { %v1911_v62 = vmul.f32 %v5869_v49, %v6691_v9  ;;  %v1928_v54 = vpop.permute.xlu0 %1927  ;;  %5473 = vmatprep.subr.mxu0 %v1930_v51 }
 0x7c1   : > { %v5871_v34 = vpop.eup %5870  ;;  %5474 = vmatpush3.msra.mxu0 %v1930_v51 }
 0x7c2   : > { %4849 = vst.msk [vmem:[%s6534_s18 + $0x68] sm:$0xff] %vm916_vm6, %v1911_v62  ;;  %5475 = vmatprep.subr.mxu0 %v1928_v54  ;;  %v1909_v63 = vmul.f32 %v5871_v34, %v6695_v4 }
 0x7c3   : > { %v2713_v35 = vpop.permute.xlu1 %2712  ;;  %5476 = vmatpush3.msra.mxu0 %v1928_v54  ;;  %v6845_v54 = vpop.f32.mrf.mxu0 }
 0x7c4   : > { %4848 = vst.msk [vmem:[%s6534_s18 + $0x60] sm:$0xff] %vm916_vm6, %v1909_v63  ;;  %5477 = vmatprep.mubr.msk.f32.mxu0 %vm916_vm6, %v1909_v63  ;;  %5550 = vmatprep.subr.msk.mxu1 %vm790_vm3, %v2713_v35  ;;  %v2711_v3 = vpop.permute.xlu0 %2710 }
 0x7c5   : > { %v5873_v2 = vpop.eup %5872  ;;  %5478 = vmatmul.mubr.msk.f32.vlgmr.msra.gmra.mxu0 %vm916_vm6, %v1911_v62  ;;  %5551 = vmatpush3.xpose.msk.msra.mxu1 %vm790_vm3, %v2713_v35 }
 0x7c6   : > { %v5875_v7 = vpop.eup %5874  ;;  %5552 = vmatprep.subr.msk.mxu1 %vm790_vm3, %v2711_v3  ;;  %v1915_v9 = vmul.f32 %v5873_v2, %v6699_v23  ;;  %5486 = vmatprep.subr.mxu0 %v2059_v0 }
 0x7c7   : > { %v1913_v11 = vmul.f32 %v5875_v7, %v6701_v32  ;;  %5487 = vmatpush3.msra.mxu0 %v2059_v0  ;;  %v2709_v4 = vpop.permute.xlu1 %2708 }
 0x7c8   : > { %4851 = vst.msk [vmem:[%s6534_s18 + $0x78] sm:$0xff] %vm916_vm6, %v1915_v9  ;;  %v2707_v32 = vpop.permute.xlu0 %2706 }
 0x7c9   : > { %v5877_v15 = vpop.eup %5876  ;;  %4850 = vst.msk [vmem:[%s6534_s18 + $0x70] sm:$0xff] %vm916_vm6, %v1913_v11  ;;  %5480 = vmatprep.mubr.msk.f32.mxu0 %vm916_vm6, %v1913_v11  ;;  %5553 = vmatpush3.xpose.msk.msra.mxu1 %vm790_vm3, %v2711_v3 }
 0x7ca   : > { %v5879_v10 = vpop.eup %5878  ;;  %5481 = vmatmul.mubr.msk.f32.gmra.mxu0 %vm916_vm6, %v1915_v9  ;;  %5554 = vmatprep.subr.msk.mxu1 %vm790_vm3, %v2709_v4  ;;  %v1919_v21 = vmul.f32 %v5877_v15, %v6707_v36 }
 0x7cb   : > { %v1917_v23 = vmul.f32 %v5879_v10, %v6709_v16  ;;  %v2705_v13 = vpop.permute.xlu1 %2704 }
 0x7cc   : > { %4853 = vst.msk [vmem:[%s6534_s18 + $0x88] sm:$0x1] %vm932_vm7, %v1919_v21  ;;  %v2703_v33 = vpop.permute.xlu0 %2702 }
 0x7cd   : > { %4852 = vst.msk [vmem:[%s6534_s18 + $0x80] sm:$0xff] %vm916_vm6, %v1917_v23  ;;  %5483 = vmatprep.mubr.msk.f32.mxu0 %vm916_vm6, %v1917_v23  ;;  %5555 = vmatpush3.xpose.msk.msra.mxu1 %vm790_vm3, %v2709_v4 }
 0x7ce   : > { %5484 = vmatmul.mubr.msk.f32.gmra.mxu0 %vm916_vm6, %v1919_v21  ;;  %5556 = vmatprep.subr.msk.mxu1 %vm790_vm3, %v2707_v32 }
 0x7d1   : > { %5557 = vmatpush3.xpose.msk.msra.mxu1 %vm790_vm3, %v2707_v32 }
 0x7d2   : > { %5558 = vmatprep.subr.msk.mxu1 %vm790_vm3, %v2705_v13 }
 0x7d5   : > { %5559 = vmatpush3.xpose.msk.msra.mxu1 %vm790_vm3, %v2705_v13 }
 0x7d6   : > { %5560 = vmatprep.subr.msk.mxu1 %vm790_vm3, %v2703_v33 }
 0x7d9   : > { %5561 = vmatpush3.xpose.msk.msra.mxu1 %vm790_vm3, %v2703_v33 }
 0x7dc   : > { %5563 = vmatmul.mubr.msk.f32.vlgmr.msra.gmra.mxu1 %vm790_vm3, %v6376_v18 }
 0x7dd   : > { %5565 = vmatprep.mubr.msk.f32.mxu1 %vm790_vm3, %v6386_v31 }
 0x7e0   : > { %5566 = vmatmul.mubr.msk.f32.gmra.mxu1 %vm790_vm3, %v6394_v27 }
 0x7e1   : > { %5568 = vmatprep.mubr.msk.f32.mxu1 %vm790_vm3, %v6402_v40 }
 0x7e4   : > { %5569 = vmatmul.mubr.msk.f32.gmra.mxu1 %vm790_vm3, %v6398_v38 }
 0x7fc   : > { %v2330_v36 = vpop.xlane.xlu1 %2329 }
 0x7fd   : > { %v2346_v16 = vsub.f32 %v6731_v43, %v2330_v36  ;;  %v2333_v37 = vpop.xlane.xlu0 %2332 }
 0x7fe   : > { %v2347_v28 = vsub.f32 %v6733_v41, %v2333_v37 }
 0x7ff   : > { %v2352_v1 = vmul.f32 1.442695, %v2346_v16 }
 0x800   : > { %v2354_v12 = vmul.f32 1.442695, %v2347_v28  ;;  %v2339_v39 = vpop.xlane.xlu1 %2338 }
 0x801   : > { %5880 = vpow2.f32 %v2352_v1  ;;  %v2349_v42 = vsub.f32 %v6735_v52, %v2339_v39  ;;  %v2336_v29 = vpop.xlane.xlu0 %2335 }
 0x802   : > { %5882 = vpow2.f32 %v2354_v12  ;;  %v2348_v45 = vsub.f32 %v6739_v44, %v2336_v29 }
 0x803   : > { %v2358_v46 = vmul.f32 1.442695, %v2349_v42 }
 0x804   : > { %v2356_v24 = vmul.f32 1.442695, %v2348_v45  ;;  %v2345_v50 = vpop.xlane.xlu1 %2344 }
 0x805   : > { %5884 = vpow2.f32 %v2358_v46  ;;  %v2351_v53 = vsub.f32 %v6743_v17, %v2345_v50  ;;  %v2342_v43 = vpop.xlane.xlu0 %2341 }
 0x806   : > { %5886 = vpow2.f32 %v2356_v24  ;;  %v2350_v41 = vsub.f32 %v6747_v47, %v2342_v43 }
 0x807   : > { %v2362_v56 = vmul.f32 1.442695, %v2351_v53 }
 0x808   : > { %v2360_v57 = vmul.f32 1.442695, %v2350_v41  ;;  %v2410_v63 = vpop.permute.xlu1 %2409 }
 0x809   : > { %5888 = vpow2.f32 %v2362_v56  ;;  %v2412_v58 = vpop.permute.xlu0 %2411 }
 0x80a   : > { %5890 = vpow2.f32 %v2360_v57  ;;  %5518 = vmatprep.subr.msk.mxu0 %vm1025_vm5, %v2412_v58 }
 0x80c   : > { %v2408_v2 = vpop.permute.xlu1 %2407 }
 0x80e   : > { %v6817_v52 = vpop.eup %5880 }
 0x80f   : > { %v6819_v44 = vpop.eup %5882  ;;  %v2364_v59 = vsel %vm916_vm6, %v6817_v52, 0.0 }
 0x810   : > { %2365 = vadd.xlane.f32.xlu0 %v2364_v59  ;;  %v2367_v17 = vsel %vm916_vm6, %v6819_v44, 0.0 }
 0x811   : > { %2368 = vadd.xlane.f32.xlu1 %v2367_v17 }
 0x812   : > { %v6825_v47 = vpop.eup %5884 }
 0x813   : > { %v6827_v25 = vpop.eup %5886  ;;  %v2373_v60 = vsel %vm916_vm6, %v6825_v47, 0.0 }
 0x814   : > { %v2370_v61 = vsel %vm916_vm6, %v6827_v25, 0.0 }
 0x815   : > { %2374 = vadd.xlane.f32.xlu1 %v2373_v60  ;;  %2371 = vadd.xlane.f32.xlu0 %v2370_v61 }
 0x816   : > { %v6833_v48 = vpop.eup %5888 }
 0x817   : > { %v6835_v49 = vpop.eup %5890  ;;  %v2379_v51 = vsel %vm932_vm7, %v6833_v48, 0.0 }
 0x818   : > { %v2376_v62 = vsel %vm916_vm6, %v6835_v49, 0.0 }
 0x819   : > { %2380 = vadd.xlane.f32.xlu1 %v2379_v51  ;;  %2377 = vadd.xlane.f32.xlu0 %v2376_v62 }
 0x82a   : > { %2403 = vrot.lane.b32.xlu1 %v6301_v55, %s6020_s22  ;;  %v2406_v55 = vpop.permute.xlu0 %2405 }
 0x82f   : > { %2401 = vrot.lane.b32.xlu0 %v6274_v22, %s6020_s22 }
 0x885   : > { %v5479_v34 = vpop.f32.mrf.mxu0 }
 0x887   : > { %v2030_v35 = vpop.f32.mrf.mxu0 }
 0x888   : > { %5488 = vmatprep.mubr.msk.f32.mxu0 %vm790_vm3, %v2030_v35 }
 0x889   : > { %5489 = vmatmul.mubr.msk.f32.vlgmr.msra.gmra.mxu0 %vm790_vm3, %v5479_v34 }
 0x88a   : > { %v5482_v0 = vpop.f32.mrf.mxu0  ;;  %5519 = vmatpush3.msk.msra.mxu0 %vm1025_vm5, %v2412_v58 }
 0x88b   : > { %5520 = vmatprep.subr.mxu0 %v2410_v63 }
 0x88c   : > { %v2040_v3 = vpop.f32.mrf.mxu0  ;;  %5521 = vmatpush3.msra.mxu0 %v2410_v63 }
 0x88d   : > { %5491 = vmatprep.mubr.msk.f32.mxu0 %vm790_vm3, %v2040_v3  ;;  %5522 = vmatprep.subr.mxu0 %v2408_v2 }
 0x88e   : > { %v5485_v22 = vpop.f32.mrf.mxu0  ;;  %5492 = vmatmul.mubr.msk.f32.gmra.mxu0 %vm790_vm3, %v5482_v0 }
 0x88f   : > { %5523 = vmatpush3.msra.mxu0 %v2408_v2 }
 0x890   : > { %5524 = vmatprep.subr.mxu0 %v2406_v55  ;;  %v2050_v7 = vpop.f32.mrf.mxu0 }
 0x891   : > { %5525 = vmatpush3.msra.mxu0 %v2406_v55  ;;  %5494 = vmatprep.mubr.msk.f32.mxu0 %vm790_vm3, %v2050_v7 }
 0x892   : > { %5495 = vmatmul.mubr.msk.f32.gmra.mxu0 %vm790_vm3, %v5485_v22 }
 0x899   : > { %v2366_v9 = vpop.xlane.xlu0 %2365 }
 0x89a   : > { %v2369_v11 = vpop.xlane.xlu1 %2368  ;;  %5892 = vrcp.f32 %v2366_v9 }
 0x89b   : > { %5894 = vrcp.f32 %v2369_v11 }
 0x89c   : > { %v5564_v15 = vpop.f32.mrf.mxu1 }
 0x89d   : > { %v6854_v4 = vmul.f32 0.35355338, %v5564_v15  ;;  %v1682_v15 = vadd.f32 %v6661_v6, %v6663_v8  ;;  %v1697_v6 = vadd.f32 %v6845_v54, %v6673_v30 }
 0x89e   : > { %v2375_v10 = vpop.xlane.xlu1 %2374  ;;  %v2372_v21 = vpop.xlane.xlu0 %2371 }
 0x89f   : > { %5896 = vrcp.f32 %v2375_v10  ;;  %v2804_v23 = vpop.f32.mrf.mxu1  ;;  %v2842_v32 = vsel %vm916_vm6, %v6854_v4, -inf }
 0x8a0   : > { %5898 = vrcp.f32 %v2372_v21  ;;  %v6858_v13 = vmul.f32 0.35355338, %v2804_v23  ;;  %2843 = vmax.xlane.f32.xlu0 %v2842_v32 }
 0x8a1   : > { %v5567_v33 = vpop.f32.mrf.mxu1 }
 0x8a2   : > { %v6860_v36 = vmul.f32 0.35355338, %v5567_v33  ;;  %v2381_v16 = vpop.xlane.xlu1 %2380  ;;  %v2378_v37 = vpop.xlane.xlu0 %2377  ;;  %v2839_v28 = vsel %vm916_vm6, %v6858_v13, -inf }
 0x8a3   : > { %5900 = vrcp.f32 %v2381_v16  ;;  %v2814_v1 = vpop.f32.mrf.mxu1  ;;  %2840 = vmax.xlane.f32.xlu1 %v2839_v28 }
 0x8a4   : > { %5902 = vrcp.f32 %v2378_v37  ;;  %v6864_v12 = vmul.f32 0.35355338, %v2814_v1  ;;  %v2848_v45 = vsel %vm916_vm6, %v6860_v36, -inf }
 0x8a5   : > { %v5570_v39 = vpop.f32.mrf.mxu1 }
 0x8a6   : > { %v6866_v42 = vmul.f32 0.35355338, %v5570_v39  ;;  %v2404_v29 = vpop.permute.xlu1 %2403  ;;  %v2845_v46 = vsel %vm916_vm6, %v6864_v12, -inf  ;;  %v2402_v57 = vpop.permute.xlu0 %2401 }
 0x8a7   : > { %v5893_v24 = vpop.eup %5892  ;;  %v2824_v50 = vpop.f32.mrf.mxu1  ;;  %2849 = vmax.xlane.f32.xlu1 %v2848_v45  ;;  %2846 = vmax.xlane.f32.xlu0 %v2845_v46 }
 0x8a8   : > { %v5895_v53 = vpop.eup %5894  ;;  %v6872_v43 = vmul.f32 0.35355338, %v2824_v50  ;;  %5526 = vmatprep.subr.mxu0 %v2404_v29  ;;  %v2383_v41 = vmul.f32 %v5893_v24, %v6817_v52  ;;  %v2854_v58 = vsel %vm932_vm7, %v6866_v42, -inf }
 0x8a9   : > { %v2385_v56 = vmul.f32 %v5895_v53, %v6819_v44  ;;  %5527 = vmatpush3.msra.mxu0 %v2404_v29 }
 0x8aa   : > { %5528 = vmatprep.subr.mxu0 %v2402_v57  ;;  %v2851_v59 = vsel %vm916_vm6, %v6872_v43, -inf  ;;  %4879 = vst.msk [vmem:[%s6534_s18 + $0x90] sm:$0xff] %vm916_vm6, %v2383_v41  ;;  %5530 = vmatprep.mubr.msk.f32.mxu0 %vm916_vm6, %v2383_v41 }
 0x8ab   : > { %4880 = vst.msk [vmem:[%s6534_s18 + $0x98] sm:$0xff] %vm916_vm6, %v2385_v56  ;;  %5529 = vmatpush3.msra.mxu0 %v2402_v57  ;;  %2855 = vmax.xlane.f32.xlu1 %v2854_v58 }
 0x8ac   : > { %v5897_v52 = vpop.eup %5896  ;;  %2852 = vmax.xlane.f32.xlu0 %v2851_v59  ;;  %5531 = vmatmul.mubr.msk.f32.vlgmr.msra.gmra.mxu0 %vm916_vm6, %v2385_v56 }
 0x8ad   : > { %v5899_v44 = vpop.eup %5898  ;;  %v2389_v17 = vmul.f32 %v5897_v52, %v6825_v47  ;;  %v2533_v47 = vld [vmem:[%s6589_s21 + $0x18] sm:$0xff] }
 0x8ae   : > { %v2387_v60 = vmul.f32 %v5899_v44, %v6827_v25  ;;  %5539 = vmatprep.subr.mxu0 %v2533_v47 }
 0x8af   : > { %4882 = vst.msk [vmem:[%s6534_s18 + $0xa8] sm:$0xff] %vm916_vm6, %v2389_v17  ;;  %5540 = vmatpush3.msra.mxu0 %v2533_v47 }
 0x8b0   : > { %v5901_v61 = vpop.eup %5900  ;;  %4881 = vst.msk [vmem:[%s6534_s18 + $0xa0] sm:$0xff] %vm916_vm6, %v2387_v60  ;;  %5533 = vmatprep.mubr.msk.f32.mxu0 %vm916_vm6, %v2387_v60 }
 0x8b1   : > { %v5903_v51 = vpop.eup %5902  ;;  %5534 = vmatmul.mubr.msk.f32.gmra.mxu0 %vm916_vm6, %v2389_v17  ;;  %v2393_v62 = vmul.f32 %v5901_v61, %v6833_v48 }
 0x8b2   : > { %v2391_v34 = vmul.f32 %v5903_v51, %v6835_v49 }
 0x8b3   : > { %4884 = vst.msk [vmem:[%s6534_s18 + $0xb8] sm:$0x1] %vm932_vm7, %v2393_v62 }
 0x8b4   : > { %4883 = vst.msk [vmem:[%s6534_s18 + $0xb0] sm:$0xff] %vm916_vm6, %v2391_v34  ;;  %5536 = vmatprep.mubr.msk.f32.mxu0 %vm916_vm6, %v2391_v34 }
 0x8b5   : > { %5537 = vmatmul.mubr.msk.f32.gmra.mxu0 %vm916_vm6, %v2393_v62 }
 0x8bc   : > { %2920 = vrot.lane.b32.xlu1 %v6402_v40, %s6013_s29 }
 0x8c0   : > { %2916 = vrot.lane.b32.xlu1 %v6386_v31, %s6013_s29 }
 0x8c2   : > { %2922 = vrot.lane.b32.xlu0 %v6398_v38, %s6013_s29 }
 0x8c4   : > { %2914 = vrot.lane.b32.xlu1 %v6376_v18, %s6013_s29 }
 0x8c6   : > { %2918 = vrot.lane.b32.xlu0 %v6394_v27, %s6013_s29 }
 0x8c8   : > { %3067 = vrot.lane.b32.xlu1 %v6398_v38, %s6011_s25 }
 0x8ca   : > { %2912 = vrot.lane.b32.xlu0 %v6656_v5, %s6013_s29 }
 0x8cc   : > { %3063 = vrot.lane.b32.xlu1 %v6394_v27, %s6011_s25 }
 0x8ce   : > { %3065 = vrot.lane.b32.xlu0 %v6402_v40, %s6011_s25 }
 0x929   : > { %v2844_v25 = vpop.xlane.xlu0 %2843 }
 0x92a   : > { %v2858_v48 = vsub.f32 %v6854_v4, %v2844_v25 }
 0x92c   : > { %v2865_v49 = vmul.f32 1.442695, %v2858_v48  ;;  %v2841_v63 = vpop.xlane.xlu1 %2840 }
 0x92d   : > { %v2857_v35 = vsub.f32 %v6858_v13, %v2841_v63 }
 0x92e   : > { %5904 = vpow2.f32 %v2865_v49 }
 0x92f   : > { %v2863_v0 = vmul.f32 1.442695, %v2857_v35 }
 0x930   : > { %v2847_v2 = vpop.xlane.xlu0 %2846  ;;  %v2850_v1 = vpop.xlane.xlu1 %2849 }
 0x931   : > { %5906 = vpow2.f32 %v2863_v0  ;;  %v2859_v39 = vsub.f32 %v6864_v12, %v2847_v2 }
 0x933   : > { %v2867_v46 = vmul.f32 1.442695, %v2859_v39 }
 0x934   : > { %v2856_v45 = vpop.xlane.xlu1 %2855 }
 0x935   : > { %v2853_v3 = vpop.xlane.xlu0 %2852 }
 0x936   : > { %v2861_v29 = vsub.f32 %v6872_v43, %v2853_v3 }
 0x938   : > { %v2871_v30 = vmul.f32 1.442695, %v2861_v29  ;;  %v2921_v24 = vpop.permute.xlu1 %2920 }
 0x939   : > { %v2923_v22 = vpop.permute.xlu0 %2922 }
 0x93a   : > { %5571 = vmatprep.subr.msk.mxu0 %vm1025_vm5, %v2923_v22 }
 0x93b   : > { %v6924_v55 = vpop.eup %5904 }
 0x93c   : > { %v2878_v7 = vsel %vm916_vm6, %v6924_v55, 0.0  ;;  %v2917_v12 = vpop.permute.xlu1 %2916 }
 0x93d   : > { %2879 = vadd.xlane.f32.xlu1 %v2878_v7  ;;  %v2919_v57 = vpop.permute.xlu0 %2918 }
 0x93e   : > { %v6928_v9 = vpop.eup %5906 }
 0x93f   : > { %v2875_v11 = vsel %vm916_vm6, %v6928_v9, 0.0 }
 0x940   : > { %2876 = vadd.xlane.f32.xlu0 %v2875_v11  ;;  %v2915_v60 = vpop.permute.xlu1 %2914 }
 0x941   : > { %v2913_v62 = vpop.permute.xlu0 %2912 }
 0x944   : > { %v3068_v34 = vpop.permute.xlu1 %3067 }
 0x945   : > { %v3066_v25 = vpop.permute.xlu0 %3065 }
 0x948   : > { %v3064_v47 = vpop.permute.xlu1 %3063 }
 0x949   : > { %v5490_v4 = vpop.f32.mrf.mxu0 }
 0x94a   : > { %v6934_v10 = vadd.f32 %v5490_v4, %v1682_v15 }
 0x94b   : > { %v2144_v21 = vpop.f32.mrf.mxu0 }
 0x94c   : > { %v6937_v23 = vadd.f32 %v2144_v21, %v6665_v14 }
 0x94e   : > { %v5493_v32 = vpop.f32.mrf.mxu0  ;;  %3059 = vrot.lane.b32.xlu1 %v6376_v18, %s6011_s25 }
 0x94f   : > { %v6942_v13 = vadd.f32 %v5493_v32, %v6667_v19  ;;  %v2860_v19 = vsub.f32 %v6860_v36, %v2850_v1 }
 0x950   : > { %v2154_v33 = vpop.f32.mrf.mxu0 }
 0x951   : > { %v6945_v16 = vadd.f32 %v2154_v33, %v6669_v20  ;;  %v2869_v20 = vmul.f32 1.442695, %v2860_v19 }
 0x952   : > { %v5496_v37 = vpop.f32.mrf.mxu0 }
 0x953   : > { %v6950_v8 = vadd.f32 %v5496_v37, %v6671_v26  ;;  %5908 = vpow2.f32 %v2869_v20  ;;  %v2862_v26 = vsub.f32 %v6866_v42, %v2856_v45 }
 0x954   : > { %v2164_v14 = vpop.f32.mrf.mxu0  ;;  %5910 = vpow2.f32 %v2867_v46  ;;  %v3044_v46 = vld [vmem:[%s6589_s21] sm:$0xff] }
 0x955   : > { %v6952_v28 = vadd.f32 %v2164_v14, %v1697_v6  ;;  %v2873_v54 = vmul.f32 1.442695, %v2862_v26  ;;  %5912 = vpow2.f32 %v2871_v30 }
 0x956   : > { %3061 = vrot.lane.b32.xlu0 %v6386_v31, %s6011_s25 }
 0x957   : > { %5914 = vpow2.f32 %v2873_v54 }
 0x960   : > { %v6960_v53 = vpop.eup %5908 }
 0x961   : > { %v6964_v43 = vpop.eup %5910  ;;  %v2884_v42 = vsel %vm916_vm6, %v6960_v53, 0.0 }
 0x962   : > { %v6969_v56 = vpop.eup %5912  ;;  %v2881_v59 = vsel %vm916_vm6, %v6964_v43, 0.0 }
 0x963   : > { %v2887_v44 = vsel %vm916_vm6, %v6969_v56, 0.0 }
 0x964   : > { %v6977_v17 = vpop.eup %5914 }
 0x965   : > { %v2890_v51 = vsel %vm932_vm7, %v6977_v17, 0.0 }
 0x96c   : > { %v5532_v50 = vpop.f32.mrf.mxu0 }
 0x96e   : > { %v2504_v36 = vpop.f32.mrf.mxu0 }
 0x96f   : > { %5541 = vmatprep.mubr.msk.f32.mxu0 %vm790_vm3, %v2504_v36 }
 0x970   : > { %5542 = vmatmul.mubr.msk.f32.vlgmr.msra.gmra.mxu0 %vm790_vm3, %v5532_v50  ;;  %v2667_v50 = vld [vmem:[%s6080_s10 + $0x8] sm:$0xff] }
 0x971   : > { %v5535_v41 = vpop.f32.mrf.mxu0  ;;  %5572 = vmatpush3.msk.msra.mxu0 %vm1025_vm5, %v2923_v22 }
 0x972   : > { %5573 = vmatprep.subr.mxu0 %v2921_v24  ;;  %2885 = vadd.xlane.f32.xlu1 %v2884_v42 }
 0x973   : > { %v2514_v58 = vpop.f32.mrf.mxu0  ;;  %5574 = vmatpush3.msra.mxu0 %v2921_v24 }
 0x974   : > { %5544 = vmatprep.mubr.msk.f32.mxu0 %vm790_vm3, %v2514_v58  ;;  %5575 = vmatprep.subr.mxu0 %v2919_v57  ;;  %v2669_v58 = vld [vmem:[%s6080_s10 + $0x18] sm:$0xff] }
 0x975   : > { %v5538_v52 = vpop.f32.mrf.mxu0  ;;  %5545 = vmatmul.mubr.msk.f32.gmra.mxu0 %vm790_vm3, %v5535_v41  ;;  %2882 = vadd.xlane.f32.xlu0 %v2881_v59 }
 0x976   : > { %5576 = vmatpush3.msra.mxu0 %v2919_v57  ;;  %2888 = vadd.xlane.f32.xlu1 %v2887_v44  ;;  %v2668_v44 = vld [vmem:[%s6080_s10 + $0x10] sm:$0xff] }
 0x977   : > { %5577 = vmatprep.subr.mxu0 %v2917_v12  ;;  %v2524_v61 = vpop.f32.mrf.mxu0 }
 0x978   : > { %5578 = vmatpush3.msra.mxu0 %v2917_v12  ;;  %5547 = vmatprep.mubr.msk.f32.mxu0 %vm790_vm3, %v2524_v61 }
 0x979   : > { %5579 = vmatprep.subr.mxu0 %v2915_v60  ;;  %5548 = vmatmul.mubr.msk.f32.gmra.mxu0 %vm790_vm3, %v5538_v52 }
 0x97a   : > { %5580 = vmatpush3.msra.mxu0 %v2915_v60  ;;  %2891 = vadd.xlane.f32.xlu0 %v2890_v51  ;;  %v2671_v51 = vld [vmem:[%s6080_s10 + $0x28] sm:$0x1] }
 0x97b   : > { %5581 = vmatprep.subr.mxu0 %v2913_v62 }
 0x97c   : > { %5582 = vmatpush3.msra.mxu0 %v2913_v62 }
 0x97d   : > { %5592 = vmatprep.subr.msk.mxu0 %vm790_vm3, %v3068_v34 }
 0x987   : > { %3045 = vrot.lane.b32.xlu1 %v6656_v5, %s6012_s26 }
 0x98b   : > { %3049 = vrot.lane.b32.xlu1 %v6386_v31, %s6012_s26 }
 0x98f   : > { %3053 = vrot.lane.b32.xlu1 %v6402_v40, %s6012_s26 }
 0x990   : > { %3057 = vrot.lane.b32.xlu0 %v6656_v5, %s6011_s25  ;;  %s7044_s25 = scalar_lea.vmem %s7472_s6, %s7476_s28 }
 0x991   : > { %v4898_v54 = vld [vmem:[%s7044_s25] ss:$0 sm:$0xff] }
 0x994   : > { %3047 = vrot.lane.b32.xlu0 %v6376_v18, %s6012_s26 }
 0x998   : > { %3051 = vrot.lane.b32.xlu0 %v6394_v27, %s6012_s26 }
 0x99c   : > { %3055 = vrot.lane.b32.xlu0 %v6398_v38, %s6012_s26  ;;  %s5763_s26 = smul.u32 96, %s7476_s28 }
 0x99e   : > { %s7054_s16 = scalar_lea.vmem %s7473_s7, %s5763_s26 }
 0x9c6   : > { %v2880_v48 = vpop.xlane.xlu1 %2879 }
 0x9c7   : > { %5916 = vrcp.f32 %v2880_v48 }
 0x9c9   : > { %v2877_v49 = vpop.xlane.xlu0 %2876 }
 0x9ca   : > { %5918 = vrcp.f32 %v2877_v49  ;;  %v3060_v22 = vpop.permute.xlu1 %3059 }
 0x9cd   : > { %v3062_v3 = vpop.permute.xlu0 %3061 }
 0x9d4   : > { %v5917_v63 = vpop.eup %5916 }
 0x9d5   : > { %v2896_v35 = vmul.f32 %v5917_v63, %v6924_v55 }
 0x9d7   : > { %v5919_v0 = vpop.eup %5918  ;;  %4912 = vst.msk [vmem:[%s6534_s18 + $0xc8] sm:$0xff] %vm916_vm6, %v2896_v35 }
 0x9d8   : > { %v2894_v2 = vmul.f32 %v5919_v0, %v6928_v9 }
 0x9da   : > { %4911 = vst.msk [vmem:[%s6534_s18 + $0xc0] sm:$0xff] %vm916_vm6, %v2894_v2  ;;  %5583 = vmatprep.mubr.msk.f32.mxu0 %vm916_vm6, %v2894_v2 }
 0x9db   : > { %5584 = vmatmul.mubr.msk.f32.vlgmr.msra.gmra.mxu0 %vm916_vm6, %v2896_v35 }
 0x9dc   : > { %5593 = vmatpush3.xpose.msk.msra.mxu0 %vm790_vm3, %v3068_v34 }
 0x9dd   : > { %5594 = vmatprep.subr.msk.mxu0 %vm790_vm3, %v3066_v25 }
 0x9e0   : > { %5595 = vmatpush3.xpose.msk.msra.mxu0 %vm790_vm3, %v3066_v25 }
 0x9e1   : > { %5596 = vmatprep.subr.msk.mxu0 %vm790_vm3, %v3064_v47 }
 0x9e4   : > { %5597 = vmatpush3.xpose.msk.msra.mxu0 %vm790_vm3, %v3064_v47 }
 0x9e5   : > { %5598 = vmatprep.subr.msk.mxu0 %vm790_vm3, %v3062_v3 }
 0x9e8   : > { %5599 = vmatpush3.xpose.msk.msra.mxu0 %vm790_vm3, %v3062_v3 }
 0x9e9   : > { %5600 = vmatprep.subr.msk.mxu0 %vm790_vm3, %v3060_v22 }
 0x9ec   : > { %5601 = vmatpush3.xpose.msk.msra.mxu0 %vm790_vm3, %v3060_v22 }
 0x9fb   : > { %v2886_v55 = vpop.xlane.xlu1 %2885 }
 0x9fc   : > { %5920 = vrcp.f32 %v2886_v55 }
 0x9fe   : > { %v2883_v7 = vpop.xlane.xlu0 %2882 }
 0x9ff   : > { %5922 = vrcp.f32 %v2883_v7  ;;  %v2889_v9 = vpop.xlane.xlu1 %2888 }
 0xa00   : > { %5924 = vrcp.f32 %v2889_v9 }
 0xa03   : > { %v2892_v11 = vpop.xlane.xlu0 %2891  ;;  %v3046_v14 = vpop.permute.xlu1 %3045 }
 0xa04   : > { %5926 = vrcp.f32 %v2892_v11 }
 0xa07   : > { %v3058_v15 = vpop.permute.xlu0 %3057  ;;  %v3050_v20 = vpop.permute.xlu1 %3049 }
 0xa08   : > { %5602 = vmatprep.subr.msk.mxu0 %vm790_vm3, %v3058_v15 }
 0xa09   : > { %v5921_v4 = vpop.eup %5920  ;;  %5603 = vmatpush3.xpose.msk.msra.mxu0 %vm790_vm3, %v3058_v15 }
 0xa0a   : > { %v2900_v21 = vmul.f32 %v5921_v4, %v6960_v53  ;;  %5645 = vmatprep.subr.mxu0 %v3044_v46 }
 0xa0b   : > { %v3048_v39 = vpop.permute.xlu0 %3047  ;;  %v3054_v45 = vpop.permute.xlu1 %3053 }
 0xa0c   : > { %v5923_v32 = vpop.eup %5922  ;;  %4914 = vst.msk [vmem:[%s6534_s18 + $0xd8] sm:$0xff] %vm916_vm6, %v2900_v21 }
 0xa0d   : > { %v5925_v33 = vpop.eup %5924  ;;  %v2898_v37 = vmul.f32 %v5923_v32, %v6964_v43  ;;  %v2666_v43 = vld [vmem:[%s6080_s10] sm:$0xff] }
 0xa0e   : > { %v2902_v6 = vmul.f32 %v5925_v33, %v6969_v56 }
 0xa0f   : > { %4913 = vst.msk [vmem:[%s6534_s18 + $0xd0] sm:$0xff] %vm916_vm6, %v2898_v37  ;;  %5586 = vmatprep.mubr.msk.f32.mxu0 %vm916_vm6, %v2898_v37  ;;  %v3052_v29 = vpop.permute.xlu0 %3051 }
 0xa10   : > { %5587 = vmatmul.mubr.msk.f32.gmra.mxu0 %vm916_vm6, %v2900_v21  ;;  %4915 = vst.msk [vmem:[%s6534_s18 + $0xe0] sm:$0xff] %vm916_vm6, %v2902_v6 }
 0xa11   : > { %v5927_v1 = vpop.eup %5926  ;;  %5589 = vmatprep.mubr.msk.f32.mxu0 %vm916_vm6, %v2902_v6 }
 0xa12   : > { %v2904_v19 = vmul.f32 %v5927_v1, %v6977_v17 }
 0xa13   : > { %v3056_v26 = vpop.permute.xlu0 %3055 }
 0xa14   : > { %4916 = vst.msk [vmem:[%s6534_s18 + $0xe8] sm:$0x1] %vm932_vm7, %v2904_v19  ;;  %5590 = vmatmul.mubr.msk.f32.gmra.mxu0 %vm916_vm6, %v2904_v19 }
 0xa15   : > { %5604 = vmatprep.mubr.msk.f32.mxu0 %vm790_vm3, %v3046_v14 }
 0xa18   : > { %5605 = vmatmul.mubr.msk.f32.vlgmr.msra.gmra.mxu0 %vm790_vm3, %v3048_v39 }
 0xa19   : > { %5607 = vmatprep.mubr.msk.f32.mxu0 %vm790_vm3, %v3050_v20  ;;  %5646 = vmatpush3.msra.mxu0 %v3044_v46 }
 0xa1c   : > { %5608 = vmatmul.mubr.msk.f32.gmra.mxu0 %vm790_vm3, %v3052_v29 }
 0xa1d   : > { %5610 = vmatprep.mubr.msk.f32.mxu0 %vm790_vm3, %v3054_v45 }
 0xa20   : > { %5611 = vmatmul.mubr.msk.f32.gmra.mxu0 %vm790_vm3, %v3056_v26 }
 0xa30   : > { %v5543_v30 = vpop.f32.mrf.mxu0 }
 0xa31   : > { %v2648_v24 = vadd.f32 %v5543_v30, %v6934_v10 }
 0xa32   : > { %v2618_v53 = vpop.f32.mrf.mxu0 }
 0xa33   : > { %v2661_v36 = vadd.f32 %v4898_v54, %v2648_v24  ;;  %v2647_v12 = vadd.f32 %v2618_v53, %v6937_v23 }
 0xa35   : > { %v2673_v41 = vadd.f32 %v2667_v50, %v2661_v36  ;;  %v2660_v42 = vadd.f32 %v4898_v54, %v2647_v12  ;;  %v5546_v56 = vpop.f32.mrf.mxu0 }
 0xa36   : > { %v2650_v10 = vadd.f32 %v5546_v56, %v6942_v13 }
 0xa37   : > { %2679 = vst.msk [vmem:[%s7054_s16 + $0x8] sm:$0xff] %vm428_vm0, %v2673_v41  ;;  %v2672_v57 = vadd.f32 %v2666_v43, %v2660_v42  ;;  %v2628_v23 = vpop.f32.mrf.mxu0 }
 0xa38   : > { %v2663_v59 = vadd.f32 %v4898_v54, %v2650_v10  ;;  %v2649_v52 = vadd.f32 %v2628_v23, %v6945_v16  ;;  %v2670_v16 = vld [vmem:[%s6080_s10 + $0x20] sm:$0xff] }
 0xa39   : > { %2678 = vst.msk [vmem:[%s7054_s16] sm:$0xff] %vm428_vm0, %v2672_v57  ;;  %v5549_v17 = vpop.f32.mrf.mxu0 }
 0xa3a   : > { %v2675_v60 = vadd.f32 %v2669_v58, %v2663_v59  ;;  %v2662_v61 = vadd.f32 %v4898_v54, %v2649_v52  ;;  %v2652_v13 = vadd.f32 %v5549_v17, %v6950_v8 }
 0xa3b   : > { %v2638_v62 = vpop.f32.mrf.mxu0 }
 0xa3c   : > { %2681 = vst.msk [vmem:[%s7054_s16 + $0x18] sm:$0xff] %vm428_vm0, %v2675_v60  ;;  %v2674_v34 = vadd.f32 %v2668_v44, %v2662_v61  ;;  %v2665_v47 = vadd.f32 %v4898_v54, %v2652_v13  ;;  %v2651_v25 = vadd.f32 %v2638_v62, %v6952_v28 }
 0xa3e   : > { %2680 = vst.msk [vmem:[%s7054_s16 + $0x10] sm:$0xff] %vm428_vm0, %v2674_v34  ;;  %v2677_v48 = vadd.f32 %v2671_v51, %v2665_v47  ;;  %v2664_v49 = vadd.f32 %v4898_v54, %v2651_v25 }
 0xa40   : > { %2684 = vst.msk [vmem:[%s7054_s16 + $0x28] sm:$0x1] %vm2683_vm8, %v2677_v48  ;;  %v2676_v63 = vadd.f32 %v2670_v16, %v2664_v49 }
 0xa42   : > { %2682 = vst.msk [vmem:[%s7054_s16 + $0x20] sm:$0xff] %vm428_vm0, %v2676_v63 }
 0xa9b   : > { %v5585_v8 = vpop.f32.mrf.mxu0 }
 0xa9d   : > { %v3015_v35 = vpop.f32.mrf.mxu0 }
 0xa9e   : > { %5647 = vmatprep.mubr.msk.f32.mxu0 %vm790_vm3, %v3015_v35 }
 0xa9f   : > { %5648 = vmatmul.mubr.msk.f32.vlgmr.msra.gmra.mxu0 %vm790_vm3, %v5585_v8 }
 0xad0   : > { %v5588_v0 = vpop.f32.mrf.mxu0 }
 0xad2   : > { %v3025_v2 = vpop.f32.mrf.mxu0 }
 0xad3   : > { %5650 = vmatprep.mubr.msk.f32.mxu0 %vm790_vm3, %v3025_v2 }
 0xad4   : > { %v5591_v28 = vpop.f32.mrf.mxu0  ;;  %5651 = vmatmul.mubr.msk.f32.gmra.mxu0 %vm790_vm3, %v5588_v0 }
 0xad6   : > { %v3035_v3 = vpop.f32.mrf.mxu0 }
 0xad7   : > { %5653 = vmatprep.mubr.msk.f32.mxu0 %vm790_vm3, %v3035_v3 }
 0xad8   : > { %v5606_v22 = vpop.f32.mrf.mxu0  ;;  %5654 = vmatmul.mubr.msk.f32.gmra.mxu0 %vm790_vm3, %v5591_v28 }
 0xad9   : > { %v3189_v55 = vmul.f32 0.35355338, %v5606_v22 }
 0xada   : > { %v3159_v7 = vpop.f32.mrf.mxu0 }
 0xadb   : > { %v3188_v9 = vmul.f32 0.35355338, %v3159_v7  ;;  %v3197_v11 = vsel %vm916_vm6, %v3189_v55, -inf }
 0xadc   : > { %3198 = vmax.xlane.f32.xlu0 %v3197_v11  ;;  %v5609_v15 = vpop.f32.mrf.mxu0 }
 0xadd   : > { %v3191_v4 = vmul.f32 0.35355338, %v5609_v15  ;;  %v3194_v21 = vsel %vm916_vm6, %v3188_v9, -inf }
 0xade   : > { %3195 = vmax.xlane.f32.xlu1 %v3194_v21  ;;  %v3169_v32 = vpop.f32.mrf.mxu0 }
 0xadf   : > { %v3190_v33 = vmul.f32 0.35355338, %v3169_v32  ;;  %v3203_v14 = vsel %vm916_vm6, %v3191_v4, -inf }
 0xae0   : > { %v5612_v37 = vpop.f32.mrf.mxu0 }
 0xae1   : > { %v3193_v6 = vmul.f32 0.35355338, %v5612_v37  ;;  %v3200_v1 = vsel %vm916_vm6, %v3190_v33, -inf }
 0xae2   : > { %3204 = vmax.xlane.f32.xlu1 %v3203_v14  ;;  %3201 = vmax.xlane.f32.xlu0 %v3200_v1  ;;  %v3179_v19 = vpop.f32.mrf.mxu0 }
 0xae3   : > { %v3192_v39 = vmul.f32 0.35355338, %v3179_v19  ;;  %v3209_v20 = vsel %vm932_vm7, %v3193_v6, -inf }
 0xae5   : > { %v3206_v29 = vsel %vm916_vm6, %v3192_v39, -inf }
 0xae6   : > { %3210 = vmax.xlane.f32.xlu1 %v3209_v20  ;;  %3207 = vmax.xlane.f32.xlu0 %v3206_v29 }
 0xb65   : > { %v3199_v45 = vpop.xlane.xlu0 %3198 }
 0xb66   : > { %v3213_v46 = vsub.f32 %v3189_v55, %v3199_v45 }
 0xb67   : > { %v3196_v26 = vpop.xlane.xlu1 %3195 }
 0xb68   : > { %v3220_v30 = vmul.f32 1.442695, %v3213_v46  ;;  %v3212_v54 = vsub.f32 %v3188_v9, %v3196_v26 }
 0xb6a   : > { %5928 = vpow2.f32 %v3220_v30  ;;  %v3218_v24 = vmul.f32 1.442695, %v3212_v54 }
 0xb6b   : > { %v3205_v50 = vpop.xlane.xlu1 %3204  ;;  %v3202_v53 = vpop.xlane.xlu0 %3201 }
 0xb6c   : > { %5930 = vpow2.f32 %v3218_v24  ;;  %v3215_v36 = vsub.f32 %v3191_v4, %v3205_v50  ;;  %v3214_v12 = vsub.f32 %v3190_v33, %v3202_v53 }
 0xb6e   : > { %v3224_v43 = vmul.f32 1.442695, %v3215_v36  ;;  %v3222_v41 = vmul.f32 1.442695, %v3214_v12 }
 0xb6f   : > { %v3211_v44 = vpop.xlane.xlu1 %3210  ;;  %v3208_v61 = vpop.xlane.xlu0 %3207 }
 0xb70   : > { %5932 = vpow2.f32 %v3224_v43  ;;  %v3217_v17 = vsub.f32 %v3193_v6, %v3211_v44  ;;  %v3216_v13 = vsub.f32 %v3192_v39, %v3208_v61  ;;  %v3399_v6 = vld [vmem:[%s6589_s21 + $0x8] sm:$0xff] }
 0xb71   : > { %5934 = vpow2.f32 %v3222_v41 }
 0xb72   : > { %v3228_v60 = vmul.f32 1.442695, %v3217_v17  ;;  %v3226_v51 = vmul.f32 1.442695, %v3216_v13 }
 0xb74   : > { %5936 = vpow2.f32 %v3228_v60 }
 0xb75   : > { %5938 = vpow2.f32 %v3226_v51 }
 0xb77   : > { %v7089_v42 = vpop.eup %5928 }
 0xb78   : > { %v3233_v56 = vsel %vm916_vm6, %v7089_v42, 0.0 }
 0xb79   : > { %v7093_v10 = vpop.eup %5930  ;;  %3234 = vadd.xlane.f32.xlu1 %v3233_v56 }
 0xb7a   : > { %v3230_v57 = vsel %vm916_vm6, %v7093_v10, 0.0 }
 0xb7b   : > { %3231 = vadd.xlane.f32.xlu0 %v3230_v57 }
 0xb7d   : > { %v7097_v58 = vpop.eup %5932 }
 0xb7e   : > { %v7099_v23 = vpop.eup %5934  ;;  %v3239_v59 = vsel %vm916_vm6, %v7097_v58, 0.0 }
 0xb7f   : > { %3240 = vadd.xlane.f32.xlu1 %v3239_v59  ;;  %v3236_v52 = vsel %vm916_vm6, %v7099_v23, 0.0 }
 0xb80   : > { %3237 = vadd.xlane.f32.xlu0 %v3236_v52 }
 0xb81   : > { %v7115_v62 = vpop.eup %5936 }
 0xb82   : > { %v3245_v34 = vsel %vm932_vm7, %v7115_v62, 0.0  ;;  %v7119_v47 = vpop.eup %5938 }
 0xb83   : > { %v3242_v25 = vsel %vm916_vm6, %v7119_v47, 0.0 }
 0xb90   : > { %3275 = vrot.lane.b32.xlu1 %v6402_v40, %s6014_s30 }
 0xb94   : > { %3273 = vrot.lane.b32.xlu1 %v6394_v27, %s6014_s30 }
 0xb96   : > { %3277 = vrot.lane.b32.xlu0 %v6398_v38, %s6014_s30 }
 0xb98   : > { %3271 = vrot.lane.b32.xlu1 %v6386_v31, %s6014_s30 }
 0xb9c   : > { %3269 = vrot.lane.b32.xlu1 %v6376_v18, %s6014_s30 }
 0xbb5   : > { %3246 = vadd.xlane.f32.xlu0 %v3245_v34 }
 0xbc0   : > { %3243 = vadd.xlane.f32.xlu1 %v3242_v25 }
 0xbcb   : > { %3640 = vrot.lane.b32.xlu0 %v6376_v18, %s6015_s9 }
 0xbcf   : > { %3634 = vrot.lane.b32.xlu0 %v6402_v40, %s6016_s12 }
 0xbd1   : > { %3267 = vrot.lane.b32.xlu1 %v6656_v5, %s6014_s30 }
 0xbd3   : > { %4122 = vrot.lane.b32.xlu0 %v6398_v38, %s6017_s13 }
 0xbd5   : > { %3648 = vrot.lane.b32.xlu1 %v6398_v38, %s6015_s9 }
 0xbd7   : > { %4118 = vrot.lane.b32.xlu0 %v6394_v27, %s6017_s13 }
 0xbd9   : > { %3646 = vrot.lane.b32.xlu1 %v6402_v40, %s6015_s9 }
 0xbdb   : > { %4114 = vrot.lane.b32.xlu0 %v6376_v18, %s6017_s13 }
 0xbdd   : > { %3644 = vrot.lane.b32.xlu1 %v6394_v27, %s6015_s9 }
 0xbdf   : > { %4100 = vrot.lane.b32.xlu0 %v6656_v5, %s6018_s14 }
 0xbe1   : > { %3642 = vrot.lane.b32.xlu1 %v6386_v31, %s6015_s9 }
 0xbe3   : > { %4104 = vrot.lane.b32.xlu0 %v6386_v31, %s6018_s14 }
 0xbe5   : > { %3638 = vrot.lane.b32.xlu1 %v6656_v5, %s6015_s9 }
 0xbe7   : > { %4108 = vrot.lane.b32.xlu0 %v6402_v40, %s6018_s14 }
 0xbe9   : > { %3626 = vrot.lane.b32.xlu1 %v6656_v5, %s6016_s12 }
 0xbed   : > { %3628 = vrot.lane.b32.xlu1 %v6376_v18, %s6016_s12 }
 0xbf1   : > { %3630 = vrot.lane.b32.xlu1 %v6386_v31, %s6016_s12 }
 0xbf5   : > { %3632 = vrot.lane.b32.xlu1 %v6394_v27, %s6016_s12 }
 0xbf9   : > { %3636 = vrot.lane.b32.xlu1 %v6398_v38, %s6016_s12 }
 0xbfd   : > { %4120 = vrot.lane.b32.xlu1 %v6402_v40, %s6017_s13 }
 0xc01   : > { %4116 = vrot.lane.b32.xlu1 %v6386_v31, %s6017_s13 }
 0xc02   : > { %v3235_v16 = vpop.xlane.xlu1 %3234 }
 0xc03   : > { %5940 = vrcp.f32 %v3235_v16 }
 0xc04   : > { %v3232_v48 = vpop.xlane.xlu0 %3231 }
 0xc05   : > { %5942 = vrcp.f32 %v3232_v48  ;;  %4112 = vrot.lane.b32.xlu1 %v6656_v5, %s6017_s13 }
 0xc08   : > { %v3241_v49 = vpop.xlane.xlu1 %3240 }
 0xc09   : > { %5944 = vrcp.f32 %v3241_v49  ;;  %v3238_v63 = vpop.xlane.xlu0 %3237  ;;  %4102 = vrot.lane.b32.xlu1 %v6376_v18, %s6018_s14 }
 0xc0a   : > { %5946 = vrcp.f32 %v3238_v63 }
 0xc0c   : > { %v3276_v8 = vpop.permute.xlu1 %3275 }
 0xc0d   : > { %v3278_v35 = vpop.permute.xlu0 %3277  ;;  %4106 = vrot.lane.b32.xlu1 %v6394_v27, %s6018_s14 }
 0xc0e   : > { %5613 = vmatprep.subr.msk.mxu1 %vm1025_vm5, %v3278_v35 }
 0xc0f   : > { %5614 = vmatpush3.msk.msra.mxu1 %vm1025_vm5, %v3278_v35 }
 0xc10   : > { %v5941_v0 = vpop.eup %5940  ;;  %5615 = vmatprep.subr.mxu1 %v3276_v8  ;;  %v3274_v2 = vpop.permute.xlu1 %3273 }
 0xc11   : > { %v3251_v28 = vmul.f32 %v5941_v0, %v7089_v42  ;;  %5616 = vmatpush3.msra.mxu1 %v3276_v8  ;;  %4110 = vrot.lane.b32.xlu1 %v6398_v38, %s6018_s14 }
 0xc12   : > { %v5943_v3 = vpop.eup %5942  ;;  %5617 = vmatprep.subr.mxu1 %v3274_v2 }
 0xc13   : > { %4937 = vst.msk [vmem:[%s6534_s18 + $0xf8] sm:$0xff] %vm916_vm6, %v3251_v28  ;;  %5618 = vmatpush3.msra.mxu1 %v3274_v2  ;;  %v3249_v22 = vmul.f32 %v5943_v3, %v7093_v10 }
 0xc14   : > { %v3272_v55 = vpop.permute.xlu1 %3271 }
 0xc15   : > { %5619 = vmatprep.subr.mxu1 %v3272_v55  ;;  %4936 = vst.msk [vmem:[%s6534_s18 + $0xf0] sm:$0xff] %vm916_vm6, %v3249_v22  ;;  %5625 = vmatprep.mubr.msk.f32.mxu1 %vm916_vm6, %v3249_v22 }
 0xc16   : > { %v5945_v7 = vpop.eup %5944  ;;  %5620 = vmatpush3.msra.mxu1 %v3272_v55 }
 0xc17   : > { %v5947_v9 = vpop.eup %5946  ;;  %v3255_v11 = vmul.f32 %v5945_v7, %v7097_v58 }
 0xc18   : > { %v3270_v15 = vpop.permute.xlu1 %3269  ;;  %v3253_v4 = vmul.f32 %v5947_v9, %v7099_v23 }
 0xc19   : > { %5621 = vmatprep.subr.mxu1 %v3270_v15  ;;  %4939 = vst.msk [vmem:[%s6534_s18 + $0x108] sm:$0xff] %vm916_vm6, %v3255_v11 }
 0xc1a   : > { %5622 = vmatpush3.msra.mxu1 %v3270_v15  ;;  %4938 = vst.msk [vmem:[%s6534_s18 + $0x100] sm:$0xff] %vm916_vm6, %v3253_v4 }
 0xc3e   : > { %v3247_v21 = vpop.xlane.xlu0 %3246 }
 0xc3f   : > { %5948 = vrcp.f32 %v3247_v21 }
 0xc42   : > { %v3641_v53 = vpop.permute.xlu0 %3640 }
 0xc46   : > { %v3635_v41 = vpop.permute.xlu0 %3634 }
 0xc49   : > { %v3244_v32 = vpop.xlane.xlu1 %3243 }
 0xc4a   : > { %5950 = vrcp.f32 %v3244_v32  ;;  %v4123_v10 = vpop.permute.xlu0 %4122 }
 0xc4c   : > { %v5949_v33 = vpop.eup %5948 }
 0xc4d   : > { %v3268_v37 = vpop.permute.xlu1 %3267  ;;  %v3259_v14 = vmul.f32 %v5949_v33, %v7115_v62 }
 0xc4e   : > { %5623 = vmatprep.subr.mxu1 %v3268_v37  ;;  %v4119_v58 = vpop.permute.xlu0 %4118 }
 0xc4f   : > { %5624 = vmatpush3.msra.mxu1 %v3268_v37  ;;  %4941 = vst.msk [vmem:[%s6534_s18 + $0x118] sm:$0x1] %vm932_vm7, %v3259_v14 }
 0xc50   : > { %5626 = vmatmul.mubr.msk.f32.vlgmr.msra.gmra.mxu1 %vm916_vm6, %v3251_v28  ;;  %5634 = vmatprep.subr.mxu1 %v3399_v6 }
 0xc51   : > { %v3649_v1 = vpop.permute.xlu1 %3648  ;;  %5628 = vmatprep.mubr.msk.f32.mxu1 %vm916_vm6, %v3253_v4  ;;  %5635 = vmatpush3.msra.mxu1 %v3399_v6 }
 0xc52   : > { %5656 = vmatprep.subr.msk.mxu1 %vm790_vm3, %v3649_v1  ;;  %v4115_v59 = vpop.permute.xlu0 %4114 }
 0xc54   : > { %5629 = vmatmul.mubr.msk.f32.gmra.mxu1 %vm916_vm6, %v3255_v11 }
 0xc55   : > { %v3647_v20 = vpop.permute.xlu1 %3646 }
 0xc56   : > { %v4101_v44 = vpop.permute.xlu0 %4100 }
 0xc57   : > { %v5951_v19 = vpop.eup %5950 }
 0xc58   : > { %v3257_v39 = vmul.f32 %v5951_v19, %v7119_v47 }
 0xc59   : > { %v3645_v29 = vpop.permute.xlu1 %3644 }
 0xc5a   : > { %4940 = vst.msk [vmem:[%s6534_s18 + $0x110] sm:$0xff] %vm916_vm6, %v3257_v39  ;;  %5631 = vmatprep.mubr.msk.f32.mxu1 %vm916_vm6, %v3257_v39  ;;  %v4105_v61 = vpop.permute.xlu0 %4104 }
 0xc5b   : > { %5632 = vmatmul.mubr.msk.f32.gmra.mxu1 %vm916_vm6, %v3259_v14 }
 0xc5d   : > { %v3643_v45 = vpop.permute.xlu1 %3642 }
 0xc5e   : > { %v4109_v51 = vpop.permute.xlu0 %4108 }
 0xc61   : > { %v3639_v46 = vpop.permute.xlu1 %3638 }
 0xc65   : > { %v3627_v26 = vpop.permute.xlu1 %3626 }
 0xc69   : > { %v3629_v50 = vpop.permute.xlu1 %3628 }
 0xc6d   : > { %v3631_v12 = vpop.permute.xlu1 %3630 }
 0xc71   : > { %v3633_v56 = vpop.permute.xlu1 %3632 }
 0xc75   : > { %v3637_v57 = vpop.permute.xlu1 %3636 }
 0xc79   : > { %v4121_v23 = vpop.permute.xlu1 %4120 }
 0xc7d   : > { %v4117_v52 = vpop.permute.xlu1 %4116 }
 0xc81   : > { %v4113_v17 = vpop.permute.xlu1 %4112 }
 0xc85   : > { %v4103_v60 = vpop.permute.xlu1 %4102 }
 0xc89   : > { %v4107_v13 = vpop.permute.xlu1 %4106 }
 0xc8d   : > { %v4111_v62 = vpop.permute.xlu1 %4110 }
 0xd10   : > { %v5627_v30 = vpop.f32.mrf.mxu1 }
 0xd12   : > { %v3370_v54 = vpop.f32.mrf.mxu1 }
 0xd13   : > { %5636 = vmatprep.mubr.msk.f32.mxu1 %vm790_vm3, %v3370_v54 }
 0xd14   : > { %v5630_v24 = vpop.f32.mrf.mxu1  ;;  %5637 = vmatmul.mubr.msk.f32.vlgmr.msra.gmra.mxu1 %vm790_vm3, %v5627_v30 }
 0xd15   : > { %5657 = vmatpush3.xpose.msk.msra.mxu1 %vm790_vm3, %v3649_v1 }
 0xd16   : > { %5658 = vmatprep.subr.msk.mxu1 %vm790_vm3, %v3647_v20  ;;  %v3380_v36 = vpop.f32.mrf.mxu1 }
 0xd17   : > { %5639 = vmatprep.mubr.msk.f32.mxu1 %vm790_vm3, %v3380_v36 }
 0xd18   : > { %5640 = vmatmul.mubr.msk.f32.gmra.mxu1 %vm790_vm3, %v5630_v24 }
 0xd19   : > { %5659 = vmatpush3.xpose.msk.msra.mxu1 %vm790_vm3, %v3647_v20 }
 0xd1a   : > { %5660 = vmatprep.subr.msk.mxu1 %vm790_vm3, %v3645_v29 }
 0xd1b   : > { %v5633_v43 = vpop.f32.mrf.mxu1 }
 0xd1d   : > { %5661 = vmatpush3.xpose.msk.msra.mxu1 %vm790_vm3, %v3645_v29  ;;  %v3390_v42 = vpop.f32.mrf.mxu1 }
 0xd1e   : > { %5662 = vmatprep.subr.msk.mxu1 %vm790_vm3, %v3643_v45  ;;  %5642 = vmatprep.mubr.msk.f32.mxu1 %vm790_vm3, %v3390_v42 }
 0xd1f   : > { %5643 = vmatmul.mubr.msk.f32.gmra.mxu1 %vm790_vm3, %v5633_v43 }
 0xd20   : > { %5668 = vmatprep.mubr.msk.f32.mxu1 %vm790_vm3, %v3627_v26 }
 0xd21   : > { %5663 = vmatpush3.xpose.msk.msra.mxu1 %vm790_vm3, %v3643_v45 }
 0xd22   : > { %5664 = vmatprep.subr.msk.mxu1 %vm790_vm3, %v3641_v53 }
 0xd25   : > { %5665 = vmatpush3.xpose.msk.msra.mxu1 %vm790_vm3, %v3641_v53 }
 0xd26   : > { %5666 = vmatprep.subr.msk.mxu1 %vm790_vm3, %v3639_v46 }
 0xd29   : > { %5667 = vmatpush3.xpose.msk.msra.mxu1 %vm790_vm3, %v3639_v46 }
 0xd2a   : > { %5709 = vmatprep.subr.msk.mxu1 %vm790_vm3, %v4123_v10 }
 0xd2c   : > { %5669 = vmatmul.mubr.msk.f32.vlgmr.msra.gmra.mxu1 %vm790_vm3, %v3629_v50 }
 0xd2d   : > { %5671 = vmatprep.mubr.msk.f32.mxu1 %vm790_vm3, %v3631_v12  ;;  %5710 = vmatpush3.xpose.msk.msra.mxu1 %vm790_vm3, %v4123_v10 }
 0xd2e   : > { %5711 = vmatprep.subr.msk.mxu1 %vm790_vm3, %v4121_v23 }
 0xd30   : > { %5672 = vmatmul.mubr.msk.f32.gmra.mxu1 %vm790_vm3, %v3633_v56 }
 0xd31   : > { %5674 = vmatprep.mubr.msk.f32.mxu1 %vm790_vm3, %v3635_v41  ;;  %5712 = vmatpush3.xpose.msk.msra.mxu1 %vm790_vm3, %v4121_v23 }
 0xd32   : > { %5713 = vmatprep.subr.msk.mxu1 %vm790_vm3, %v4119_v58 }
 0xd34   : > { %5675 = vmatmul.mubr.msk.f32.gmra.mxu1 %vm790_vm3, %v3637_v57 }
 0xd35   : > { %5714 = vmatpush3.xpose.msk.msra.mxu1 %vm790_vm3, %v4119_v58  ;;  %5721 = vmatprep.mubr.msk.f32.mxu1 %vm790_vm3, %v4101_v44 }
 0xd36   : > { %5715 = vmatprep.subr.msk.mxu1 %vm790_vm3, %v4117_v52 }
 0xd39   : > { %5716 = vmatpush3.xpose.msk.msra.mxu1 %vm790_vm3, %v4117_v52 }
 0xd3a   : > { %5717 = vmatprep.subr.msk.mxu1 %vm790_vm3, %v4115_v59 }
 0xd3d   : > { %5718 = vmatpush3.xpose.msk.msra.mxu1 %vm790_vm3, %v4115_v59 }
 0xd3e   : > { %5719 = vmatprep.subr.msk.mxu1 %vm790_vm3, %v4113_v17 }
 0xd41   : > { %5720 = vmatpush3.xpose.msk.msra.mxu1 %vm790_vm3, %v4113_v17 }
 0xd44   : > { %5722 = vmatmul.mubr.msk.f32.vlgmr.msra.gmra.mxu1 %vm790_vm3, %v4103_v60 }
 0xd45   : > { %5724 = vmatprep.mubr.msk.f32.mxu1 %vm790_vm3, %v4105_v61 }
 0xd48   : > { %5725 = vmatmul.mubr.msk.f32.gmra.mxu1 %vm790_vm3, %v4107_v13 }
 0xd49   : > { %5727 = vmatprep.mubr.msk.f32.mxu1 %vm790_vm3, %v4109_v51 }
 0xd4c   : > { %5728 = vmatmul.mubr.msk.f32.gmra.mxu1 %vm790_vm3, %v4111_v62 }
 0xdd4   : > { %v7242_v34 = vpop.f32.mrf.mxu1 }
 0xdd6   : > { %v7244_v47 = vpop.f32.mrf.mxu1 }
 0xdd8   : > { %v7246_v25 = vpop.f32.mrf.mxu1 }
 0xdda   : > { %v7248_v16 = vpop.f32.mrf.mxu1 }
 0xddf   : > { %v7250_v48 = vpop.f32.mrf.mxu1 }
 0xde1   : > { %v7252_v49 = vpop.f32.mrf.mxu1 }
 0xdec   : > { %v5670_v63 = vpop.f32.mrf.mxu1 }
 0xded   : > { %v3770_v8 = vmul.f32 0.35355338, %v5670_v63 }
 0xdee   : > { %v3740_v35 = vpop.f32.mrf.mxu1 }
 0xdef   : > { %v3769_v0 = vmul.f32 0.35355338, %v3740_v35  ;;  %v3778_v2 = vsel %vm916_vm6, %v3770_v8, -inf }
 0xdf0   : > { %3779 = vmax.xlane.f32.xlu1 %v3778_v2  ;;  %v5673_v28 = vpop.f32.mrf.mxu1 }
 0xdf1   : > { %v3775_v3 = vsel %vm916_vm6, %v3769_v0, -inf  ;;  %v3772_v9 = vmul.f32 0.35355338, %v5673_v28 }
 0xdf2   : > { %3776 = vmax.xlane.f32.xlu0 %v3775_v3  ;;  %v3750_v22 = vpop.f32.mrf.mxu1 }
 0xdf3   : > { %v3771_v55 = vmul.f32 0.35355338, %v3750_v22  ;;  %v3784_v32 = vsel %vm916_vm6, %v3772_v9, -inf }
 0xdf4   : > { %v5676_v7 = vpop.f32.mrf.mxu1 }
 0xdf5   : > { %v3781_v11 = vsel %vm916_vm6, %v3771_v55, -inf  ;;  %v3774_v21 = vmul.f32 0.35355338, %v5676_v7 }
 0xdf6   : > { %3782 = vmax.xlane.f32.xlu0 %v3781_v11  ;;  %v3760_v15 = vpop.f32.mrf.mxu1 }
 0xdf7   : > { %v3773_v4 = vmul.f32 0.35355338, %v3760_v15  ;;  %v3790_v37 = vsel %vm932_vm7, %v3774_v21, -inf }
 0xdf9   : > { %v3787_v33 = vsel %vm916_vm6, %v3773_v4, -inf }
 0xdfa   : > { %3785 = vmax.xlane.f32.xlu0 %v3784_v32  ;;  %3788 = vmax.xlane.f32.xlu1 %v3787_v33 }
 0xdfe   : > { %3791 = vmax.xlane.f32.xlu0 %v3790_v37 }
 0xe04   : > { %v5723_v63 = vpop.f32.mrf.mxu1 }
 0xe05   : > { %v7298_v28 = vmul.f32 0.35355338, %v5723_v63 }
 0xe0b   : > { %3858 = vrot.lane.b32.xlu1 %v6398_v38, %s6019_s11 }
 0xe0f   : > { %3854 = vrot.lane.b32.xlu1 %v6394_v27, %s6019_s11 }
 0xe13   : > { %3852 = vrot.lane.b32.xlu1 %v6386_v31, %s6019_s11 }
 0xe14   : > { %3856 = vrot.lane.b32.xlu0 %v6402_v40, %s6019_s11 }
 0xe79   : > { %v3780_v6 = vpop.xlane.xlu1 %3779 }
 0xe7a   : > { %v3794_v14 = vsub.f32 %v3770_v8, %v3780_v6  ;;  %v4214_v8 = vpop.f32.mrf.mxu1 }
 0xe7b   : > { %v3777_v1 = vpop.xlane.xlu0 %3776  ;;  %v7304_v7 = vmul.f32 0.35355338, %v4214_v8 }
 0xe7c   : > { %v3801_v19 = vmul.f32 1.442695, %v3794_v14  ;;  %v3793_v39 = vsub.f32 %v3769_v0, %v3777_v1  ;;  %v5726_v35 = vpop.f32.mrf.mxu1 }
 0xe7d   : > { %v4249_v15 = vsel %vm916_vm6, %v7304_v7, -inf }
 0xe7e   : > { %5952 = vpow2.f32 %v3801_v19  ;;  %v3799_v20 = vmul.f32 1.442695, %v3793_v39  ;;  %v4224_v0 = vpop.f32.mrf.mxu1 }
 0xe7f   : > { %v3783_v29 = vpop.xlane.xlu0 %3782  ;;  %v7308_v11 = vmul.f32 0.35355338, %v4224_v0 }
 0xe80   : > { %5954 = vpow2.f32 %v3799_v20  ;;  %v3795_v45 = vsub.f32 %v3771_v55, %v3783_v29  ;;  %v5729_v2 = vpop.f32.mrf.mxu1  ;;  %v4252_v55 = vsel %vm916_vm6, %v7298_v28, -inf }
 0xe81   : > { %v7316_v32 = vmul.f32 0.35355338, %v5729_v2 }
 0xe82   : > { %v3803_v46 = vmul.f32 1.442695, %v3795_v45  ;;  %v4234_v3 = vpop.f32.mrf.mxu1 }
 0xe83   : > { %v3789_v26 = vpop.xlane.xlu1 %3788  ;;  %v3786_v30 = vpop.xlane.xlu0 %3785  ;;  %v7300_v22 = vmul.f32 0.35355338, %v4234_v3  ;;  %v4264_v37 = vsel %vm932_vm7, %v7316_v32, -inf }
 0xe84   : > { %5956 = vpow2.f32 %v3803_v46  ;;  %v3797_v54 = vsub.f32 %v3773_v4, %v3789_v26  ;;  %v3796_v24 = vsub.f32 %v3772_v9, %v3786_v30  ;;  %v7312_v4 = vmul.f32 0.35355338, %v5726_v35  ;;  %v3980_v30 = vld [vmem:[%s6589_s21 + $0x10] sm:$0xff] }
 0xe85   : > { %v4261_v9 = vsel %vm916_vm6, %v7300_v22, -inf }
 0xe86   : > { %v3807_v50 = vmul.f32 1.442695, %v3797_v54  ;;  %v3805_v53 = vmul.f32 1.442695, %v3796_v24  ;;  %v4258_v33 = vsel %vm916_vm6, %v7312_v4, -inf }
 0xe87   : > { %v3859_v36 = vpop.permute.xlu1 %3858  ;;  %v3792_v12 = vpop.xlane.xlu0 %3791 }
 0xe88   : > { %5958 = vpow2.f32 %v3807_v50  ;;  %v3798_v43 = vsub.f32 %v3774_v21, %v3792_v12  ;;  %5677 = vmatprep.subr.msk.mxu0 %vm1025_vm5, %v3859_v36  ;;  %v4255_v21 = vsel %vm916_vm6, %v7308_v11, -inf }
 0xe89   : > { %5960 = vpow2.f32 %v3805_v53  ;;  %5678 = vmatpush3.msk.msra.mxu0 %vm1025_vm5, %v3859_v36 }
 0xe8a   : > { %v3809_v41 = vmul.f32 1.442695, %v3798_v43 }
 0xe8b   : > { %v7270_v42 = vpop.eup %5952  ;;  %v3855_v56 = vpop.permute.xlu1 %3854 }
 0xe8c   : > { %v3857_v10 = vpop.permute.xlu0 %3856  ;;  %5962 = vpow2.f32 %v3809_v41  ;;  %v3814_v57 = vsel %vm916_vm6, %v7270_v42, 0.0 }
 0xe8d   : > { %5679 = vmatprep.subr.mxu0 %v3857_v10  ;;  %v7274_v58 = vpop.eup %5954  ;;  %3815 = vadd.xlane.f32.xlu0 %v3814_v57 }
 0xe8e   : > { %5680 = vmatpush3.msra.mxu0 %v3857_v10  ;;  %v3811_v23 = vsel %vm916_vm6, %v7274_v58, 0.0 }
 0xe8f   : > { %5681 = vmatprep.subr.mxu0 %v3855_v56  ;;  %v3853_v59 = vpop.permute.xlu1 %3852  ;;  %3812 = vadd.xlane.f32.xlu1 %v3811_v23 }
 0xe90   : > { %5682 = vmatpush3.msra.mxu0 %v3855_v56 }
 0xe91   : > { %5683 = vmatprep.subr.mxu0 %v3853_v59  ;;  %v7278_v52 = vpop.eup %5956 }
 0xe92   : > { %5684 = vmatpush3.msra.mxu0 %v3853_v59  ;;  %v3817_v44 = vsel %vm916_vm6, %v7278_v52, 0.0 }
 0xe93   : > { %3818 = vadd.xlane.f32.xlu1 %v3817_v44 }
 0xe95   : > { %v7282_v17 = vpop.eup %5958 }
 0xe96   : > { %v7284_v60 = vpop.eup %5960  ;;  %v3823_v61 = vsel %vm916_vm6, %v7282_v17, 0.0 }
 0xe97   : > { %3824 = vadd.xlane.f32.xlu1 %v3823_v61  ;;  %v3820_v13 = vsel %vm916_vm6, %v7284_v60, 0.0 }
 0xe98   : > { %3821 = vadd.xlane.f32.xlu0 %v3820_v13 }
 0xe99   : > { %v7290_v51 = vpop.eup %5962 }
 0xe9a   : > { %v3826_v62 = vsel %vm932_vm7, %v7290_v51, 0.0 }
 0xe9c   : > { %3827 = vadd.xlane.f32.xlu0 %v3826_v62 }
 0xea8   : > { %3848 = vrot.lane.b32.xlu1 %v6656_v5, %s6019_s11 }
 0xeb2   : > { %3850 = vrot.lane.b32.xlu0 %v6376_v18, %s6019_s11 }
 0xecc   : > { %4253 = vmax.xlane.f32.xlu1 %v4252_v55 }
 0xed0   : > { %4262 = vmax.xlane.f32.xlu1 %v4261_v9 }
 0xed1   : > { %4250 = vmax.xlane.f32.xlu0 %v4249_v15 }
 0xed5   : > { %4256 = vmax.xlane.f32.xlu0 %v4255_v21  ;;  %v7384_v21 = vpop.f32.mrf.mxu0 }
 0xed9   : > { %4259 = vmax.xlane.f32.xlu0 %v4258_v33 }
 0xedd   : > { %4265 = vmax.xlane.f32.xlu0 %v4264_v37 }
 0xee1   : > { %4332 = vrot.lane.b32.xlu1 %v6398_v38, %s6020_s22 }
 0xee5   : > { %4328 = vrot.lane.b32.xlu1 %v6394_v27, %s6020_s22 }
 0xee9   : > { %4326 = vrot.lane.b32.xlu1 %v6386_v31, %s6020_s22 }
 0xef3   : > { %4330 = vrot.lane.b32.xlu0 %v6402_v40, %s6020_s22 }
 0xf16   : > { %v3816_v6 = vpop.xlane.xlu0 %3815 }
 0xf17   : > { %5964 = vrcp.f32 %v3816_v6 }
 0xf18   : > { %v3813_v14 = vpop.xlane.xlu1 %3812 }
 0xf19   : > { %5966 = vrcp.f32 %v3813_v14 }
 0xf1c   : > { %v3819_v1 = vpop.xlane.xlu1 %3818 }
 0xf1d   : > { %5968 = vrcp.f32 %v3819_v1 }
 0xf20   : > { %v3825_v19 = vpop.xlane.xlu1 %3824 }
 0xf21   : > { %5970 = vrcp.f32 %v3825_v19  ;;  %v3822_v38 = vpop.xlane.xlu0 %3821 }
 0xf22   : > { %5972 = vrcp.f32 %v3822_v38 }
 0xf24   : > { %v5965_v27 = vpop.eup %5964  ;;  %v3849_v46 = vpop.permute.xlu1 %3848 }
 0xf25   : > { %v3832_v39 = vmul.f32 %v5965_v27, %v7270_v42  ;;  %v3828_v31 = vpop.xlane.xlu0 %3827 }
 0xf26   : > { %v5967_v20 = vpop.eup %5966  ;;  %5974 = vrcp.f32 %v3828_v31 }
 0xf27   : > { %4974 = vst.msk [vmem:[%s6534_s18 + $0x128] sm:$0xff] %vm916_vm6, %v3832_v39  ;;  %v3830_v40 = vmul.f32 %v5967_v20, %v7274_v58 }
 0xf29   : > { %v3851_v29 = vpop.permute.xlu0 %3850  ;;  %4973 = vst.msk [vmem:[%s6534_s18 + $0x120] sm:$0xff] %vm916_vm6, %v3830_v40  ;;  %5689 = vmatprep.mubr.msk.f32.mxu0 %vm916_vm6, %v3830_v40 }
 0xf2a   : > { %v5969_v45 = vpop.eup %5968  ;;  %5685 = vmatprep.subr.mxu0 %v3851_v29 }
 0xf2b   : > { %5686 = vmatpush3.msra.mxu0 %v3851_v29  ;;  %v3834_v26 = vmul.f32 %v5969_v45, %v7278_v52 }
 0xf2c   : > { %5687 = vmatprep.subr.mxu0 %v3849_v46 }
 0xf2d   : > { %5688 = vmatpush3.msra.mxu0 %v3849_v46  ;;  %4975 = vst.msk [vmem:[%s6534_s18 + $0x130] sm:$0xff] %vm916_vm6, %v3834_v26 }
 0xf2e   : > { %v5971_v54 = vpop.eup %5970  ;;  %5690 = vmatmul.mubr.msk.f32.vlgmr.msra.gmra.mxu0 %vm916_vm6, %v3832_v39  ;;  %5698 = vmatprep.subr.mxu0 %v3980_v30 }
 0xf2f   : > { %v5973_v24 = vpop.eup %5972  ;;  %5692 = vmatprep.mubr.msk.f32.mxu0 %vm916_vm6, %v3834_v26  ;;  %v3838_v50 = vmul.f32 %v5971_v54, %v7282_v17  ;;  %5699 = vmatpush3.msra.mxu0 %v3980_v30 }
 0xf30   : > { %v3836_v53 = vmul.f32 %v5973_v24, %v7284_v60 }
 0xf31   : > { %4977 = vst.msk [vmem:[%s6534_s18 + $0x140] sm:$0xff] %vm916_vm6, %v3838_v50 }
 0xf32   : > { %4976 = vst.msk [vmem:[%s6534_s18 + $0x138] sm:$0xff] %vm916_vm6, %v3836_v53  ;;  %5693 = vmatmul.mubr.msk.f32.gmra.mxu0 %vm916_vm6, %v3836_v53 }
 0xf33   : > { %v5975_v36 = vpop.eup %5974  ;;  %5695 = vmatprep.mubr.msk.f32.mxu0 %vm916_vm6, %v3838_v50 }
 0xf34   : > { %v3840_v12 = vmul.f32 %v5975_v36, %v7290_v51 }
 0xf36   : > { %4978 = vst.msk [vmem:[%s6534_s18 + $0x148] sm:$0x1] %vm932_vm7, %v3840_v12  ;;  %5696 = vmatmul.mubr.msk.f32.gmra.mxu0 %vm916_vm6, %v3840_v12 }
 0xf55   : > { %v4254_v43 = vpop.xlane.xlu1 %4253 }
 0xf56   : > { %v4268_v41 = vsub.f32 %v7298_v28, %v4254_v43 }
 0xf58   : > { %v4275_v42 = vmul.f32 1.442695, %v4268_v41 }
 0xf59   : > { %v4263_v56 = vpop.xlane.xlu1 %4262 }
 0xf5a   : > { %5976 = vpow2.f32 %v4275_v42  ;;  %v4251_v10 = vpop.xlane.xlu0 %4250  ;;  %v4271_v58 = vsub.f32 %v7300_v22, %v4263_v56 }
 0xf5b   : > { %v4267_v57 = vsub.f32 %v7304_v7, %v4251_v10 }
 0xf5c   : > { %v4281_v17 = vmul.f32 1.442695, %v4271_v58 }
 0xf5d   : > { %v4273_v23 = vmul.f32 1.442695, %v4267_v57  ;;  %v4333_v59 = vpop.permute.xlu1 %4332 }
 0xf5e   : > { %v4257_v52 = vpop.xlane.xlu0 %4256  ;;  %5730 = vmatprep.subr.msk.mxu0 %vm1025_vm5, %v4333_v59 }
 0xf5f   : > { %5978 = vpow2.f32 %v4273_v23  ;;  %v4269_v44 = vsub.f32 %v7308_v11, %v4257_v52  ;;  %v3603_v52 = vadd.f32 %v7384_v21, %v7242_v34 }
 0xf61   : > { %v4277_v60 = vmul.f32 1.442695, %v4269_v44  ;;  %v4329_v1 = vpop.permute.xlu1 %4328 }
 0xf62   : > { %v4260_v61 = vpop.xlane.xlu0 %4259 }
 0xf63   : > { %5980 = vpow2.f32 %v4277_v60  ;;  %v4270_v13 = vsub.f32 %v7312_v4, %v4260_v61 }
 0xf64   : > { %5982 = vpow2.f32 %v4281_v17 }
 0xf65   : > { %v4279_v51 = vmul.f32 1.442695, %v4270_v13  ;;  %v4327_v39 = vpop.permute.xlu1 %4326 }
 0xf66   : > { %v4266_v62 = vpop.xlane.xlu0 %4265 }
 0xf67   : > { %v5977_v63 = vpop.eup %5976  ;;  %5984 = vpow2.f32 %v4279_v51  ;;  %v4272_v8 = vsub.f32 %v7316_v32, %v4266_v62  ;;  %v7386_v32 = vpop.f32.mrf.mxu0 }
 0xf68   : > { %v4288_v35 = vsel %vm916_vm6, %v5977_v63, 0.0  ;;  %v3598_v17 = vadd.f32 %v7386_v32, %v7244_v47 }
 0xf69   : > { %v4283_v0 = vmul.f32 1.442695, %v4272_v8  ;;  %4289 = vadd.xlane.f32.xlu0 %v4288_v35  ;;  %v7388_v33 = vpop.f32.mrf.mxu0 }
 0xf6a   : > { %v4331_v19 = vpop.permute.xlu0 %4330  ;;  %v3613_v13 = vadd.f32 %v7388_v33, %v7246_v25 }
 0xf6b   : > { %5986 = vpow2.f32 %v4283_v0  ;;  %v7390_v37 = vpop.f32.mrf.mxu0 }
 0xf6c   : > { %v5979_v2 = vpop.eup %5978 }
 0xf6d   : > { %v4285_v28 = vsel %vm916_vm6, %v5979_v2, 0.0  ;;  %v7392_v6 = vpop.f32.mrf.mxu0 }
 0xf6e   : > { %4286 = vadd.xlane.f32.xlu1 %v4285_v28  ;;  %v3623_v0 = vadd.f32 %v7392_v6, %v7250_v48 }
 0xf6f   : > { %v7394_v14 = vpop.f32.mrf.mxu0 }
 0xf70   : > { %v7364_v3 = vpop.eup %5980  ;;  %v3618_v47 = vadd.f32 %v7394_v14, %v7252_v49 }
 0xf71   : > { %v4291_v22 = vsel %vm916_vm6, %v7364_v3, 0.0  ;;  %v7368_v55 = vpop.eup %5982 }
 0xf72   : > { %4292 = vadd.xlane.f32.xlu1 %v4291_v22  ;;  %v4297_v9 = vsel %vm916_vm6, %v7368_v55, 0.0 }
 0xf74   : > { %v7370_v7 = vpop.eup %5984 }
 0xf75   : > { %v4294_v11 = vsel %vm916_vm6, %v7370_v7, 0.0 }
 0xf76   : > { %4298 = vadd.xlane.f32.xlu1 %v4297_v9  ;;  %4295 = vadd.xlane.f32.xlu0 %v4294_v11  ;;  %v5023_v11 = vld [vmem:[%s7044_s25] ss:$0 sm:$0xff] }
 0xf78   : > { %v7376_v15 = vpop.eup %5986 }
 0xf79   : > { %v4300_v4 = vsel %vm932_vm7, %v7376_v15, 0.0 }
 0xf7a   : > { %4301 = vadd.xlane.f32.xlu0 %v4300_v4  ;;  %v4588_v4 = vld [vmem:[%s6080_s10 + $0x31] sm:$0xff] }
 0xf87   : > { %4322 = vrot.lane.b32.xlu1 %v6656_v5, %s6020_s22 }
 0xf90   : > { %4324 = vrot.lane.b32.xlu0 %v6376_v18, %s6020_s22 }
 0xfee   : > { %v5691_v38 = vpop.f32.mrf.mxu0 }
 0xff0   : > { %v3951_v27 = vpop.f32.mrf.mxu0 }
 0xff1   : > { %5700 = vmatprep.mubr.msk.f32.mxu0 %vm790_vm3, %v3951_v27  ;;  %v4590_v27 = vld [vmem:[%s6080_s10 + $0x41] sm:$0xff] }
 0xff2   : > { %v5694_v5 = vpop.f32.mrf.mxu0  ;;  %5701 = vmatmul.mubr.msk.f32.vlgmr.msra.gmra.mxu0 %vm790_vm3, %v5691_v38  ;;  %v4290_v18 = vpop.xlane.xlu0 %4289 }
 0xff3   : > { %5731 = vmatpush3.msk.msra.mxu0 %vm1025_vm5, %v4333_v59  ;;  %5988 = vrcp.f32 %v4290_v18  ;;  %v4454_v59 = vld [vmem:[%s6589_s21 + $0x18] sm:$0xff] }
 0xff4   : > { %5732 = vmatprep.subr.mxu0 %v4331_v19  ;;  %v3961_v31 = vpop.f32.mrf.mxu0 }
 0xff5   : > { %5733 = vmatpush3.msra.mxu0 %v4331_v19  ;;  %5703 = vmatprep.mubr.msk.f32.mxu0 %vm790_vm3, %v3961_v31  ;;  %v4589_v31 = vld [vmem:[%s6080_s10 + $0x39] sm:$0xff] }
 0xff6   : > { %5734 = vmatprep.subr.mxu0 %v4329_v1  ;;  %v5697_v20 = vpop.f32.mrf.mxu0  ;;  %5704 = vmatmul.mubr.msk.f32.gmra.mxu0 %vm790_vm3, %v5694_v5 }
 0xff7   : > { %5735 = vmatpush3.msra.mxu0 %v4329_v1  ;;  %v4287_v40 = vpop.xlane.xlu1 %4286 }
 0xff8   : > { %5990 = vrcp.f32 %v4287_v40  ;;  %5736 = vmatprep.subr.mxu0 %v4327_v39  ;;  %v3971_v29 = vpop.f32.mrf.mxu0 }
 0xff9   : > { %5737 = vmatpush3.msra.mxu0 %v4327_v39  ;;  %5706 = vmatprep.mubr.msk.f32.mxu0 %vm790_vm3, %v3971_v29 }
 0xffa   : > { %5707 = vmatmul.mubr.msk.f32.gmra.mxu0 %vm790_vm3, %v5697_v20 }
 0xffb   : > { %v4293_v45 = vpop.xlane.xlu1 %4292 }
 0xffc   : > { %5992 = vrcp.f32 %v4293_v45 }
 0xfff   : > { %v4299_v46 = vpop.xlane.xlu1 %4298  ;;  %v4296_v26 = vpop.xlane.xlu0 %4295 }
0x1000   : > { %v5989_v30 = vpop.eup %5988  ;;  %5994 = vrcp.f32 %v4299_v46  ;;  %v4592_v46 = vld [vmem:[%s6080_s10 + $0x51] sm:$0x1] }
0x1001   : > { %v4306_v54 = vmul.f32 %v5989_v30, %v5977_v63  ;;  %5996 = vrcp.f32 %v4296_v26  ;;  %v3608_v63 = vadd.f32 %v7390_v37, %v7248_v16  ;;  %v4587_v37 = vld [vmem:[%s6080_s10 + $0x29] sm:$0xff] }
0x1003   : > { %5005 = vst.msk [vmem:[%s6534_s18 + $0x158] sm:$0xff] %vm916_vm6, %v4306_v54  ;;  %v4302_v24 = vpop.xlane.xlu0 %4301  ;;  %v4323_v43 = vpop.permute.xlu1 %4322 }
0x1004   : > { %5998 = vrcp.f32 %v4302_v24 }
0x1005   : > { %v5991_v50 = vpop.eup %5990 }
0x1006   : > { %v4304_v53 = vmul.f32 %v5991_v50, %v5979_v2  ;;  %v4591_v50 = vld [vmem:[%s6080_s10 + $0x49] sm:$0xff] }
0x1007   : > { %v4325_v36 = vpop.permute.xlu0 %4324 }
0x1008   : > { %5738 = vmatprep.subr.mxu0 %v4325_v36  ;;  %5004 = vst.msk [vmem:[%s6534_s18 + $0x150] sm:$0xff] %vm916_vm6, %v4304_v53  ;;  %5742 = vmatprep.mubr.msk.f32.mxu0 %vm916_vm6, %v4304_v53 }
0x1009   : > { %v5993_v12 = vpop.eup %5992  ;;  %5739 = vmatpush3.msra.mxu0 %v4325_v36 }
0x100a   : > { %5740 = vmatprep.subr.mxu0 %v4323_v43  ;;  %v4308_v41 = vmul.f32 %v5993_v12, %v7364_v3 }
0x100b   : > { %5741 = vmatpush3.msra.mxu0 %v4323_v43 }
0x100c   : > { %5743 = vmatmul.mubr.msk.f32.vlgmr.msra.gmra.mxu0 %vm916_vm6, %v4306_v54  ;;  %5006 = vst.msk [vmem:[%s6534_s18 + $0x160] sm:$0xff] %vm916_vm6, %v4308_v41  ;;  %5751 = vmatprep.subr.mxu0 %v4454_v59 }
0x100d   : > { %v5995_v42 = vpop.eup %5994  ;;  %5745 = vmatprep.mubr.msk.f32.mxu0 %vm916_vm6, %v4308_v41  ;;  %5752 = vmatpush3.msra.mxu0 %v4454_v59 }
0x100e   : > { %v5997_v56 = vpop.eup %5996  ;;  %v4312_v10 = vmul.f32 %v5995_v42, %v7368_v55 }
0x100f   : > { %v4310_v57 = vmul.f32 %v5997_v56, %v7370_v7 }
0x1010   : > { %5008 = vst.msk [vmem:[%s6534_s18 + $0x170] sm:$0xff] %vm916_vm6, %v4312_v10 }
0x1011   : > { %v5999_v58 = vpop.eup %5998  ;;  %5007 = vst.msk [vmem:[%s6534_s18 + $0x168] sm:$0xff] %vm916_vm6, %v4310_v57  ;;  %5746 = vmatmul.mubr.msk.f32.gmra.mxu0 %vm916_vm6, %v4310_v57 }
0x1012   : > { %5748 = vmatprep.mubr.msk.f32.mxu0 %vm916_vm6, %v4312_v10  ;;  %v4314_v23 = vmul.f32 %v5999_v58, %v7376_v15 }
0x1014   : > { %5009 = vst.msk [vmem:[%s6534_s18 + $0x178] sm:$0x1] %vm932_vm7, %v4314_v23 }
0x1015   : > { %5749 = vmatmul.mubr.msk.f32.gmra.mxu0 %vm916_vm6, %v4314_v23 }
0x10b2   : > { %v5702_v44 = vpop.f32.mrf.mxu0 }
0x10b3   : > { %v4095_v60 = vadd.f32 %v5702_v44, %v3603_v52 }
0x10b4   : > { %v4065_v61 = vpop.f32.mrf.mxu0 }
0x10b5   : > { %v4094_v51 = vadd.f32 %v4065_v61, %v3598_v17 }
0x10b6   : > { %v5705_v62 = vpop.f32.mrf.mxu0 }
0x10b7   : > { %v4097_v8 = vadd.f32 %v5705_v62, %v3613_v13 }
0x10b8   : > { %v4075_v35 = vpop.f32.mrf.mxu0 }
0x10b9   : > { %v4096_v34 = vadd.f32 %v4075_v35, %v3608_v63 }
0x10ba   : > { %v5708_v2 = vpop.f32.mrf.mxu0 }
0x10bb   : > { %v4099_v28 = vadd.f32 %v5708_v2, %v3623_v0 }
0x10bc   : > { %v4085_v3 = vpop.f32.mrf.mxu0 }
0x10bd   : > { %v4098_v22 = vadd.f32 %v4085_v3, %v3618_v47 }
0x10cc   : > { %v5744_v25 = vpop.f32.mrf.mxu0 }
0x10ce   : > { %v4425_v55 = vpop.f32.mrf.mxu0 }
0x10cf   : > { %5753 = vmatprep.mubr.msk.f32.mxu0 %vm790_vm3, %v4425_v55 }
0x10d0   : > { %5754 = vmatmul.mubr.msk.f32.vlgmr.msra.gmra.mxu0 %vm790_vm3, %v5744_v25 }
0x10d1   : > { %v5747_v16 = vpop.f32.mrf.mxu0 }
0x10d3   : > { %v4435_v7 = vpop.f32.mrf.mxu0 }
0x10d4   : > { %5756 = vmatprep.mubr.msk.f32.mxu0 %vm790_vm3, %v4435_v7 }
0x10d5   : > { %v5750_v48 = vpop.f32.mrf.mxu0  ;;  %5757 = vmatmul.mubr.msk.f32.gmra.mxu0 %vm790_vm3, %v5747_v16 }
0x10d7   : > { %v4445_v49 = vpop.f32.mrf.mxu0 }
0x10d8   : > { %5759 = vmatprep.mubr.msk.f32.mxu0 %vm790_vm3, %v4445_v49 }
0x10d9   : > { %5760 = vmatmul.mubr.msk.f32.gmra.mxu0 %vm790_vm3, %v5750_v48 }
0x1190   : > { %v5755_v9 = vpop.f32.mrf.mxu0 }
0x1191   : > { %v4569_v15 = vadd.f32 %v5755_v9, %v4095_v60 }
0x1192   : > { %v4539_v21 = vpop.f32.mrf.mxu0 }
0x1193   : > { %v4582_v32 = vadd.f32 %v5023_v11, %v4569_v15  ;;  %v4568_v33 = vadd.f32 %v4539_v21, %v4094_v51 }
0x1195   : > { %v4594_v6 = vadd.f32 %v4588_v4, %v4582_v32  ;;  %v4581_v14 = vadd.f32 %v5023_v11, %v4568_v33  ;;  %v5758_v1 = vpop.f32.mrf.mxu0 }
0x1196   : > { %v4571_v19 = vadd.f32 %v5758_v1, %v4097_v8 }
0x1197   : > { %5025 = vst.msk [vmem:[%s7054_s16 + $0x38] sm:$0xff] %vm428_vm0, %v4594_v6  ;;  %v4593_v38 = vadd.f32 %v4587_v37, %v4581_v14  ;;  %v4549_v5 = vpop.f32.mrf.mxu0 }
0x1198   : > { %v4584_v18 = vadd.f32 %v5023_v11, %v4571_v19  ;;  %v4570_v39 = vadd.f32 %v4549_v5, %v4096_v34 }
0x1199   : > { %5024 = vst.msk [vmem:[%s7054_s16 + $0x30] sm:$0xff] %vm428_vm0, %v4593_v38  ;;  %v5761_v20 = vpop.f32.mrf.mxu0 }
0x119a   : > { %v4596_v40 = vadd.f32 %v4590_v27, %v4584_v18  ;;  %v4583_v29 = vadd.f32 %v5023_v11, %v4570_v39  ;;  %v4573_v45 = vadd.f32 %v5761_v20, %v4099_v28 }
0x119b   : > { %v4559_v26 = vpop.f32.mrf.mxu0 }
0x119c   : > { %5027 = vst.msk [vmem:[%s7054_s16 + $0x48] sm:$0xff] %vm428_vm0, %v4596_v40  ;;  %v4595_v30 = vadd.f32 %v4589_v31, %v4583_v29  ;;  %v4586_v54 = vadd.f32 %v5023_v11, %v4573_v45  ;;  %v4572_v24 = vadd.f32 %v4559_v26, %v4098_v22 }
0x119e   : > { %5026 = vst.msk [vmem:[%s7054_s16 + $0x40] sm:$0xff] %vm428_vm0, %v4595_v30  ;;  %v4598_v53 = vadd.f32 %v4592_v46, %v4586_v54  ;;  %v4585_v36 = vadd.f32 %v5023_v11, %v4572_v24 }
0x11a0   : > { %5029 = vst.msk [vmem:[%s7054_s16 + $0x58] sm:$0x1] %vm2683_vm8, %v4598_v53  ;;  %v4597_v12 = vadd.f32 %v4591_v50, %v4585_v36 }
0x11a2   : > { %5028 = vst.msk [vmem:[%s7054_s16 + $0x50] sm:$0xff] %vm428_vm0, %v4597_v12 }
0x11a3 PF: > { %s19_s27 = sadd.s32 1, %s6006_s27  }
0x11a4   : > { %p16_p4 = scmp.ge.s32.totalorder %s19_s27, 4  }
0x11a6   :  { %18 = sbr.rel (!%p16_p4) target bundleno = 1 (0x1), region = 116 }

</bundles_post_ra>
